<compile_context>
chip_gen: v7x
topology: tpu7x:2x2x1
jax: 0.10.0
libtpu: 0.0.40
codegen_flags: <defaults>
</compile_context>

<pallas_src>
import jax
import jax.numpy as jnp
from jax.experimental import pallas as pl
from jax.experimental.pallas import tpu as pltpu


# --------------------------- fused forward kernel ---------------------------

def _fused_forward_kernel(p_ref, wc_ref, bc_ref, wqk_ref, wv_ref,
                          wproj_ref, bproj_ref,
                          wenc_ref, senc_ref, benc_ref,
                          wh_ref, bh_ref, wout_ref, bout_ref,
                          o_ref, pooled_ref, acc_ref):
    """Whole forward pass; grid streams the 2048-wide encoder reduction.

    step 0 prologue : conv stem + self-attention + residual + global pool
                      -> pooled_ref (VMEM scratch), zero acc_ref
    every step      : h0 block = relu(pooled @ w_proj[:,blk] + b_proj[blk])
                      acc += h0 @ w_enc[blk,:]        (int8 weights -> bf16 MXU)
    last step       : dequant scale + b_enc, relu, EDL head, softplus evidence
    """
    k = pl.program_id(0)
    B = o_ref.shape[0]

    # ---------------- encoder prologue (runs once, at k == 0) ---------------
    @pl.when(k == 0)
    def _():
        C = wc_ref.shape[1]
        BN = p_ref.shape[0]
        N = BN // B

        # conv stem as matmul + bias + relu  -> [B*N, C]
        x2 = jnp.dot(p_ref[...], wc_ref[...],
                     preferred_element_type=jnp.float32) + bc_ref[...]
        x2 = jnp.maximum(x2, 0.0)

        # channel projections: Wqk = Wq @ Wk^T, wv already scaled by gamma
        t2 = jnp.dot(x2, wqk_ref[...], preferred_element_type=jnp.float32)
        v2 = jnp.dot(x2, wv_ref[...], preferred_element_type=jnp.float32)

        x = x2.reshape(B, N, C)
        t = t2.reshape(B, N, C)
        v = v2.reshape(B, N, C)

        # attention scores s = (x @ Wqk) @ x^T, batched, no explicit transpose
        s = jnp.einsum('bnd,bmd->bnm', t, x,
                       preferred_element_type=jnp.float32)
        s = s - jnp.max(s, axis=-1, keepdims=True)
        e = jnp.exp(s)
        denom = jnp.sum(e, axis=-1, keepdims=True)                 # [B, N, 1]

        # unnormalized attention, cheap EUP reciprocal scaling of the result
        attn = jnp.einsum('bnm,bmd->bnd', e, v,
                          preferred_element_type=jnp.float32)
        y = attn * pl.reciprocal(denom, approx=True) + x           # gamma in wv

        pooled_ref[...] = jnp.mean(y, axis=1)                      # global pool
        acc_ref[...] = jnp.zeros_like(acc_ref)

    # --------------- streamed reduction over the 2048 hidden dim ------------
    # cast the tiny [B,32] activation to bf16 (native bf16 MXU pass); the
    # streamed w_proj block is already bf16.
    h0 = jnp.dot(pooled_ref[...].astype(jnp.bfloat16), wproj_ref[...],
                 preferred_element_type=jnp.float32) + bproj_ref[...]
    h0 = jnp.maximum(h0, 0.0)                                      # [B, tk]

    # int8 w_enc block -> bf16 for the MXU; f32 accumulation in VMEM.
    acc_ref[...] += jnp.dot(h0.astype(jnp.bfloat16),
                            wenc_ref[...].astype(jnp.bfloat16),
                            preferred_element_type=jnp.float32)

    # --------------------------- epilogue (k == last) ------------------------
    @pl.when(k == pl.num_programs(0) - 1)
    def _():
        # per-output-column int8 dequant scale commutes with the K reduction
        h1 = jnp.maximum(acc_ref[...] * senc_ref[...] + benc_ref[...], 0.0)
        h2 = jnp.dot(h1.astype(jnp.bfloat16), wh_ref[...],
                     preferred_element_type=jnp.float32) + bh_ref[...]
        h2 = jnp.maximum(h2, 0.0)                                  # [B, 50]
        # TODO(synk): Dropout(0.5) between the two head layers is identity at
        # inference; a PRNG-based mask kernel would be needed for training.
        logits = jnp.dot(h2, wout_ref[...],
                         preferred_element_type=jnp.float32) + bout_ref[...]
        o_ref[...] = jnp.logaddexp(logits, 0.0).astype(o_ref.dtype)  # softplus


def pallas_combined_forward(patches_2d, batch, w_conv, b_conv_2d, wqk, wv_g,
                            w_proj, b_proj_2d, w_enc_q, s_enc, b_enc_2d,
                            w_h, b_h_2d, w_out, b_out_2d, tk=1024):
    BN, Kp = patches_2d.shape
    C = w_conv.shape[1]
    D = w_enc_q.shape[0]              # 2048
    H = w_h.shape[1]                  # 50
    O = w_out.shape[1]                # 7
    assert D % tk == 0, (D, tk)       # no silent fallback
    grid = (D // tk,)
    return pl.pallas_call(
        _fused_forward_kernel,
        out_shape=jax.ShapeDtypeStruct((batch, O), jnp.float32),
        grid_spec=pltpu.PrefetchScalarGridSpec(
            num_scalar_prefetch=0,
            grid=grid,
            in_specs=[
                # encoder inputs (constant index map -> fetched once)
                pl.BlockSpec((BN, Kp), lambda k: (0, 0)),   # im2col patches
                pl.BlockSpec((Kp, C), lambda k: (0, 0)),    # conv weight
                pl.BlockSpec((1, C), lambda k: (0, 0)),     # conv bias
                pl.BlockSpec((C, C), lambda k: (0, 0)),     # Wq @ Wk^T
                pl.BlockSpec((C, C), lambda k: (0, 0)),     # gamma * Wv
                # streamed projection / encoder weights
                pl.BlockSpec((C, tk), lambda k: (0, k)),    # w_proj (bf16)
                pl.BlockSpec((1, tk), lambda k: (0, k)),    # b_proj
                pl.BlockSpec((tk, D), lambda k: (k, 0)),    # w_enc (int8)
                pl.BlockSpec((1, D), lambda k: (0, 0)),     # w_enc dequant scale
                pl.BlockSpec((1, D), lambda k: (0, 0)),     # b_enc
                # EDL head (resident, fetched once)
                pl.BlockSpec((D, H), lambda k: (0, 0)),     # w_h (bf16)
                pl.BlockSpec((1, H), lambda k: (0, 0)),     # b_h
                pl.BlockSpec((H, O), lambda k: (0, 0)),     # w_out
                pl.BlockSpec((1, O), lambda k: (0, 0)),     # b_out
            ],
            out_specs=pl.BlockSpec((batch, O), lambda k: (0, 0)),
            scratch_shapes=[pltpu.VMEM((batch, C), jnp.float32),   # pooled
                            pltpu.VMEM((batch, D), jnp.float32)],  # f32 acc
        ),
        compiler_params=pltpu.CompilerParams(
            dimension_semantics=("arbitrary",)),
    )(patches_2d, w_conv, b_conv_2d, wqk, wv_g,
      w_proj, b_proj_2d, w_enc_q, s_enc, b_enc_2d,
      w_h, b_h_2d, w_out, b_out_2d)


# ------------------------------- JAX glue -----------------------------------

def im2col_3x3(x_nhwc):
    """3x3, stride 1, padding 1 patches -> [B, H, W, 9*C] (static, pure glue)."""
    B, H, W, C = x_nhwc.shape
    xp = jnp.pad(x_nhwc, ((0, 0), (1, 1), (1, 1), (0, 0)))
    cols = []
    for di in range(3):
        for dj in range(3):
            cols.append(xp[:, di:di + H, dj:dj + W, :])
    return jnp.concatenate(cols, axis=-1)


def init_params(key, c_in=3, c_stem=32, dim_encoder_out=2048, dim_hidden=50,
                num_classes=7):
    def dense(k, fan_in, fan_out, dtype=jnp.float32):
        kw, kb = jax.random.split(k)
        w = (jax.random.normal(kw, (fan_in, fan_out), jnp.float32)
             / jnp.sqrt(jnp.float32(fan_in))).astype(dtype)
        b = jax.random.normal(kb, (fan_out,), jnp.float32) * 0.01
        return w, b

    ks = jax.random.split(key, 7)
    w_conv, b_conv = dense(ks[0], 9 * c_in, c_stem)
    wq = jax.random.normal(ks[1], (c_stem, c_stem // 8), jnp.float32) / jnp.sqrt(
        jnp.float32(c_stem))
    wk = jax.random.normal(ks[2], (c_stem, c_stem // 8), jnp.float32) / jnp.sqrt(
        jnp.float32(c_stem))
    wv = jax.random.normal(ks[3], (c_stem, c_stem), jnp.float32) / jnp.sqrt(
        jnp.float32(c_stem))
    gamma = jnp.float32(0.1)                      # attention residual gate

    # small streamed / resident weights in bf16; f32 accumulation in-kernel
    w_proj, b_proj = dense(ks[4], c_stem, dim_encoder_out, dtype=jnp.bfloat16)

    # dominant 2048x2048 encoder weight: int8 + per-output-column dequant scale
    w_enc_f32, b_enc = dense(ks[5], dim_encoder_out, dim_encoder_out)
    s_enc = jnp.maximum(jnp.max(jnp.abs(w_enc_f32), axis=0, keepdims=True),
                        1e-8) / 127.0                              # [1, D]
    w_enc_q = jnp.round(w_enc_f32 / s_enc).astype(jnp.int8)        # [D, D]

    k6, k7 = jax.random.split(ks[6])
    w_h, b_h = dense(k6, dim_encoder_out, dim_hidden, dtype=jnp.bfloat16)
    w_out, b_out = dense(k7, dim_hidden, num_classes)
    return dict(w_conv=w_conv, b_conv=b_conv, wq=wq, wk=wk, wv=wv, gamma=gamma,
                w_proj=w_proj, b_proj=b_proj,
                w_enc_q=w_enc_q, s_enc=s_enc, b_enc=b_enc,
                w_h=w_h, b_h=b_h, w_out=w_out, b_out=b_out)


def combined_bayesian_forward(x_nchw, p):
    B, Cin, H, W = x_nchw.shape
    x = jnp.transpose(x_nchw, (0, 2, 3, 1))                 # NCHW -> NHWC
    # TODO(synk): at realistic image sizes the 3x3 gather should live inside
    # the kernel (halo BlockSpec) instead of a 9x im2col copy in HBM, and the
    # attention should be tiled flash-style over key blocks (the full [B,N,N]
    # score tensor would exceed VMEM at e.g. 56x56 on v7x).
    patches = im2col_3x3(x).reshape(B * H * W, 9 * Cin)

    # tiny glue precomputes: bilinear attention form and gamma folded into Wv
    wqk = jnp.dot(p["wq"], p["wk"].T)                       # [C, C]
    wv_g = p["gamma"] * p["wv"]                             # [C, C]

    D = p["w_enc_q"].shape[0]
    Hd = p["w_h"].shape[1]
    O = p["w_out"].shape[1]
    return pallas_combined_forward(
        patches, B, p["w_conv"], p["b_conv"].reshape(1, -1), wqk, wv_g,
        p["w_proj"], p["b_proj"].reshape(1, D),
        p["w_enc_q"], p["s_enc"], p["b_enc"].reshape(1, D),
        p["w_h"], p["b_h"].reshape(1, Hd),
        p["w_out"], p["b_out"].reshape(1, O))               # [B, num_classes]


def reference_forward(x_nchw, p):
    """Pure-JAX f32 reference of the same synthesized architecture."""
    B, Cin, H, W = x_nchw.shape
    x = jnp.transpose(x_nchw, (0, 2, 3, 1))
    patches = im2col_3x3(x).reshape(B, H * W, 9 * Cin)
    f = jnp.maximum(jnp.einsum('bnk,kc->bnc', patches, p["w_conv"])
                    + p["b_conv"], 0.0)
    q = f @ p["wq"]
    kk = f @ p["wk"]
    v = f @ p["wv"]
    s = jnp.einsum('bnd,bmd->bnm', q, kk)
    a = jax.nn.softmax(s, axis=-1)
    y = p["gamma"] * jnp.einsum('bnm,bmd->bnd', a, v) + f
    pooled = jnp.mean(y, axis=1)
    h0 = jnp.maximum(pooled @ p["w_proj"].astype(jnp.float32) + p["b_proj"], 0.0)
    w_enc = p["w_enc_q"].astype(jnp.float32) * p["s_enc"]
    h1 = jnp.maximum(h0 @ w_enc + p["b_enc"], 0.0)
    h2 = jnp.maximum(h1 @ p["w_h"].astype(jnp.float32) + p["b_h"], 0.0)
    logits = h2 @ p["w_out"] + p["b_out"]
    return jax.nn.softplus(logits)


if __name__ == "__main__":
    key = jax.random.PRNGKey(0)
    pkey, xkey = jax.random.split(key)
    params = init_params(pkey)
    x = jax.random.normal(xkey, (2, 3, 16, 16), jnp.float32)   # NCHW input

    fwd = jax.jit(combined_bayesian_forward)
    out = jax.block_until_ready(fwd(x, params))

    assert out.shape == (2, 7), out.shape
    assert bool(jnp.all(jnp.isfinite(out)))
    assert bool(jnp.all(out >= 0.0))   # softplus evidence is non-negative

    # tolerance check vs f32 reference (covers bf16 casts + approx reciprocal)
    ref = reference_forward(x, params)
    assert bool(jnp.allclose(out, ref, rtol=1e-1, atol=1e-1)), (out, ref)

    print("KERNEL_OK")
</pallas_src>

<mosaic_0001>
module attributes {stable_mosaic.version = 11 : i64} {
  func.func @_fused_forward_kernel(%arg0: i32, %arg1: memref<512x27xf32, #tpu.memory_space<vmem>>, %arg2: memref<27x32xf32, #tpu.memory_space<vmem>>, %arg3: memref<1x32xf32, #tpu.memory_space<vmem>>, %arg4: memref<32x32xf32, #tpu.memory_space<vmem>>, %arg5: memref<32x32xf32, #tpu.memory_space<vmem>>, %arg6: memref<32x1024xbf16, #tpu.memory_space<vmem>>, %arg7: memref<1x1024xf32, #tpu.memory_space<vmem>>, %arg8: memref<1024x2048xi8, #tpu.memory_space<vmem>>, %arg9: memref<1x2048xf32, #tpu.memory_space<vmem>>, %arg10: memref<1x2048xf32, #tpu.memory_space<vmem>>, %arg11: memref<2048x50xbf16, #tpu.memory_space<vmem>>, %arg12: memref<1x50xf32, #tpu.memory_space<vmem>>, %arg13: memref<50x7xf32, #tpu.memory_space<vmem>>, %arg14: memref<1x7xf32, #tpu.memory_space<vmem>>, %arg15: memref<2x7xf32, #tpu.memory_space<vmem>>, %arg16: memref<2x32xf32, #tpu.memory_space<vmem>>, %arg17: memref<2x2048xf32, #tpu.memory_space<vmem>>) attributes {dimension_semantics = [#tpu.dimension_semantics<arbitrary>], iteration_bounds = array<i64: 2>, scalar_prefetch = 0 : i64, scratch_operands = 2 : i64, tpu.core_type = #tpu.core_type<tc>, window_params = [{pipeline_mode = #tpu.pipeline_mode<synchronous>, transform_indices = @transform_0, window_bounds = array<i64: 512, 27>}, {pipeline_mode = #tpu.pipeline_mode<synchronous>, transform_indices = @transform_1, window_bounds = array<i64: 27, 32>}, {pipeline_mode = #tpu.pipeline_mode<synchronous>, transform_indices = @transform_2, window_bounds = array<i64: 1, 32>}, {pipeline_mode = #tpu.pipeline_mode<synchronous>, transform_indices = @transform_3, window_bounds = array<i64: 32, 32>}, {pipeline_mode = #tpu.pipeline_mode<synchronous>, transform_indices = @transform_4, window_bounds = array<i64: 32, 32>}, {transform_indices = @transform_5, window_bounds = array<i64: 32, 1024>}, {transform_indices = @transform_6, window_bounds = array<i64: 1, 1024>}, {transform_indices = @transform_7, window_bounds = array<i64: 1024, 2048>}, {pipeline_mode = #tpu.pipeline_mode<synchronous>, transform_indices = @transform_8, window_bounds = array<i64: 1, 2048>}, {pipeline_mode = #tpu.pipeline_mode<synchronous>, transform_indices = @transform_9, window_bounds = array<i64: 1, 2048>}, {pipeline_mode = #tpu.pipeline_mode<synchronous>, transform_indices = @transform_10, window_bounds = array<i64: 2048, 50>}, {pipeline_mode = #tpu.pipeline_mode<synchronous>, transform_indices = @transform_11, window_bounds = array<i64: 1, 50>}, {pipeline_mode = #tpu.pipeline_mode<synchronous>, transform_indices = @transform_12, window_bounds = array<i64: 50, 7>}, {pipeline_mode = #tpu.pipeline_mode<synchronous>, transform_indices = @transform_13, window_bounds = array<i64: 1, 7>}, {pipeline_mode = #tpu.pipeline_mode<synchronous>, transform_indices = @transform_14, window_bounds = array<i64: 2, 7>}]} {
    %c0_i32 = arith.constant 0 : i32
    %0 = arith.cmpi eq, %arg0, %c0_i32 : i32
    %1 = arith.extui %0 : i1 to i32
    %c0_i32_0 = arith.constant 0 : i32
    %2 = arith.cmpi ne, %1, %c0_i32_0 : i32
    scf.if %2 {
      %c0_15 = arith.constant 0 : index
      %c0_16 = arith.constant 0 : index
      %22 = vector.load %arg1[%c0_15, %c0_16] : memref<512x27xf32, #tpu.memory_space<vmem>>, vector<512x27xf32>
      %c0_17 = arith.constant 0 : index
      %c0_18 = arith.constant 0 : index
      %23 = vector.load %arg2[%c0_17, %c0_18] : memref<27x32xf32, #tpu.memory_space<vmem>>, vector<27x32xf32>
      %cst_19 = arith.constant dense<0.000000e+00> : vector<512x32xf32>
      %24 = tpu.matmul %22, %23, %cst_19 {dimension_numbers = #tpu.dot_dimension_numbers<[1], [0], [0], [1], [0, 0, 1, 1], [], []>} : vector<512x27xf32>, vector<27x32xf32>, vector<512x32xf32> -> vector<512x32xf32>
      %c0_20 = arith.constant 0 : index
      %c0_21 = arith.constant 0 : index
      %25 = vector.load %arg3[%c0_20, %c0_21] : memref<1x32xf32, #tpu.memory_space<vmem>>, vector<1x32xf32>
      %26 = vector.broadcast %25 : vector<1x32xf32> to vector<512x32xf32>
      %27 = arith.addf %24, %26 : vector<512x32xf32>
      %cst_22 = arith.constant 0.000000e+00 : f32
      %28 = vector.broadcast %cst_22 : f32 to vector<512x32xf32>
      %29 = arith.maximumf %27, %28 : vector<512x32xf32>
      %c0_23 = arith.constant 0 : index
      %c0_24 = arith.constant 0 : index
      %30 = vector.load %arg4[%c0_23, %c0_24] : memref<32x32xf32, #tpu.memory_space<vmem>>, vector<32x32xf32>
      %cst_25 = arith.constant dense<0.000000e+00> : vector<512x32xf32>
      %31 = tpu.matmul %29, %30, %cst_25 {dimension_numbers = #tpu.dot_dimension_numbers<[1], [0], [0], [1], [0, 0, 1, 1], [], []>} : vector<512x32xf32>, vector<32x32xf32>, vector<512x32xf32> -> vector<512x32xf32>
      %c0_26 = arith.constant 0 : index
      %c0_27 = arith.constant 0 : index
      %32 = vector.load %arg5[%c0_26, %c0_27] : memref<32x32xf32, #tpu.memory_space<vmem>>, vector<32x32xf32>
      %cst_28 = arith.constant dense<0.000000e+00> : vector<512x32xf32>
      %33 = tpu.matmul %29, %32, %cst_28 {dimension_numbers = #tpu.dot_dimension_numbers<[1], [0], [0], [1], [0, 0, 1, 1], [], []>} : vector<512x32xf32>, vector<32x32xf32>, vector<512x32xf32> -> vector<512x32xf32>
      %34 = vector.shape_cast %29 : vector<512x32xf32> to vector<2x256x32xf32>
      %35 = vector.shape_cast %31 : vector<512x32xf32> to vector<2x256x32xf32>
      %36 = vector.shape_cast %33 : vector<512x32xf32> to vector<2x256x32xf32>
      "tpu.trace_start"() <{level = 10 : i32, message = "bnd,bmd->bnm"}> : () -> ()
      %cst_29 = arith.constant dense<0.000000e+00> : vector<2x256x256xf32>
      %37 = tpu.matmul %35, %34, %cst_29 {dimension_numbers = #tpu.dot_dimension_numbers<[2], [2], [1], [1], [0, 0, 0, 1, 1, 1], [0], [0]>} : vector<2x256x32xf32>, vector<2x256x32xf32>, vector<2x256x256xf32> -> vector<2x256x256xf32>
      "tpu.trace_stop"() : () -> ()
      %cst_30 = arith.constant dense<0xFF800000> : vector<2x256xf32>
      %38 = vector.multi_reduction <maximumf>, %37, %cst_30 [2] : vector<2x256x256xf32> to vector<2x256xf32>
      %39 = vector.shape_cast %38 : vector<2x256xf32> to vector<2x256x1xf32>
      %40 = vector.broadcast %39 : vector<2x256x1xf32> to vector<2x256x256xf32>
      %41 = arith.subf %37, %40 : vector<2x256x256xf32>
      %42 = math.exp %41 : vector<2x256x256xf32>
      %cst_31 = arith.constant dense<0.000000e+00> : vector<2x256xf32>
      %43 = vector.multi_reduction <add>, %42, %cst_31 [2] : vector<2x256x256xf32> to vector<2x256xf32>
      %44 = vector.shape_cast %43 : vector<2x256xf32> to vector<2x256x1xf32>
      "tpu.trace_start"() <{level = 10 : i32, message = "bnm,bmd->bnd"}> : () -> ()
      %cst_32 = arith.constant dense<0.000000e+00> : vector<2x256x32xf32>
      %45 = tpu.matmul %42, %36, %cst_32 {dimension_numbers = #tpu.dot_dimension_numbers<[2], [1], [1], [2], [0, 0, 0, 1, 1, 2], [0], [0]>} : vector<2x256x256xf32>, vector<2x256x32xf32>, vector<2x256x32xf32> -> vector<2x256x32xf32>
      "tpu.trace_stop"() : () -> ()
      %46 = tpu.reciprocal %44 {approx = true} : vector<2x256x1xf32> -> vector<2x256x1xf32>
      %47 = vector.broadcast %46 : vector<2x256x1xf32> to vector<2x256x32xf32>
      %48 = arith.mulf %45, %47 : vector<2x256x32xf32>
      %49 = arith.addf %48, %34 : vector<2x256x32xf32>
      %cst_33 = arith.constant dense<0.000000e+00> : vector<2x32xf32>
      %50 = vector.multi_reduction <add>, %49, %cst_33 [1] : vector<2x256x32xf32> to vector<2x32xf32>
      %cst_34 = arith.constant 2.560000e+02 : f32
      %51 = vector.broadcast %cst_34 : f32 to vector<2x32xf32>
      %52 = arith.divf %50, %51 : vector<2x32xf32>
      %c0_35 = arith.constant 0 : index
      %c0_36 = arith.constant 0 : index
      %53 = vector.load %arg16[%c0_35, %c0_36] : memref<2x32xf32, #tpu.memory_space<vmem>>, vector<2x32xf32>
      tpu.vector_store %arg16[%c0_35, %c0_36], %52 {strides = array<i32>} : memref<2x32xf32, #tpu.memory_space<vmem>>, vector<2x32xf32>,
      %cst_37 = arith.constant 0.000000e+00 : f32
      %54 = vector.broadcast %cst_37 : f32 to vector<2x2048xf32>
      %c0_38 = arith.constant 0 : index
      %c0_39 = arith.constant 0 : index
      %55 = vector.load %arg17[%c0_38, %c0_39] : memref<2x2048xf32, #tpu.memory_space<vmem>>, vector<2x2048xf32>
      tpu.vector_store %arg17[%c0_38, %c0_39], %54 {strides = array<i32>} : memref<2x2048xf32, #tpu.memory_space<vmem>>, vector<2x2048xf32>,
    } else {
    }
    %c0 = arith.constant 0 : index
    %c0_1 = arith.constant 0 : index
    %3 = vector.load %arg16[%c0, %c0_1] : memref<2x32xf32, #tpu.memory_space<vmem>>, vector<2x32xf32>
    %4 = arith.truncf %3 : vector<2x32xf32> to vector<2x32xbf16>
    %c0_2 = arith.constant 0 : index
    %c0_3 = arith.constant 0 : index
    %5 = vector.load %arg6[%c0_2, %c0_3] : memref<32x1024xbf16, #tpu.memory_space<vmem>>, vector<32x1024xbf16>
    %cst = arith.constant dense<0.000000e+00> : vector<2x1024xf32>
    %6 = tpu.matmul %4, %5, %cst {dimension_numbers = #tpu.dot_dimension_numbers<[1], [0], [0], [1], [0, 0, 1, 1], [], []>} : vector<2x32xbf16>, vector<32x1024xbf16>, vector<2x1024xf32> -> vector<2x1024xf32>
    %c0_4 = arith.constant 0 : index
    %c0_5 = arith.constant 0 : index
    %7 = vector.load %arg7[%c0_4, %c0_5] : memref<1x1024xf32, #tpu.memory_space<vmem>>, vector<1x1024xf32>
    %8 = vector.broadcast %7 : vector<1x1024xf32> to vector<2x1024xf32>
    %9 = arith.addf %6, %8 : vector<2x1024xf32>
    %cst_6 = arith.constant 0.000000e+00 : f32
    %10 = vector.broadcast %cst_6 : f32 to vector<2x1024xf32>
    %11 = arith.maximumf %9, %10 : vector<2x1024xf32>
    %c0_7 = arith.constant 0 : index
    %c0_8 = arith.constant 0 : index
    %12 = vector.load %arg17[%c0_7, %c0_8] : memref<2x2048xf32, #tpu.memory_space<vmem>>, vector<2x2048xf32>
    %13 = arith.truncf %11 : vector<2x1024xf32> to vector<2x1024xbf16>
    %c0_9 = arith.constant 0 : index
    %c0_10 = arith.constant 0 : index
    %14 = vector.load %arg8[%c0_9, %c0_10] : memref<1024x2048xi8, #tpu.memory_space<vmem>>, vector<1024x2048xi8>
    %15 = arith.sitofp %14 : vector<1024x2048xi8> to vector<1024x2048xbf16>
    %cst_11 = arith.constant dense<0.000000e+00> : vector<2x2048xf32>
    %16 = tpu.matmul %13, %15, %cst_11 {dimension_numbers = #tpu.dot_dimension_numbers<[1], [0], [0], [1], [0, 0, 1, 1], [], []>} : vector<2x1024xbf16>, vector<1024x2048xbf16>, vector<2x2048xf32> -> vector<2x2048xf32>
    %17 = arith.addf %12, %16 : vector<2x2048xf32>
    %c0_12 = arith.constant 0 : index
    %c0_13 = arith.constant 0 : index
    %18 = vector.load %arg17[%c0_12, %c0_13] : memref<2x2048xf32, #tpu.memory_space<vmem>>, vector<2x2048xf32>
    tpu.vector_store %arg17[%c0_12, %c0_13], %17 {strides = array<i32>} : memref<2x2048xf32, #tpu.memory_space<vmem>>, vector<2x2048xf32>,
    %c1_i32 = arith.constant 1 : i32
    %19 = arith.cmpi eq, %arg0, %c1_i32 : i32
    %20 = arith.extui %19 : i1 to i32
    %c0_i32_14 = arith.constant 0 : i32
    %21 = arith.cmpi ne, %20, %c0_i32_14 : i32
    scf.if %21 {
      %c0_15 = arith.constant 0 : index
      %c0_16 = arith.constant 0 : index
      %22 = vector.load %arg17[%c0_15, %c0_16] : memref<2x2048xf32, #tpu.memory_space<vmem>>, vector<2x2048xf32>
      %c0_17 = arith.constant 0 : index
      %c0_18 = arith.constant 0 : index
      %23 = vector.load %arg9[%c0_17, %c0_18] : memref<1x2048xf32, #tpu.memory_space<vmem>>, vector<1x2048xf32>
      %24 = vector.broadcast %23 : vector<1x2048xf32> to vector<2x2048xf32>
      %25 = arith.mulf %22, %24 : vector<2x2048xf32>
      %c0_19 = arith.constant 0 : index
      %c0_20 = arith.constant 0 : index
      %26 = vector.load %arg10[%c0_19, %c0_20] : memref<1x2048xf32, #tpu.memory_space<vmem>>, vector<1x2048xf32>
      %27 = vector.broadcast %26 : vector<1x2048xf32> to vector<2x2048xf32>
      %28 = arith.addf %25, %27 : vector<2x2048xf32>
      %cst_21 = arith.constant 0.000000e+00 : f32
      %29 = vector.broadcast %cst_21 : f32 to vector<2x2048xf32>
      %30 = arith.maximumf %28, %29 : vector<2x2048xf32>
      %31 = arith.truncf %30 : vector<2x2048xf32> to vector<2x2048xbf16>
      %c0_22 = arith.constant 0 : index
      %c0_23 = arith.constant 0 : index
      %32 = vector.load %arg11[%c0_22, %c0_23] : memref<2048x50xbf16, #tpu.memory_space<vmem>>, vector<2048x50xbf16>
      %cst_24 = arith.constant dense<0.000000e+00> : vector<2x50xf32>
      %33 = tpu.matmul %31, %32, %cst_24 {dimension_numbers = #tpu.dot_dimension_numbers<[1], [0], [0], [1], [0, 0, 1, 1], [], []>} : vector<2x2048xbf16>, vector<2048x50xbf16>, vector<2x50xf32> -> vector<2x50xf32>
      %c0_25 = arith.constant 0 : index
      %c0_26 = arith.constant 0 : index
      %34 = vector.load %arg12[%c0_25, %c0_26] : memref<1x50xf32, #tpu.memory_space<vmem>>, vector<1x50xf32>
      %35 = vector.broadcast %34 : vector<1x50xf32> to vector<2x50xf32>
      %36 = arith.addf %33, %35 : vector<2x50xf32>
      %cst_27 = arith.constant 0.000000e+00 : f32
      %37 = vector.broadcast %cst_27 : f32 to vector<2x50xf32>
      %38 = arith.maximumf %36, %37 : vector<2x50xf32>
      %c0_28 = arith.constant 0 : index
      %c0_29 = arith.constant 0 : index
      %39 = vector.load %arg13[%c0_28, %c0_29] : memref<50x7xf32, #tpu.memory_space<vmem>>, vector<50x7xf32>
      %cst_30 = arith.constant dense<0.000000e+00> : vector<2x7xf32>
      %40 = tpu.matmul %38, %39, %cst_30 {dimension_numbers = #tpu.dot_dimension_numbers<[1], [0], [0], [1], [0, 0, 1, 1], [], []>} : vector<2x50xf32>, vector<50x7xf32>, vector<2x7xf32> -> vector<2x7xf32>
      %c0_31 = arith.constant 0 : index
      %c0_32 = arith.constant 0 : index
      %41 = vector.load %arg14[%c0_31, %c0_32] : memref<1x7xf32, #tpu.memory_space<vmem>>, vector<1x7xf32>
      %42 = vector.broadcast %41 : vector<1x7xf32> to vector<2x7xf32>
      %43 = arith.addf %40, %42 : vector<2x7xf32>
      %cst_33 = arith.constant 0.000000e+00 : f32
      %44 = vector.broadcast %cst_33 : f32 to vector<2x7xf32>
      %45 = arith.maximumf %43, %44 : vector<2x7xf32>
      %46 = vector.broadcast %cst_33 : f32 to vector<2x7xf32>
      %47 = arith.subf %43, %46 : vector<2x7xf32>
      %48 = arith.cmpf one, %47, %47 : vector<2x7xf32>
      %49 = vector.broadcast %cst_33 : f32 to vector<2x7xf32>
      %50 = arith.addf %43, %49 : vector<2x7xf32>
      %51 = math.absf %47 : vector<2x7xf32>
      %cst_34 = arith.constant 0.000000e+00 : f32
      %52 = vector.broadcast %cst_34 : f32 to vector<2x7xf32>
      %53 = arith.subf %52, %51 : vector<2x7xf32>
      %54 = math.exp %53 : vector<2x7xf32>
      %55 = math.log1p %54 : vector<2x7xf32>
      %56 = arith.addf %45, %55 : vector<2x7xf32>
      %57 = arith.select %48, %50, %56 : vector<2x7xi1>, vector<2x7xf32>
      %c0_35 = arith.constant 0 : index
      %c0_36 = arith.constant 0 : index
      %58 = vector.load %arg15[%c0_35, %c0_36] : memref<2x7xf32, #tpu.memory_space<vmem>>, vector<2x7xf32>
      tpu.vector_store %arg15[%c0_35, %c0_36], %57 {strides = array<i32>} : memref<2x7xf32, #tpu.memory_space<vmem>>, vector<2x7xf32>,
    } else {
    }
    return
  }
  func.func @transform_0(%arg0: i32) -> (i32, i32) {
    %c0_i32 = arith.constant 0 : i32
    %c0_i32_0 = arith.constant 0 : i32
    %c0_i32_1 = arith.constant 0 : i32
    return %c0_i32, %c0_i32_0 : i32, i32
  }
  func.func @transform_1(%arg0: i32) -> (i32, i32) {
    %c0_i32 = arith.constant 0 : i32
    %c0_i32_0 = arith.constant 0 : i32
    %c0_i32_1 = arith.constant 0 : i32
    return %c0_i32, %c0_i32_0 : i32, i32
  }
  func.func @transform_2(%arg0: i32) -> (i32, i32) {
    %c0_i32 = arith.constant 0 : i32
    %c0_i32_0 = arith.constant 0 : i32
    %c0_i32_1 = arith.constant 0 : i32
    return %c0_i32, %c0_i32_0 : i32, i32
  }
  func.func @transform_3(%arg0: i32) -> (i32, i32) {
    %c0_i32 = arith.constant 0 : i32
    %c0_i32_0 = arith.constant 0 : i32
    %c0_i32_1 = arith.constant 0 : i32
    return %c0_i32, %c0_i32_0 : i32, i32
  }
  func.func @transform_4(%arg0: i32) -> (i32, i32) {
    %c0_i32 = arith.constant 0 : i32
    %c0_i32_0 = arith.constant 0 : i32
    %c0_i32_1 = arith.constant 0 : i32
    return %c0_i32, %c0_i32_0 : i32, i32
  }
  func.func @transform_5(%arg0: i32) -> (i32, i32) {
    %c0_i32 = arith.constant 0 : i32
    %c0_i32_0 = arith.constant 0 : i32
    return %c0_i32, %arg0 : i32, i32
  }
  func.func @transform_6(%arg0: i32) -> (i32, i32) {
    %c0_i32 = arith.constant 0 : i32
    %c0_i32_0 = arith.constant 0 : i32
    return %c0_i32, %arg0 : i32, i32
  }
  func.func @transform_7(%arg0: i32) -> (i32, i32) {
    %c0_i32 = arith.constant 0 : i32
    %c0_i32_0 = arith.constant 0 : i32
    return %arg0, %c0_i32 : i32, i32
  }
  func.func @transform_8(%arg0: i32) -> (i32, i32) {
    %c0_i32 = arith.constant 0 : i32
    %c0_i32_0 = arith.constant 0 : i32
    %c0_i32_1 = arith.constant 0 : i32
    return %c0_i32, %c0_i32_0 : i32, i32
  }
  func.func @transform_9(%arg0: i32) -> (i32, i32) {
    %c0_i32 = arith.constant 0 : i32
    %c0_i32_0 = arith.constant 0 : i32
    %c0_i32_1 = arith.constant 0 : i32
    return %c0_i32, %c0_i32_0 : i32, i32
  }
  func.func @transform_10(%arg0: i32) -> (i32, i32) {
    %c0_i32 = arith.constant 0 : i32
    %c0_i32_0 = arith.constant 0 : i32
    %c0_i32_1 = arith.constant 0 : i32
    return %c0_i32, %c0_i32_0 : i32, i32
  }
  func.func @transform_11(%arg0: i32) -> (i32, i32) {
    %c0_i32 = arith.constant 0 : i32
    %c0_i32_0 = arith.constant 0 : i32
    %c0_i32_1 = arith.constant 0 : i32
    return %c0_i32, %c0_i32_0 : i32, i32
  }
  func.func @transform_12(%arg0: i32) -> (i32, i32) {
    %c0_i32 = arith.constant 0 : i32
    %c0_i32_0 = arith.constant 0 : i32
    %c0_i32_1 = arith.constant 0 : i32
    return %c0_i32, %c0_i32_0 : i32, i32
  }
  func.func @transform_13(%arg0: i32) -> (i32, i32) {
    %c0_i32 = arith.constant 0 : i32
    %c0_i32_0 = arith.constant 0 : i32
    %c0_i32_1 = arith.constant 0 : i32
    return %c0_i32, %c0_i32_0 : i32, i32
  }
  func.func @transform_14(%arg0: i32) -> (i32, i32) {
    %c0_i32 = arith.constant 0 : i32
    %c0_i32_0 = arith.constant 0 : i32
    %c0_i32_1 = arith.constant 0 : i32
    return %c0_i32, %c0_i32_0 : i32, i32
  }
}

</mosaic_0001>

<bundles_post_ra>
// kernel: combined_bayesian_forward.1
= control target key start
LH: loop header
LB: loop body
LE: loop exit
PB: predicated region body
PF: predicated region fallthrough
CT: control target
= control target key end

     0   :  { %s16291_s0 = inlined_call_operand.vmem [shape: f32[512,27], index: 0, kind: input, shape index: {}]   ;;  %s16292_s1 = inlined_call_operand.hbm [shape: f32[27,32], index: 1, kind: input, shape index: {}]   ;;  %s16293_s2 = inlined_call_operand.hbm [shape: f32[1,32], index: 2, kind: input, shape index: {}]   ;;  %s16294_s3 = inlined_call_operand.vmem [shape: f32[32,32], index: 3, kind: input, shape index: {}]   ;;  %s16295_s4 = inlined_call_operand.vmem [shape: f32[32,32], index: 4, kind: input, shape index: {}]   ;;  %s16296_s5 = inlined_call_operand.hbm [shape: bf16[32,2048], index: 5, kind: input, shape index: {}]   ;;  %s16297_s6 = inlined_call_operand.hbm [shape: f32[1,2048], index: 6, kind: input, shape index: {}]   ;;  %s16298_s7 = inlined_call_operand.hbm [shape: s8[2048,2048], index: 7, kind: input, shape index: {}]   ;;  %s16299_s8 = inlined_call_operand.hbm [shape: f32[1,2048], index: 8, kind: input, shape index: {}]   ;;  %s16300_s9 = inlined_call_operand.hbm [shape: f32[1,2048], index: 9, kind: input, shape index: {}]   ;;  %s16301_s10 = inlined_call_operand.vmem [shape: bf16[2048,50], index: 10, kind: input, shape index: {}]   ;;  %s16302_s11 = inlined_call_operand.hbm [shape: f32[1,50], index: 11, kind: input, shape index: {}]   ;;  %s16303_s12 = inlined_call_operand.vmem [shape: f32[50,7], index: 12, kind: input, shape index: {}]   ;;  %s16304_s13 = inlined_call_operand.hbm [shape: f32[1,7], index: 13, kind: input, shape index: {}]   ;;  %s16305_s14 = inlined_call_operand.hbm [shape: f32[2,7], index: 14, kind: output, shape index: {}]  }
   0x1   :  { %16475 = sst [smem:[#allocation171_spill]] %s16291_s0 }
   0x2   :  { %16476 = sst [smem:[#allocation172_spill]] %s16292_s1 }
   0x3   :  { %16477 = sst [smem:[#allocation173_spill]] %s16294_s3 }
   0x4   :  { %16478 = sst [smem:[#allocation174_spill]] %s16295_s4 }
   0x5   :  { %16479 = sst [smem:[#allocation175_spill]] %s16296_s5 }
   0x6   :  { %16480 = sst [smem:[#allocation176_spill]] %s16301_s10 }
   0x7   :  { %16481 = sst [smem:[#allocation177_spill]] %s16303_s12 }
   0x8   :  { %16482 = sst [smem:[#allocation178_spill]] %s16305_s14 }
   0x9   :  { %19 = vsyncpa [#allocation5], 0 }
   0xa   :  { %20 = vsyncpa [#allocation8], 0 }
   0xb   :  { %21 = vsyncpa [#allocation14], 0 }
   0xc   :  { %22 = vsyncpa [#allocation17], 0 }
   0xd   :  { %23 = vsyncpa [#allocation6], 0  ;;  %s12724_s29 = smov 0   ;;  %s12726_s30 = smov 0  }
   0xe   :  { %s12728_s15 = smov 0   ;;  %s12730_s16 = smov 0  }
   0xf LB: > { %16483 = sst [smem:[#allocation26_spill]] %s12615_s30  ;;  %s12625_s17 = smov [#allocation4]   ;;  %s12623_s16 = sphi %s12730_s16, %s16840_s16   ;;  %s12619_s15 = sphi %s12728_s15, %s16843_s15   ;;  %s12615_s30 = sphi %s12726_s30, %s16842_s30   ;;  %s12611_s29 = sphi %s12724_s29, %s16841_s29  }
  0x10   : > { %16484 = sst [smem:[#allocation27_spill]] %s12619_s15  ;;  %s379_s18 = sshll.u32 %s12625_s17, 4  ;;  %s380_s18 = int_to_ptr.vmem [resolvable:$true] %s379_s18 }
  0x11   : > { %s12745_s19 = sadd.s32 4294967295, %s12623_s16   ;;  %p9885_p0 = scmp.ge.s32.totalorder %s12623_s16, 1 }
  0x12   : > { %16485 = sst [smem:[#allocation28_spill]] %s12745_s19  ;;  %p16307_p1 = scmp.eq.s32.totalorder %s12745_s19, 0 }
  0x13   : > { %p364_p2 = scmp.lt.s32.totalorder %s12623_s16, 3  ;;  %s12764_s22 = sadd.s32 1, %s12623_s16  }
  0x14   : > { %16488 = sst [smem:[#allocation29_spill]] %s12764_s22  ;;  %s16489_s1 = sld [smem:[#allocation172_spill]] }
  0x15   : > { %p12751_p4 = pnand %p9885_p0, %p364_p2 }
  0x17   : > { %s16486_s20 = scalar_select %p12751_p4, 1, 0 }
  0x18   : > { %p11667_p5 = pneg %p12751_p4 }
  0x1a   : > { %p12759_p6 = pnand %p11667_p5, %p16307_p1  ;;  %s12281_s25 = scalar_lea.hbm %s16489_s1, 512 }
  0x1b   : > { %p12282_p7 = scmp.ne.s32.totalorder %s16489_s1, %s12281_s25  ;;  %p12288_p11 = scmp.lt.u32.totalorder %s12281_s25, %s16489_s1 }
  0x1c   : > { %s16487_s21 = scalar_select %p12759_p6, 1, 0 }
  0x1d   : > { %p12774_p8 = pneg %p12759_p6 }
  0x1f   : > { %s16490_s28 = scalar_select %p12774_p8, 1, 0 }
  0x20   : > { %p12284_p9 = pnand %p12774_p8, %p12282_p7 }
  0x22   : > { %p12285_p10 = pneg %p12284_p9 }
  0x24   : > { %p12290_p12 = pnand %p12288_p11, %p12285_p10 }
  0x26   : > { %12293 = shalt.err (!%p12290_p12)
}
  0x27   : > { %s12294_s23 = scalar_lea.vmem %s380_s18, 512  ;;  %p12302_p5 = scmp.lt.s32.totalorder %s380_s18, %s380_s18 }
  0x28   : > { %p12295_p13 = scmp.ne.s32.totalorder %s380_s18, %s12294_s23  ;;  %p12303_p3 = scmp.lt.s32.totalorder %s12294_s23, %s12294_s23 }
  0x2a   : > { %p12297_p0 = pnand %p12295_p13, %p12774_p8  ;;  %p12304_p1 = por %p12303_p3, %p12302_p5 }
  0x2c   : > { %p12298_p2 = pneg %p12297_p0 }
  0x2e   : > { %p12305_p4 = pnand %p12304_p1, %p12298_p2 }
  0x30   : > { %12308 = shalt.err (!%p12305_p4)
}
  0x31   : > { %s16312_s24 = smov 128   ;;  %s12627_s14 = smov 8  }
  0x32   : > { %11670 = dma.hbm_to_vmem [thread:$0]  (!%p12759_p6), %s16489_s1, 512, %s380_s18, [#allocation5], %s16312_s24, %s16312_s24, %s12627_s14  }
  0x33   : > { %s138_s27 = ssub.s32 %s12623_s16, %s12764_s22  ;;  %s141_s17 = sadd.s32 1, %s12619_s15 }
  0x34   : > { %p139_p1 = scmp.eq.s32.totalorder %s138_s27, 0  ;;  %p148_p3 = scmp.ne.s32.totalorder %s12619_s15, %s12615_s30 }
  0x35   : > { %p149_p4 = scmp.eq.s32.totalorder %s12623_s16, 0  ;;  %p154_p7 = scmp.ne.s32.totalorder %s12615_s30, %s12611_s29 }
  0x36   : > { %s12801_s23 = scalar_select %p139_p1, %s12619_s15, %s141_s17  }
  0x37   : > { %p150_p9 = por %p149_p4, %p148_p3  ;;  %p16492_p10 = scmp.eq.s32.totalorder %s12745_s19, 0 }
  0x38   : > { %16491 = sst [smem:[#allocation30_spill]] %s12801_s23  ;;  %p11702_p12 = scmp.lt.s32.totalorder %s12623_s16, 2 }
  0x39   : > { %p12805_p11 = por %p16492_p10, %p154_p7  ;;  %s460_s10 = sand.u32 1, %s12623_s16  }
  0x3a   : > { %s12812_s4 = sand.u32 1, %s12619_s15   ;;  %s10393_s14 = sshll.u32 %s12623_s16, 9 }
  0x3b   : > { %s16493_s12 = scalar_select %p12805_p11, 1, 0 }
  0x3c   : > { %s9893_s18 = sshll.u32 %s12812_s4, 7  ;;  %s16495_s5 = sld [smem:[#allocation175_spill]] }
  0x3d   : > { %16494 = sst [smem:[#allocation31_spill]] %s16493_s12  ;;  %s464_s29 = scalar_lea.vmem [#allocation9], %s9893_s18 }
  0x3e   : > { %s471_s17 = sshll.u32 %s464_s29, 4  ;;  %p12821_p13 = pnand %p11702_p12, %p150_p9  ;;  %s12825_s17 = int_to_ptr.vmem [resolvable:$true] %s471_s17 }
  0x3f   : > { %s12827_s1 = scalar_lea.sflag [#allocation5], %s460_s10 }
  0x40   : > { %s16496_s24 = scalar_select %p12821_p13, 1, 0 }
  0x41   : > { %p12833_p2 = pneg %p12821_p13 }
  0x42   : > { %s12819_s27 = scalar_lea.hbm %s16495_s5, %s10393_s14  ;;  %s12314_s26 = scalar_lea.hbm %s16495_s5, 4096 }
  0x43   : > { %s12309_s23 = scalar_lea.hbm %s12819_s27, 2048  ;;  %p12315_p3 = scmp.lt.u32.totalorder %s12819_s27, %s16495_s5 }
  0x44   : > { %p12310_p0 = scmp.ne.s32.totalorder %s12819_s27, %s12309_s23  ;;  %p12316_p4 = scmp.lt.u32.totalorder %s12314_s26, %s12309_s23 }
  0x45   : > { %s16497_s14 = scalar_select %p12833_p2, 1, 0 }
  0x46   : > { %p12312_p5 = pnand %p12833_p2, %p12310_p0  ;;  %p12317_p7 = por %p12316_p4, %p12315_p3 }
  0x47   : > { %p12318_p9 = scmp.lt.u32.totalorder %s12309_s23, %s12819_s27 }
  0x48   : > { %p12313_p1 = pneg %p12312_p5 }
  0x49   : > { %p12319_p10 = por %p12318_p9, %p12317_p7 }
  0x4b   : > { %p12320_p12 = pnand %p12319_p10, %p12313_p1 }
  0x4d   : > { %12323 = shalt.err (!%p12320_p12)
}
  0x4e   : > { %s12324_s10 = scalar_lea.vmem %s12825_s17, 2048  ;;  %s12628_s18 = smov [#allocation9]  }
  0x4f   : > { %p12325_p0 = scmp.ne.s32.totalorder %s12825_s17, %s12324_s10  ;;  %s12329_s25 = sshll.u32 %s12628_s18, 4  ;;  %s12330_s25 = int_to_ptr.vmem [resolvable:$false] %s12329_s25 }
  0x50   : > { %s12331_s15 = scalar_lea.vmem %s12330_s25, 4096  ;;  %p12332_p6 = scmp.lt.s32.totalorder %s12825_s17, %s12330_s25 }
  0x51   : > { %p12327_p5 = pnand %p12325_p0, %p12833_p2  ;;  %p12333_p8 = scmp.lt.s32.totalorder %s12331_s15, %s12324_s10 }
  0x53   : > { %p12328_p11 = pneg %p12327_p5  ;;  %p12334_p3 = por %p12333_p8, %p12332_p6 }
  0x55   : > { %p12335_p4 = pnand %p12334_p3, %p12328_p11 }
  0x57   : > { %12338 = shalt.err (!%p12335_p4)
}
  0x58   : > { %s12629_s23 = smov 1024   ;;  %s12630_s26 = smov 512  }
  0x59   : > { %s12631_s29 = smov 32   ;;  %s12632_s5 = smov [#allocation7]  }
  0x5a   : > { %11689 = dma.hbm_to_vmem [thread:$0]  (!%p12821_p13), %s12819_s27, 2048, %s12825_s17, %s12827_s1, %s12629_s23, %s12630_s26, %s12631_s29  }
  0x5b   : > { %s393_s22 = sshll.u32 %s12632_s5, 4  ;;  %s12633_s18 = smov [#allocation13]   ;;  %s394_s22 = int_to_ptr.vmem [resolvable:$true] %s393_s22 }
  0x5c   : > { %s421_s3 = sshll.u32 %s12633_s18, 4  ;;  %s12339_s15 = scalar_lea.hbm %s16293_s2, 16  ;;  %s422_s3 = int_to_ptr.vmem [resolvable:$true] %s421_s3 }
  0x5d   : > { %p12340_p6 = scmp.ne.s32.totalorder %s16293_s2, %s12339_s15  ;;  %p16498_p8 = scmp.ne.s32.totalorder %s16490_s28, 0 }
  0x5e   : > { %p12346_p7 = scmp.lt.u32.totalorder %s12339_s15, %s16293_s2 }
  0x5f   : > { %p12342_p11 = pnand %p12340_p6, %p16498_p8 }
  0x61   : > { %p12343_p1 = pneg %p12342_p11 }
  0x63   : > { %p12348_p9 = pnand %p12346_p7, %p12343_p1 }
  0x65   : > { %12351 = shalt.err (!%p12348_p9)
}
  0x66   : > { %s12352_s5 = scalar_lea.vmem %s394_s22, 16  ;;  %s12359_s27 = scalar_lea.vmem %s394_s22, 32 }
  0x67   : > { %p12353_p10 = scmp.ne.s32.totalorder %s394_s22, %s12352_s5  ;;  %p12360_p5 = scmp.lt.s32.totalorder %s394_s22, %s394_s22 }
  0x68   : > { %p12361_p3 = scmp.lt.s32.totalorder %s12359_s27, %s12352_s5 }
  0x69   : > { %p12355_p12 = pnand %p12353_p10, %p16498_p8 }
  0x6a   : > { %p12362_p4 = por %p12361_p3, %p12360_p5 }
  0x6b   : > { %p12356_p0 = pneg %p12355_p12 }
  0x6d   : > { %p12363_p13 = pnand %p12362_p4, %p12356_p0 }
  0x6f   : > { %12366 = shalt.err (!%p12363_p13)
}
  0x70   : > { %p16499_p6 = scmp.ne.s32.totalorder %s16487_s21, 0  ;;  %s9896_s30 = sshll.u32 %s12812_s4, 3 }
  0x71   : > { %s12367_s23 = scalar_lea.hbm %s16300_s9, 256 }
  0x72   : > { %11673 = dma.hbm_to_vmem [thread:$0]  (!%p16499_p6), %s16293_s2, 16, %s394_s22, [#allocation8]  }
  0x73   : > { %p12368_p11 = scmp.ne.s32.totalorder %s16300_s9, %s12367_s23  ;;  %p12374_p7 = scmp.lt.u32.totalorder %s12367_s23, %s16300_s9 }
  0x75   : > { %p12370_p13 = pnand %p12368_p11, %p16498_p8 }
  0x77   : > { %p12371_p1 = pneg %p12370_p13 }
  0x79   : > { %p12376_p9 = pnand %p12374_p7, %p12371_p1 }
  0x7b   : > { %12379 = shalt.err (!%p12376_p9)
}
  0x7c   : > { %s12380_s22 = scalar_lea.vmem %s422_s3, 256  ;;  %p12388_p5 = scmp.lt.s32.totalorder %s422_s3, %s422_s3 }
  0x7d   : > { %p12381_p10 = scmp.ne.s32.totalorder %s422_s3, %s12380_s22  ;;  %p12389_p3 = scmp.lt.s32.totalorder %s12380_s22, %s12380_s22 }
  0x7f   : > { %p12383_p12 = pnand %p12381_p10, %p16498_p8  ;;  %p12390_p4 = por %p12389_p3, %p12388_p5 }
  0x81   : > { %p12384_p0 = pneg %p12383_p12 }
  0x83   : > { %p12391_p2 = pnand %p12390_p4, %p12384_p0 }
  0x85   : > { %12394 = shalt.err (!%p12391_p2)
}
  0x86   : > { %11679 = dma.hbm_to_vmem [thread:$0]  (!%p16499_p6), %s16300_s9, 256, %s422_s3, [#allocation14]  }
  0x87   : > { %s10394_s5 = sshll.u32 %s12623_s16, 7  ;;  %s485_s19 = scalar_lea.vmem [#allocation10], %s9896_s30 }
  0x88   : > { %s12898_s12 = scalar_lea.hbm %s16297_s6, %s10394_s5  ;;  %s493_s17 = sshll.u32 %s485_s19, 4  ;;  %s494_s17 = int_to_ptr.vmem [resolvable:$true] %s493_s17 }
  0x89   : > { %s12395_s23 = scalar_lea.hbm %s12898_s12, 128  ;;  %p16500_p11 = scmp.ne.s32.totalorder %s16497_s14, 0 }
  0x8a   : > { %p12396_p2 = scmp.ne.s32.totalorder %s12898_s12, %s12395_s23  ;;  %s12400_s29 = scalar_lea.hbm %s16297_s6, 256 }
  0x8b   : > { %p12401_p7 = scmp.lt.u32.totalorder %s12898_s12, %s16297_s6  ;;  %p12402_p9 = scmp.lt.u32.totalorder %s12400_s29, %s12395_s23 }
  0x8c   : > { %p12398_p13 = pnand %p12396_p2, %p16500_p11  ;;  %p12404_p12 = scmp.lt.u32.totalorder %s12395_s23, %s12898_s12 }
  0x8d   : > { %p12403_p10 = por %p12402_p9, %p12401_p7 }
  0x8e   : > { %p12399_p1 = pneg %p12398_p13 }
  0x8f   : > { %p12405_p0 = por %p12404_p12, %p12403_p10 }
  0x91   : > { %p12406_p5 = pnand %p12405_p0, %p12399_p1 }
  0x93   : > { %12409 = shalt.err (!%p12406_p5)
}
  0x94   : > { %s12410_s30 = scalar_lea.vmem %s494_s17, 128  ;;  %s12634_s22 = smov [#allocation10]  }
  0x95   : > { %p12411_p3 = scmp.ne.s32.totalorder %s494_s17, %s12410_s30  ;;  %s12415_s10 = sshll.u32 %s12634_s22, 4  ;;  %s12416_s10 = int_to_ptr.vmem [resolvable:$false] %s12415_s10 }
  0x96   : > { %s12417_s15 = scalar_lea.vmem %s12416_s10, 256  ;;  %p12418_p13 = scmp.lt.s32.totalorder %s494_s17, %s12416_s10 }
  0x97   : > { %p12413_p4 = pnand %p12411_p3, %p16500_p11  ;;  %p12419_p6 = scmp.lt.s32.totalorder %s12417_s15, %s12410_s30 }
  0x99   : > { %p12414_p2 = pneg %p12413_p4  ;;  %p12420_p8 = por %p12419_p6, %p12418_p13 }
  0x9b   : > { %p12421_p7 = pnand %p12420_p8, %p12414_p2 }
  0x9d   : > { %12424 = shalt.err (!%p12421_p7)
}
  0x9e   : > { %p16501_p9 = scmp.ne.s32.totalorder %s16496_s24, 0  ;;  %s12635_s5 = smov [#allocation12]  }
  0x9f   : > { %s410_s27 = sshll.u32 %s12635_s5, 4  ;;  %s12636_s0 = smov [#allocation15]   ;;  %s411_s27 = int_to_ptr.vmem [resolvable:$true] %s410_s27 }
  0xa0   : > { %11692 = dma.hbm_to_vmem [thread:$0]  (!%p16501_p9), %s12898_s12, 128, %s494_s17, %s12827_s1  }
  0xa1   : > { %s435_s19 = sshll.u32 %s12636_s0, 4  ;;  %s12425_s3 = scalar_lea.hbm %s16299_s8, 256  ;;  %s436_s19 = int_to_ptr.vmem [resolvable:$true] %s435_s19 }
  0xa2   : > { %p12426_p8 = scmp.ne.s32.totalorder %s16299_s8, %s12425_s3  ;;  %p16502_p6 = scmp.ne.s32.totalorder %s16490_s28, 0 }
  0xa3   : > { %p12432_p12 = scmp.lt.u32.totalorder %s12425_s3, %s16299_s8 }
  0xa4   : > { %p12428_p1 = pnand %p12426_p8, %p16502_p6 }
  0xa6   : > { %p12429_p10 = pneg %p12428_p1 }
  0xa8   : > { %p12434_p0 = pnand %p12432_p12, %p12429_p10 }
  0xaa   : > { %12437 = shalt.err (!%p12434_p0)
}
  0xab   : > { %s12438_s12 = scalar_lea.vmem %s411_s27, 256  ;;  %p12446_p2 = scmp.lt.s32.totalorder %s411_s27, %s411_s27 }
  0xac   : > { %p12439_p5 = scmp.ne.s32.totalorder %s411_s27, %s12438_s12  ;;  %p12447_p13 = scmp.lt.s32.totalorder %s12438_s12, %s12438_s12 }
  0xae   : > { %p12441_p3 = pnand %p12439_p5, %p16502_p6  ;;  %p12448_p7 = por %p12447_p13, %p12446_p2 }
  0xb0   : > { %p12442_p4 = pneg %p12441_p3 }
  0xb2   : > { %p12449_p9 = pnand %p12448_p7, %p12442_p4 }
  0xb4   : > { %12452 = shalt.err (!%p12449_p9)
}
  0xb5   : > { %p16503_p8 = scmp.ne.s32.totalorder %s16487_s21, 0  ;;  %s12453_s5 = scalar_lea.hbm %s16302_s11, 16 }
  0xb6   : > { %p12454_p1 = scmp.ne.s32.totalorder %s16302_s11, %s12453_s5  ;;  %p12460_p9 = scmp.lt.u32.totalorder %s12453_s5, %s16302_s11 }
  0xb7   : > { %11676 = dma.hbm_to_vmem [thread:$0]  (!%p16503_p8), %s16299_s8, 256, %s411_s27, [#allocation8]  }
  0xb8   : > { %p12456_p10 = pnand %p12454_p1, %p16502_p6 }
  0xba   : > { %p12457_p12 = pneg %p12456_p10 }
  0xbc   : > { %p12462_p0 = pnand %p12460_p9, %p12457_p12 }
  0xbe   : > { %12465 = shalt.err (!%p12462_p0)
}
  0xbf   : > { %s12466_s29 = scalar_lea.vmem %s436_s19, 16  ;;  %s12473_s27 = scalar_lea.vmem %s436_s19, 32 }
  0xc0   : > { %p12467_p5 = scmp.ne.s32.totalorder %s436_s19, %s12466_s29  ;;  %p12474_p2 = scmp.lt.s32.totalorder %s436_s19, %s436_s19 }
  0xc1   : > { %p12475_p13 = scmp.lt.s32.totalorder %s12473_s27, %s12466_s29 }
  0xc2   : > { %p12469_p3 = pnand %p12467_p5, %p16502_p6 }
  0xc3   : > { %p12476_p7 = por %p12475_p13, %p12474_p2 }
  0xc4   : > { %p12470_p4 = pneg %p12469_p3 }
  0xc6   : > { %p12477_p11 = pnand %p12476_p7, %p12470_p4 }
  0xc8   : > { %12480 = shalt.err (!%p12477_p11)
}
  0xc9   : > { %11682 = dma.hbm_to_vmem [thread:$0]  (!%p16503_p8), %s16302_s11, 16, %s436_s19, [#allocation14]  }
  0xca   : > { %s12637_s30 = smov [#allocation16]   ;;  %s9899_s17 = sshll.u32 %s12812_s4, 12 }
  0xcb   : > { %s449_s12 = sshll.u32 %s12637_s30, 4  ;;  %s12481_s15 = scalar_lea.hbm %s16304_s13, 16  ;;  %s450_s12 = int_to_ptr.vmem [resolvable:$true] %s449_s12 }
  0xcc   : > { %p12482_p11 = scmp.ne.s32.totalorder %s16304_s13, %s12481_s15  ;;  %p12488_p12 = scmp.lt.u32.totalorder %s12481_s15, %s16304_s13 }
  0xce   : > { %p12484_p1 = pnand %p12482_p11, %p16502_p6 }
  0xd0   : > { %p12485_p10 = pneg %p12484_p1 }
  0xd2   : > { %p12490_p9 = pnand %p12488_p12, %p12485_p10 }
  0xd4   : > { %12493 = shalt.err (!%p12490_p9)
}
  0xd5   : > { %s12494_s19 = scalar_lea.vmem %s450_s12, 16  ;;  %s12501_s4 = scalar_lea.vmem %s450_s12, 32 }
  0xd6   : > { %p12495_p0 = scmp.ne.s32.totalorder %s450_s12, %s12494_s19  ;;  %p12502_p4 = scmp.lt.s32.totalorder %s450_s12, %s450_s12 }
  0xd7   : > { %p12503_p2 = scmp.lt.s32.totalorder %s12501_s4, %s12494_s19 }
  0xd8   : > { %p12497_p5 = pnand %p12495_p0, %p16502_p6 }
  0xd9   : > { %p12504_p13 = por %p12503_p2, %p12502_p4 }
  0xda   : > { %p12498_p3 = pneg %p12497_p5 }
  0xdc   : > { %p12505_p7 = pnand %p12504_p13, %p12498_p3 }
  0xde   : > { %12508 = shalt.err (!%p12505_p7)
}
  0xdf   : > { %11685 = dma.hbm_to_vmem [thread:$0]  (!%p16503_p8), %s16304_s13, 16, %s450_s12, [#allocation17]  }
  0xe0   : > { %s10396_s27 = sshll.u32 %s12623_s16, 16  ;;  %s504_s18 = scalar_lea.vmem [#allocation11], %s9899_s17 }
  0xe1   : > { %s512_s25 = sshll.u32 %s504_s18, 4  ;;  %s12977_s22 = scalar_lea.hbm %s16298_s7, %s10396_s27  ;;  %s12979_s25 = int_to_ptr.vmem [resolvable:$true] %s512_s25 }
  0xe2   : > { %s12509_s21 = scalar_lea.hbm %s12977_s22, 65536  ;;  %p16504_p11 = scmp.ne.s32.totalorder %s16497_s14, 0 }
  0xe3   : > { %p12510_p6 = scmp.ne.s32.totalorder %s12977_s22, %s12509_s21  ;;  %s12514_s17 = scalar_lea.hbm %s16298_s7, 131072 }
  0xe4   : > { %p12515_p8 = scmp.lt.u32.totalorder %s12977_s22, %s16298_s7  ;;  %p12516_p12 = scmp.lt.u32.totalorder %s12514_s17, %s12509_s21 }
  0xe5   : > { %p12512_p1 = pnand %p12510_p6, %p16504_p11  ;;  %p12518_p0 = scmp.lt.u32.totalorder %s12509_s21, %s12977_s22 }
  0xe6   : > { %p12517_p9 = por %p12516_p12, %p12515_p8 }
  0xe7   : > { %p12513_p10 = pneg %p12512_p1 }
  0xe8   : > { %p12519_p5 = por %p12518_p0, %p12517_p9 }
  0xea   : > { %p12520_p3 = pnand %p12519_p5, %p12513_p10 }
  0xec   : > { %12523 = shalt.err (!%p12520_p3)
}
  0xed   : > { %s12524_s5 = scalar_lea.vmem %s12979_s25, 65536  ;;  %s12638_s0 = smov [#allocation11]  }
  0xee   : > { %p12525_p4 = scmp.ne.s32.totalorder %s12979_s25, %s12524_s5  ;;  %s12529_s23 = sshll.u32 %s12638_s0, 4  ;;  %s12530_s23 = int_to_ptr.vmem [resolvable:$false] %s12529_s23 }
  0xef   : > { %s12531_s26 = scalar_lea.vmem %s12530_s23, 131072  ;;  %p12532_p7 = scmp.lt.s32.totalorder %s12979_s25, %s12530_s23 }
  0xf0   : > { %p12527_p2 = pnand %p12525_p4, %p16504_p11  ;;  %p12533_p6 = scmp.lt.s32.totalorder %s12531_s26, %s12524_s5 }
  0xf2   : > { %p12528_p13 = pneg %p12527_p2  ;;  %p12534_p1 = por %p12533_p6, %p12532_p7 }
  0xf4   : > { %p12535_p8 = pnand %p12534_p1, %p12528_p13 }
  0xf6   : > { %12538 = shalt.err (!%p12535_p8)
}
  0xf7   : > { %s12639_s19 = smov 2048   ;;  %p16505_p10 = scmp.ne.s32.totalorder %s16496_s24, 0 }
  0xf8   : > { %s16506_s4 = smov 128   ;;  %p16507_p11 = scmp.ne.s32.totalorder %s16486_s20, 0 }
  0xf9   : > { %11695 = dma.hbm_to_vmem [thread:$0]  (!%p16505_p10), %s12977_s22, 65536, %s12979_s25, %s12827_s1, %s12639_s19, %s12639_s19, %s16506_s4  }
  0xfa   : > { %524 = sbr.rel (%p16507_p11) target bundleno = 3563 (0xdeb), region = 76  ;;  %s16508_s14 = sld [smem:[#allocation28_spill]] (!%p16507_p11) }
 0x100   : > { %p16509_p12 = scmp.eq.s32.totalorder (!%p16507_p11), %s16508_s14, 0 }
 0x102   : > { %12582 = dma.done.wait (%p16509_p12), [#allocation5], 512   ;;  %p16510_p9 = pmov %p16509_p12 }
 0x104   : > { %12584 = vsyncadd (%p16510_p9), [#allocation5], 4294966784  ;;  %p16511_p0 = pmov %p16510_p9 }
 0x106   : > { %12586 = dma.done.wait (%p16511_p0), [#allocation8], 16   ;;  %p16512_p5 = pmov %p16511_p0 }
 0x107   : > { %s16513_s24 = sld [smem:[#allocation26_spill]]  ;;  %s16514_s3 = sld [smem:[#allocation31_spill]] }
 0x108   : > { %12588 = vsyncadd (%p16512_p5), [#allocation8], 4294967280  ;;  %s534_s29 = sand.u32 1, %s16508_s14  }
 0x109   : > { %s535_s20 = scalar_lea.sflag [#allocation5], %s534_s29 }
 0x10d   : > { %s536_s1 = sand.u32 1, %s16513_s24   ;;  %p16515_p3 = scmp.ne.s32.totalorder %s16514_s3, 0 }
 0x10e   : > { %s9906_s27 = sshll.u32 %s536_s1, 7 }
 0x10f   : > { %s13016_s18 = scalar_lea.vmem [#allocation9], %s9906_s27 }
 0x110   : > { %12590 = dma.done.wait (%p16515_p3), %s535_s20, 67712  }
 0x111   : > { %12592 = vsyncadd (%p16515_p3), %s535_s20, 4294899584  ;;  %s9907_s25 = sshll.u32 %s536_s1, 3  ;;  %s9908_s28 = sshll.u32 %s536_s1, 12 }
 0x112   : > { %s13022_s30 = scalar_lea.vmem [#allocation10], %s9907_s25  ;;  %s13024_s22 = scalar_lea.vmem [#allocation11], %s9908_s28 }
 0x113   : > { %p16516_p4 = pmov %p16511_p0 }
 0x114   : > { %p16517_p2 = pmov %p16511_p0 }
 0x115   : > { %12594 = dma.done.wait (%p16516_p4), [#allocation8], 256  }
 0x116   : > { %12596 = vsyncadd (%p16517_p2), [#allocation8], 4294967040  ;;  %p16518_p13 = pmov %p16511_p0 }
 0x117   : > { %p16519_p7 = pmov %p16511_p0 }
 0x118   : > { %12598 = dma.done.wait (%p16518_p13), [#allocation14], 272  }
 0x119   : > { %12600 = vsyncadd (%p16519_p7), [#allocation14], 4294967024  ;;  %p16520_p6 = pmov %p16511_p0 }
 0x11a   : > { %p16521_p1 = pmov %p16511_p0 }
 0x11b   : > { %12602 = dma.done.wait (%p16520_p6), [#allocation17], 16  }
 0x11c   : > { %12604 = vsyncadd (%p16521_p1), [#allocation17], 4294967280  ;;  %p16522_p8 = scmp.ne.s32.totalorder %s16508_s14, 0 }
 0x11e   : > { %629 = sbr.rel (%p16522_p8) target bundleno = 1534 (0x5fe), region = 116 }
 0x125   : > { %v694_v0 = vld [vmem:[#allocation4] sm:$0xff]  ;;  %v695_v1 = vld [vmem:[#allocation4 + $0x8] sm:$0xff]  ;;  %v696_v2 = vld [vmem:[#allocation4 + $0x10] sm:$0xff]  ;;  %vm898_vm0 = vcmask 1042432   ;;  %vm705_vm1 = vcmask 220160   ;;  %s16523_s16 = sld [smem:[#allocation171_spill]] }
 0x126   : > { %v11306_v3 = vpack.c.bf16 %v695_v1, %v694_v0  ;;  %v697_v4 = vld [vmem:[#allocation4 + $0x18] sm:$0x7]  ;;  %vm12640_vm2 = vmmov 1   ;;  %s16525_s10 = sld [smem:[#allocation173_spill]]  ;;  %s16526_s24 = sld [smem:[#allocation174_spill]]  ;;  %vm1355_vm4 = vcmask 261120  }
 0x127   : > { %v11310_v6 = vpack.c.bf16 %v697_v4, %v696_v2  ;;  %vm11311_vm3 = vmpackc.low %vm898_vm0, %vm12640_vm2  ;;  %vm4581_vm6 = vcmask 1041409   ;;  %vm4584_vm7 = vcmask 254976  }
 0x128   : > { %11307 = vmatprep.subr.bf16.mxu0 %v11306_v3  ;;  %11533 = vmatprep.subr.bf16.mxu1 %v11306_v3  ;;  %vm13501_vm5 = vmpackc.low %vm1355_vm4, %vm1355_vm4 }
 0x129   : > { %11309 = vmatpush3.bf16.msra.mxu0 %v11306_v3  ;;  %11535 = vmatpush3.bf16.msra.mxu1 %v11306_v3 }
 0x12a   : > { %11312 = vmatprep.subr.msk.bf16.mxu0 %vm11311_vm3, %v11310_v6  ;;  %11534 = vmatprep.subr.msk.bf16.mxu1 %vm11311_vm3, %v11310_v6 }
 0x12b   : > { %s16524_s17 = smov %s16523_s16  ;;  %v630_v5 = vld [vmem:[%s16523_s16] sm:$0xff] }
 0x12c   : > { %10985 = vmatprep.mubr.msk.f32.mxu0 %vm705_vm1, %v630_v5  ;;  %v662_v7 = vld [vmem:[%s16524_s17 + $0x100] sm:$0xff]  ;;  %v631_v8 = vld [vmem:[%s16524_s17 + $0x8] sm:$0xff]  ;;  %v632_v10 = vld [vmem:[%s16524_s17 + $0x10] sm:$0xff] }
 0x12d   : > { %11315 = vmatpush3.bf16.msk.msra.mxu0 %vm11311_vm3, %v11310_v6  ;;  %11536 = vmatpush3.bf16.msk.msra.mxu1 %vm11311_vm3, %v11310_v6  ;;  %v663_v9 = vld [vmem:[%s16524_s17 + $0x108] sm:$0xff]  ;;  %v664_v11 = vld [vmem:[%s16524_s17 + $0x110] sm:$0xff]  ;;  %v633_v12 = vld [vmem:[%s16524_s17 + $0x18] sm:$0xff] }
 0x12e   : > { %11033 = vmatprep.mubr.msk.f32.mxu1 %vm705_vm1, %v662_v7  ;;  %v665_v13 = vld [vmem:[%s16524_s17 + $0x118] sm:$0xff]  ;;  %v634_v14 = vld [vmem:[%s16524_s17 + $0x20] sm:$0xff]  ;;  %v635_v16 = vld [vmem:[%s16524_s17 + $0x28] sm:$0xff] }
 0x12f   : > { %v666_v15 = vld [vmem:[%s16524_s17 + $0x120] sm:$0xff]  ;;  %v667_v17 = vld [vmem:[%s16524_s17 + $0x128] sm:$0xff]  ;;  %v636_v18 = vld [vmem:[%s16524_s17 + $0x30] sm:$0xff] }
 0x130   : > { %10986 = vmatmul.mubr.msk.f32.vlgmr.msra.gmra.mrb[0].mxu0 %vm705_vm1, %v631_v8  ;;  %11034 = vmatmul.mubr.msk.f32.vlgmr.msra.gmra.mrb[0].mxu1 %vm705_vm1, %v663_v9  ;;  %v668_v19 = vld [vmem:[%s16524_s17 + $0x130] sm:$0xff]  ;;  %v637_v20 = vld [vmem:[%s16524_s17 + $0x38] sm:$0xff]  ;;  %v638_v22 = vld [vmem:[%s16524_s17 + $0x40] sm:$0xff] }
 0x131   : > { %10988 = vmatprep.mubr.msk.f32.mxu0 %vm705_vm1, %v632_v10  ;;  %11036 = vmatprep.mubr.msk.f32.mxu1 %vm705_vm1, %v664_v11  ;;  %v669_v21 = vld [vmem:[%s16524_s17 + $0x138] sm:$0xff]  ;;  %v670_v23 = vld [vmem:[%s16524_s17 + $0x140] sm:$0xff]  ;;  %v639_v24 = vld [vmem:[%s16524_s17 + $0x48] sm:$0xff] }
 0x132   : > { %v671_v25 = vld [vmem:[%s16524_s17 + $0x148] sm:$0xff]  ;;  %v1351_v26 = vld [vmem:[%s16525_s10] sm:$0xff]  ;;  %v1353_v28 = vld [vmem:[%s16525_s10 + $0x10] sm:$0xff] }
 0x133   : > { %v1352_v27 = vld [vmem:[%s16525_s10 + $0x8] sm:$0xff]  ;;  %v1354_v30 = vld [vmem:[%s16525_s10 + $0x18] sm:$0xff]  ;;  %v1933_v31 = vld [vmem:[%s16526_s24] sm:$0xff] }
 0x134   : > { %10989 = vmatmul.mubr.msk.f32.gmra.mrb[2].mxu0 %vm705_vm1, %v633_v12  ;;  %11037 = vmatmul.mubr.msk.f32.gmra.mrb[2].mxu1 %vm705_vm1, %v665_v13  ;;  %v11316_v29 = vpack.c.bf16 %v1352_v27, %v1351_v26  ;;  %v1934_v32 = vld [vmem:[%s16526_s24 + $0x8] sm:$0xff]  ;;  %v640_v33 = vld [vmem:[%s16524_s17 + $0x50] sm:$0xff]  ;;  %v11320_v36 = vpack.c.bf16 %v1354_v30, %v1353_v28  ;;  %v641_v37 = vld [vmem:[%s16524_s17 + $0x58] sm:$0xff] }
 0x135   : > { %10991 = vmatprep.mubr.msk.f32.mxu0 %vm705_vm1, %v634_v14  ;;  %11039 = vmatprep.mubr.msk.f32.mxu1 %vm705_vm1, %v666_v15  ;;  %v672_v34 = vld [vmem:[%s16524_s17 + $0x150] sm:$0xff]  ;;  %v11324_v35 = vpack.c.bf16 %v1934_v32, %v1933_v31  ;;  %v673_v38 = vld [vmem:[%s16524_s17 + $0x158] sm:$0xff]  ;;  %v642_v39 = vld [vmem:[%s16524_s17 + $0x60] sm:$0xff] }
 0x136   : > { %11317 = vmatprep.subr.bf16.mxu1 %v11316_v29  ;;  %v674_v40 = vld [vmem:[%s16524_s17 + $0x160] sm:$0xff]  ;;  %v643_v41 = vld [vmem:[%s16524_s17 + $0x68] sm:$0xff]  ;;  %v644_v43 = vld [vmem:[%s16524_s17 + $0x70] sm:$0xff] }
 0x137   : > { %11319 = vmatpush3.bf16.msra.mxu1 %v11316_v29  ;;  %11325 = vmatprep.subr.bf16.mxu0 %v11324_v35  ;;  %v675_v42 = vld [vmem:[%s16524_s17 + $0x168] sm:$0xff]  ;;  %v676_v44 = vld [vmem:[%s16524_s17 + $0x170] sm:$0xff]  ;;  %v645_v45 = vld [vmem:[%s16524_s17 + $0x78] sm:$0xff] }
 0x138   : > { %10992 = vmatmul.mubr.msk.f32.gmra.mrb[4].mxu0 %vm705_vm1, %v635_v16  ;;  %11040 = vmatmul.mubr.msk.f32.gmra.mrb[4].mxu1 %vm705_vm1, %v667_v17  ;;  %v677_v46 = vld [vmem:[%s16524_s17 + $0x178] sm:$0xff]  ;;  %v646_v47 = vld [vmem:[%s16524_s17 + $0x80] sm:$0xff]  ;;  %v647_v49 = vld [vmem:[%s16524_s17 + $0x88] sm:$0xff] }
 0x139   : > { %10994 = vmatprep.mubr.msk.f32.mxu0 %vm705_vm1, %v636_v18  ;;  %11042 = vmatprep.mubr.msk.f32.mxu1 %vm705_vm1, %v668_v19  ;;  %v678_v48 = vld [vmem:[%s16524_s17 + $0x180] sm:$0xff]  ;;  %v679_v50 = vld [vmem:[%s16524_s17 + $0x188] sm:$0xff]  ;;  %v648_v51 = vld [vmem:[%s16524_s17 + $0x90] sm:$0xff] }
 0x13a   : > { %11321 = vmatprep.subr.bf16.mxu1 %v11320_v36  ;;  %11327 = vmatpush3.bf16.msra.mxu0 %v11324_v35  ;;  %v680_v52 = vld [vmem:[%s16524_s17 + $0x190] sm:$0xff]  ;;  %v649_v53 = vld [vmem:[%s16524_s17 + $0x98] sm:$0xff]  ;;  %v650_v55 = vld [vmem:[%s16524_s17 + $0xa0] sm:$0xff] }
 0x13b   : > { %11323 = vmatpush3.bf16.msra.mxu1 %v11320_v36  ;;  %v681_v54 = vld [vmem:[%s16524_s17 + $0x198] sm:$0xff]  ;;  %v682_v56 = vld [vmem:[%s16524_s17 + $0x1a0] sm:$0xff]  ;;  %v651_v57 = vld [vmem:[%s16524_s17 + $0xa8] sm:$0xff] }
 0x13c   : > { %10995 = vmatmul.mubr.msk.f32.gmra.mrb[6].mxu0 %vm705_vm1, %v637_v20  ;;  %11043 = vmatmul.mubr.msk.f32.gmra.mrb[6].mxu1 %vm705_vm1, %v669_v21  ;;  %v683_v58 = vld [vmem:[%s16524_s17 + $0x1a8] sm:$0xff]  ;;  %v652_v59 = vld [vmem:[%s16524_s17 + $0xb0] sm:$0xff]  ;;  %v653_v61 = vld [vmem:[%s16524_s17 + $0xb8] sm:$0xff] }
 0x13d   : > { %10997 = vmatprep.mubr.msk.f32.mxu0 %vm705_vm1, %v638_v22  ;;  %11045 = vmatprep.mubr.msk.f32.mxu1 %vm705_vm1, %v670_v23  ;;  %v684_v60 = vld [vmem:[%s16524_s17 + $0x1b0] sm:$0xff]  ;;  %v685_v62 = vld [vmem:[%s16524_s17 + $0x1b8] sm:$0xff]  ;;  %v654_v63 = vld [vmem:[%s16524_s17 + $0xc0] sm:$0xff] }
 0x13e   : > { %v686_v0 = vld [vmem:[%s16524_s17 + $0x1c0] sm:$0xff]  ;;  %v655_v1 = vld [vmem:[%s16524_s17 + $0xc8] sm:$0xff]  ;;  %v656_v3 = vld [vmem:[%s16524_s17 + $0xd0] sm:$0xff] }
 0x13f   : > { %v687_v2 = vld [vmem:[%s16524_s17 + $0x1c8] sm:$0xff]  ;;  %v688_v4 = vld [vmem:[%s16524_s17 + $0x1d0] sm:$0xff]  ;;  %v657_v5 = vld [vmem:[%s16524_s17 + $0xd8] sm:$0xff] }
 0x140   : > { %10998 = vmatmul.mubr.msk.f32.gmra.mrb[8].mxu0 %vm705_vm1, %v639_v24  ;;  %11046 = vmatmul.mubr.msk.f32.gmra.mrb[8].mxu1 %vm705_vm1, %v671_v25  ;;  %v689_v6 = vld [vmem:[%s16524_s17 + $0x1d8] sm:$0xff]  ;;  %v658_v7 = vld [vmem:[%s16524_s17 + $0xe0] sm:$0xff]  ;;  %v659_v9 = vld [vmem:[%s16524_s17 + $0xe8] sm:$0xff] }
 0x141   : > { %11000 = vmatprep.mubr.msk.f32.mxu0 %vm705_vm1, %v640_v33  ;;  %11048 = vmatprep.mubr.msk.f32.mxu1 %vm705_vm1, %v672_v34  ;;  %v690_v8 = vld [vmem:[%s16524_s17 + $0x1e0] sm:$0xff]  ;;  %v691_v10 = vld [vmem:[%s16524_s17 + $0x1e8] sm:$0xff]  ;;  %v660_v11 = vld [vmem:[%s16524_s17 + $0xf0] sm:$0xff] }
 0x142   : > { %v692_v12 = vld [vmem:[%s16524_s17 + $0x1f0] sm:$0xff]  ;;  %v661_v13 = vld [vmem:[%s16524_s17 + $0xf8] sm:$0xff]  ;;  %v13320_v18 = vld [vmem:[#allocation7] ss:$0 sm:$0xff] }
 0x143   : > { %v693_v14 = vld [vmem:[%s16524_s17 + $0x1f8] sm:$0xff]  ;;  %v1935_v15 = vld [vmem:[%s16526_s24 + $0x10] sm:$0xff] }
 0x144   : > { %11001 = vmatmul.mubr.msk.f32.gmra.mrb[10].mxu0 %vm705_vm1, %v641_v37  ;;  %11049 = vmatmul.mubr.msk.f32.gmra.mrb[10].mxu1 %vm705_vm1, %v673_v38  ;;  %v1936_v16 = vld [vmem:[%s16526_s24 + $0x18] sm:$0xff] }
 0x145   : > { %11003 = vmatprep.mubr.msk.f32.mxu0 %vm705_vm1, %v642_v39  ;;  %11051 = vmatprep.mubr.msk.f32.mxu1 %vm705_vm1, %v674_v40  ;;  %v11328_v17 = vpack.c.bf16 %v1936_v16, %v1935_v15 }
 0x147   : > { %11329 = vmatprep.subr.bf16.mxu0 %v11328_v17 }
 0x148   : > { %11004 = vmatmul.mubr.msk.f32.gmra.mrb[12].mxu0 %vm705_vm1, %v643_v41  ;;  %11052 = vmatmul.mubr.msk.f32.gmra.mrb[12].mxu1 %vm705_vm1, %v675_v42 }
 0x149   : > { %11006 = vmatprep.mubr.msk.f32.mxu0 %vm705_vm1, %v644_v43  ;;  %11054 = vmatprep.mubr.msk.f32.mxu1 %vm705_vm1, %v676_v44 }
 0x14a   : > { %11331 = vmatpush3.bf16.msra.mxu0 %v11328_v17 }
 0x14c   : > { %11007 = vmatmul.mubr.msk.f32.gmra.mrb[14].mxu0 %vm705_vm1, %v645_v45  ;;  %11055 = vmatmul.mubr.msk.f32.gmra.mrb[14].mxu1 %vm705_vm1, %v677_v46 }
 0x14d   : > { %11009 = vmatprep.mubr.msk.f32.mxu0 %vm705_vm1, %v646_v47  ;;  %11057 = vmatprep.mubr.msk.f32.mxu1 %vm705_vm1, %v678_v48 }
 0x150   : > { %11010 = vmatmul.mubr.msk.f32.gmra.mrb[16].mxu0 %vm705_vm1, %v647_v49  ;;  %11058 = vmatmul.mubr.msk.f32.gmra.mrb[16].mxu1 %vm705_vm1, %v679_v50 }
 0x151   : > { %11012 = vmatprep.mubr.msk.f32.mxu0 %vm705_vm1, %v648_v51  ;;  %11060 = vmatprep.mubr.msk.f32.mxu1 %vm705_vm1, %v680_v52 }
 0x154   : > { %11013 = vmatmul.mubr.msk.f32.gmra.mrb[18].mxu0 %vm705_vm1, %v649_v53  ;;  %11061 = vmatmul.mubr.msk.f32.gmra.mrb[18].mxu1 %vm705_vm1, %v681_v54 }
 0x155   : > { %11015 = vmatprep.mubr.msk.f32.mxu0 %vm705_vm1, %v650_v55  ;;  %11063 = vmatprep.mubr.msk.f32.mxu1 %vm705_vm1, %v682_v56 }
 0x158   : > { %11016 = vmatmul.mubr.msk.f32.gmra.mrb[20].mxu0 %vm705_vm1, %v651_v57  ;;  %11064 = vmatmul.mubr.msk.f32.gmra.mrb[20].mxu1 %vm705_vm1, %v683_v58 }
 0x159   : > { %11018 = vmatprep.mubr.msk.f32.mxu0 %vm705_vm1, %v652_v59  ;;  %11066 = vmatprep.mubr.msk.f32.mxu1 %vm705_vm1, %v684_v60 }
 0x15c   : > { %11019 = vmatmul.mubr.msk.f32.gmra.mrb[22].mxu0 %vm705_vm1, %v653_v61  ;;  %11067 = vmatmul.mubr.msk.f32.gmra.mrb[22].mxu1 %vm705_vm1, %v685_v62 }
 0x15d   : > { %11021 = vmatprep.mubr.msk.f32.mxu0 %vm705_vm1, %v654_v63  ;;  %11069 = vmatprep.mubr.msk.f32.mxu1 %vm705_vm1, %v686_v0 }
 0x160   : > { %11022 = vmatmul.mubr.msk.f32.gmra.mrb[24].mxu0 %vm705_vm1, %v655_v1  ;;  %11070 = vmatmul.mubr.msk.f32.gmra.mrb[24].mxu1 %vm705_vm1, %v687_v2 }
 0x161   : > { %11024 = vmatprep.mubr.msk.f32.mxu0 %vm705_vm1, %v656_v3  ;;  %11072 = vmatprep.mubr.msk.f32.mxu1 %vm705_vm1, %v688_v4 }
 0x164   : > { %11025 = vmatmul.mubr.msk.f32.gmra.mrb[26].mxu0 %vm705_vm1, %v657_v5  ;;  %11073 = vmatmul.mubr.msk.f32.gmra.mrb[26].mxu1 %vm705_vm1, %v689_v6 }
 0x165   : > { %11027 = vmatprep.mubr.msk.f32.mxu0 %vm705_vm1, %v658_v7  ;;  %11075 = vmatprep.mubr.msk.f32.mxu1 %vm705_vm1, %v690_v8 }
 0x168   : > { %11028 = vmatmul.mubr.msk.f32.gmra.mrb[28].mxu0 %vm705_vm1, %v659_v9  ;;  %11076 = vmatmul.mubr.msk.f32.gmra.mrb[28].mxu1 %vm705_vm1, %v691_v10 }
 0x169   : > { %11030 = vmatprep.mubr.msk.f32.mxu0 %vm705_vm1, %v660_v11  ;;  %11078 = vmatprep.mubr.msk.f32.mxu1 %vm705_vm1, %v692_v12 }
 0x16c   : > { %11031 = vmatmul.mubr.msk.f32.gmra.mrb[30].mxu0 %vm705_vm1, %v661_v13  ;;  %11079 = vmatmul.mubr.msk.f32.gmra.mrb[30].mxu1 %vm705_vm1, %v693_v14 }
 0x203   : > { %v10987_v19 = vpop.f32.mrb[0].mxu0  ;;  %v13322_v20 = vpop.f32.mrb[0].mxu1 }
 0x204   : > { %v974_v21 = vadd.f32 %v10987_v19, %v13320_v18  ;;  %v968_v22 = vpop.f32.mrb[1].mxu0  ;;  %v13325_v23 = vpop.f32.mrb[1].mxu1  ;;  %v1134_v17 = vadd.f32 %v13322_v20, %v13320_v18 }
 0x205   : > { %v969_v24 = vadd.f32 %v13320_v18, %v968_v22 }
 0x206   : > { %v13332_v28 = vmax.f32 %v974_v21, 0.0 }
 0x207   : > { %v13328_v25 = vmax.f32 %v969_v24, 0.0  ;;  %v10990_v26 = vpop.f32.mrb[2].mxu0  ;;  %v13330_v27 = vpop.f32.mrb[2].mxu1 }
 0x208   : > { %16528 = vst [vmem:[#allocation33_spill] sm:$0xff] %v13332_v28  ;;  %v984_v29 = vadd.f32 %v10990_v26, %v13320_v18  ;;  %v978_v30 = vpop.f32.mrb[3].mxu0  ;;  %v13335_v31 = vpop.f32.mrb[3].mxu1  ;;  %v1129_v26 = vadd.f32 %v13320_v18, %v13325_v23 }
 0x209   : > { %16527 = vst [vmem:[#allocation32_spill] sm:$0xff] %v13328_v25  ;;  %v979_v32 = vadd.f32 %v13320_v18, %v978_v30  ;;  %11089 = vmatprep.mubr.msk.f32.mxu1 %vm1355_vm4, %v13328_v25  ;;  %11193 = vmatprep.mubr.msk.f32.mxu0 %vm1355_vm4, %v13328_v25 }
 0x20a   : > { %11090 = vmatmul.mubr.msk.f32.vlgmr.msra.gmra.mrb[32].mxu1 %vm1355_vm4, %v13332_v28  ;;  %11194 = vmatmul.mubr.msk.f32.vlgmr.msra.gmra.mrb[32].mxu0 %vm1355_vm4, %v13332_v28  ;;  %v13350_v36 = vmax.f32 %v984_v29, 0.0 }
 0x20b   : > { %v13346_v33 = vmax.f32 %v979_v32, 0.0  ;;  %v10993_v34 = vpop.f32.mrb[4].mxu0  ;;  %v13348_v35 = vpop.f32.mrb[4].mxu1 }
 0x20c   : > { %16530 = vst [vmem:[#allocation35_spill] sm:$0xff] %v13350_v36  ;;  %v994_v37 = vadd.f32 %v10993_v34, %v13320_v18  ;;  %v988_v38 = vpop.f32.mrb[5].mxu0  ;;  %v13353_v39 = vpop.f32.mrb[5].mxu1 }
 0x20d   : > { %16529 = vst [vmem:[#allocation34_spill] sm:$0xff] %v13346_v33  ;;  %v989_v40 = vadd.f32 %v13320_v18, %v988_v38  ;;  %11092 = vmatprep.mubr.msk.f32.mxu1 %vm1355_vm4, %v13346_v33  ;;  %11196 = vmatprep.mubr.msk.f32.mxu0 %vm1355_vm4, %v13346_v33 }
 0x20e   : > { %11093 = vmatmul.mubr.msk.f32.gmra.mrb[34].mxu1 %vm1355_vm4, %v13350_v36  ;;  %11197 = vmatmul.mubr.msk.f32.gmra.mrb[34].mxu0 %vm1355_vm4, %v13350_v36  ;;  %v13368_v44 = vmax.f32 %v994_v37, 0.0  ;;  %v13468_v37 = vmax.f32 %v1134_v17, 0.0 }
 0x20f   : > { %v13364_v41 = vmax.f32 %v989_v40, 0.0  ;;  %v10996_v42 = vpop.f32.mrb[6].mxu0  ;;  %v13366_v43 = vpop.f32.mrb[6].mxu1 }
 0x210   : > { %16532 = vst [vmem:[#allocation37_spill] sm:$0xff] %v13368_v44  ;;  %v1004_v45 = vadd.f32 %v10996_v42, %v13320_v18  ;;  %v998_v46 = vpop.f32.mrb[7].mxu0  ;;  %v13371_v47 = vpop.f32.mrb[7].mxu1  ;;  %16542 = vst [vmem:[#allocation47_spill] sm:$0xff] %v13468_v37 }
 0x211   : > { %16531 = vst [vmem:[#allocation36_spill] sm:$0xff] %v13364_v41  ;;  %v999_v48 = vadd.f32 %v13320_v18, %v998_v46  ;;  %11095 = vmatprep.mubr.msk.f32.mxu1 %vm1355_vm4, %v13364_v41  ;;  %11199 = vmatprep.mubr.msk.f32.mxu0 %vm1355_vm4, %v13364_v41  ;;  %v13473_v46 = vmax.f32 %v1129_v26, 0.0 }
 0x212   : > { %11096 = vmatmul.mubr.msk.f32.gmra.mrb[36].mxu1 %vm1355_vm4, %v13368_v44  ;;  %11200 = vmatmul.mubr.msk.f32.gmra.mrb[36].mxu0 %vm1355_vm4, %v13368_v44  ;;  %v13384_v52 = vmax.f32 %v1004_v45, 0.0 }
 0x213   : > { %v13382_v49 = vmax.f32 %v999_v48, 0.0  ;;  %v10999_v50 = vpop.f32.mrb[8].mxu0  ;;  %v11047_v51 = vpop.f32.mrb[8].mxu1  ;;  %16544 = vst [vmem:[#allocation49_spill] sm:$0xff] %v13473_v46 }
 0x214   : > { %16534 = vst [vmem:[#allocation39_spill] sm:$0xff] %v13384_v52  ;;  %v1014_v53 = vadd.f32 %v10999_v50, %v13320_v18  ;;  %v1008_v54 = vpop.f32.mrb[9].mxu0  ;;  %v13388_v55 = vadd.f32 %v11047_v51, %v13320_v18  ;;  %v1168_v56 = vpop.f32.mrb[9].mxu1 }
 0x215   : > { %16533 = vst [vmem:[#allocation38_spill] sm:$0xff] %v13382_v49  ;;  %v1009_v57 = vadd.f32 %v13320_v18, %v1008_v54  ;;  %11098 = vmatprep.mubr.msk.f32.mxu1 %vm1355_vm4, %v13382_v49  ;;  %11202 = vmatprep.mubr.msk.f32.mxu0 %vm1355_vm4, %v13382_v49  ;;  %v13396_v58 = vadd.f32 %v13320_v18, %v1168_v56 }
 0x216   : > { %11099 = vmatmul.mubr.msk.f32.gmra.mrb[38].mxu1 %vm1355_vm4, %v13384_v52  ;;  %11203 = vmatmul.mubr.msk.f32.gmra.mrb[38].mxu0 %vm1355_vm4, %v13384_v52  ;;  %v13404_v62 = vmax.f32 %v1014_v53, 0.0 }
 0x217   : > { %v13402_v59 = vmax.f32 %v1009_v57, 0.0  ;;  %v11002_v60 = vpop.f32.mrb[10].mxu0  ;;  %v11050_v61 = vpop.f32.mrb[10].mxu1 }
 0x218   : > { %16536 = vst [vmem:[#allocation41_spill] sm:$0xff] %v13404_v62  ;;  %v1024_v63 = vadd.f32 %v11002_v60, %v13320_v18  ;;  %v1018_v0 = vpop.f32.mrb[11].mxu0  ;;  %v13408_v1 = vadd.f32 %v11050_v61, %v13320_v18  ;;  %v1178_v2 = vpop.f32.mrb[11].mxu1  ;;  %v1144_v61 = vadd.f32 %v13330_v27, %v13320_v18 }
 0x219   : > { %16535 = vst [vmem:[#allocation40_spill] sm:$0xff] %v13402_v59  ;;  %v1019_v3 = vadd.f32 %v13320_v18, %v1018_v0  ;;  %11101 = vmatprep.mubr.msk.f32.mxu1 %vm1355_vm4, %v13402_v59  ;;  %11205 = vmatprep.mubr.msk.f32.mxu0 %vm1355_vm4, %v13402_v59  ;;  %v13420_v4 = vadd.f32 %v13320_v18, %v1178_v2 }
 0x21a   : > { %11102 = vmatmul.mubr.msk.f32.gmra.mrb[40].mxu1 %vm1355_vm4, %v13404_v62  ;;  %11206 = vmatmul.mubr.msk.f32.gmra.mrb[40].mxu0 %vm1355_vm4, %v13404_v62  ;;  %v13424_v8 = vmax.f32 %v1024_v63, 0.0  ;;  %v11335_v2 = vpack.c.bf16 %v13332_v28, %v13328_v25 }
 0x21b   : > { %v13422_v5 = vmax.f32 %v1019_v3, 0.0  ;;  %v11005_v6 = vpop.f32.mrb[12].mxu0  ;;  %v11053_v7 = vpop.f32.mrb[12].mxu1 }
 0x21c   : > { %16538 = vst [vmem:[#allocation43_spill] sm:$0xff] %v13424_v8  ;;  %v1034_v9 = vadd.f32 %v11005_v6, %v13320_v18  ;;  %v1028_v10 = vpop.f32.mrb[13].mxu0  ;;  %v13428_v11 = vadd.f32 %v11053_v7, %v13320_v18  ;;  %v1188_v12 = vpop.f32.mrb[13].mxu1 }
 0x21d   : > { %16537 = vst [vmem:[#allocation42_spill] sm:$0xff] %v13422_v5  ;;  %v1029_v13 = vadd.f32 %v13320_v18, %v1028_v10  ;;  %11104 = vmatprep.mubr.msk.f32.mxu1 %vm1355_vm4, %v13422_v5  ;;  %11208 = vmatprep.mubr.msk.f32.mxu0 %vm1355_vm4, %v13422_v5  ;;  %v13436_v14 = vadd.f32 %v13320_v18, %v1188_v12 }
 0x21e   : > { %11105 = vmatmul.mubr.msk.f32.gmra.mrb[42].mxu1 %vm1355_vm4, %v13424_v8  ;;  %11209 = vmatmul.mubr.msk.f32.gmra.mrb[42].mxu0 %vm1355_vm4, %v13424_v8  ;;  %v13446_v21 = vmax.f32 %v1034_v9, 0.0  ;;  %v11383_v9 = vpack.c.bf16 %v13468_v37, %v13473_v46 }
 0x21f   : > { %v13442_v15 = vmax.f32 %v1029_v13, 0.0  ;;  %v11008_v16 = vpop.f32.mrb[14].mxu0  ;;  %v11056_v19 = vpop.f32.mrb[14].mxu1 }
 0x220   : > { %16540 = vst [vmem:[#allocation45_spill] sm:$0xff] %v13446_v21  ;;  %v1044_v22 = vadd.f32 %v11008_v16, %v13320_v18  ;;  %v1038_v24 = vpop.f32.mrb[15].mxu0  ;;  %v13452_v29 = vadd.f32 %v11056_v19, %v13320_v18  ;;  %v1198_v30 = vpop.f32.mrb[15].mxu1  ;;  %v1139_v19 = vadd.f32 %v13320_v18, %v13335_v31  ;;  %v13537_v31 = vmax.f32 %v1144_v61, 0.0 }
 0x221   : > { %16539 = vst [vmem:[#allocation44_spill] sm:$0xff] %v13442_v15  ;;  %v1039_v32 = vadd.f32 %v13320_v18, %v1038_v24  ;;  %11107 = vmatprep.mubr.msk.f32.mxu1 %vm1355_vm4, %v13442_v15  ;;  %11211 = vmatprep.mubr.msk.f32.mxu0 %vm1355_vm4, %v13442_v15  ;;  %v13464_v20 = vadd.f32 %v13320_v18, %v1198_v30 }
 0x222   : > { %11108 = vmatmul.mubr.msk.f32.gmra.mrb[44].mxu1 %vm1355_vm4, %v13446_v21  ;;  %11212 = vmatmul.mubr.msk.f32.gmra.mrb[44].mxu0 %vm1355_vm4, %v13446_v21  ;;  %v13470_v40 = vmax.f32 %v1044_v22, 0.0  ;;  %16554 = vst [vmem:[#allocation57_spill] sm:$0xff] %v13537_v31 }
 0x223   : > { %v13466_v23 = vmax.f32 %v1039_v32, 0.0  ;;  %v11011_v34 = vpop.f32.mrb[16].mxu0  ;;  %v11059_v38 = vpop.f32.mrb[16].mxu1 }
 0x224   : > { %16543 = vst [vmem:[#allocation48_spill] sm:$0xff] %v13470_v40  ;;  %v1054_v42 = vadd.f32 %v11011_v34, %v13320_v18  ;;  %v1048_v45 = vpop.f32.mrb[17].mxu0  ;;  %v1214_v48 = vadd.f32 %v11059_v38, %v13320_v18  ;;  %v1208_v50 = vpop.f32.mrb[17].mxu1 }
 0x225   : > { %16541 = vst [vmem:[#allocation46_spill] sm:$0xff] %v13466_v23  ;;  %v1049_v51 = vadd.f32 %v13320_v18, %v1048_v45  ;;  %11110 = vmatprep.mubr.msk.f32.mxu1 %vm1355_vm4, %v13466_v23  ;;  %11214 = vmatprep.mubr.msk.f32.mxu0 %vm1355_vm4, %v13466_v23  ;;  %v1209_v53 = vadd.f32 %v13320_v18, %v1208_v50 }
 0x226   : > { %v13482_v54 = vmax.f32 %v1054_v42, 0.0  ;;  %11111 = vmatmul.mubr.msk.f32.gmra.mrb[46].mxu1 %vm1355_vm4, %v13470_v40  ;;  %11215 = vmatmul.mubr.msk.f32.gmra.mrb[46].mxu0 %vm1355_vm4, %v13470_v40  ;;  %v13488_v56 = vmax.f32 %v1214_v48, 0.0 }
 0x227   : > { %v13490_v57 = vmax.f32 %v1049_v51, 0.0  ;;  %v11014_v60 = vpop.f32.mrb[18].mxu0  ;;  %v13494_v63 = vmax.f32 %v1209_v53, 0.0  ;;  %v11062_v0 = vpop.f32.mrb[18].mxu1 }
 0x228   : > { %16545 = vst [vmem:[#allocation50_spill] sm:$0xff] %v13482_v54  ;;  %16546 = vst [vmem:[#allocation51_spill] sm:$0xff] %v13488_v56  ;;  %v1064_v3 = vadd.f32 %v11014_v60, %v13320_v18  ;;  %v1058_v6 = vpop.f32.mrb[19].mxu0  ;;  %v1224_v27 = vadd.f32 %v11062_v0, %v13320_v18  ;;  %v1218_v10 = vpop.f32.mrb[19].mxu1  ;;  %v13556_v60 = vmax.f32 %v1139_v19, 0.0 }
 0x229   : > { %16547 = vst [vmem:[#allocation52_spill] sm:$0xff] %v13490_v57  ;;  %16548 = vst [vmem:[#allocation53_spill] sm:$0xff] %v13494_v63  ;;  %v1059_v12 = vadd.f32 %v13320_v18, %v1058_v6  ;;  %11113 = vmatprep.mubr.msk.f32.mxu1 %vm1355_vm4, %v13490_v57  ;;  %11217 = vmatprep.mubr.msk.f32.mxu0 %vm1355_vm4, %v13490_v57  ;;  %v11332_v13 = vpack.c.bf16 %v13482_v54, %v13490_v57 }
 0x22a   : > { %v11380_v16 = vpack.c.bf16 %v13488_v56, %v13494_v63  ;;  %v13517_v17 = vmax.f32 %v1064_v3, 0.0  ;;  %11114 = vmatmul.mubr.msk.f32.gmra.mrb[48].mxu1 %vm1355_vm4, %v13482_v54  ;;  %11218 = vmatmul.mubr.msk.f32.gmra.mrb[48].mxu0 %vm1355_vm4, %v13482_v54  ;;  %v13525_v22 = vmax.f32 %v1224_v27, 0.0  ;;  %v1219_v24 = vadd.f32 %v13320_v18, %v1218_v10  ;;  %16556 = vst [vmem:[#allocation59_spill] sm:$0xff] %v13556_v60 }
 0x22b   : > { %v13528_v26 = vmax.f32 %v1059_v12, 0.0  ;;  %v11017_v30 = vpop.f32.mrb[20].mxu0  ;;  %11334 = vmatprep.subr.msk.bf16.mxu1 %vm13501_vm5, %v11332_v13  ;;  %v11065_v32 = vpop.f32.mrb[20].mxu1  ;;  %v11389_v13 = vpack.c.bf16 %v13537_v31, %v13556_v60 }
 0x22c   : > { %16551 = vst [vmem:[#allocation54_spill] sm:$0xff] %v13517_v17  ;;  %16552 = vst [vmem:[#allocation55_spill] sm:$0xff] %v13525_v22  ;;  %11382 = vmatprep.subr.msk.bf16.mxu0 %vm13501_vm5, %v11380_v16  ;;  %v1074_v34 = vadd.f32 %v11017_v30, %v13320_v18  ;;  %v1068_v38 = vpop.f32.mrb[21].mxu0  ;;  %11337 = vmatpush3.bf16.xpose.msk.msra.mxu1 %vm13501_vm5, %v11335_v2  ;;  %v13539_v42 = vmax.f32 %v1219_v24, 0.0  ;;  %v1234_v45 = vadd.f32 %v11065_v32, %v13320_v18  ;;  %v1228_v48 = vpop.f32.mrb[21].mxu1 }
 0x22d   : > { %16553 = vst [vmem:[#allocation56_spill] sm:$0xff] %v13528_v26  ;;  %11385 = vmatpush3.bf16.xpose.msk.msra.mxu0 %vm13501_vm5, %v11383_v9  ;;  %v1069_v50 = vadd.f32 %v13320_v18, %v1068_v38  ;;  %11116 = vmatprep.mubr.msk.f32.mxu1 %vm1355_vm4, %v13528_v26  ;;  %v11338_v51 = vpack.c.bf16 %v13517_v17, %v13528_v26 }
 0x22e   : > { %16555 = vst [vmem:[#allocation58_spill] sm:$0xff] %v13539_v42  ;;  %11220 = vmatprep.mubr.msk.f32.mxu0 %vm1355_vm4, %v13528_v26  ;;  %v1229_v53 = vadd.f32 %v13320_v18, %v1228_v48  ;;  %11117 = vmatmul.mubr.msk.f32.gmra.mrb[50].mxu1 %vm1355_vm4, %v13517_v17  ;;  %v11386_v61 = vpack.c.bf16 %v13525_v22, %v13539_v42  ;;  %v13564_v3 = vmax.f32 %v1234_v45, 0.0  ;;  %v13568_v27 = vmax.f32 %v1074_v34, 0.0 }
 0x22f   : > { %11221 = vmatmul.mubr.msk.f32.gmra.mrb[50].mxu0 %vm1355_vm4, %v13517_v17  ;;  %v13560_v0 = vmax.f32 %v1069_v50, 0.0  ;;  %v11020_v2 = vpop.f32.mrb[22].mxu0  ;;  %11340 = vmatprep.subr.msk.bf16.mxu1 %vm13501_vm5, %v11338_v51  ;;  %v11068_v9 = vpop.f32.mrb[22].mxu1  ;;  %v1154_v16 = vadd.f32 %v13348_v35, %v13320_v18  ;;  %v11341_v30 = vpack.c.bf16 %v13350_v36, %v13346_v33  ;;  %v1149_v35 = vadd.f32 %v13320_v18, %v13353_v39 }
 0x230   : > { %16558 = vst [vmem:[#allocation61_spill] sm:$0xff] %v13564_v3  ;;  %v13566_v6 = vmax.f32 %v1229_v53, 0.0  ;;  %16560 = vst [vmem:[#allocation63_spill] sm:$0xff] %v13568_v27  ;;  %v1084_v10 = vadd.f32 %v11020_v2, %v13320_v18  ;;  %v1078_v12 = vpop.f32.mrb[23].mxu0  ;;  %11388 = vmatprep.subr.msk.bf16.mxu0 %vm13501_vm5, %v11386_v61  ;;  %v1238_v19 = vpop.f32.mrb[23].mxu1  ;;  %v1244_v38 = vadd.f32 %v11068_v9, %v13320_v18 }
 0x231   : > { %16557 = vst [vmem:[#allocation60_spill] sm:$0xff] %v13560_v0  ;;  %v1079_v24 = vadd.f32 %v13320_v18, %v1078_v12  ;;  %11119 = vmatprep.mubr.msk.f32.mxu1 %vm1355_vm4, %v13560_v0  ;;  %11223 = vmatprep.mubr.msk.f32.mxu0 %vm1355_vm4, %v13560_v0  ;;  %v1239_v48 = vadd.f32 %v13320_v18, %v1238_v19  ;;  %v13601_v39 = vmax.f32 %v1154_v16, 0.0 }
 0x232   : > { %16559 = vst [vmem:[#allocation62_spill] sm:$0xff] %v13566_v6  ;;  %11120 = vmatmul.mubr.msk.f32.gmra.mrb[52].mxu1 %vm1355_vm4, %v13568_v27  ;;  %v11392_v45 = vpack.c.bf16 %v13564_v3, %v13566_v6  ;;  %v13596_v51 = vmax.f32 %v1084_v10, 0.0  ;;  %v11344_v2 = vpack.c.bf16 %v13568_v27, %v13560_v0  ;;  %v13614_v10 = vmax.f32 %v1149_v35, 0.0 }
 0x233   : > { %11224 = vmatmul.mubr.msk.f32.gmra.mrb[52].mxu0 %vm1355_vm4, %v13568_v27  ;;  %v13590_v32 = vmax.f32 %v1079_v24, 0.0  ;;  %v11023_v34 = vpop.f32.mrb[24].mxu0  ;;  %v11071_v50 = vpop.f32.mrb[24].mxu1  ;;  %16563 = vst [vmem:[#allocation66_spill] sm:$0xff] %v13601_v39  ;;  %v13624_v24 = vmax.f32 %v1244_v38, 0.0 }
 0x234   : > { %16562 = vst [vmem:[#allocation65_spill] sm:$0xff] %v13596_v51  ;;  %v1094_v53 = vadd.f32 %v11023_v34, %v13320_v18  ;;  %v1088_v61 = vpop.f32.mrb[25].mxu0  ;;  %11343 = vmatpush3.bf16.xpose.msk.msra.mxu1 %vm13501_vm5, %v11341_v30  ;;  %v1248_v9 = vpop.f32.mrb[25].mxu1  ;;  %16564 = vst [vmem:[#allocation67_spill] sm:$0xff] %v13614_v10  ;;  %v13628_v30 = vmax.f32 %v1239_v48, 0.0  ;;  %v11347_v48 = vpack.c.bf16 %v13368_v44, %v13364_v41 }
 0x235   : > { %16561 = vst [vmem:[#allocation64_spill] sm:$0xff] %v13590_v32  ;;  %11391 = vmatpush3.bf16.xpose.msk.msra.mxu0 %vm13501_vm5, %v11389_v13  ;;  %v1089_v12 = vadd.f32 %v13320_v18, %v1088_v61  ;;  %11122 = vmatprep.mubr.msk.f32.mxu1 %vm1355_vm4, %v13590_v32  ;;  %v1164_v13 = vadd.f32 %v13366_v43, %v13320_v18  ;;  %16566 = vst [vmem:[#allocation69_spill] sm:$0xff] %v13624_v24 }
 0x236   : > { %11226 = vmatprep.mubr.msk.f32.mxu0 %vm1355_vm4, %v13590_v32  ;;  %11346 = vmatprep.subr.msk.bf16.mxu1 %vm13501_vm5, %v11344_v2  ;;  %16567 = vst [vmem:[#allocation70_spill] sm:$0xff] %v13628_v30  ;;  %v13630_v34 = vmax.f32 %v1094_v53, 0.0  ;;  %v11395_v61 = vpack.c.bf16 %v13601_v39, %v13614_v10  ;;  %v1254_v0 = vadd.f32 %v11071_v50, %v13320_v18 }
 0x237   : > { %11123 = vmatmul.mubr.msk.f32.gmra.mrb[54].mxu1 %vm1355_vm4, %v13596_v51  ;;  %v13620_v16 = vmax.f32 %v1089_v12, 0.0  ;;  %11227 = vmatmul.mubr.msk.f32.gmra.mrb[54].mxu0 %vm1355_vm4, %v13596_v51  ;;  %v11026_v19 = vpop.f32.mrb[26].mxu0  ;;  %v11074_v35 = vpop.f32.mrb[26].mxu1  ;;  %v13647_v53 = vmax.f32 %v1164_v13, 0.0  ;;  %v11398_v13 = vpack.c.bf16 %v13624_v24, %v13628_v30 }
 0x238   : > { %11394 = vmatprep.subr.msk.bf16.mxu0 %vm13501_vm5, %v11392_v45  ;;  %16568 = vst [vmem:[#allocation71_spill] sm:$0xff] %v13630_v34  ;;  %v1104_v43 = vadd.f32 %v11026_v19, %v13320_v18  ;;  %v1098_v2 = vpop.f32.mrb[27].mxu0  ;;  %v13636_v12 = vadd.f32 %v11074_v35, %v13320_v18  ;;  %v1258_v27 = vpop.f32.mrb[27].mxu1  ;;  %v1159_v45 = vadd.f32 %v13320_v18, %v13371_v47 }
 0x239   : > { %16565 = vst [vmem:[#allocation68_spill] sm:$0xff] %v13620_v16  ;;  %v1099_v38 = vadd.f32 %v13320_v18, %v1098_v2  ;;  %11125 = vmatprep.mubr.msk.f32.mxu1 %vm1355_vm4, %v13620_v16  ;;  %11229 = vmatprep.mubr.msk.f32.mxu0 %vm1355_vm4, %v13620_v16  ;;  %16569 = vst [vmem:[#allocation72_spill] sm:$0xff] %v13647_v53  ;;  %v1259_v19 = vadd.f32 %v13320_v18, %v1258_v27 }
 0x23a   : > { %v11350_v2 = vpack.c.bf16 %v13596_v51, %v13590_v32  ;;  %v13661_v26 = vmax.f32 %v1104_v43, 0.0  ;;  %v13670_v32 = vmax.f32 %v1159_v45, 0.0  ;;  %v13688_v45 = vmax.f32 %v1254_v0, 0.0 }
 0x23b   : > { %11126 = vmatmul.mubr.msk.f32.gmra.mrb[56].mxu1 %vm1355_vm4, %v13630_v34  ;;  %v13652_v35 = vmax.f32 %v1099_v38, 0.0  ;;  %11230 = vmatmul.mubr.msk.f32.gmra.mrb[56].mxu0 %vm1355_vm4, %v13630_v34  ;;  %v11029_v47 = vpop.f32.mrb[28].mxu0  ;;  %v11077_v17 = vpop.f32.mrb[28].mxu1  ;;  %v1249_v38 = vadd.f32 %v13320_v18, %v1248_v9 }
 0x23c   : > { %16571 = vst [vmem:[#allocation74_spill] sm:$0xff] %v13661_v26  ;;  %v1114_v54 = vadd.f32 %v11029_v47, %v13320_v18  ;;  %v1108_v27 = vpop.f32.mrb[29].mxu0  ;;  %11349 = vmatpush3.bf16.xpose.msk.msra.mxu1 %vm13501_vm5, %v11347_v48  ;;  %v1274_v51 = vadd.f32 %v11077_v17, %v13320_v18  ;;  %v1268_v50 = vpop.f32.mrb[29].mxu1  ;;  %16572 = vst [vmem:[#allocation75_spill] sm:$0xff] %v13670_v32  ;;  %v11401_v17 = vpack.c.bf16 %v13647_v53, %v13670_v32 }
 0x23d   : > { %16570 = vst [vmem:[#allocation73_spill] sm:$0xff] %v13652_v35  ;;  %11397 = vmatpush3.bf16.xpose.msk.msra.mxu0 %vm13501_vm5, %v11395_v61  ;;  %v1109_v57 = vadd.f32 %v13320_v18, %v1108_v27  ;;  %11128 = vmatprep.mubr.msk.f32.mxu1 %vm1355_vm4, %v13652_v35  ;;  %v1269_v43 = vadd.f32 %v13320_v18, %v1268_v50  ;;  %16574 = vst [vmem:[#allocation77_spill] sm:$0xff] %v13688_v45  ;;  %v13695_v50 = vmax.f32 %v1249_v38, 0.0 }
 0x23e   : > { %11232 = vmatprep.mubr.msk.f32.mxu0 %vm1355_vm4, %v13652_v35  ;;  %11352 = vmatprep.subr.msk.bf16.mxu1 %vm13501_vm5, %v11350_v2  ;;  %v13692_v47 = vmax.f32 %v1114_v54, 0.0  ;;  %v11353_v54 = vpack.c.bf16 %v13384_v52, %v13382_v49 }
 0x23f   : > { %11129 = vmatmul.mubr.msk.f32.gmra.mrb[58].mxu1 %vm1355_vm4, %v13661_v26  ;;  %v13684_v9 = vmax.f32 %v1109_v57, 0.0  ;;  %11233 = vmatmul.mubr.msk.f32.gmra.mrb[58].mxu0 %vm1355_vm4, %v13661_v26  ;;  %v11032_v61 = vpop.f32.mrb[30].mxu0  ;;  %v11080_v48 = vpop.f32.mrb[30].mxu1  ;;  %16576 = vst [vmem:[#allocation79_spill] sm:$0xff] %v13695_v50 }
 0x240   : > { %11400 = vmatprep.subr.msk.bf16.mxu0 %vm13501_vm5, %v11398_v13  ;;  %16575 = vst [vmem:[#allocation78_spill] sm:$0xff] %v13692_v47  ;;  %v1124_v2 = vadd.f32 %v11032_v61, %v13320_v18  ;;  %v1118_v27 = vpop.f32.mrb[31].mxu0  ;;  %v1284_v57 = vadd.f32 %v11080_v48, %v13320_v18  ;;  %v1278_v44 = vpop.f32.mrb[31].mxu1  ;;  %v11356_v61 = vpack.c.bf16 %v13630_v34, %v13620_v16 }
 0x241   : > { %16573 = vst [vmem:[#allocation76_spill] sm:$0xff] %v13684_v9  ;;  %v1119_v41 = vadd.f32 %v13320_v18, %v1118_v27  ;;  %11131 = vmatprep.mubr.msk.f32.mxu1 %vm1355_vm4, %v13684_v9  ;;  %11235 = vmatprep.mubr.msk.f32.mxu0 %vm1355_vm4, %v13684_v9  ;;  %v1279_v0 = vadd.f32 %v13320_v18, %v1278_v44  ;;  %v13723_v18 = vmax.f32 %v13388_v55, 0.0  ;;  %v13736_v44 = vmax.f32 %v1259_v19, 0.0 }
 0x242   : > { %v13712_v38 = vmax.f32 %v1124_v2, 0.0  ;;  %v11404_v48 = vpack.c.bf16 %v13688_v45, %v13695_v50  ;;  %v13739_v55 = vmax.f32 %v13396_v58, 0.0  ;;  %v11359_v19 = vpack.c.bf16 %v13404_v62, %v13402_v59 }
 0x243   : > { %11132 = vmatmul.mubr.msk.f32.gmra.mrb[60].mxu1 %vm1355_vm4, %v13692_v47  ;;  %v13708_v13 = vmax.f32 %v1119_v41, 0.0  ;;  %11236 = vmatmul.mubr.msk.f32.gmra.mrb[60].mxu0 %vm1355_vm4, %v13692_v47  ;;  %16579 = vst [vmem:[#allocation82_spill] sm:$0xff] %v13723_v18  ;;  %v13734_v41 = vmax.f32 %v13636_v12, 0.0  ;;  %16581 = vst [vmem:[#allocation84_spill] sm:$0xff] %v13736_v44  ;;  %v13768_v2 = vmax.f32 %v13408_v1, 0.0  ;;  %v13776_v27 = vmax.f32 %v1274_v51, 0.0 }
 0x244   : > { %16578 = vst [vmem:[#allocation81_spill] sm:$0xff] %v13712_v38  ;;  %11355 = vmatpush3.bf16.xpose.msk.msra.mxu1 %vm13501_vm5, %v11353_v54  ;;  %16582 = vst [vmem:[#allocation85_spill] sm:$0xff] %v13739_v55  ;;  %v11407_v12 = vpack.c.bf16 %v13723_v18, %v13739_v55  ;;  %v13780_v54 = vmax.f32 %v1269_v43, 0.0  ;;  %v11365_v51 = vpack.c.bf16 %v13424_v8, %v13422_v5 }
 0x245   : > { %16577 = vst [vmem:[#allocation80_spill] sm:$0xff] %v13708_v13  ;;  %11403 = vmatpush3.bf16.xpose.msk.msra.mxu0 %vm13501_vm5, %v11401_v17  ;;  %11134 = vmatprep.mubr.msk.f32.mxu1 %vm1355_vm4, %v13708_v13  ;;  %16580 = vst [vmem:[#allocation83_spill] sm:$0xff] %v13734_v41  ;;  %v11410_v58 = vpack.c.bf16 %v13734_v41, %v13736_v44  ;;  %v11362_v17 = vpack.c.bf16 %v13661_v26, %v13652_v35 }
 0x246   : > { %11238 = vmatprep.mubr.msk.f32.mxu0 %vm1355_vm4, %v13708_v13  ;;  %11358 = vmatprep.subr.msk.bf16.mxu1 %vm13501_vm5, %v11356_v61  ;;  %16583 = vst [vmem:[#allocation86_spill] sm:$0xff] %v13768_v2  ;;  %16584 = vst [vmem:[#allocation87_spill] sm:$0xff] %v13776_v27  ;;  %v13783_v61 = vmax.f32 %v13420_v4, 0.0  ;;  %v11416_v4 = vpack.c.bf16 %v13776_v27, %v13780_v54  ;;  %v11368_v43 = vpack.c.bf16 %v13692_v47, %v13684_v9 }
 0x247   : > { %11135 = vmatmul.mubr.msk.f32.gmra.mrb[62].mxu1 %vm1355_vm4, %v13712_v38  ;;  %11239 = vmatmul.mubr.msk.f32.gmra.mrb[62].mxu0 %vm1355_vm4, %v13712_v38  ;;  %16585 = vst [vmem:[#allocation88_spill] sm:$0xff] %v13780_v54 }
 0x248   : > { %11137 = vmatprep.mubr.msk.f32.mxu1 %vm1355_vm4, %v13473_v46  ;;  %11241 = vmatprep.mubr.msk.f32.mxu0 %vm1355_vm4, %v13473_v46  ;;  %16586 = vst [vmem:[#allocation89_spill] sm:$0xff] %v13783_v61  ;;  %v11413_v1 = vpack.c.bf16 %v13768_v2, %v13783_v61 }
 0x249   : > { %11406 = vmatprep.subr.msk.bf16.mxu0 %vm13501_vm5, %v11404_v48  ;;  %v13810_v48 = vmax.f32 %v13428_v11, 0.0 }
 0x24b   : > { %11138 = vmatmul.mubr.msk.f32.gmra.mrb[64].mxu1 %vm1355_vm4, %v13468_v37  ;;  %11242 = vmatmul.mubr.msk.f32.gmra.mrb[64].mxu0 %vm1355_vm4, %v13468_v37  ;;  %16587 = vst [vmem:[#allocation90_spill] sm:$0xff] %v13810_v48 }
 0x24c   : > { %11140 = vmatprep.mubr.msk.f32.mxu1 %vm1355_vm4, %v13556_v60  ;;  %11361 = vmatpush3.bf16.xpose.msk.msra.mxu1 %vm13501_vm5, %v11359_v19  ;;  %v13822_v19 = vmax.f32 %v1279_v0, 0.0  ;;  %v11374_v0 = vpack.c.bf16 %v13712_v38, %v13708_v13 }
 0x24d   : > { %11244 = vmatprep.mubr.msk.f32.mxu0 %vm1355_vm4, %v13556_v60  ;;  %11364 = vmatprep.subr.msk.bf16.mxu1 %vm13501_vm5, %v11362_v17  ;;  %v13852_v17 = vmax.f32 %v13452_v29, 0.0 }
 0x24e   : > { %11409 = vmatpush3.bf16.xpose.msk.msra.mxu0 %vm13501_vm5, %v11407_v12  ;;  %v13818_v12 = vmax.f32 %v1284_v57, 0.0  ;;  %16589 = vst [vmem:[#allocation92_spill] sm:$0xff] %v13822_v19  ;;  %v11371_v57 = vpack.c.bf16 %v13446_v21, %v13442_v15 }
 0x24f   : > { %11141 = vmatmul.mubr.msk.f32.gmra.mrb[66].mxu1 %vm1355_vm4, %v13537_v31  ;;  %11412 = vmatprep.subr.msk.bf16.mxu0 %vm13501_vm5, %v11410_v58  ;;  %v13825_v58 = vmax.f32 %v13436_v14, 0.0  ;;  %16591 = vst [vmem:[#allocation94_spill] sm:$0xff] %v13852_v17 }
 0x250   : > { %11245 = vmatmul.mubr.msk.f32.gmra.mrb[66].mxu0 %vm1355_vm4, %v13537_v31  ;;  %11143 = vmatprep.mubr.msk.f32.mxu1 %vm1355_vm4, %v13614_v10  ;;  %16588 = vst [vmem:[#allocation91_spill] sm:$0xff] %v13818_v12  ;;  %v11422_v14 = vpack.c.bf16 %v13818_v12, %v13822_v19 }
 0x251   : > { %11247 = vmatprep.mubr.msk.f32.mxu0 %vm1355_vm4, %v13614_v10  ;;  %16590 = vst [vmem:[#allocation93_spill] sm:$0xff] %v13825_v58  ;;  %v11419_v11 = vpack.c.bf16 %v13810_v48, %v13825_v58 }
 0x253   : > { %11144 = vmatmul.mubr.msk.f32.gmra.mrb[68].mxu1 %vm1355_vm4, %v13601_v39 }
 0x254   : > { %11248 = vmatmul.mubr.msk.f32.gmra.mrb[68].mxu0 %vm1355_vm4, %v13601_v39  ;;  %11146 = vmatprep.mubr.msk.f32.mxu1 %vm1355_vm4, %v13670_v32 }
 0x255   : > { %11367 = vmatpush3.bf16.xpose.msk.msra.mxu1 %vm13501_vm5, %v11365_v51  ;;  %11250 = vmatprep.mubr.msk.f32.mxu0 %vm1355_vm4, %v13670_v32  ;;  %v11377_v51 = vpack.c.bf16 %v13470_v40, %v13466_v23 }
 0x256   : > { %11370 = vmatprep.subr.msk.bf16.mxu1 %vm13501_vm5, %v11368_v43  ;;  %11415 = vmatpush3.bf16.xpose.msk.msra.mxu0 %vm13501_vm5, %v11413_v1  ;;  %v13863_v1 = vmax.f32 %v13464_v20, 0.0  ;;  %v12641_v20 = vmov 0.0|0.0  }
 0x257   : > { %11147 = vmatmul.mubr.msk.f32.gmra.mrb[70].mxu1 %vm1355_vm4, %v13647_v53  ;;  %11418 = vmatprep.subr.msk.bf16.mxu0 %vm13501_vm5, %v11416_v4 }
 0x258   : > { %11251 = vmatmul.mubr.msk.f32.gmra.mrb[70].mxu0 %vm1355_vm4, %v13647_v53  ;;  %11149 = vmatprep.mubr.msk.f32.mxu1 %vm1355_vm4, %v13739_v55  ;;  %16592 = vst [vmem:[#allocation95_spill] sm:$0xff] %v13863_v1  ;;  %v11425_v29 = vpack.c.bf16 %v13852_v17, %v13863_v1 }
 0x259   : > { %11253 = vmatprep.mubr.msk.f32.mxu0 %vm1355_vm4, %v13739_v55 }
 0x25b   : > { %11150 = vmatmul.mubr.msk.f32.gmra.mrb[72].mxu1 %vm1355_vm4, %v13723_v18 }
 0x25c   : > { %11254 = vmatmul.mubr.msk.f32.gmra.mrb[72].mxu0 %vm1355_vm4, %v13723_v18  ;;  %11152 = vmatprep.mubr.msk.f32.mxu1 %vm1355_vm4, %v13783_v61 }
 0x25d   : > { %11373 = vmatpush3.bf16.xpose.msk.msra.mxu1 %vm13501_vm5, %v11371_v57  ;;  %11256 = vmatprep.mubr.msk.f32.mxu0 %vm1355_vm4, %v13783_v61 }
 0x25e   : > { %11376 = vmatprep.subr.msk.bf16.mxu1 %vm13501_vm5, %v11374_v0  ;;  %11421 = vmatpush3.bf16.xpose.msk.msra.mxu0 %vm13501_vm5, %v11419_v11 }
 0x25f   : > { %11153 = vmatmul.mubr.msk.f32.gmra.mrb[74].mxu1 %vm1355_vm4, %v13768_v2  ;;  %11424 = vmatprep.subr.msk.bf16.mxu0 %vm13501_vm5, %v11422_v14 }
 0x260   : > { %11257 = vmatmul.mubr.msk.f32.gmra.mrb[74].mxu0 %vm1355_vm4, %v13768_v2  ;;  %11155 = vmatprep.mubr.msk.f32.mxu1 %vm1355_vm4, %v13825_v58 }
 0x261   : > { %11259 = vmatprep.mubr.msk.f32.mxu0 %vm1355_vm4, %v13825_v58 }
 0x263   : > { %11156 = vmatmul.mubr.msk.f32.gmra.mrb[76].mxu1 %vm1355_vm4, %v13810_v48 }
 0x264   : > { %11260 = vmatmul.mubr.msk.f32.gmra.mrb[76].mxu0 %vm1355_vm4, %v13810_v48  ;;  %11158 = vmatprep.mubr.msk.f32.mxu1 %vm1355_vm4, %v13863_v1 }
 0x265   : > { %11379 = vmatpush3.bf16.xpose.msk.msra.mxu1 %vm13501_vm5, %v11377_v51  ;;  %11262 = vmatprep.mubr.msk.f32.mxu0 %vm1355_vm4, %v13863_v1 }
 0x266   : > { %11427 = vmatpush3.bf16.xpose.msk.msra.mxu0 %vm13501_vm5, %v11425_v29  ;;  %11428 = vmatprep.subr.bf16.mxu1 %v12641_v20 }
 0x267   : > { %11159 = vmatmul.mubr.msk.f32.gmra.mrb[78].mxu1 %vm1355_vm4, %v13852_v17  ;;  %11476 = vmatprep.subr.bf16.mxu0 %v12641_v20 }
 0x268   : > { %11263 = vmatmul.mubr.msk.f32.gmra.mrb[78].mxu0 %vm1355_vm4, %v13852_v17  ;;  %11161 = vmatprep.mubr.msk.f32.mxu1 %vm1355_vm4, %v13494_v63 }
 0x269   : > { %11265 = vmatprep.mubr.msk.f32.mxu0 %vm1355_vm4, %v13494_v63 }
 0x26b   : > { %11162 = vmatmul.mubr.msk.f32.gmra.mrb[80].mxu1 %vm1355_vm4, %v13488_v56 }
 0x26c   : > { %11266 = vmatmul.mubr.msk.f32.gmra.mrb[80].mxu0 %vm1355_vm4, %v13488_v56  ;;  %11164 = vmatprep.mubr.msk.f32.mxu1 %vm1355_vm4, %v13539_v42 }
 0x26d   : > { %11268 = vmatprep.mubr.msk.f32.mxu0 %vm1355_vm4, %v13539_v42 }
 0x26f   : > { %11165 = vmatmul.mubr.msk.f32.gmra.mrb[82].mxu1 %vm1355_vm4, %v13525_v22 }
 0x270   : > { %11269 = vmatmul.mubr.msk.f32.gmra.mrb[82].mxu0 %vm1355_vm4, %v13525_v22  ;;  %11167 = vmatprep.mubr.msk.f32.mxu1 %vm1355_vm4, %v13566_v6 }
 0x271   : > { %11271 = vmatprep.mubr.msk.f32.mxu0 %vm1355_vm4, %v13566_v6 }
 0x273   : > { %11168 = vmatmul.mubr.msk.f32.gmra.mrb[84].mxu1 %vm1355_vm4, %v13564_v3 }
 0x274   : > { %11272 = vmatmul.mubr.msk.f32.gmra.mrb[84].mxu0 %vm1355_vm4, %v13564_v3  ;;  %11170 = vmatprep.mubr.msk.f32.mxu1 %vm1355_vm4, %v13628_v30 }
 0x275   : > { %11274 = vmatprep.mubr.msk.f32.mxu0 %vm1355_vm4, %v13628_v30 }
 0x277   : > { %11171 = vmatmul.mubr.msk.f32.gmra.mrb[86].mxu1 %vm1355_vm4, %v13624_v24 }
 0x278   : > { %11275 = vmatmul.mubr.msk.f32.gmra.mrb[86].mxu0 %vm1355_vm4, %v13624_v24  ;;  %11173 = vmatprep.mubr.msk.f32.mxu1 %vm1355_vm4, %v13695_v50 }
 0x279   : > { %11277 = vmatprep.mubr.msk.f32.mxu0 %vm1355_vm4, %v13695_v50 }
 0x27b   : > { %11174 = vmatmul.mubr.msk.f32.gmra.mrb[88].mxu1 %vm1355_vm4, %v13688_v45 }
 0x27c   : > { %11278 = vmatmul.mubr.msk.f32.gmra.mrb[88].mxu0 %vm1355_vm4, %v13688_v45  ;;  %11176 = vmatprep.mubr.msk.f32.mxu1 %vm1355_vm4, %v13736_v44 }
 0x27d   : > { %11280 = vmatprep.mubr.msk.f32.mxu0 %vm1355_vm4, %v13736_v44 }
 0x27f   : > { %11177 = vmatmul.mubr.msk.f32.gmra.mrb[90].mxu1 %vm1355_vm4, %v13734_v41 }
 0x280   : > { %11281 = vmatmul.mubr.msk.f32.gmra.mrb[90].mxu0 %vm1355_vm4, %v13734_v41  ;;  %11179 = vmatprep.mubr.msk.f32.mxu1 %vm1355_vm4, %v13780_v54 }
 0x281   : > { %11283 = vmatprep.mubr.msk.f32.mxu0 %vm1355_vm4, %v13780_v54 }
 0x283   : > { %11180 = vmatmul.mubr.msk.f32.gmra.mrb[92].mxu1 %vm1355_vm4, %v13776_v27 }
 0x284   : > { %11284 = vmatmul.mubr.msk.f32.gmra.mrb[92].mxu0 %vm1355_vm4, %v13776_v27  ;;  %11182 = vmatprep.mubr.msk.f32.mxu1 %vm1355_vm4, %v13822_v19 }
 0x285   : > { %11286 = vmatprep.mubr.msk.f32.mxu0 %vm1355_vm4, %v13822_v19 }
 0x287   : > { %11183 = vmatmul.mubr.msk.f32.gmra.mrb[94].mxu1 %vm1355_vm4, %v13818_v12 }
 0x288   : > { %11287 = vmatmul.mubr.msk.f32.gmra.mrb[94].mxu0 %vm1355_vm4, %v13818_v12 }
 0x2dd   : > { %v11091_v7 = vpop.f32.mrb[32].mxu1  ;;  %v11195_v4 = vpop.f32.mrb[32].mxu0 }
 0x2de   : > { %v1614_v43 = vpop.f32.mrb[33].mxu1  ;;  %v2003_v11 = vpop.f32.mrb[33].mxu0 }
 0x2df   : > { %v11429_v57 = vpack.c.bf16 %v11195_v4, %v2003_v11  ;;  %10633 = vmatprep.mubr.msk.f32.mxu1 %vm1355_vm4, %v1614_v43 }
 0x2e0   : > { %10634 = vmatmul.mubr.msk.f32.vlgmr.msra.gmra.mrb[96].mxu1 %vm1355_vm4, %v1614_v43 }
 0x2e1   : > { %v11094_v14 = vpop.f32.mrb[34].mxu1  ;;  %v11198_v0 = vpop.f32.mrb[34].mxu0  ;;  %10635 = vmatprep.mubr.msk.f32.mxu1 %vm1355_vm4, %v11091_v7  ;;  %11430 = vmatpush1.bf16.msra.mxu1 %v11429_v57 }
 0x2e2   : > { %v1624_v29 = vpop.f32.mrb[35].mxu1  ;;  %v2013_v51 = vpop.f32.mrb[35].mxu0  ;;  %11431 = vmatprep.subr.bf16.mxu1 %v12641_v20 }
 0x2e3   : > { %v11432_v38 = vpack.c.bf16 %v11198_v0, %v2013_v51 }
 0x2e4   : > { %10636 = vmatmul.mubr.msk.f32.gmra.mrb[98].mxu1 %vm1355_vm4, %v11091_v7 }
 0x2e5   : > { %v11097_v12 = vpop.f32.mrb[36].mxu1  ;;  %v11201_v19 = vpop.f32.mrb[36].mxu0  ;;  %10637 = vmatprep.mubr.msk.f32.mxu1 %vm1355_vm4, %v1624_v29  ;;  %11433 = vmatpush1.bf16.msra.mxu1 %v11432_v38 }
 0x2e6   : > { %v1634_v4 = vpop.f32.mrb[37].mxu1  ;;  %v2023_v11 = vpop.f32.mrb[37].mxu0  ;;  %11434 = vmatprep.subr.bf16.mxu1 %v12641_v20 }
 0x2e7   : > { %v11435_v43 = vpack.c.bf16 %v11201_v19, %v2023_v11 }
 0x2e8   : > { %10638 = vmatmul.mubr.msk.f32.gmra.mrb[100].mxu1 %vm1355_vm4, %v1624_v29 }
 0x2e9   : > { %v11100_v57 = vpop.f32.mrb[38].mxu1  ;;  %v11204_v13 = vpop.f32.mrb[38].mxu0  ;;  %10639 = vmatprep.mubr.msk.f32.mxu1 %vm1355_vm4, %v11094_v14  ;;  %11436 = vmatpush1.bf16.msra.mxu1 %v11435_v43 }
 0x2ea   : > { %v1644_v0 = vpop.f32.mrb[39].mxu1  ;;  %v2033_v51 = vpop.f32.mrb[39].mxu0  ;;  %11437 = vmatprep.subr.bf16.mxu1 %v12641_v20 }
 0x2eb   : > { %v11438_v7 = vpack.c.bf16 %v11204_v13, %v2033_v51 }
 0x2ec   : > { %10640 = vmatmul.mubr.msk.f32.gmra.mrb[102].mxu1 %vm1355_vm4, %v11094_v14 }
 0x2ed   : > { %v11103_v38 = vpop.f32.mrb[40].mxu1  ;;  %v11207_v27 = vpop.f32.mrb[40].mxu0  ;;  %10641 = vmatprep.mubr.msk.f32.mxu1 %vm1355_vm4, %v1634_v4  ;;  %11439 = vmatpush1.bf16.msra.mxu1 %v11438_v7 }
 0x2ee   : > { %v1654_v19 = vpop.f32.mrb[41].mxu1  ;;  %v2043_v11 = vpop.f32.mrb[41].mxu0  ;;  %11440 = vmatprep.subr.bf16.mxu1 %v12641_v20 }
 0x2ef   : > { %v11441_v29 = vpack.c.bf16 %v11207_v27, %v2043_v11 }
 0x2f0   : > { %10642 = vmatmul.mubr.msk.f32.gmra.mrb[104].mxu1 %vm1355_vm4, %v1634_v4 }
 0x2f1   : > { %v11106_v43 = vpop.f32.mrb[42].mxu1  ;;  %v11210_v47 = vpop.f32.mrb[42].mxu0  ;;  %10643 = vmatprep.mubr.msk.f32.mxu1 %vm1355_vm4, %v11097_v12  ;;  %11442 = vmatpush1.bf16.msra.mxu1 %v11441_v29 }
 0x2f2   : > { %v1664_v13 = vpop.f32.mrb[43].mxu1  ;;  %v2053_v51 = vpop.f32.mrb[43].mxu0  ;;  %11443 = vmatprep.subr.bf16.mxu1 %v12641_v20 }
 0x2f3   : > { %v11444_v14 = vpack.c.bf16 %v11210_v47, %v2053_v51 }
 0x2f4   : > { %10644 = vmatmul.mubr.msk.f32.gmra.mrb[106].mxu1 %vm1355_vm4, %v11097_v12 }
 0x2f5   : > { %v13974_v7 = vpop.f32.mrb[44].mxu1  ;;  %v11213_v54 = vpop.f32.mrb[44].mxu0  ;;  %10645 = vmatprep.mubr.msk.f32.mxu1 %vm1355_vm4, %v1644_v0  ;;  %11445 = vmatpush1.bf16.msra.mxu1 %v11444_v14 }
 0x2f6   : > { %v1674_v27 = vpop.f32.mrb[45].mxu1  ;;  %v2063_v4 = vpop.f32.mrb[45].mxu0  ;;  %11446 = vmatprep.subr.bf16.mxu1 %v12641_v20 }
 0x2f7   : > { %v11447_v11 = vpack.c.bf16 %v11213_v54, %v2063_v4 }
 0x2f8   : > { %10646 = vmatmul.mubr.msk.f32.gmra.mrb[108].mxu1 %vm1355_vm4, %v1644_v0 }
 0x2f9   : > { %v13979_v29 = vpop.f32.mrb[46].mxu1  ;;  %v11216_v9 = vpop.f32.mrb[46].mxu0  ;;  %10647 = vmatprep.mubr.msk.f32.mxu1 %vm1355_vm4, %v11100_v57  ;;  %11448 = vmatpush1.bf16.msra.mxu1 %v11447_v11 }
 0x2fa   : > { %v13982_v47 = vpop.f32.mrb[47].mxu1  ;;  %v2073_v12 = vpop.f32.mrb[47].mxu0  ;;  %11449 = vmatprep.subr.bf16.mxu1 %v12641_v20 }
 0x2fb   : > { %v11450_v51 = vpack.c.bf16 %v11216_v9, %v2073_v12 }
 0x2fc   : > { %10648 = vmatmul.mubr.msk.f32.gmra.mrb[110].mxu1 %vm1355_vm4, %v11100_v57 }
 0x2fd   : > { %v13986_v14 = vpop.f32.mrb[48].mxu1  ;;  %v11219_v41 = vpop.f32.mrb[48].mxu0  ;;  %10649 = vmatprep.mubr.msk.f32.mxu1 %vm1355_vm4, %v1654_v19  ;;  %11451 = vmatpush1.bf16.msra.mxu1 %v11450_v51 }
 0x2fe   : > { %v13989_v54 = vpop.f32.mrb[49].mxu1  ;;  %v2083_v0 = vpop.f32.mrb[49].mxu0  ;;  %11452 = vmatprep.subr.bf16.mxu1 %v12641_v20 }
 0x2ff   : > { %v11453_v4 = vpack.c.bf16 %v11219_v41, %v2083_v0 }
 0x300   : > { %10650 = vmatmul.mubr.msk.f32.gmra.mrb[112].mxu1 %vm1355_vm4, %v1654_v19 }
 0x301   : > { %v13993_v11 = vpop.f32.mrb[50].mxu1  ;;  %10651 = vmatprep.mubr.msk.f32.mxu1 %vm1355_vm4, %v11103_v38  ;;  %11454 = vmatpush1.bf16.msra.mxu1 %v11453_v4 }
 0x302   : > { %v11222_v26 = vpop.f32.mrb[50].mxu0  ;;  %v13996_v9 = vpop.f32.mrb[51].mxu1  ;;  %11455 = vmatprep.subr.bf16.mxu1 %v12641_v20 }
 0x303   : > { %v2093_v57 = vpop.f32.mrb[51].mxu0 }
 0x304   : > { %v11456_v12 = vpack.c.bf16 %v11222_v26, %v2093_v57  ;;  %10652 = vmatmul.mubr.msk.f32.gmra.mrb[114].mxu1 %vm1355_vm4, %v11103_v38 }
 0x305   : > { %v14000_v51 = vpop.f32.mrb[52].mxu1  ;;  %10653 = vmatprep.mubr.msk.f32.mxu1 %vm1355_vm4, %v1664_v13 }
 0x306   : > { %v11225_v44 = vpop.f32.mrb[52].mxu0  ;;  %11457 = vmatpush1.bf16.msra.mxu1 %v11456_v12  ;;  %v14003_v41 = vpop.f32.mrb[53].mxu1 }
 0x307   : > { %v2103_v19 = vpop.f32.mrb[53].mxu0  ;;  %11458 = vmatprep.subr.bf16.mxu1 %v12641_v20 }
 0x308   : > { %v11459_v0 = vpack.c.bf16 %v11225_v44, %v2103_v19  ;;  %10654 = vmatmul.mubr.msk.f32.gmra.mrb[116].mxu1 %vm1355_vm4, %v1664_v13 }
 0x309   : > { %10655 = vmatprep.mubr.msk.f32.mxu1 %vm1355_vm4, %v11106_v43 }
 0x30a   : > { %v14007_v4 = vpop.f32.mrb[54].mxu1  ;;  %11460 = vmatpush1.bf16.msra.mxu1 %v11459_v0  ;;  %v11228_v26 = vpop.f32.mrb[54].mxu0 }
 0x30b   : > { %v14010_v38 = vpop.f32.mrb[55].mxu1  ;;  %11461 = vmatprep.subr.bf16.mxu1 %v12641_v20  ;;  %v2113_v57 = vpop.f32.mrb[55].mxu0 }
 0x30c   : > { %v11462_v12 = vpack.c.bf16 %v11228_v26, %v2113_v57  ;;  %10656 = vmatmul.mubr.msk.f32.gmra.mrb[118].mxu1 %vm1355_vm4, %v11106_v43 }
 0x30d   : > { %10657 = vmatprep.mubr.msk.f32.mxu1 %vm1355_vm4, %v1674_v27 }
 0x30e   : > { %v14014_v35 = vpop.f32.mrb[56].mxu1  ;;  %v11231_v44 = vpop.f32.mrb[56].mxu0  ;;  %11463 = vmatpush1.bf16.msra.mxu1 %v11462_v12 }
 0x30f   : > { %v14017_v13 = vpop.f32.mrb[57].mxu1  ;;  %v2123_v19 = vpop.f32.mrb[57].mxu0  ;;  %11464 = vmatprep.subr.bf16.mxu1 %v12641_v20 }
 0x310   : > { %v11465_v0 = vpack.c.bf16 %v11231_v44, %v2123_v19  ;;  %10658 = vmatmul.mubr.msk.f32.gmra.mrb[120].mxu1 %vm1355_vm4, %v1674_v27 }
 0x311   : > { %10659 = vmatprep.mubr.msk.f32.mxu1 %vm1355_vm4, %v13974_v7 }
 0x312   : > { %v14021_v45 = vpop.f32.mrb[58].mxu1  ;;  %v11234_v43 = vpop.f32.mrb[58].mxu0  ;;  %11466 = vmatpush1.bf16.msra.mxu1 %v11465_v0 }
 0x313   : > { %v14025_v26 = vpop.f32.mrb[59].mxu1  ;;  %v2133_v57 = vpop.f32.mrb[59].mxu0  ;;  %11467 = vmatprep.subr.bf16.mxu1 %v12641_v20 }
 0x314   : > { %v11468_v12 = vpack.c.bf16 %v11234_v43, %v2133_v57  ;;  %10660 = vmatmul.mubr.msk.f32.gmra.mrb[122].mxu1 %vm1355_vm4, %v13974_v7 }
 0x315   : > { %10661 = vmatprep.mubr.msk.f32.mxu1 %vm1355_vm4, %v13982_v47 }
 0x316   : > { %v14030_v34 = vpop.f32.mrb[60].mxu1  ;;  %v11237_v27 = vpop.f32.mrb[60].mxu0  ;;  %11469 = vmatpush1.bf16.msra.mxu1 %v11468_v12 }
 0x317   : > { %v14034_v44 = vpop.f32.mrb[61].mxu1  ;;  %v2143_v19 = vpop.f32.mrb[61].mxu0  ;;  %11470 = vmatprep.subr.bf16.mxu1 %v12641_v20 }
 0x318   : > { %v11471_v0 = vpack.c.bf16 %v11237_v27, %v2143_v19  ;;  %10662 = vmatmul.mubr.msk.f32.gmra.mrb[124].mxu1 %vm1355_vm4, %v13982_v47 }
 0x319   : > { %10663 = vmatprep.mubr.msk.f32.mxu1 %vm1355_vm4, %v13979_v29 }
 0x31a   : > { %v14039_v43 = vpop.f32.mrb[62].mxu1  ;;  %v11240_v7 = vpop.f32.mrb[62].mxu0  ;;  %11472 = vmatpush1.bf16.msra.mxu1 %v11471_v0 }
 0x31b   : > { %v14043_v57 = vpop.f32.mrb[63].mxu1  ;;  %v2153_v50 = vpop.f32.mrb[63].mxu0  ;;  %11473 = vmatprep.subr.bf16.mxu1 %v12641_v20 }
 0x31c   : > { %v11474_v12 = vpack.c.bf16 %v11240_v7, %v2153_v50  ;;  %10664 = vmatmul.mubr.msk.f32.gmra.mrb[126].mxu1 %vm1355_vm4, %v13979_v29 }
 0x31d   : > { %10665 = vmatprep.mubr.msk.f32.mxu1 %vm1355_vm4, %v13989_v54 }
 0x31e   : > { %v11139_v27 = vpop.f32.mrb[64].mxu1  ;;  %v11243_v47 = vpop.f32.mrb[64].mxu0  ;;  %11475 = vmatpush1.bf16.msra.mxu1 %v11474_v12 }
 0x31f   : > { %v1774_v19 = vpop.f32.mrb[65].mxu1  ;;  %v2163_v16 = vpop.f32.mrb[65].mxu0 }
 0x320   : > { %10729 = vmatprep.mubr.msk.f32.mxu0 %vm1355_vm4, %v1774_v19  ;;  %v11477_v0 = vpack.c.bf16 %v11243_v47, %v2163_v16  ;;  %10666 = vmatmul.mubr.msk.f32.gmra.mrb[128].mxu1 %vm1355_vm4, %v13989_v54 }
 0x321   : > { %10730 = vmatmul.mubr.msk.f32.vlgmr.msra.gmra.mrb[96].mxu0 %vm1355_vm4, %v1774_v19  ;;  %10667 = vmatprep.mubr.msk.f32.mxu1 %vm1355_vm4, %v13986_v14 }
 0x322   : > { %10731 = vmatprep.mubr.msk.f32.mxu0 %vm1355_vm4, %v11139_v27  ;;  %v11142_v50 = vpop.f32.mrb[66].mxu1  ;;  %11478 = vmatpush1.bf16.msra.mxu0 %v11477_v0 }
 0x323   : > { %v11246_v29 = vpop.f32.mrb[66].mxu0  ;;  %v1784_v7 = vpop.f32.mrb[67].mxu1  ;;  %11479 = vmatprep.subr.bf16.mxu0 %v12641_v20 }
 0x324   : > { %v2173_v12 = vpop.f32.mrb[67].mxu0  ;;  %10668 = vmatmul.mubr.msk.f32.gmra.mrb[130].mxu1 %vm1355_vm4, %v13986_v14 }
 0x325   : > { %v11480_v24 = vpack.c.bf16 %v11246_v29, %v2173_v12  ;;  %10732 = vmatmul.mubr.msk.f32.gmra.mrb[98].mxu0 %vm1355_vm4, %v11139_v27  ;;  %10669 = vmatprep.mubr.msk.f32.mxu1 %vm1355_vm4, %v13996_v9 }
 0x326   : > { %10733 = vmatprep.mubr.msk.f32.mxu0 %vm1355_vm4, %v1784_v7  ;;  %v11145_v16 = vpop.f32.mrb[68].mxu1 }
 0x327   : > { %11481 = vmatpush1.bf16.msra.mxu0 %v11480_v24  ;;  %v11249_v54 = vpop.f32.mrb[68].mxu0  ;;  %v1794_v47 = vpop.f32.mrb[69].mxu1 }
 0x328   : > { %v2183_v19 = vpop.f32.mrb[69].mxu0  ;;  %11482 = vmatprep.subr.bf16.mxu0 %v12641_v20  ;;  %10670 = vmatmul.mubr.msk.f32.gmra.mrb[132].mxu1 %vm1355_vm4, %v13996_v9 }
 0x329   : > { %10734 = vmatmul.mubr.msk.f32.gmra.mrb[100].mxu0 %vm1355_vm4, %v1784_v7  ;;  %v11483_v14 = vpack.c.bf16 %v11249_v54, %v2183_v19  ;;  %10671 = vmatprep.mubr.msk.f32.mxu1 %vm1355_vm4, %v13993_v11 }
 0x32a   : > { %10735 = vmatprep.mubr.msk.f32.mxu0 %vm1355_vm4, %v11142_v50  ;;  %v11148_v27 = vpop.f32.mrb[70].mxu1 }
 0x32b   : > { %11484 = vmatpush1.bf16.msra.mxu0 %v11483_v14  ;;  %v11252_v0 = vpop.f32.mrb[70].mxu0  ;;  %v1804_v24 = vpop.f32.mrb[71].mxu1 }
 0x32c   : > { %v2193_v29 = vpop.f32.mrb[71].mxu0  ;;  %11485 = vmatprep.subr.bf16.mxu0 %v12641_v20  ;;  %10672 = vmatmul.mubr.msk.f32.gmra.mrb[134].mxu1 %vm1355_vm4, %v13993_v11 }
 0x32d   : > { %10736 = vmatmul.mubr.msk.f32.gmra.mrb[102].mxu0 %vm1355_vm4, %v11142_v50  ;;  %v11486_v9 = vpack.c.bf16 %v11252_v0, %v2193_v29  ;;  %10673 = vmatprep.mubr.msk.f32.mxu1 %vm1355_vm4, %v14003_v41 }
 0x32e   : > { %10737 = vmatprep.mubr.msk.f32.mxu0 %vm1355_vm4, %v1794_v47  ;;  %v11151_v7 = vpop.f32.mrb[72].mxu1 }
 0x32f   : > { %11487 = vmatpush1.bf16.msra.mxu0 %v11486_v9  ;;  %v11255_v12 = vpop.f32.mrb[72].mxu0  ;;  %v1814_v54 = vpop.f32.mrb[73].mxu1 }
 0x330   : > { %v2203_v19 = vpop.f32.mrb[73].mxu0  ;;  %11488 = vmatprep.subr.bf16.mxu0 %v12641_v20  ;;  %10674 = vmatmul.mubr.msk.f32.gmra.mrb[136].mxu1 %vm1355_vm4, %v14003_v41 }
 0x331   : > { %10738 = vmatmul.mubr.msk.f32.gmra.mrb[104].mxu0 %vm1355_vm4, %v1794_v47  ;;  %v11489_v11 = vpack.c.bf16 %v11255_v12, %v2203_v19  ;;  %10675 = vmatprep.mubr.msk.f32.mxu1 %vm1355_vm4, %v14000_v51 }
 0x332   : > { %10739 = vmatprep.mubr.msk.f32.mxu0 %vm1355_vm4, %v11145_v16  ;;  %v14085_v50 = vpop.f32.mrb[74].mxu1 }
 0x333   : > { %11490 = vmatpush1.bf16.msra.mxu0 %v11489_v11  ;;  %v11258_v14 = vpop.f32.mrb[74].mxu0  ;;  %v1824_v0 = vpop.f32.mrb[75].mxu1 }
 0x334   : > { %v2213_v29 = vpop.f32.mrb[75].mxu0  ;;  %11491 = vmatprep.subr.bf16.mxu0 %v12641_v20  ;;  %10676 = vmatmul.mubr.msk.f32.gmra.mrb[138].mxu1 %vm1355_vm4, %v14000_v51 }
 0x335   : > { %10740 = vmatmul.mubr.msk.f32.gmra.mrb[106].mxu0 %vm1355_vm4, %v11145_v16  ;;  %v11492_v41 = vpack.c.bf16 %v11258_v14, %v2213_v29  ;;  %10677 = vmatprep.mubr.msk.f32.mxu1 %vm1355_vm4, %v14010_v38 }
 0x336   : > { %10741 = vmatprep.mubr.msk.f32.mxu0 %vm1355_vm4, %v1804_v24  ;;  %v14094_v47 = vpop.f32.mrb[76].mxu1 }
 0x337   : > { %11493 = vmatpush1.bf16.msra.mxu0 %v11492_v41  ;;  %v11261_v9 = vpop.f32.mrb[76].mxu0  ;;  %v14096_v12 = vpop.f32.mrb[77].mxu1 }
 0x338   : > { %v2223_v19 = vpop.f32.mrb[77].mxu0  ;;  %11494 = vmatprep.subr.bf16.mxu0 %v12641_v20  ;;  %10678 = vmatmul.mubr.msk.f32.gmra.mrb[140].mxu1 %vm1355_vm4, %v14010_v38 }
 0x339   : > { %10742 = vmatmul.mubr.msk.f32.gmra.mrb[108].mxu0 %vm1355_vm4, %v1804_v24  ;;  %v11495_v51 = vpack.c.bf16 %v11261_v9, %v2223_v19  ;;  %10679 = vmatprep.mubr.msk.f32.mxu1 %vm1355_vm4, %v14007_v4 }
 0x33a   : > { %10743 = vmatprep.mubr.msk.f32.mxu0 %vm1355_vm4, %v11148_v27  ;;  %v14105_v16 = vpop.f32.mrb[78].mxu1 }
 0x33b   : > { %11496 = vmatpush1.bf16.msra.mxu0 %v11495_v51  ;;  %v11264_v11 = vpop.f32.mrb[78].mxu0  ;;  %v14107_v14 = vpop.f32.mrb[79].mxu1 }
 0x33c   : > { %v2233_v29 = vpop.f32.mrb[79].mxu0  ;;  %11497 = vmatprep.subr.bf16.mxu0 %v12641_v20  ;;  %10680 = vmatmul.mubr.msk.f32.gmra.mrb[142].mxu1 %vm1355_vm4, %v14007_v4 }
 0x33d   : > { %10744 = vmatmul.mubr.msk.f32.gmra.mrb[110].mxu0 %vm1355_vm4, %v11148_v27  ;;  %v11498_v38 = vpack.c.bf16 %v11264_v11, %v2233_v29  ;;  %10681 = vmatprep.mubr.msk.f32.mxu1 %vm1355_vm4, %v14017_v13 }
 0x33e   : > { %10745 = vmatprep.mubr.msk.f32.mxu0 %vm1355_vm4, %v1814_v54  ;;  %v14116_v24 = vpop.f32.mrb[80].mxu1 }
 0x33f   : > { %11499 = vmatpush1.bf16.msra.mxu0 %v11498_v38  ;;  %v11267_v41 = vpop.f32.mrb[80].mxu0  ;;  %v14118_v9 = vpop.f32.mrb[81].mxu1 }
 0x340   : > { %v2243_v19 = vpop.f32.mrb[81].mxu0  ;;  %11500 = vmatprep.subr.bf16.mxu0 %v12641_v20  ;;  %10682 = vmatmul.mubr.msk.f32.gmra.mrb[144].mxu1 %vm1355_vm4, %v14017_v13 }
 0x341   : > { %10746 = vmatmul.mubr.msk.f32.gmra.mrb[112].mxu0 %vm1355_vm4, %v1814_v54  ;;  %v11501_v4 = vpack.c.bf16 %v11267_v41, %v2243_v19  ;;  %10683 = vmatprep.mubr.msk.f32.mxu1 %vm1355_vm4, %v14014_v35 }
 0x342   : > { %10747 = vmatprep.mubr.msk.f32.mxu0 %vm1355_vm4, %v11151_v7  ;;  %v14127_v27 = vpop.f32.mrb[82].mxu1 }
 0x343   : > { %11502 = vmatpush1.bf16.msra.mxu0 %v11501_v4  ;;  %v11270_v51 = vpop.f32.mrb[82].mxu0  ;;  %v14129_v11 = vpop.f32.mrb[83].mxu1 }
 0x344   : > { %v2253_v29 = vpop.f32.mrb[83].mxu0  ;;  %11503 = vmatprep.subr.bf16.mxu0 %v12641_v20  ;;  %10684 = vmatmul.mubr.msk.f32.gmra.mrb[146].mxu1 %vm1355_vm4, %v14014_v35 }
 0x345   : > { %10748 = vmatmul.mubr.msk.f32.gmra.mrb[114].mxu0 %vm1355_vm4, %v11151_v7  ;;  %v11504_v13 = vpack.c.bf16 %v11270_v51, %v2253_v29  ;;  %10685 = vmatprep.mubr.msk.f32.mxu1 %vm1355_vm4, %v14025_v26 }
 0x346   : > { %10749 = vmatprep.mubr.msk.f32.mxu0 %vm1355_vm4, %v1824_v0  ;;  %v14138_v54 = vpop.f32.mrb[84].mxu1 }
 0x347   : > { %11505 = vmatpush1.bf16.msra.mxu0 %v11504_v13  ;;  %v11273_v38 = vpop.f32.mrb[84].mxu0  ;;  %v14140_v41 = vpop.f32.mrb[85].mxu1 }
 0x348   : > { %v2263_v19 = vpop.f32.mrb[85].mxu0  ;;  %11506 = vmatprep.subr.bf16.mxu0 %v12641_v20  ;;  %10686 = vmatmul.mubr.msk.f32.gmra.mrb[148].mxu1 %vm1355_vm4, %v14025_v26 }
 0x349   : > { %10750 = vmatmul.mubr.msk.f32.gmra.mrb[116].mxu0 %vm1355_vm4, %v1824_v0  ;;  %v11507_v35 = vpack.c.bf16 %v11273_v38, %v2263_v19  ;;  %10687 = vmatprep.mubr.msk.f32.mxu1 %vm1355_vm4, %v14021_v45 }
 0x34a   : > { %10751 = vmatprep.mubr.msk.f32.mxu0 %vm1355_vm4, %v14085_v50  ;;  %v14150_v7 = vpop.f32.mrb[86].mxu1 }
 0x34b   : > { %11508 = vmatpush1.bf16.msra.mxu0 %v11507_v35  ;;  %v11276_v4 = vpop.f32.mrb[86].mxu0  ;;  %v14152_v51 = vpop.f32.mrb[87].mxu1 }
 0x34c   : > { %v2273_v29 = vpop.f32.mrb[87].mxu0  ;;  %11509 = vmatprep.subr.bf16.mxu0 %v12641_v20  ;;  %10688 = vmatmul.mubr.msk.f32.gmra.mrb[150].mxu1 %vm1355_vm4, %v14021_v45 }
 0x34d   : > { %10752 = vmatmul.mubr.msk.f32.gmra.mrb[118].mxu0 %vm1355_vm4, %v14085_v50  ;;  %v11510_v26 = vpack.c.bf16 %v11276_v4, %v2273_v29  ;;  %10689 = vmatprep.mubr.msk.f32.mxu1 %vm1355_vm4, %v14034_v44 }
 0x34e   : > { %10753 = vmatprep.mubr.msk.f32.mxu0 %vm1355_vm4, %v14096_v12  ;;  %v11175_v0 = vpop.f32.mrb[88].mxu1 }
 0x34f   : > { %11511 = vmatpush1.bf16.msra.mxu0 %v11510_v26  ;;  %v11279_v13 = vpop.f32.mrb[88].mxu0  ;;  %v1894_v38 = vpop.f32.mrb[89].mxu1 }
 0x350   : > { %v2283_v19 = vpop.f32.mrb[89].mxu0  ;;  %11512 = vmatprep.subr.bf16.mxu0 %v12641_v20  ;;  %10690 = vmatmul.mubr.msk.f32.gmra.mrb[152].mxu1 %vm1355_vm4, %v14034_v44 }
 0x351   : > { %10754 = vmatmul.mubr.msk.f32.gmra.mrb[120].mxu0 %vm1355_vm4, %v14096_v12  ;;  %v11513_v45 = vpack.c.bf16 %v11279_v13, %v2283_v19  ;;  %10691 = vmatprep.mubr.msk.f32.mxu1 %vm1355_vm4, %v14030_v34 }
 0x352   : > { %10755 = vmatprep.mubr.msk.f32.mxu0 %vm1355_vm4, %v14094_v47  ;;  %v11178_v50 = vpop.f32.mrb[90].mxu1 }
 0x353   : > { %11514 = vmatpush1.bf16.msra.mxu0 %v11513_v45  ;;  %v11282_v35 = vpop.f32.mrb[90].mxu0  ;;  %v1904_v4 = vpop.f32.mrb[91].mxu1 }
 0x354   : > { %v2293_v29 = vpop.f32.mrb[91].mxu0  ;;  %11515 = vmatprep.subr.bf16.mxu0 %v12641_v20  ;;  %10692 = vmatmul.mubr.msk.f32.gmra.mrb[154].mxu1 %vm1355_vm4, %v14030_v34 }
 0x355   : > { %10756 = vmatmul.mubr.msk.f32.gmra.mrb[122].mxu0 %vm1355_vm4, %v14094_v47  ;;  %v11516_v44 = vpack.c.bf16 %v11282_v35, %v2293_v29  ;;  %10693 = vmatprep.mubr.msk.f32.mxu1 %vm1355_vm4, %v14043_v57 }
 0x356   : > { %10757 = vmatprep.mubr.msk.f32.mxu0 %vm1355_vm4, %v14107_v14  ;;  %v11181_v12 = vpop.f32.mrb[92].mxu1 }
 0x357   : > { %11517 = vmatpush1.bf16.msra.mxu0 %v11516_v44  ;;  %v11285_v26 = vpop.f32.mrb[92].mxu0  ;;  %v1914_v13 = vpop.f32.mrb[93].mxu1 }
 0x358   : > { %v2303_v19 = vpop.f32.mrb[93].mxu0  ;;  %11518 = vmatprep.subr.bf16.mxu0 %v12641_v20  ;;  %10694 = vmatmul.mubr.msk.f32.gmra.mrb[156].mxu1 %vm1355_vm4, %v14043_v57 }
 0x359   : > { %10758 = vmatmul.mubr.msk.f32.gmra.mrb[124].mxu0 %vm1355_vm4, %v14107_v14  ;;  %v11519_v34 = vpack.c.bf16 %v11285_v26, %v2303_v19  ;;  %10695 = vmatprep.mubr.msk.f32.mxu1 %vm1355_vm4, %v14039_v43 }
 0x35a   : > { %10759 = vmatprep.mubr.msk.f32.mxu0 %vm1355_vm4, %v14105_v16  ;;  %v11184_v47 = vpop.f32.mrb[94].mxu1 }
 0x35b   : > { %11520 = vmatpush1.bf16.msra.mxu0 %v11519_v34  ;;  %v11288_v45 = vpop.f32.mrb[94].mxu0  ;;  %v1924_v35 = vpop.f32.mrb[95].mxu1 }
 0x35c   : > { %v2313_v29 = vpop.f32.mrb[95].mxu0  ;;  %11521 = vmatprep.subr.bf16.mxu0 %v12641_v20  ;;  %10696 = vmatmul.mubr.msk.f32.gmra.mrb[158].mxu1 %vm1355_vm4, %v14039_v43 }
 0x35d   : > { %10760 = vmatmul.mubr.msk.f32.gmra.mrb[126].mxu0 %vm1355_vm4, %v14105_v16  ;;  %v11522_v57 = vpack.c.bf16 %v11288_v45, %v2313_v29 }
 0x35e   : > { %10761 = vmatprep.mubr.msk.f32.mxu0 %vm1355_vm4, %v14118_v9 }
 0x35f   : > { %11523 = vmatpush1.bf16.msra.mxu0 %v11522_v57 }
 0x361   : > { %10762 = vmatmul.mubr.msk.f32.gmra.mrb[128].mxu0 %vm1355_vm4, %v14118_v9 }
 0x362   : > { %10763 = vmatprep.mubr.msk.f32.mxu0 %vm1355_vm4, %v14116_v24 }
 0x365   : > { %10764 = vmatmul.mubr.msk.f32.gmra.mrb[130].mxu0 %vm1355_vm4, %v14116_v24 }
 0x366   : > { %10765 = vmatprep.mubr.msk.f32.mxu0 %vm1355_vm4, %v14129_v11 }
 0x369   : > { %10766 = vmatmul.mubr.msk.f32.gmra.mrb[132].mxu0 %vm1355_vm4, %v14129_v11 }
 0x36a   : > { %10767 = vmatprep.mubr.msk.f32.mxu0 %vm1355_vm4, %v14127_v27 }
 0x36d   : > { %10768 = vmatmul.mubr.msk.f32.gmra.mrb[134].mxu0 %vm1355_vm4, %v14127_v27 }
 0x36e   : > { %10769 = vmatprep.mubr.msk.f32.mxu0 %vm1355_vm4, %v14140_v41 }
 0x371   : > { %10770 = vmatmul.mubr.msk.f32.gmra.mrb[136].mxu0 %vm1355_vm4, %v14140_v41 }
 0x372   : > { %10771 = vmatprep.mubr.msk.f32.mxu0 %vm1355_vm4, %v14138_v54 }
 0x375   : > { %10772 = vmatmul.mubr.msk.f32.gmra.mrb[138].mxu0 %vm1355_vm4, %v14138_v54 }
 0x376   : > { %10773 = vmatprep.mubr.msk.f32.mxu0 %vm1355_vm4, %v14152_v51 }
 0x379   : > { %10774 = vmatmul.mubr.msk.f32.gmra.mrb[140].mxu0 %vm1355_vm4, %v14152_v51 }
 0x37a   : > { %10775 = vmatprep.mubr.msk.f32.mxu0 %vm1355_vm4, %v14150_v7 }
 0x37d   : > { %10776 = vmatmul.mubr.msk.f32.gmra.mrb[142].mxu0 %vm1355_vm4, %v14150_v7 }
 0x37e   : > { %10777 = vmatprep.mubr.msk.f32.mxu0 %vm1355_vm4, %v1894_v38 }
 0x381   : > { %10778 = vmatmul.mubr.msk.f32.gmra.mrb[144].mxu0 %vm1355_vm4, %v1894_v38 }
 0x382   : > { %10779 = vmatprep.mubr.msk.f32.mxu0 %vm1355_vm4, %v11175_v0 }
 0x385   : > { %10780 = vmatmul.mubr.msk.f32.gmra.mrb[146].mxu0 %vm1355_vm4, %v11175_v0 }
 0x386   : > { %10781 = vmatprep.mubr.msk.f32.mxu0 %vm1355_vm4, %v1904_v4 }
 0x389   : > { %10782 = vmatmul.mubr.msk.f32.gmra.mrb[148].mxu0 %vm1355_vm4, %v1904_v4 }
 0x38a   : > { %10783 = vmatprep.mubr.msk.f32.mxu0 %vm1355_vm4, %v11178_v50 }
 0x38d   : > { %10784 = vmatmul.mubr.msk.f32.gmra.mrb[150].mxu0 %vm1355_vm4, %v11178_v50 }
 0x38e   : > { %10785 = vmatprep.mubr.msk.f32.mxu0 %vm1355_vm4, %v1914_v13 }
 0x391   : > { %10786 = vmatmul.mubr.msk.f32.gmra.mrb[152].mxu0 %vm1355_vm4, %v1914_v13 }
 0x392   : > { %10787 = vmatprep.mubr.msk.f32.mxu0 %vm1355_vm4, %v11181_v12 }
 0x395   : > { %10788 = vmatmul.mubr.msk.f32.gmra.mrb[154].mxu0 %vm1355_vm4, %v11181_v12 }
 0x396   : > { %10789 = vmatprep.mubr.msk.f32.mxu0 %vm1355_vm4, %v1924_v35 }
 0x399   : > { %10790 = vmatmul.mubr.msk.f32.gmra.mrb[156].mxu0 %vm1355_vm4, %v1924_v35 }
 0x39a   : > { %10791 = vmatprep.mubr.msk.f32.mxu0 %vm1355_vm4, %v11184_v47 }
 0x39d   : > { %10792 = vmatmul.mubr.msk.f32.gmra.mrb[158].mxu0 %vm1355_vm4, %v11184_v47 }
 0x3b3   : > { %v14243_v20 = vpop.f32.mrb[96].mxu1 }
 0x3b4   : > { %v14245_v43 = vpop.f32.mrb[97].mxu1 }
 0x3b5   : > { %v3028_v16 = vmax.f32 %v14243_v20, %v14245_v43 }
 0x3b7   : > { %3029 = vmax.xlane.f32.xlu0 %v3028_v16  ;;  %v14249_v14 = vpop.f32.mrb[98].mxu1 }
 0x3b8   : > { %v14251_v24 = vpop.f32.mrb[99].mxu1 }
 0x3b9   : > { %v3031_v9 = vmax.f32 %v14249_v14, %v14251_v24 }
 0x3bb   : > { %3032 = vmax.xlane.f32.xlu1 %v3031_v9  ;;  %v14255_v27 = vpop.f32.mrb[100].mxu1 }
 0x3bc   : > { %v14257_v11 = vpop.f32.mrb[101].mxu1 }
 0x3bd   : > { %v3034_v54 = vmax.f32 %v14255_v27, %v14257_v11 }
 0x3bf   : > { %v14261_v41 = vpop.f32.mrb[102].mxu1 }
 0x3c0   : > { %v14263_v7 = vpop.f32.mrb[103].mxu1 }
 0x3c1   : > { %v3037_v51 = vmax.f32 %v14261_v41, %v14263_v7 }
 0x3c3   : > { %v14267_v0 = vpop.f32.mrb[104].mxu1 }
 0x3c4   : > { %v14269_v38 = vpop.f32.mrb[105].mxu1 }
 0x3c5   : > { %v16616_v59 = vmax.f32 %v14267_v0, %v14269_v38 }
 0x3c7   : > { %v14273_v4 = vpop.f32.mrb[106].mxu1 }
 0x3c8   : > { %v14275_v44 = vpop.f32.mrb[107].mxu1 }
 0x3cb   : > { %v14279_v26 = vpop.f32.mrb[108].mxu1 }
 0x3cc   : > { %16593 = vst [vmem:[#allocation96_spill] sm:$0xff] %v14279_v26  ;;  %v14281_v13 = vpop.f32.mrb[109].mxu1 }
 0x3cd   : > { %16594 = vst [vmem:[#allocation97_spill] sm:$0xff] %v14281_v13 }
 0x3cf   : > { %v14285_v34 = vpop.f32.mrb[110].mxu1 }
 0x3d0   : > { %16595 = vst [vmem:[#allocation98_spill] sm:$0xff] %v14285_v34  ;;  %v14287_v47 = vpop.f32.mrb[111].mxu1 }
 0x3d1   : > { %16596 = vst [vmem:[#allocation99_spill] sm:$0xff] %v14287_v47 }
 0x3d3   : > { %v14291_v35 = vpop.f32.mrb[112].mxu1 }
 0x3d4   : > { %16597 = vst [vmem:[#allocation100_spill] sm:$0xff] %v14291_v35  ;;  %v14293_v29 = vpop.f32.mrb[113].mxu1 }
 0x3d5   : > { %16598 = vst [vmem:[#allocation101_spill] sm:$0xff] %v14293_v29 }
 0x3d7   : > { %v14297_v16 = vpop.f32.mrb[114].mxu1 }
 0x3d8   : > { %16599 = vst [vmem:[#allocation102_spill] sm:$0xff] %v14297_v16  ;;  %v14299_v9 = vpop.f32.mrb[115].mxu1 }
 0x3d9   : > { %16600 = vst [vmem:[#allocation103_spill] sm:$0xff] %v14299_v9 }
 0x3db   : > { %v14303_v12 = vpop.f32.mrb[116].mxu1 }
 0x3dc   : > { %16601 = vst [vmem:[#allocation104_spill] sm:$0xff] %v14303_v12  ;;  %v14305_v50 = vpop.f32.mrb[117].mxu1 }
 0x3dd   : > { %16602 = vst [vmem:[#allocation105_spill] sm:$0xff] %v14305_v50 }
 0x3df   : > { %v14309_v30 = vpop.f32.mrb[118].mxu1 }
 0x3e0   : > { %16603 = vst [vmem:[#allocation106_spill] sm:$0xff] %v14309_v30  ;;  %v14311_v3 = vpop.f32.mrb[119].mxu1 }
 0x3e1   : > { %16604 = vst [vmem:[#allocation107_spill] sm:$0xff] %v14311_v3 }
 0x3e3   : > { %v14315_v6 = vpop.f32.mrb[120].mxu1 }
 0x3e4   : > { %16605 = vst [vmem:[#allocation108_spill] sm:$0xff] %v14315_v6  ;;  %v14317_v22 = vpop.f32.mrb[121].mxu1 }
 0x3e5   : > { %16606 = vst [vmem:[#allocation109_spill] sm:$0xff] %v14317_v22 }
 0x3e7   : > { %v14321_v42 = vpop.f32.mrb[122].mxu1 }
 0x3e8   : > { %16607 = vst [vmem:[#allocation110_spill] sm:$0xff] %v14321_v42  ;;  %v14323_v56 = vpop.f32.mrb[123].mxu1 }
 0x3e9   : > { %16608 = vst [vmem:[#allocation111_spill] sm:$0xff] %v14323_v56 }
 0x3eb   : > { %v14327_v63 = vpop.f32.mrb[124].mxu1 }
 0x3ec   : > { %16609 = vst [vmem:[#allocation112_spill] sm:$0xff] %v14327_v63  ;;  %v14329_v17 = vpop.f32.mrb[125].mxu1 }
 0x3ed   : > { %16610 = vst [vmem:[#allocation113_spill] sm:$0xff] %v14329_v17 }
 0x3ef   : > { %v14333_v40 = vpop.f32.mrb[126].mxu1 }
 0x3f0   : > { %16611 = vst [vmem:[#allocation114_spill] sm:$0xff] %v14333_v40  ;;  %v14335_v1 = vpop.f32.mrb[127].mxu1 }
 0x3f1   : > { %16612 = vst [vmem:[#allocation115_spill] sm:$0xff] %v14335_v1 }
 0x3f3   : > { %v14339_v23 = vpop.f32.mrb[128].mxu1 }
 0x3f4   : > { %v14341_v48 = vpop.f32.mrb[96].mxu0  ;;  %v14343_v21 = vpop.f32.mrb[129].mxu1 }
 0x3f5   : > { %v14345_v45 = vpop.f32.mrb[97].mxu0 }
 0x3f6   : > { %v3124_v58 = vmax.f32 %v14341_v48, %v14345_v45 }
 0x3f7   : > { %v14353_v2 = vpop.f32.mrb[130].mxu1 }
 0x3f8   : > { %v14351_v15 = vpop.f32.mrb[98].mxu0  ;;  %3125 = vmax.xlane.f32.xlu0 %v3124_v58  ;;  %v14355_v19 = vpop.f32.mrb[131].mxu1 }
 0x3f9   : > { %v14357_v8 = vpop.f32.mrb[99].mxu0 }
 0x3fa   : > { %v3127_v61 = vmax.f32 %v14351_v15, %v14357_v8 }
 0x3fb   : > { %v14365_v57 = vpop.f32.mrb[132].mxu1 }
 0x3fc   : > { %v14363_v18 = vpop.f32.mrb[100].mxu0  ;;  %3128 = vmax.xlane.f32.xlu1 %v3127_v61  ;;  %3035 = vmax.xlane.f32.xlu0 %v3034_v54  ;;  %v14367_v62 = vpop.f32.mrb[133].mxu1 }
 0x3fd   : > { %16613 = vst [vmem:[#allocation116_spill] sm:$0xff] %v14367_v62  ;;  %v14369_v58 = vpop.f32.mrb[101].mxu0 }
 0x3fe   : > { %v3130_v55 = vmax.f32 %v14363_v18, %v14369_v58 }
 0x3ff   : > { %v14377_v5 = vpop.f32.mrb[134].mxu1 }
 0x400   : > { %v14375_v53 = vpop.f32.mrb[102].mxu0  ;;  %3131 = vmax.xlane.f32.xlu1 %v3130_v55  ;;  %3038 = vmax.xlane.f32.xlu0 %v3037_v51  ;;  %16614 = vst [vmem:[#allocation117_spill] sm:$0xff] %v14377_v5  ;;  %v14379_v61 = vpop.f32.mrb[135].mxu1 }
 0x401   : > { %16615 = vst [vmem:[#allocation118_spill] sm:$0xff] %v14379_v61  ;;  %v14381_v54 = vpop.f32.mrb[103].mxu0 }
 0x402   : > { %v3133_v52 = vmax.f32 %v14375_v53, %v14381_v54 }
 0x403   : > { %v14392_v55 = vpop.f32.mrb[136].mxu1 }
 0x404   : > { %v14387_v49 = vpop.f32.mrb[104].mxu0  ;;  %3134 = vmax.xlane.f32.xlu1 %v3133_v52  ;;  %3041 = vmax.xlane.f32.xlu0 %v16616_v59  ;;  %v14394_v51 = vpop.f32.mrb[137].mxu1  ;;  %v16619_v52 = vmax.f32 %v14273_v4, %v14275_v44 }
 0x405   : > { %16617 = vst [vmem:[#allocation119_spill] sm:$0xff] %v14394_v51  ;;  %v14396_v39 = vpop.f32.mrb[105].mxu0 }
 0x406   : > { %v3136_v10 = vmax.f32 %v14387_v49, %v14396_v39 }
 0x407   : > { %v14407_v59 = vpop.f32.mrb[138].mxu1 }
 0x408   : > { %v14402_v32 = vpop.f32.mrb[106].mxu0  ;;  %3137 = vmax.xlane.f32.xlu1 %v3136_v10  ;;  %3044 = vmax.xlane.f32.xlu0 %v16619_v52  ;;  %v14409_v36 = vpop.f32.mrb[139].mxu1  ;;  %v16622_v10 = vmax.f32 %v14279_v26, %v14281_v13 }
 0x409   : > { %16618 = vst [vmem:[#allocation120_spill] sm:$0xff] %v14402_v32  ;;  %v14411_v60 = vpop.f32.mrb[107].mxu0 }
 0x40a   : > { %16620 = vst [vmem:[#allocation121_spill] sm:$0xff] %v14411_v60  ;;  %v3139_v33 = vmax.f32 %v14402_v32, %v14411_v60 }
 0x40b   : > { %v14422_v52 = vpop.f32.mrb[140].mxu1 }
 0x40c   : > { %v14417_v31 = vpop.f32.mrb[108].mxu0  ;;  %3140 = vmax.xlane.f32.xlu1 %v3139_v33  ;;  %3047 = vmax.xlane.f32.xlu0 %v16622_v10  ;;  %v14424_v37 = vpop.f32.mrb[141].mxu1  ;;  %v16625_v33 = vmax.f32 %v14285_v34, %v14287_v47 }
 0x40d   : > { %16621 = vst [vmem:[#allocation122_spill] sm:$0xff] %v14417_v31  ;;  %v14426_v28 = vpop.f32.mrb[109].mxu0 }
 0x40e   : > { %16623 = vst [vmem:[#allocation123_spill] sm:$0xff] %v14426_v28  ;;  %v3142_v25 = vmax.f32 %v14417_v31, %v14426_v28 }
 0x40f   : > { %v14437_v10 = vpop.f32.mrb[142].mxu1 }
 0x410   : > { %v14432_v46 = vpop.f32.mrb[110].mxu0  ;;  %3143 = vmax.xlane.f32.xlu1 %v3142_v25  ;;  %3050 = vmax.xlane.f32.xlu0 %v16625_v33  ;;  %v14439_v13 = vpop.f32.mrb[143].mxu1  ;;  %v16629_v25 = vmax.f32 %v14291_v35, %v14293_v29 }
 0x411   : > { %16624 = vst [vmem:[#allocation124_spill] sm:$0xff] %v14432_v46  ;;  %16626 = vst [vmem:[#allocation125_spill] sm:$0xff] %v14439_v13  ;;  %v14441_v26 = vpop.f32.mrb[111].mxu0 }
 0x412   : > { %16627 = vst [vmem:[#allocation126_spill] sm:$0xff] %v14441_v26  ;;  %v3145_v32 = vmax.f32 %v14432_v46, %v14441_v26 }
 0x413   : > { %v14452_v33 = vpop.f32.mrb[144].mxu1 }
 0x414   : > { %v14447_v60 = vpop.f32.mrb[112].mxu0  ;;  %3146 = vmax.xlane.f32.xlu1 %v3145_v32  ;;  %3053 = vmax.xlane.f32.xlu0 %v16629_v25  ;;  %16630 = vst [vmem:[#allocation128_spill] sm:$0xff] %v14452_v33  ;;  %v14454_v47 = vpop.f32.mrb[145].mxu1  ;;  %v16634_v32 = vmax.f32 %v14297_v16, %v14299_v9 }
 0x415   : > { %16628 = vst [vmem:[#allocation127_spill] sm:$0xff] %v14447_v60  ;;  %16631 = vst [vmem:[#allocation129_spill] sm:$0xff] %v14454_v47  ;;  %v14456_v34 = vpop.f32.mrb[113].mxu0 }
 0x416   : > { %16632 = vst [vmem:[#allocation130_spill] sm:$0xff] %v14456_v34  ;;  %v3148_v31 = vmax.f32 %v14447_v60, %v14456_v34 }
 0x417   : > { %v14467_v25 = vpop.f32.mrb[146].mxu1 }
 0x418   : > { %v14462_v28 = vpop.f32.mrb[114].mxu0  ;;  %3149 = vmax.xlane.f32.xlu1 %v3148_v31  ;;  %3056 = vmax.xlane.f32.xlu0 %v16634_v32  ;;  %v14469_v29 = vpop.f32.mrb[147].mxu1  ;;  %v16637_v31 = vmax.f32 %v14303_v12, %v14305_v50 }
 0x419   : > { %16633 = vst [vmem:[#allocation131_spill] sm:$0xff] %v14462_v28  ;;  %v14471_v35 = vpop.f32.mrb[115].mxu0 }
 0x41a   : > { %16635 = vst [vmem:[#allocation132_spill] sm:$0xff] %v14471_v35  ;;  %v3151_v46 = vmax.f32 %v14462_v28, %v14471_v35 }
 0x41b   : > { %v14482_v32 = vpop.f32.mrb[148].mxu1 }
 0x41c   : > { %v14477_v26 = vpop.f32.mrb[116].mxu0  ;;  %3152 = vmax.xlane.f32.xlu1 %v3151_v46  ;;  %3059 = vmax.xlane.f32.xlu0 %v16637_v31  ;;  %v14484_v9 = vpop.f32.mrb[149].mxu1  ;;  %v16640_v46 = vmax.f32 %v14309_v30, %v14311_v3 }
 0x41d   : > { %16636 = vst [vmem:[#allocation133_spill] sm:$0xff] %v14477_v26  ;;  %v14486_v16 = vpop.f32.mrb[117].mxu0 }
 0x41e   : > { %16638 = vst [vmem:[#allocation134_spill] sm:$0xff] %v14486_v16  ;;  %v3154_v60 = vmax.f32 %v14477_v26, %v14486_v16 }
 0x41f   : > { %v14497_v31 = vpop.f32.mrb[150].mxu1 }
 0x420   : > { %v14492_v34 = vpop.f32.mrb[118].mxu0  ;;  %3155 = vmax.xlane.f32.xlu1 %v3154_v60  ;;  %3062 = vmax.xlane.f32.xlu0 %v16640_v46  ;;  %v14499_v50 = vpop.f32.mrb[151].mxu1  ;;  %v16643_v60 = vmax.f32 %v14315_v6, %v14317_v22 }
 0x421   : > { %16639 = vst [vmem:[#allocation135_spill] sm:$0xff] %v14492_v34  ;;  %v14501_v12 = vpop.f32.mrb[119].mxu0 }
 0x422   : > { %16641 = vst [vmem:[#allocation136_spill] sm:$0xff] %v14501_v12  ;;  %v3157_v28 = vmax.f32 %v14492_v34, %v14501_v12 }
 0x423   : > { %v14512_v46 = vpop.f32.mrb[152].mxu1 }
 0x424   : > { %v14507_v35 = vpop.f32.mrb[120].mxu0  ;;  %3158 = vmax.xlane.f32.xlu1 %v3157_v28  ;;  %3065 = vmax.xlane.f32.xlu0 %v16643_v60  ;;  %v14514_v3 = vpop.f32.mrb[153].mxu1  ;;  %v16646_v28 = vmax.f32 %v14321_v42, %v14323_v56 }
 0x425   : > { %16642 = vst [vmem:[#allocation137_spill] sm:$0xff] %v14507_v35  ;;  %v14516_v30 = vpop.f32.mrb[121].mxu0 }
 0x426   : > { %16644 = vst [vmem:[#allocation138_spill] sm:$0xff] %v14516_v30  ;;  %v3160_v26 = vmax.f32 %v14507_v35, %v14516_v30 }
 0x427   : > { %v14527_v60 = vpop.f32.mrb[154].mxu1 }
 0x428   : > { %v14522_v16 = vpop.f32.mrb[122].mxu0  ;;  %3161 = vmax.xlane.f32.xlu1 %v3160_v26  ;;  %3068 = vmax.xlane.f32.xlu0 %v16646_v28  ;;  %v14529_v22 = vpop.f32.mrb[155].mxu1  ;;  %v16648_v26 = vmax.f32 %v14327_v63, %v14329_v17 }
 0x429   : > { %16645 = vst [vmem:[#allocation139_spill] sm:$0xff] %v14522_v16  ;;  %v14531_v6 = vpop.f32.mrb[123].mxu0 }
 0x42a   : > { %16647 = vst [vmem:[#allocation140_spill] sm:$0xff] %v14531_v6  ;;  %v3163_v34 = vmax.f32 %v14522_v16, %v14531_v6 }
 0x42b   : > { %v14542_v28 = vpop.f32.mrb[156].mxu1 }
 0x42c   : > { %v14537_v12 = vpop.f32.mrb[124].mxu0  ;;  %3164 = vmax.xlane.f32.xlu1 %v3163_v34  ;;  %3071 = vmax.xlane.f32.xlu0 %v16648_v26  ;;  %16649 = vst [vmem:[#allocation141_spill] sm:$0xff] %v14542_v28  ;;  %v14544_v56 = vpop.f32.mrb[157].mxu1  ;;  %v16653_v34 = vmax.f32 %v14333_v40, %v14335_v1 }
 0x42d   : > { %16650 = vst [vmem:[#allocation142_spill] sm:$0xff] %v14544_v56  ;;  %v14546_v42 = vpop.f32.mrb[125].mxu0 }
 0x42e   : > { %16651 = vst [vmem:[#allocation143_spill] sm:$0xff] %v14546_v42  ;;  %v3166_v35 = vmax.f32 %v14537_v12, %v14546_v42 }
 0x42f   : > { %v14557_v26 = vpop.f32.mrb[158].mxu1 }
 0x430   : > { %v14552_v30 = vpop.f32.mrb[126].mxu0  ;;  %3167 = vmax.xlane.f32.xlu1 %v3166_v35  ;;  %3074 = vmax.xlane.f32.xlu0 %v16653_v34  ;;  %16654 = vst [vmem:[#allocation145_spill] sm:$0xff] %v14557_v26  ;;  %v14559_v17 = vpop.f32.mrb[159].mxu1  ;;  %v16658_v35 = vmax.f32 %v14339_v23, %v14343_v21 }
 0x431   : > { %16652 = vst [vmem:[#allocation144_spill] sm:$0xff] %v14552_v30  ;;  %16655 = vst [vmem:[#allocation146_spill] sm:$0xff] %v14559_v17  ;;  %v14561_v63 = vpop.f32.mrb[127].mxu0 }
 0x432   : > { %16656 = vst [vmem:[#allocation147_spill] sm:$0xff] %v14561_v63  ;;  %v3169_v16 = vmax.f32 %v14552_v30, %v14561_v63  ;;  %v16661_v63 = vmax.f32 %v14353_v2, %v14355_v19 }
 0x434   : > { %v14567_v6 = vpop.f32.mrb[128].mxu0  ;;  %3170 = vmax.xlane.f32.xlu1 %v3169_v16  ;;  %3077 = vmax.xlane.f32.xlu0 %v16658_v35  ;;  %v16664_v35 = vmax.f32 %v14365_v57, %v14367_v62 }
 0x435   : > { %16657 = vst [vmem:[#allocation148_spill] sm:$0xff] %v14567_v6  ;;  %v14572_v34 = vpop.f32.mrb[129].mxu0 }
 0x436   : > { %16659 = vst [vmem:[#allocation149_spill] sm:$0xff] %v14572_v34  ;;  %v3172_v1 = vmax.f32 %v14567_v6, %v14572_v34 }
 0x438   : > { %v14576_v40 = vpop.f32.mrb[130].mxu0  ;;  %3173 = vmax.xlane.f32.xlu1 %v3172_v1  ;;  %3080 = vmax.xlane.f32.xlu0 %v16661_v63  ;;  %v16666_v63 = vmax.f32 %v14377_v5, %v14379_v61 }
 0x439   : > { %16660 = vst [vmem:[#allocation150_spill] sm:$0xff] %v14576_v40  ;;  %v14581_v42 = vpop.f32.mrb[131].mxu0 }
 0x43a   : > { %16662 = vst [vmem:[#allocation151_spill] sm:$0xff] %v14581_v42  ;;  %v3175_v16 = vmax.f32 %v14576_v40, %v14581_v42 }
 0x43c   : > { %v14585_v30 = vpop.f32.mrb[132].mxu0  ;;  %3176 = vmax.xlane.f32.xlu1 %v3175_v16  ;;  %3083 = vmax.xlane.f32.xlu0 %v16664_v35  ;;  %v16668_v35 = vmax.f32 %v14392_v55, %v14394_v51 }
 0x43d   : > { %16663 = vst [vmem:[#allocation152_spill] sm:$0xff] %v14585_v30  ;;  %v14590_v34 = vpop.f32.mrb[133].mxu0 }
 0x43e   : > { %16665 = vst [vmem:[#allocation153_spill] sm:$0xff] %v14590_v34  ;;  %v3178_v1 = vmax.f32 %v14585_v30, %v14590_v34 }
 0x440   : > { %v14594_v6 = vpop.f32.mrb[134].mxu0  ;;  %3179 = vmax.xlane.f32.xlu1 %v3178_v1  ;;  %3086 = vmax.xlane.f32.xlu0 %v16666_v63 }
 0x441   : > { %v14599_v42 = vpop.f32.mrb[135].mxu0 }
 0x442   : > { %16667 = vst [vmem:[#allocation154_spill] sm:$0xff] %v14599_v42  ;;  %v3181_v16 = vmax.f32 %v14594_v6, %v14599_v42 }
 0x444   : > { %v14603_v40 = vpop.f32.mrb[136].mxu0  ;;  %3182 = vmax.xlane.f32.xlu1 %v3181_v16  ;;  %3089 = vmax.xlane.f32.xlu0 %v16668_v35  ;;  %v3030_v30 = vpop.xlane.xlu0 %3029  ;;  %v16670_v16 = vmax.f32 %v14407_v59, %v14409_v36 }
 0x445   : > { %v14608_v34 = vpop.f32.mrb[137].mxu0  ;;  %v3220_v1 = vsub.f32 %v14243_v20, %v3030_v30  ;;  %v3221_v61 = vsub.f32 %v14245_v43, %v3030_v30 }
 0x446   : > { %16669 = vst [vmem:[#allocation155_spill] sm:$0xff] %v14608_v34  ;;  %v3184_v63 = vmax.f32 %v14603_v40, %v14608_v34 }
 0x447   : > { %v3348_v5 = vmul.f32 1.442695, %v3220_v1  ;;  %v3350_v62 = vmul.f32 1.442695, %v3221_v61 }
 0x448   : > { %v14614_v42 = vpop.f32.mrb[138].mxu0  ;;  %3185 = vmax.xlane.f32.xlu1 %v3184_v63  ;;  %3092 = vmax.xlane.f32.xlu0 %v16670_v16  ;;  %v3033_v51 = vpop.xlane.xlu1 %3032  ;;  %v16671_v63 = vmax.f32 %v14422_v52, %v14424_v37 }
 0x449   : > { %v14619_v35 = vpop.f32.mrb[139].mxu0  ;;  %11764 = vpow2.f32 %v3348_v5  ;;  %v3222_v20 = vsub.f32 %v14249_v14, %v3033_v51  ;;  %v3223_v30 = vsub.f32 %v14251_v24, %v3033_v51 }
 0x44a   : > { %v3187_v43 = vmax.f32 %v14614_v42, %v14619_v35  ;;  %11766 = vpow2.f32 %v3350_v62  ;;  %v16672_v62 = vmax.f32 %v14437_v10, %v14439_v13 }
 0x44b   : > { %v3352_v61 = vmul.f32 1.442695, %v3222_v20  ;;  %v3354_v1 = vmul.f32 1.442695, %v3223_v30 }
 0x44c   : > { %v14625_v34 = vpop.f32.mrb[140].mxu0  ;;  %3188 = vmax.xlane.f32.xlu1 %v3187_v43  ;;  %3095 = vmax.xlane.f32.xlu0 %v16671_v63  ;;  %v16674_v43 = vmax.f32 %v14452_v33, %v14454_v47 }
 0x44d   : > { %v14630_v16 = vpop.f32.mrb[141].mxu0  ;;  %11768 = vpow2.f32 %v3352_v61 }
 0x44e   : > { %v3190_v5 = vmax.f32 %v14625_v34, %v14630_v16  ;;  %11770 = vpow2.f32 %v3354_v1 }
 0x450   : > { %v14634_v14 = vpop.f32.mrb[142].mxu0  ;;  %3191 = vmax.xlane.f32.xlu1 %v3190_v5  ;;  %3098 = vmax.xlane.f32.xlu0 %v16672_v62 }
 0x451   : > { %v14639_v24 = vpop.f32.mrb[143].mxu0 }
 0x452   : > { %16673 = vst [vmem:[#allocation156_spill] sm:$0xff] %v14639_v24  ;;  %v3193_v51 = vmax.f32 %v14634_v14, %v14639_v24 }
 0x453   : > { %v11765_v20 = vpop.eup %11764 }
 0x454   : > { %v14643_v30 = vpop.f32.mrb[144].mxu0  ;;  %3194 = vmax.xlane.f32.xlu1 %v3193_v51  ;;  %3101 = vmax.xlane.f32.xlu0 %v16674_v43  ;;  %v11767_v61 = vpop.eup %11766  ;;  %v16676_v51 = vmax.f32 %v14467_v25, %v14469_v29 }
 0x455   : > { %v14648_v1 = vpop.f32.mrb[145].mxu0  ;;  %3860 = vmatprep.mubr.f32.mxu1 %v11767_v61  ;;  %v3604_v5 = vadd.f32 %v11767_v61, %v11765_v20 }
 0x456   : > { %16675 = vst [vmem:[#allocation157_spill] sm:$0xff] %v14648_v1  ;;  %v3196_v63 = vmax.f32 %v14643_v30, %v14648_v1  ;;  %3861 = vmatmul.mubr.f32.vlgmr.msra.gmra.mrb[160].mxu1 %v11765_v20  ;;  %v16679_v20 = vmax.f32 %v14482_v32, %v14484_v9 }
 0x457   : > { %v11769_v62 = vpop.eup %11768 }
 0x458   : > { %v14652_v13 = vpop.f32.mrb[146].mxu0  ;;  %3197 = vmax.xlane.f32.xlu1 %v3196_v63  ;;  %3104 = vmax.xlane.f32.xlu0 %v16676_v51  ;;  %v11771_v24 = vpop.eup %11770 }
 0x459   : > { %v14657_v47 = vpop.f32.mrb[147].mxu0  ;;  %3865 = vmatprep.mubr.f32.mxu1 %v11771_v24  ;;  %v3607_v33 = vadd.f32 %v11771_v24, %v11769_v62 }
 0x45a   : > { %16677 = vst [vmem:[#allocation158_spill] sm:$0xff] %v14657_v47  ;;  %v3199_v43 = vmax.f32 %v14652_v13, %v14657_v47  ;;  %3866 = vmatmul.mubr.f32.gmra.mrb[162].mxu1 %v11769_v62  ;;  %v16682_v47 = vmax.f32 %v14497_v31, %v14499_v50 }
 0x45c   : > { %v14661_v1 = vpop.f32.mrb[148].mxu0  ;;  %3200 = vmax.xlane.f32.xlu1 %v3199_v43  ;;  %3107 = vmax.xlane.f32.xlu0 %v16679_v20  ;;  %v16685_v20 = vmax.f32 %v14512_v46, %v14514_v3 }
 0x45d   : > { %16678 = vst [vmem:[#allocation159_spill] sm:$0xff] %v14661_v1  ;;  %v14666_v61 = vpop.f32.mrb[149].mxu0 }
 0x45e   : > { %16680 = vst [vmem:[#allocation160_spill] sm:$0xff] %v14666_v61  ;;  %v3202_v63 = vmax.f32 %v14661_v1, %v14666_v61 }
 0x460   : > { %v14670_v51 = vpop.f32.mrb[150].mxu0  ;;  %3203 = vmax.xlane.f32.xlu1 %v3202_v63  ;;  %3110 = vmax.xlane.f32.xlu0 %v16682_v47  ;;  %v16688_v47 = vmax.f32 %v14527_v60, %v14529_v22 }
 0x461   : > { %16681 = vst [vmem:[#allocation161_spill] sm:$0xff] %v14670_v51  ;;  %v14675_v24 = vpop.f32.mrb[151].mxu0 }
 0x462   : > { %16683 = vst [vmem:[#allocation162_spill] sm:$0xff] %v14675_v24  ;;  %v3205_v62 = vmax.f32 %v14670_v51, %v14675_v24 }
 0x464   : > { %v14679_v43 = vpop.f32.mrb[152].mxu0  ;;  %3206 = vmax.xlane.f32.xlu1 %v3205_v62  ;;  %3113 = vmax.xlane.f32.xlu0 %v16685_v20  ;;  %v16691_v20 = vmax.f32 %v14542_v28, %v14544_v56 }
 0x465   : > { %16684 = vst [vmem:[#allocation163_spill] sm:$0xff] %v14679_v43  ;;  %v14684_v61 = vpop.f32.mrb[153].mxu0 }
 0x466   : > { %16686 = vst [vmem:[#allocation164_spill] sm:$0xff] %v14684_v61  ;;  %v3208_v63 = vmax.f32 %v14679_v43, %v14684_v61 }
 0x468   : > { %v14688_v1 = vpop.f32.mrb[154].mxu0  ;;  %3209 = vmax.xlane.f32.xlu1 %v3208_v63  ;;  %3116 = vmax.xlane.f32.xlu0 %v16688_v47  ;;  %v16694_v47 = vmax.f32 %v14557_v26, %v14559_v17 }
 0x469   : > { %16687 = vst [vmem:[#allocation165_spill] sm:$0xff] %v14688_v1  ;;  %v14693_v24 = vpop.f32.mrb[155].mxu0 }
 0x46a   : > { %16689 = vst [vmem:[#allocation166_spill] sm:$0xff] %v14693_v24  ;;  %v3211_v62 = vmax.f32 %v14688_v1, %v14693_v24 }
 0x46c   : > { %v14697_v51 = vpop.f32.mrb[156].mxu0  ;;  %3212 = vmax.xlane.f32.xlu1 %v3211_v62  ;;  %3119 = vmax.xlane.f32.xlu0 %v16691_v20 }
 0x46d   : > { %16690 = vst [vmem:[#allocation167_spill] sm:$0xff] %v14697_v51  ;;  %v14702_v61 = vpop.f32.mrb[157].mxu0 }
 0x46e   : > { %16692 = vst [vmem:[#allocation168_spill] sm:$0xff] %v14702_v61  ;;  %v3214_v63 = vmax.f32 %v14697_v51, %v14702_v61 }
 0x470   : > { %v14706_v43 = vpop.f32.mrb[158].mxu0  ;;  %3215 = vmax.xlane.f32.xlu1 %v3214_v63  ;;  %3122 = vmax.xlane.f32.xlu0 %v16694_v47 }
 0x471   : > { %16693 = vst [vmem:[#allocation169_spill] sm:$0xff] %v14706_v43  ;;  %v14711_v24 = vpop.f32.mrb[159].mxu0 }
 0x472   : > { %16695 = vst [vmem:[#allocation170_spill] sm:$0xff] %v14711_v24  ;;  %v3217_v62 = vmax.f32 %v14706_v43, %v14711_v24 }
 0x474   : > { %3218 = vmax.xlane.f32.xlu1 %v3217_v62  ;;  %3605 = vadd.xlane.f32.xlu0 %v3604_v5 }
 0x478   : > { %3608 = vadd.xlane.f32.xlu1 %v3607_v33 }
 0x485   : > { %v3126_v20 = vpop.xlane.xlu0 %3125 }
 0x486   : > { %v3284_v56 = vsub.f32 %v14341_v48, %v3126_v20  ;;  %v3285_v61 = vsub.f32 %v14345_v45, %v3126_v20 }
 0x488   : > { %v3476_v51 = vmul.f32 1.442695, %v3284_v56  ;;  %v3478_v28 = vmul.f32 1.442695, %v3285_v61 }
 0x489   : > { %v3129_v63 = vpop.xlane.xlu1 %3128  ;;  %v3036_v1 = vpop.xlane.xlu0 %3035 }
 0x48a   : > { %11772 = vpow2.f32 %v3476_v51  ;;  %v3286_v47 = vsub.f32 %v14351_v15, %v3129_v63  ;;  %v3287_v17 = vsub.f32 %v14357_v8, %v3129_v63  ;;  %v3224_v26 = vsub.f32 %v14255_v27, %v3036_v1 }
 0x48b   : > { %11774 = vpow2.f32 %v3478_v28  ;;  %v3225_v5 = vsub.f32 %v14257_v11, %v3036_v1 }
 0x48c   : > { %v3480_v33 = vmul.f32 1.442695, %v3286_v47  ;;  %v3482_v62 = vmul.f32 1.442695, %v3287_v17  ;;  %v3356_v24 = vmul.f32 1.442695, %v3224_v26 }
 0x48d   : > { %v3358_v48 = vmul.f32 1.442695, %v3225_v5  ;;  %v3132_v43 = vpop.xlane.xlu1 %3131  ;;  %v3039_v45 = vpop.xlane.xlu0 %3038 }
 0x48e   : > { %11776 = vpow2.f32 %v3480_v33  ;;  %v3288_v56 = vsub.f32 %v14363_v18, %v3132_v43  ;;  %v3289_v61 = vsub.f32 %v14369_v58, %v3132_v43  ;;  %v3226_v15 = vsub.f32 %v14261_v41, %v3039_v45 }
 0x48f   : > { %11778 = vpow2.f32 %v3482_v62  ;;  %v3227_v8 = vsub.f32 %v14263_v7, %v3039_v45 }
 0x490   : > { %11780 = vpow2.f32 %v3356_v24  ;;  %v3484_v27 = vmul.f32 1.442695, %v3288_v56  ;;  %v3486_v28 = vmul.f32 1.442695, %v3289_v61  ;;  %v3360_v11 = vmul.f32 1.442695, %v3226_v15 }
 0x491   : > { %11782 = vpow2.f32 %v3358_v48  ;;  %v3362_v17 = vmul.f32 1.442695, %v3227_v8  ;;  %v3135_v26 = vpop.xlane.xlu1 %3134  ;;  %v3042_v1 = vpop.xlane.xlu0 %3041 }
 0x492   : > { %11784 = vpow2.f32 %v3484_v27  ;;  %v3290_v51 = vsub.f32 %v14375_v53, %v3135_v26  ;;  %v3291_v18 = vsub.f32 %v14381_v54, %v3135_v26  ;;  %v3228_v58 = vsub.f32 %v14267_v0, %v3042_v1 }
 0x493   : > { %11786 = vpow2.f32 %v3486_v28  ;;  %v3229_v41 = vsub.f32 %v14269_v38, %v3042_v1 }
 0x494   : > { %v11773_v43 = vpop.eup %11772  ;;  %11788 = vpow2.f32 %v3360_v11  ;;  %v3488_v7 = vmul.f32 1.442695, %v3290_v51  ;;  %v3490_v24 = vmul.f32 1.442695, %v3291_v18  ;;  %v3364_v20 = vmul.f32 1.442695, %v3228_v58 }
 0x495   : > { %v11775_v63 = vpop.eup %11774  ;;  %11790 = vpow2.f32 %v3362_v17  ;;  %v3366_v47 = vmul.f32 1.442695, %v3229_v41  ;;  %v3138_v5 = vpop.xlane.xlu1 %3137  ;;  %v16697_v11 = vld [vmem:[#allocation121_spill] sm:$0xff]  ;;  %v16698_v17 = vld [vmem:[#allocation96_spill] sm:$0xff] }
 0x496   : > { %v3045_v33 = vpop.xlane.xlu0 %3044  ;;  %11792 = vpow2.f32 %v3488_v7  ;;  %4085 = vmatprep.mubr.f32.mxu0 %v11775_v63  ;;  %v3292_v53 = vsub.f32 %v14387_v49, %v3138_v5  ;;  %v3293_v54 = vsub.f32 %v14396_v39, %v3138_v5  ;;  %v14733_v62 = vadd.f32 %v11775_v63, %v11773_v43  ;;  %v16696_v39 = vld [vmem:[#allocation120_spill] sm:$0xff]  ;;  %v16699_v51 = vld [vmem:[#allocation97_spill] sm:$0xff] }
 0x497   : > { %v3230_v0 = vsub.f32 %v14273_v4, %v3045_v33  ;;  %11794 = vpow2.f32 %v3490_v24  ;;  %v3231_v38 = vsub.f32 %v14275_v44, %v3045_v33  ;;  %4086 = vmatmul.mubr.f32.vlgmr.msra.gmra.mrb[160].mxu0 %v11773_v43 }
 0x498   : > { %v11777_v48 = vpop.eup %11776  ;;  %11796 = vpow2.f32 %v3364_v20  ;;  %v3492_v45 = vmul.f32 1.442695, %v3292_v53  ;;  %v3494_v56 = vmul.f32 1.442695, %v3293_v54  ;;  %v16700_v54 = vld [vmem:[#allocation122_spill] sm:$0xff] }
 0x499   : > { %v3368_v61 = vmul.f32 1.442695, %v3230_v0  ;;  %v11779_v15 = vpop.eup %11778  ;;  %11798 = vpow2.f32 %v3366_v47  ;;  %v3370_v8 = vmul.f32 1.442695, %v3231_v38  ;;  %v3141_v27 = vpop.xlane.xlu1 %3140  ;;  %v16701_v38 = vld [vmem:[#allocation123_spill] sm:$0xff] }
 0x49a   : > { %v3048_v49 = vpop.xlane.xlu0 %3047  ;;  %v11781_v28 = vpop.eup %11780  ;;  %11800 = vpow2.f32 %v3492_v45  ;;  %4090 = vmatprep.mubr.f32.mxu0 %v11779_v15  ;;  %v3294_v4 = vsub.f32 %v16696_v39, %v3141_v27  ;;  %v3295_v44 = vsub.f32 %v16697_v11, %v3141_v27  ;;  %v3703_v58 = vadd.f32 %v11779_v15, %v11777_v48  ;;  %v16702_v45 = vld [vmem:[#allocation98_spill] sm:$0xff]  ;;  %v16703_v15 = vld [vmem:[#allocation99_spill] sm:$0xff] }
 0x49b   : > { %v3232_v26 = vsub.f32 %v16698_v17, %v3048_v49  ;;  %v11783_v1 = vpop.eup %11782  ;;  %11802 = vpow2.f32 %v3494_v56  ;;  %v3233_v18 = vsub.f32 %v16699_v51, %v3048_v49  ;;  %4091 = vmatmul.mubr.f32.gmra.mrb[162].mxu0 %v11777_v48 }
 0x49c   : > { %v11785_v41 = vpop.eup %11784  ;;  %11804 = vpow2.f32 %v3368_v61  ;;  %v3496_v43 = vmul.f32 1.442695, %v3294_v4  ;;  %v3498_v7 = vmul.f32 1.442695, %v3295_v44  ;;  %3870 = vmatprep.mubr.f32.mxu1 %v11783_v1  ;;  %3704 = vadd.xlane.f32.xlu1 %v3703_v58  ;;  %v3610_v47 = vadd.f32 %v11783_v1, %v11781_v28 }
 0x49d   : > { %v3372_v24 = vmul.f32 1.442695, %v3232_v26  ;;  %v11787_v20 = vpop.eup %11786  ;;  %11806 = vpow2.f32 %v3370_v8  ;;  %v3374_v63 = vmul.f32 1.442695, %v3233_v18  ;;  %3871 = vmatmul.mubr.f32.gmra.mrb[164].mxu1 %v11781_v28  ;;  %v3144_v5 = vpop.xlane.xlu1 %3143  ;;  %v16704_v18 = vld [vmem:[#allocation124_spill] sm:$0xff] }
 0x49e   : > { %v3051_v33 = vpop.xlane.xlu0 %3050  ;;  %v11789_v53 = vpop.eup %11788  ;;  %11808 = vpow2.f32 %v3496_v43  ;;  %4095 = vmatprep.mubr.f32.mxu0 %v11787_v20  ;;  %v3296_v0 = vsub.f32 %v16700_v54, %v3144_v5  ;;  %v3297_v48 = vsub.f32 %v16701_v38, %v3144_v5  ;;  %3611 = vadd.xlane.f32.xlu0 %v3610_v47  ;;  %v3706_v27 = vadd.f32 %v11787_v20, %v11785_v41  ;;  %v16707_v47 = vld [vmem:[#allocation101_spill] sm:$0xff] }
 0x49f   : > { %v3234_v56 = vsub.f32 %v16702_v45, %v3051_v33  ;;  %v11791_v61 = vpop.eup %11790  ;;  %11810 = vpow2.f32 %v3498_v7  ;;  %v3235_v8 = vsub.f32 %v16703_v15, %v3051_v33  ;;  %4096 = vmatmul.mubr.f32.gmra.mrb[164].mxu0 %v11785_v41  ;;  %v16705_v41 = vld [vmem:[#allocation126_spill] sm:$0xff]  ;;  %v16706_v7 = vld [vmem:[#allocation100_spill] sm:$0xff] }
 0x4a0   : > { %v11793_v49 = vpop.eup %11792  ;;  %11812 = vpow2.f32 %v3372_v24  ;;  %v3500_v28 = vmul.f32 1.442695, %v3296_v0  ;;  %v3502_v39 = vmul.f32 1.442695, %v3297_v48  ;;  %3875 = vmatprep.mubr.f32.mxu1 %v11791_v61  ;;  %3707 = vadd.xlane.f32.xlu1 %v3706_v27  ;;  %v3613_v17 = vadd.f32 %v11791_v61, %v11789_v53 }
 0x4a1   : > { %v3376_v4 = vmul.f32 1.442695, %v3234_v56  ;;  %v11795_v11 = vpop.eup %11794  ;;  %11814 = vpow2.f32 %v3374_v63  ;;  %v3378_v44 = vmul.f32 1.442695, %v3235_v8  ;;  %3876 = vmatmul.mubr.f32.gmra.mrb[166].mxu1 %v11789_v53  ;;  %v3147_v26 = vpop.xlane.xlu1 %3146  ;;  %v16708_v8 = vld [vmem:[#allocation127_spill] sm:$0xff] }
 0x4a2   : > { %v3054_v1 = vpop.xlane.xlu0 %3053  ;;  %v11797_v51 = vpop.eup %11796  ;;  %11816 = vpow2.f32 %v3500_v28  ;;  %4100 = vmatprep.mubr.f32.mxu0 %v11795_v11  ;;  %v3298_v58 = vsub.f32 %v16704_v18, %v3147_v26  ;;  %v3299_v43 = vsub.f32 %v16705_v41, %v3147_v26  ;;  %3614 = vadd.xlane.f32.xlu0 %v3613_v17  ;;  %v3709_v5 = vadd.f32 %v11795_v11, %v11793_v49  ;;  %v16711_v17 = vld [vmem:[#allocation103_spill] sm:$0xff] }
 0x4a3   : > { %v3236_v24 = vsub.f32 %v16706_v7, %v3054_v1  ;;  %v11799_v20 = vpop.eup %11798  ;;  %11818 = vpow2.f32 %v3502_v39  ;;  %v3237_v63 = vsub.f32 %v16707_v47, %v3054_v1  ;;  %4101 = vmatmul.mubr.f32.gmra.mrb[166].mxu0 %v11793_v49  ;;  %v16709_v49 = vld [vmem:[#allocation130_spill] sm:$0xff] }
 0x4a4   : > { %v11801_v33 = vpop.eup %11800  ;;  %11820 = vpow2.f32 %v3376_v4  ;;  %v3504_v53 = vmul.f32 1.442695, %v3298_v58  ;;  %v3506_v54 = vmul.f32 1.442695, %v3299_v43  ;;  %3880 = vmatprep.mubr.f32.mxu1 %v11799_v20  ;;  %3710 = vadd.xlane.f32.xlu1 %v3709_v5  ;;  %v3616_v45 = vadd.f32 %v11799_v20, %v11797_v51  ;;  %v16710_v39 = vld [vmem:[#allocation102_spill] sm:$0xff] }
 0x4a5   : > { %v3380_v0 = vmul.f32 1.442695, %v3236_v24  ;;  %v11803_v38 = vpop.eup %11802  ;;  %11822 = vpow2.f32 %v3378_v44  ;;  %v3382_v48 = vmul.f32 1.442695, %v3237_v63  ;;  %3881 = vmatmul.mubr.f32.gmra.mrb[168].mxu1 %v11797_v51  ;;  %v3150_v56 = vpop.xlane.xlu1 %3149  ;;  %v16712_v63 = vld [vmem:[#allocation131_spill] sm:$0xff] }
 0x4a6   : > { %v3057_v61 = vpop.xlane.xlu0 %3056  ;;  %v11805_v15 = vpop.eup %11804  ;;  %11824 = vpow2.f32 %v3504_v53  ;;  %4105 = vmatprep.mubr.f32.mxu0 %v11803_v38  ;;  %v3300_v27 = vsub.f32 %v16708_v8, %v3150_v56  ;;  %v3301_v28 = vsub.f32 %v16709_v49, %v3150_v56  ;;  %3617 = vadd.xlane.f32.xlu0 %v3616_v45  ;;  %v3712_v26 = vadd.f32 %v11803_v38, %v11801_v33  ;;  %v16715_v45 = vld [vmem:[#allocation105_spill] sm:$0xff] }
 0x4a7   : > { %v3238_v4 = vsub.f32 %v16710_v39, %v3057_v61  ;;  %v11807_v11 = vpop.eup %11806  ;;  %11826 = vpow2.f32 %v3506_v54  ;;  %v3239_v44 = vsub.f32 %v16711_v17, %v3057_v61  ;;  %4106 = vmatmul.mubr.f32.gmra.mrb[168].mxu0 %v11801_v33  ;;  %v16713_v33 = vld [vmem:[#allocation132_spill] sm:$0xff] }
 0x4a8   : > { %v11809_v1 = vpop.eup %11808  ;;  %11828 = vpow2.f32 %v3380_v0  ;;  %v3508_v51 = vmul.f32 1.442695, %v3300_v27  ;;  %v3510_v18 = vmul.f32 1.442695, %v3301_v28  ;;  %3885 = vmatprep.mubr.f32.mxu1 %v11807_v11  ;;  %3713 = vadd.xlane.f32.xlu1 %v3712_v26  ;;  %v3619_v7 = vadd.f32 %v11807_v11, %v11805_v15  ;;  %v16714_v54 = vld [vmem:[#allocation104_spill] sm:$0xff] }
 0x4a9   : > { %v3384_v58 = vmul.f32 1.442695, %v3238_v4  ;;  %v11811_v41 = vpop.eup %11810  ;;  %11830 = vpow2.f32 %v3382_v48  ;;  %v3386_v43 = vmul.f32 1.442695, %v3239_v44  ;;  %3886 = vmatmul.mubr.f32.gmra.mrb[170].mxu1 %v11805_v15  ;;  %v3153_v24 = vpop.xlane.xlu1 %3152  ;;  %v16716_v44 = vld [vmem:[#allocation133_spill] sm:$0xff] }
 0x4aa   : > { %v3060_v20 = vpop.xlane.xlu0 %3059  ;;  %v11813_v47 = vpop.eup %11812  ;;  %11832 = vpow2.f32 %v3508_v51  ;;  %4110 = vmatprep.mubr.f32.mxu0 %v11811_v41  ;;  %v3302_v5 = vsub.f32 %v16712_v63, %v3153_v24  ;;  %v3303_v53 = vsub.f32 %v16713_v33, %v3153_v24  ;;  %3620 = vadd.xlane.f32.xlu0 %v3619_v7  ;;  %v3715_v56 = vadd.f32 %v11811_v41, %v11809_v1  ;;  %v16719_v7 = vld [vmem:[#allocation107_spill] sm:$0xff] }
 0x4ab   : > { %v3240_v0 = vsub.f32 %v16714_v54, %v3060_v20  ;;  %v11815_v38 = vpop.eup %11814  ;;  %11834 = vpow2.f32 %v3510_v18  ;;  %v3241_v48 = vsub.f32 %v16715_v45, %v3060_v20  ;;  %4111 = vmatmul.mubr.f32.gmra.mrb[170].mxu0 %v11809_v1  ;;  %v16717_v1 = vld [vmem:[#allocation134_spill] sm:$0xff] }
 0x4ac   : > { %v11817_v61 = vpop.eup %11816  ;;  %11836 = vpow2.f32 %v3384_v58  ;;  %v3512_v15 = vmul.f32 1.442695, %v3302_v5  ;;  %v3514_v8 = vmul.f32 1.442695, %v3303_v53  ;;  %3890 = vmatprep.mubr.f32.mxu1 %v11815_v38  ;;  %3716 = vadd.xlane.f32.xlu1 %v3715_v56  ;;  %v3622_v39 = vadd.f32 %v11815_v38, %v11813_v47  ;;  %v16718_v18 = vld [vmem:[#allocation106_spill] sm:$0xff] }
 0x4ad   : > { %v3388_v27 = vmul.f32 1.442695, %v3240_v0  ;;  %v11819_v49 = vpop.eup %11818  ;;  %11838 = vpow2.f32 %v3386_v43  ;;  %v3390_v28 = vmul.f32 1.442695, %v3241_v48  ;;  %3891 = vmatmul.mubr.f32.gmra.mrb[172].mxu1 %v11813_v47  ;;  %v3156_v4 = vpop.xlane.xlu1 %3155  ;;  %v16720_v48 = vld [vmem:[#allocation135_spill] sm:$0xff] }
 0x4ae   : > { %v3063_v11 = vpop.xlane.xlu0 %3062  ;;  %v11821_v17 = vpop.eup %11820  ;;  %11840 = vpow2.f32 %v3512_v15  ;;  %4115 = vmatprep.mubr.f32.mxu0 %v11819_v49  ;;  %v3304_v26 = vsub.f32 %v16716_v44, %v3156_v4  ;;  %v3305_v51 = vsub.f32 %v16717_v1, %v3156_v4  ;;  %3623 = vadd.xlane.f32.xlu0 %v3622_v39  ;;  %v3718_v24 = vadd.f32 %v11819_v49, %v11817_v61  ;;  %v16723_v39 = vld [vmem:[#allocation109_spill] sm:$0xff] }
 0x4af   : > { %v3242_v58 = vsub.f32 %v16718_v18, %v3063_v11  ;;  %v11823_v41 = vpop.eup %11822  ;;  %11842 = vpow2.f32 %v3514_v8  ;;  %v3243_v43 = vsub.f32 %v16719_v7, %v3063_v11  ;;  %4116 = vmatmul.mubr.f32.gmra.mrb[172].mxu0 %v11817_v61  ;;  %v16721_v61 = vld [vmem:[#allocation136_spill] sm:$0xff] }
 0x4b0   : > { %v11825_v20 = vpop.eup %11824  ;;  %11844 = vpow2.f32 %v3388_v27  ;;  %v3516_v47 = vmul.f32 1.442695, %v3304_v26  ;;  %v3518_v63 = vmul.f32 1.442695, %v3305_v51  ;;  %3895 = vmatprep.mubr.f32.mxu1 %v11823_v41  ;;  %3719 = vadd.xlane.f32.xlu1 %v3718_v24  ;;  %v3625_v54 = vadd.f32 %v11823_v41, %v11821_v17  ;;  %v16722_v8 = vld [vmem:[#allocation108_spill] sm:$0xff] }
 0x4b1   : > { %v3392_v5 = vmul.f32 1.442695, %v3242_v58  ;;  %v11827_v33 = vpop.eup %11826  ;;  %11846 = vpow2.f32 %v3390_v28  ;;  %v3394_v53 = vmul.f32 1.442695, %v3243_v43  ;;  %3896 = vmatmul.mubr.f32.gmra.mrb[174].mxu1 %v11821_v17  ;;  %v3159_v0 = vpop.xlane.xlu1 %3158  ;;  %v16724_v43 = vld [vmem:[#allocation137_spill] sm:$0xff] }
 0x4b2   : > { %v3066_v38 = vpop.xlane.xlu0 %3065  ;;  %v11829_v45 = vpop.eup %11828  ;;  %11848 = vpow2.f32 %v3516_v47  ;;  %4120 = vmatprep.mubr.f32.mxu0 %v11827_v33  ;;  %v3306_v56 = vsub.f32 %v16720_v48, %v3159_v0  ;;  %v3307_v15 = vsub.f32 %v16721_v61, %v3159_v0  ;;  %3626 = vadd.xlane.f32.xlu0 %v3625_v54  ;;  %v3721_v4 = vadd.f32 %v11827_v33, %v11825_v20  ;;  %v16727_v54 = vld [vmem:[#allocation111_spill] sm:$0xff] }
 0x4b3   : > { %v3244_v27 = vsub.f32 %v16722_v8, %v3066_v38  ;;  %v11831_v49 = vpop.eup %11830  ;;  %11850 = vpow2.f32 %v3518_v63  ;;  %v3245_v28 = vsub.f32 %v16723_v39, %v3066_v38  ;;  %4121 = vmatmul.mubr.f32.gmra.mrb[174].mxu0 %v11825_v20  ;;  %v16725_v20 = vld [vmem:[#allocation138_spill] sm:$0xff] }
 0x4b4   : > { %v11833_v11 = vpop.eup %11832  ;;  %11852 = vpow2.f32 %v3392_v5  ;;  %v3520_v17 = vmul.f32 1.442695, %v3306_v56  ;;  %v3522_v44 = vmul.f32 1.442695, %v3307_v15  ;;  %3900 = vmatprep.mubr.f32.mxu1 %v11831_v49  ;;  %3722 = vadd.xlane.f32.xlu1 %v3721_v4  ;;  %v3628_v18 = vadd.f32 %v11831_v49, %v11829_v45  ;;  %v16726_v63 = vld [vmem:[#allocation110_spill] sm:$0xff] }
 0x4b5   : > { %v3396_v26 = vmul.f32 1.442695, %v3244_v27  ;;  %v11835_v1 = vpop.eup %11834  ;;  %11854 = vpow2.f32 %v3394_v53  ;;  %v3398_v51 = vmul.f32 1.442695, %v3245_v28  ;;  %3901 = vmatmul.mubr.f32.gmra.mrb[176].mxu1 %v11829_v45  ;;  %v3162_v58 = vpop.xlane.xlu1 %3161  ;;  %v16728_v28 = vld [vmem:[#allocation139_spill] sm:$0xff] }
 0x4b6   : > { %v3069_v41 = vpop.xlane.xlu0 %3068  ;;  %v11837_v7 = vpop.eup %11836  ;;  %11856 = vpow2.f32 %v3520_v17  ;;  %4125 = vmatprep.mubr.f32.mxu0 %v11835_v1  ;;  %v3308_v24 = vsub.f32 %v16724_v43, %v3162_v58  ;;  %v3309_v47 = vsub.f32 %v16725_v20, %v3162_v58  ;;  %3629 = vadd.xlane.f32.xlu0 %v3628_v18  ;;  %v3724_v0 = vadd.f32 %v11835_v1, %v11833_v11  ;;  %v16731_v18 = vld [vmem:[#allocation113_spill] sm:$0xff] }
 0x4b7   : > { %v3246_v5 = vsub.f32 %v16726_v63, %v3069_v41  ;;  %v11839_v33 = vpop.eup %11838  ;;  %11858 = vpow2.f32 %v3522_v44  ;;  %v3247_v53 = vsub.f32 %v16727_v54, %v3069_v41  ;;  %4126 = vmatmul.mubr.f32.gmra.mrb[176].mxu0 %v11833_v11  ;;  %v16729_v11 = vld [vmem:[#allocation140_spill] sm:$0xff] }
 0x4b8   : > { %v11841_v38 = vpop.eup %11840  ;;  %11860 = vpow2.f32 %v3396_v26  ;;  %v3524_v45 = vmul.f32 1.442695, %v3308_v24  ;;  %v3526_v48 = vmul.f32 1.442695, %v3309_v47  ;;  %3905 = vmatprep.mubr.f32.mxu1 %v11839_v33  ;;  %3725 = vadd.xlane.f32.xlu1 %v3724_v0  ;;  %v3631_v8 = vadd.f32 %v11839_v33, %v11837_v7  ;;  %v16730_v44 = vld [vmem:[#allocation112_spill] sm:$0xff]  ;;  %v16732_v0 = vld [vmem:[#allocation143_spill] sm:$0xff] }
 0x4b9   : > { %v3400_v56 = vmul.f32 1.442695, %v3246_v5  ;;  %v11843_v61 = vpop.eup %11842  ;;  %11862 = vpow2.f32 %v3398_v51  ;;  %v3402_v15 = vmul.f32 1.442695, %v3247_v53  ;;  %3906 = vmatmul.mubr.f32.gmra.mrb[178].mxu1 %v11837_v7  ;;  %v3165_v27 = vpop.xlane.xlu1 %3164 }
 0x4ba   : > { %v3072_v49 = vpop.xlane.xlu0 %3071  ;;  %v11845_v39 = vpop.eup %11844  ;;  %11864 = vpow2.f32 %v3524_v45  ;;  %4130 = vmatprep.mubr.f32.mxu0 %v11843_v61  ;;  %v3310_v4 = vsub.f32 %v16728_v28, %v3165_v27  ;;  %v3311_v17 = vsub.f32 %v16729_v11, %v3165_v27  ;;  %3632 = vadd.xlane.f32.xlu0 %v3631_v8  ;;  %v3727_v58 = vadd.f32 %v11843_v61, %v11841_v38  ;;  %v16733_v45 = vld [vmem:[#allocation114_spill] sm:$0xff]  ;;  %v16734_v61 = vld [vmem:[#allocation115_spill] sm:$0xff] }
 0x4bb   : > { %v3248_v26 = vsub.f32 %v16730_v44, %v3072_v49  ;;  %v11847_v1 = vpop.eup %11846  ;;  %11866 = vpow2.f32 %v3526_v48  ;;  %v3249_v51 = vsub.f32 %v16731_v18, %v3072_v49  ;;  %4131 = vmatmul.mubr.f32.gmra.mrb[178].mxu0 %v11841_v38 }
 0x4bc   : > { %v11849_v41 = vpop.eup %11848  ;;  %11868 = vpow2.f32 %v3400_v56  ;;  %v3528_v7 = vmul.f32 1.442695, %v3310_v4  ;;  %v3530_v43 = vmul.f32 1.442695, %v3311_v17  ;;  %3910 = vmatprep.mubr.f32.mxu1 %v11847_v1  ;;  %3728 = vadd.xlane.f32.xlu1 %v3727_v58  ;;  %v3634_v63 = vadd.f32 %v11847_v1, %v11845_v39  ;;  %v16735_v1 = vld [vmem:[#allocation144_spill] sm:$0xff] }
 0x4bd   : > { %v3404_v24 = vmul.f32 1.442695, %v3248_v26  ;;  %v11851_v20 = vpop.eup %11850  ;;  %11870 = vpow2.f32 %v3402_v15  ;;  %v3406_v47 = vmul.f32 1.442695, %v3249_v51  ;;  %3911 = vmatmul.mubr.f32.gmra.mrb[180].mxu1 %v11845_v39  ;;  %v3168_v5 = vpop.xlane.xlu1 %3167  ;;  %v16736_v51 = vld [vmem:[#allocation147_spill] sm:$0xff] }
 0x4be   : > { %v3075_v33 = vpop.xlane.xlu0 %3074  ;;  %v11853_v54 = vpop.eup %11852  ;;  %11872 = vpow2.f32 %v3528_v7  ;;  %4135 = vmatprep.mubr.f32.mxu0 %v11851_v20  ;;  %v3312_v53 = vsub.f32 %v14537_v12, %v3168_v5  ;;  %v3313_v38 = vsub.f32 %v16732_v0, %v3168_v5  ;;  %3635 = vadd.xlane.f32.xlu0 %v3634_v63  ;;  %v3730_v8 = vadd.f32 %v11851_v20, %v11849_v41 }
 0x4bf   : > { %v3250_v48 = vsub.f32 %v16733_v45, %v3075_v33  ;;  %v11855_v56 = vpop.eup %11854  ;;  %11874 = vpow2.f32 %v3530_v43  ;;  %v3251_v15 = vsub.f32 %v16734_v61, %v3075_v33  ;;  %4136 = vmatmul.mubr.f32.gmra.mrb[180].mxu0 %v11849_v41 }
 0x4c0   : > { %v11857_v27 = vpop.eup %11856  ;;  %11876 = vpow2.f32 %v3404_v24  ;;  %v3532_v49 = vmul.f32 1.442695, %v3312_v53  ;;  %v3534_v39 = vmul.f32 1.442695, %v3313_v38  ;;  %3915 = vmatprep.mubr.f32.mxu1 %v11855_v56  ;;  %3731 = vadd.xlane.f32.xlu1 %v3730_v8  ;;  %v3637_v11 = vadd.f32 %v11855_v56, %v11853_v54 }
 0x4c1   : > { %v3408_v28 = vmul.f32 1.442695, %v3250_v48  ;;  %v11859_v4 = vpop.eup %11858  ;;  %11878 = vpow2.f32 %v3406_v47  ;;  %v3410_v12 = vmul.f32 1.442695, %v3251_v15  ;;  %3916 = vmatmul.mubr.f32.gmra.mrb[182].mxu1 %v11853_v54  ;;  %v3171_v17 = vpop.xlane.xlu1 %3170  ;;  %v16738_v48 = vld [vmem:[#allocation149_spill] sm:$0xff] }
 0x4c2   : > { %v3078_v44 = vpop.xlane.xlu0 %3077  ;;  %v11861_v26 = vpop.eup %11860  ;;  %11880 = vpow2.f32 %v3532_v49  ;;  %4140 = vmatprep.mubr.f32.mxu0 %v11859_v4  ;;  %v3314_v18 = vsub.f32 %v16735_v1, %v3171_v17  ;;  %v3315_v58 = vsub.f32 %v16736_v51, %v3171_v17  ;;  %3638 = vadd.xlane.f32.xlu0 %v3637_v11  ;;  %v3733_v24 = vadd.f32 %v11859_v4, %v11857_v27 }
 0x4c3   : > { %v3252_v41 = vsub.f32 %v14339_v23, %v3078_v44  ;;  %v11863_v7 = vpop.eup %11862  ;;  %11882 = vpow2.f32 %v3534_v39  ;;  %v3253_v43 = vsub.f32 %v14343_v21, %v3078_v44  ;;  %4141 = vmatmul.mubr.f32.gmra.mrb[182].mxu0 %v11857_v27  ;;  %v16737_v21 = vld [vmem:[#allocation148_spill] sm:$0xff] }
 0x4c4   : > { %v11865_v20 = vpop.eup %11864  ;;  %11884 = vpow2.f32 %v3408_v28  ;;  %v3536_v47 = vmul.f32 1.442695, %v3314_v18  ;;  %v3538_v63 = vmul.f32 1.442695, %v3315_v58  ;;  %3920 = vmatprep.mubr.f32.mxu1 %v11863_v7  ;;  %3734 = vadd.xlane.f32.xlu1 %v3733_v24  ;;  %v3640_v53 = vadd.f32 %v11863_v7, %v11861_v26  ;;  %v16740_v18 = vld [vmem:[#allocation151_spill] sm:$0xff]  ;;  %v16741_v7 = vld [vmem:[#allocation116_spill] sm:$0xff] }
 0x4c5   : > { %v3412_v5 = vmul.f32 1.442695, %v3252_v41  ;;  %v11867_v33 = vpop.eup %11866  ;;  %11886 = vpow2.f32 %v3410_v12  ;;  %v3414_v54 = vmul.f32 1.442695, %v3253_v43  ;;  %3921 = vmatmul.mubr.f32.gmra.mrb[184].mxu1 %v11861_v26  ;;  %v3174_v23 = vpop.xlane.xlu1 %3173 }
 0x4c6   : > { %v3081_v0 = vpop.xlane.xlu0 %3080  ;;  %v11869_v38 = vpop.eup %11868  ;;  %11888 = vpow2.f32 %v3536_v47  ;;  %4145 = vmatprep.mubr.f32.mxu0 %v11867_v33  ;;  %v3316_v45 = vsub.f32 %v16737_v21, %v3174_v23  ;;  %v3317_v56 = vsub.f32 %v16738_v48, %v3174_v23  ;;  %3641 = vadd.xlane.f32.xlu0 %v3640_v53  ;;  %v3736_v27 = vadd.f32 %v11867_v33, %v11865_v20 }
 0x4c7   : > { %v3254_v61 = vsub.f32 %v14353_v2, %v3081_v0  ;;  %v11871_v15 = vpop.eup %11870  ;;  %11890 = vpow2.f32 %v3538_v63  ;;  %v3255_v8 = vsub.f32 %v14355_v19, %v3081_v0  ;;  %4146 = vmatmul.mubr.f32.gmra.mrb[184].mxu0 %v11865_v20  ;;  %v16739_v19 = vld [vmem:[#allocation150_spill] sm:$0xff] }
 0x4c8   : > { %v11873_v49 = vpop.eup %11872  ;;  %11892 = vpow2.f32 %v3412_v5  ;;  %v3540_v39 = vmul.f32 1.442695, %v3316_v45  ;;  %v3542_v28 = vmul.f32 1.442695, %v3317_v56  ;;  %3925 = vmatprep.mubr.f32.mxu1 %v11871_v15  ;;  %3737 = vadd.xlane.f32.xlu1 %v3736_v27  ;;  %v3643_v17 = vadd.f32 %v11871_v15, %v11869_v38  ;;  %v16743_v45 = vld [vmem:[#allocation153_spill] sm:$0xff] }
 0x4c9   : > { %v3416_v4 = vmul.f32 1.442695, %v3254_v61  ;;  %v11875_v12 = vpop.eup %11874  ;;  %11894 = vpow2.f32 %v3414_v54  ;;  %v3418_v11 = vmul.f32 1.442695, %v3255_v8  ;;  %3926 = vmatmul.mubr.f32.gmra.mrb[186].mxu1 %v11869_v38  ;;  %v3177_v2 = vpop.xlane.xlu1 %3176  ;;  %v16742_v38 = vld [vmem:[#allocation152_spill] sm:$0xff]  ;;  %v16744_v56 = vld [vmem:[#allocation117_spill] sm:$0xff] }
 0x4ca   : > { %v3084_v44 = vpop.xlane.xlu0 %3083  ;;  %v11877_v26 = vpop.eup %11876  ;;  %11896 = vpow2.f32 %v3540_v39  ;;  %4150 = vmatprep.mubr.f32.mxu0 %v11875_v12  ;;  %v3318_v1 = vsub.f32 %v16739_v19, %v3177_v2  ;;  %v3319_v51 = vsub.f32 %v16740_v18, %v3177_v2  ;;  %3644 = vadd.xlane.f32.xlu0 %v3643_v17  ;;  %v3739_v24 = vadd.f32 %v11875_v12, %v11873_v49  ;;  %v16745_v8 = vld [vmem:[#allocation118_spill] sm:$0xff] }
 0x4cb   : > { %v3256_v58 = vsub.f32 %v14365_v57, %v3084_v44  ;;  %v11879_v41 = vpop.eup %11878  ;;  %11898 = vpow2.f32 %v3542_v28  ;;  %v3257_v43 = vsub.f32 %v16741_v7, %v3084_v44  ;;  %4151 = vmatmul.mubr.f32.gmra.mrb[186].mxu0 %v11873_v49  ;;  %v16746_v18 = vld [vmem:[#allocation154_spill] sm:$0xff]  ;;  %v16747_v7 = vld [vmem:[#allocation119_spill] sm:$0xff] }
 0x4cc   : > { %v11881_v20 = vpop.eup %11880  ;;  %11900 = vpow2.f32 %v3416_v4  ;;  %v3544_v47 = vmul.f32 1.442695, %v3318_v1  ;;  %v3546_v63 = vmul.f32 1.442695, %v3319_v51  ;;  %3930 = vmatprep.mubr.f32.mxu1 %v11879_v41  ;;  %3740 = vadd.xlane.f32.xlu1 %v3739_v24  ;;  %v3646_v53 = vadd.f32 %v11879_v41, %v11877_v26 }
 0x4cd   : > { %v3420_v5 = vmul.f32 1.442695, %v3256_v58  ;;  %v11883_v33 = vpop.eup %11882  ;;  %11902 = vpow2.f32 %v3418_v11  ;;  %v3422_v54 = vmul.f32 1.442695, %v3257_v43  ;;  %3931 = vmatmul.mubr.f32.gmra.mrb[188].mxu1 %v11877_v26  ;;  %v3180_v57 = vpop.xlane.xlu1 %3179 }
 0x4ce   : > { %v3087_v23 = vpop.xlane.xlu0 %3086  ;;  %v11885_v0 = vpop.eup %11884  ;;  %11904 = vpow2.f32 %v3544_v47  ;;  %4155 = vmatprep.mubr.f32.mxu0 %v11883_v33  ;;  %v3320_v21 = vsub.f32 %v16742_v38, %v3180_v57  ;;  %v3321_v48 = vsub.f32 %v16743_v45, %v3180_v57  ;;  %3647 = vadd.xlane.f32.xlu0 %v3646_v53  ;;  %v3742_v49 = vadd.f32 %v11883_v33, %v11881_v20 }
 0x4cf   : > { %v3258_v61 = vsub.f32 %v16744_v56, %v3087_v23  ;;  %v11887_v15 = vpop.eup %11886  ;;  %11906 = vpow2.f32 %v3546_v63  ;;  %v3259_v27 = vsub.f32 %v16745_v8, %v3087_v23  ;;  %4156 = vmatmul.mubr.f32.gmra.mrb[188].mxu0 %v11881_v20 }
 0x4d0   : > { %v11889_v39 = vpop.eup %11888  ;;  %11908 = vpow2.f32 %v3420_v5  ;;  %v3548_v28 = vmul.f32 1.442695, %v3320_v21  ;;  %v3550_v4 = vmul.f32 1.442695, %v3321_v48  ;;  %3935 = vmatprep.mubr.f32.mxu1 %v11887_v15  ;;  %3743 = vadd.xlane.f32.xlu1 %v3742_v49  ;;  %v3649_v2 = vadd.f32 %v11887_v15, %v11885_v0 }
 0x4d1   : > { %v3424_v12 = vmul.f32 1.442695, %v3258_v61  ;;  %v11891_v11 = vpop.eup %11890  ;;  %11910 = vpow2.f32 %v3422_v54  ;;  %v3426_v17 = vmul.f32 1.442695, %v3259_v27  ;;  %3936 = vmatmul.mubr.f32.gmra.mrb[190].mxu1 %v11885_v0  ;;  %v3183_v44 = vpop.xlane.xlu1 %3182  ;;  %v16748_v0 = vld [vmem:[#allocation155_spill] sm:$0xff] }
 0x4d2   : > { %v3090_v26 = vpop.xlane.xlu0 %3089  ;;  %v11893_v19 = vpop.eup %11892  ;;  %11912 = vpow2.f32 %v3548_v28  ;;  %4160 = vmatprep.mubr.f32.mxu0 %v11891_v11  ;;  %v3322_v1 = vsub.f32 %v14594_v6, %v3183_v44  ;;  %v3323_v51 = vsub.f32 %v16746_v18, %v3183_v44  ;;  %3650 = vadd.xlane.f32.xlu0 %v3649_v2  ;;  %v3745_v24 = vadd.f32 %v11891_v11, %v11889_v39 }
 0x4d3   : > { %v3260_v58 = vsub.f32 %v14392_v55, %v3090_v26  ;;  %v11895_v41 = vpop.eup %11894  ;;  %11914 = vpow2.f32 %v3550_v4  ;;  %v3261_v43 = vsub.f32 %v16747_v7, %v3090_v26  ;;  %4161 = vmatmul.mubr.f32.gmra.mrb[190].mxu0 %v11889_v39 }
 0x4d4   : > { %v11897_v20 = vpop.eup %11896  ;;  %11916 = vpow2.f32 %v3424_v12  ;;  %v3552_v47 = vmul.f32 1.442695, %v3322_v1  ;;  %v3554_v63 = vmul.f32 1.442695, %v3323_v51  ;;  %3940 = vmatprep.mubr.f32.mxu1 %v11895_v41  ;;  %3746 = vadd.xlane.f32.xlu1 %v3745_v24  ;;  %v3652_v53 = vadd.f32 %v11895_v41, %v11893_v19  ;;  %v16749_v24 = vld [vmem:[#allocation125_spill] sm:$0xff] }
 0x4d5   : > { %v3428_v5 = vmul.f32 1.442695, %v3260_v58  ;;  %v11899_v33 = vpop.eup %11898  ;;  %11918 = vpow2.f32 %v3426_v17  ;;  %v3430_v6 = vmul.f32 1.442695, %v3261_v43  ;;  %3941 = vmatmul.mubr.f32.gmra.mrb[192].mxu1 %v11893_v19  ;;  %v3186_v54 = vpop.xlane.xlu1 %3185 }
 0x4d6   : > { %v3093_v55 = vpop.xlane.xlu0 %3092  ;;  %v11901_v57 = vpop.eup %11900  ;;  %11920 = vpow2.f32 %v3552_v47  ;;  %4165 = vmatprep.mubr.f32.mxu0 %v11899_v33  ;;  %v3324_v23 = vsub.f32 %v14603_v40, %v3186_v54  ;;  %v3325_v38 = vsub.f32 %v16748_v0, %v3186_v54  ;;  %3701 = vadd.xlane.f32.xlu0 %v14733_v62  ;;  %v3748_v56 = vadd.f32 %v11899_v33, %v11897_v20 }
 0x4d7   : > { %v3262_v21 = vsub.f32 %v14407_v59, %v3093_v55  ;;  %v11903_v45 = vpop.eup %11902  ;;  %11922 = vpow2.f32 %v3554_v63  ;;  %v3263_v48 = vsub.f32 %v14409_v36, %v3093_v55  ;;  %4166 = vmatmul.mubr.f32.gmra.mrb[192].mxu0 %v11897_v20 }
 0x4d8   : > { %v11905_v61 = vpop.eup %11904  ;;  %11924 = vpow2.f32 %v3428_v5  ;;  %v3556_v15 = vmul.f32 1.442695, %v3324_v23  ;;  %v3558_v8 = vmul.f32 1.442695, %v3325_v38  ;;  %3945 = vmatprep.mubr.f32.mxu1 %v11903_v45  ;;  %3749 = vadd.xlane.f32.xlu1 %v3748_v56  ;;  %v3655_v28 = vadd.f32 %v11903_v45, %v11901_v57  ;;  %v16750_v23 = vld [vmem:[#allocation156_spill] sm:$0xff] }
 0x4d9   : > { %v3432_v27 = vmul.f32 1.442695, %v3262_v21  ;;  %v11907_v49 = vpop.eup %11906  ;;  %11926 = vpow2.f32 %v3430_v6  ;;  %v3434_v40 = vmul.f32 1.442695, %v3263_v48  ;;  %3946 = vmatmul.mubr.f32.gmra.mrb[194].mxu1 %v11901_v57  ;;  %v3189_v59 = vpop.xlane.xlu1 %3188  ;;  %v16751_v38 = vld [vmem:[#allocation128_spill] sm:$0xff]  ;;  %v16752_v48 = vld [vmem:[#allocation129_spill] sm:$0xff] }
 0x4da   : > { %v3096_v39 = vpop.xlane.xlu0 %3095  ;;  %v11909_v4 = vpop.eup %11908  ;;  %11928 = vpow2.f32 %v3556_v15  ;;  %4170 = vmatprep.mubr.f32.mxu0 %v11907_v49  ;;  %v3326_v36 = vsub.f32 %v14614_v42, %v3189_v59  ;;  %v3327_v62 = vsub.f32 %v14619_v35, %v3189_v59  ;;  %3653 = vadd.xlane.f32.xlu0 %v3652_v53  ;;  %v3751_v2 = vadd.f32 %v11907_v49, %v11905_v61 }
 0x4db   : > { %v3264_v12 = vsub.f32 %v14422_v52, %v3096_v39  ;;  %v11911_v11 = vpop.eup %11910  ;;  %11930 = vpow2.f32 %v3558_v8  ;;  %v3265_v17 = vsub.f32 %v14424_v37, %v3096_v39  ;;  %4171 = vmatmul.mubr.f32.gmra.mrb[194].mxu0 %v11905_v61 }
 0x4dc   : > { %v11913_v44 = vpop.eup %11912  ;;  %11932 = vpow2.f32 %v3432_v27  ;;  %v3560_v26 = vmul.f32 1.442695, %v3326_v36  ;;  %v3562_v19 = vmul.f32 1.442695, %v3327_v62  ;;  %3950 = vmatprep.mubr.f32.mxu1 %v11911_v11  ;;  %3752 = vadd.xlane.f32.xlu1 %v3751_v2  ;;  %v3658_v51 = vadd.f32 %v11911_v11, %v11909_v4  ;;  %v16753_v62 = vld [vmem:[#allocation157_spill] sm:$0xff] }
 0x4dd   : > { %v3436_v1 = vmul.f32 1.442695, %v3264_v12  ;;  %v11915_v18 = vpop.eup %11914  ;;  %11934 = vpow2.f32 %v3434_v40  ;;  %v3438_v42 = vmul.f32 1.442695, %v3265_v17  ;;  %3951 = vmatmul.mubr.f32.gmra.mrb[196].mxu1 %v11909_v4  ;;  %v3192_v35 = vpop.xlane.xlu1 %3191 }
 0x4de   : > { %v3099_v52 = vpop.xlane.xlu0 %3098  ;;  %v11917_v58 = vpop.eup %11916  ;;  %11936 = vpow2.f32 %v3560_v26  ;;  %4175 = vmatprep.mubr.f32.mxu0 %v11915_v18  ;;  %v3328_v37 = vsub.f32 %v14625_v34, %v3192_v35  ;;  %v3329_v41 = vsub.f32 %v14630_v16, %v3192_v35  ;;  %3656 = vadd.xlane.f32.xlu0 %v3655_v28  ;;  %v3754_v47 = vadd.f32 %v11915_v18, %v11913_v44 }
 0x4df   : > { %v3266_v7 = vsub.f32 %v14437_v10, %v3099_v52  ;;  %v11919_v43 = vpop.eup %11918  ;;  %11938 = vpow2.f32 %v3562_v19  ;;  %v3267_v20 = vsub.f32 %v16749_v24, %v3099_v52  ;;  %4176 = vmatmul.mubr.f32.gmra.mrb[196].mxu0 %v11913_v44 }
 0x4e0   : > { %v11921_v63 = vpop.eup %11920  ;;  %11940 = vpow2.f32 %v3436_v1  ;;  %v3564_v5 = vmul.f32 1.442695, %v3328_v37  ;;  %v3566_v33 = vmul.f32 1.442695, %v3329_v41  ;;  %3955 = vmatprep.mubr.f32.mxu1 %v11919_v43  ;;  %3755 = vadd.xlane.f32.xlu1 %v3754_v47  ;;  %v3661_v55 = vadd.f32 %v11919_v43, %v11917_v58 }
 0x4e1   : > { %v3440_v6 = vmul.f32 1.442695, %v3266_v7  ;;  %v11923_v54 = vpop.eup %11922  ;;  %11942 = vpow2.f32 %v3438_v42  ;;  %v3442_v34 = vmul.f32 1.442695, %v3267_v20  ;;  %3956 = vmatmul.mubr.f32.gmra.mrb[198].mxu1 %v11917_v58  ;;  %v3195_v16 = vpop.xlane.xlu1 %3194  ;;  %v16754_v58 = vld [vmem:[#allocation158_spill] sm:$0xff] }
 0x4e2   : > { %v3102_v10 = vpop.xlane.xlu0 %3101  ;;  %v11925_v53 = vpop.eup %11924  ;;  %11944 = vpow2.f32 %v3564_v5  ;;  %4180 = vmatprep.mubr.f32.mxu0 %v11923_v54  ;;  %v3330_v57 = vsub.f32 %v14634_v14, %v3195_v16  ;;  %v3331_v0 = vsub.f32 %v16750_v23, %v3195_v16  ;;  %3659 = vadd.xlane.f32.xlu0 %v3658_v51  ;;  %v3757_v61 = vadd.f32 %v11923_v54, %v11921_v63 }
 0x4e3   : > { %v3268_v21 = vsub.f32 %v16751_v38, %v3102_v10  ;;  %v11927_v45 = vpop.eup %11926  ;;  %11946 = vpow2.f32 %v3566_v33  ;;  %v3269_v56 = vsub.f32 %v16752_v48, %v3102_v10  ;;  %4181 = vmatmul.mubr.f32.gmra.mrb[198].mxu0 %v11921_v63  ;;  %v16756_v10 = vld [vmem:[#allocation160_spill] sm:$0xff] }
 0x4e4   : > { %v11929_v15 = vpop.eup %11928  ;;  %11948 = vpow2.f32 %v3440_v6  ;;  %v3568_v8 = vmul.f32 1.442695, %v3330_v57  ;;  %v3570_v27 = vmul.f32 1.442695, %v3331_v0  ;;  %3960 = vmatprep.mubr.f32.mxu1 %v11927_v45  ;;  %3758 = vadd.xlane.f32.xlu1 %v3757_v61  ;;  %v3664_v28 = vadd.f32 %v11927_v45, %v11925_v53 }
 0x4e5   : > { %v3444_v49 = vmul.f32 1.442695, %v3268_v21  ;;  %v11931_v40 = vpop.eup %11930  ;;  %11950 = vpow2.f32 %v3442_v34  ;;  %v3446_v14 = vmul.f32 1.442695, %v3269_v56  ;;  %3961 = vmatmul.mubr.f32.gmra.mrb[200].mxu1 %v11925_v53  ;;  %v3198_v59 = vpop.xlane.xlu1 %3197 }
 0x4e6   : > { %v3105_v39 = vpop.xlane.xlu0 %3104  ;;  %v11933_v4 = vpop.eup %11932  ;;  %11952 = vpow2.f32 %v3568_v8  ;;  %4185 = vmatprep.mubr.f32.mxu0 %v11931_v40  ;;  %v3332_v36 = vsub.f32 %v14643_v30, %v3198_v59  ;;  %v3333_v12 = vsub.f32 %v16753_v62, %v3198_v59  ;;  %3662 = vadd.xlane.f32.xlu0 %v3661_v55  ;;  %v3760_v44 = vadd.f32 %v11931_v40, %v11929_v15  ;;  %v16758_v40 = vld [vmem:[#allocation162_spill] sm:$0xff] }
 0x4e7   : > { %v3270_v11 = vsub.f32 %v14467_v25, %v3105_v39  ;;  %v11935_v17 = vpop.eup %11934  ;;  %11954 = vpow2.f32 %v3570_v27  ;;  %v3271_v2 = vsub.f32 %v14469_v29, %v3105_v39  ;;  %4186 = vmatmul.mubr.f32.gmra.mrb[200].mxu0 %v11929_v15 }
 0x4e8   : > { %v11937_v26 = vpop.eup %11936  ;;  %11956 = vpow2.f32 %v3444_v49  ;;  %v3572_v19 = vmul.f32 1.442695, %v3332_v36  ;;  %v3574_v1 = vmul.f32 1.442695, %v3333_v12  ;;  %3965 = vmatprep.mubr.f32.mxu1 %v11935_v17  ;;  %3761 = vadd.xlane.f32.xlu1 %v3760_v44  ;;  %v3667_v52 = vadd.f32 %v11935_v17, %v11933_v4 }
 0x4e9   : > { %v3448_v18 = vmul.f32 1.442695, %v3270_v11  ;;  %v11939_v42 = vpop.eup %11938  ;;  %11958 = vpow2.f32 %v3446_v14  ;;  %v3450_v30 = vmul.f32 1.442695, %v3271_v2  ;;  %3966 = vmatmul.mubr.f32.gmra.mrb[202].mxu1 %v11933_v4  ;;  %v3201_v35 = vpop.xlane.xlu1 %3200 }
 0x4ea   : > { %v3108_v25 = vpop.xlane.xlu0 %3107  ;;  %v11941_v51 = vpop.eup %11940  ;;  %11960 = vpow2.f32 %v3572_v19  ;;  %4190 = vmatprep.mubr.f32.mxu0 %v11939_v42  ;;  %v3334_v29 = vsub.f32 %v14652_v13, %v3201_v35  ;;  %v3335_v37 = vsub.f32 %v16754_v58, %v3201_v35  ;;  %3665 = vadd.xlane.f32.xlu0 %v3664_v28  ;;  %v3763_v24 = vadd.f32 %v11939_v42, %v11937_v26 }
 0x4eb   : > { %v3272_v41 = vsub.f32 %v14482_v32, %v3108_v25  ;;  %v11943_v7 = vpop.eup %11942  ;;  %11962 = vpow2.f32 %v3574_v1  ;;  %v3273_v43 = vsub.f32 %v14484_v9, %v3108_v25  ;;  %4191 = vmatmul.mubr.f32.gmra.mrb[202].mxu0 %v11937_v26  ;;  %v16755_v9 = vld [vmem:[#allocation159_spill] sm:$0xff] }
 0x4ec   : > { %v11945_v20 = vpop.eup %11944  ;;  %11964 = vpow2.f32 %v3448_v18  ;;  %v3576_v47 = vmul.f32 1.442695, %v3334_v29  ;;  %v3578_v63 = vmul.f32 1.442695, %v3335_v37  ;;  %3970 = vmatprep.mubr.f32.mxu1 %v11943_v7  ;;  %3764 = vadd.xlane.f32.xlu1 %v3763_v24  ;;  %v3670_v54 = vadd.f32 %v11943_v7, %v11941_v51  ;;  %v16760_v18 = vld [vmem:[#allocation164_spill] sm:$0xff] }
 0x4ed   : > { %v3452_v5 = vmul.f32 1.442695, %v3272_v41  ;;  %v11947_v33 = vpop.eup %11946  ;;  %11966 = vpow2.f32 %v3450_v30  ;;  %v3454_v13 = vmul.f32 1.442695, %v3273_v43  ;;  %3971 = vmatmul.mubr.f32.gmra.mrb[204].mxu1 %v11941_v51  ;;  %v3204_v6 = vpop.xlane.xlu1 %3203 }
 0x4ee   : > { %v3111_v32 = vpop.xlane.xlu0 %3110  ;;  %v11949_v34 = vpop.eup %11948  ;;  %11968 = vpow2.f32 %v3576_v47  ;;  %4195 = vmatprep.mubr.f32.mxu0 %v11947_v33  ;;  %v3336_v16 = vsub.f32 %v16755_v9, %v3204_v6  ;;  %v3337_v55 = vsub.f32 %v16756_v10, %v3204_v6  ;;  %3668 = vadd.xlane.f32.xlu0 %v3667_v52  ;;  %v3766_v0 = vadd.f32 %v11947_v33, %v11945_v20  ;;  %v16763_v33 = vld [vmem:[#allocation141_spill] sm:$0xff] }
 0x4ef   : > { %v3274_v53 = vsub.f32 %v14497_v31, %v3111_v32  ;;  %v11951_v57 = vpop.eup %11950  ;;  %11970 = vpow2.f32 %v3578_v63  ;;  %v3275_v23 = vsub.f32 %v14499_v50, %v3111_v32  ;;  %4196 = vmatmul.mubr.f32.gmra.mrb[204].mxu0 %v11945_v20  ;;  %v16757_v50 = vld [vmem:[#allocation161_spill] sm:$0xff]  ;;  %v16762_v63 = vld [vmem:[#allocation166_spill] sm:$0xff] }
 0x4f0   : > { %v11953_v38 = vpop.eup %11952  ;;  %11972 = vpow2.f32 %v3452_v5  ;;  %v3580_v21 = vmul.f32 1.442695, %v3336_v16  ;;  %v3582_v45 = vmul.f32 1.442695, %v3337_v55  ;;  %3975 = vmatprep.mubr.f32.mxu1 %v11951_v57  ;;  %3767 = vadd.xlane.f32.xlu1 %v3766_v0  ;;  %v3673_v8 = vadd.f32 %v11951_v57, %v11949_v34  ;;  %v16764_v32 = vld [vmem:[#allocation142_spill] sm:$0xff] }
 0x4f1   : > { %v3456_v48 = vmul.f32 1.442695, %v3274_v53  ;;  %v11955_v56 = vpop.eup %11954  ;;  %11974 = vpow2.f32 %v3454_v13  ;;  %v3458_v61 = vmul.f32 1.442695, %v3275_v23  ;;  %3976 = vmatmul.mubr.f32.gmra.mrb[206].mxu1 %v11949_v34  ;;  %v3207_v15 = vpop.xlane.xlu1 %3206 }
 0x4f2   : > { %v3114_v31 = vpop.xlane.xlu0 %3113  ;;  %v11957_v27 = vpop.eup %11956  ;;  %11976 = vpow2.f32 %v3580_v21  ;;  %4200 = vmatprep.mubr.f32.mxu0 %v11955_v56  ;;  %v3338_v49 = vsub.f32 %v16757_v50, %v3207_v15  ;;  %v3339_v14 = vsub.f32 %v16758_v40, %v3207_v15  ;;  %3671 = vadd.xlane.f32.xlu0 %v3670_v54  ;;  %v3769_v4 = vadd.f32 %v11955_v56, %v11953_v38  ;;  %v16766_v56 = vld [vmem:[#allocation168_spill] sm:$0xff]  ;;  %v16767_v15 = vld [vmem:[#allocation145_spill] sm:$0xff] }
 0x4f3   : > { %v3276_v59 = vsub.f32 %v14512_v46, %v3114_v31  ;;  %v11959_v39 = vpop.eup %11958  ;;  %11978 = vpow2.f32 %v3582_v45  ;;  %v3277_v28 = vsub.f32 %v14514_v3, %v3114_v31  ;;  %4201 = vmatmul.mubr.f32.gmra.mrb[206].mxu0 %v11953_v38  ;;  %v16759_v3 = vld [vmem:[#allocation163_spill] sm:$0xff] }
 0x4f4   : > { %v11961_v36 = vpop.eup %11960  ;;  %11980 = vpow2.f32 %v3456_v48  ;;  %v3584_v62 = vmul.f32 1.442695, %v3338_v49  ;;  %v3586_v12 = vmul.f32 1.442695, %v3339_v14  ;;  %3980 = vmatprep.mubr.f32.mxu1 %v11959_v39  ;;  %3770 = vadd.xlane.f32.xlu1 %v3769_v4  ;;  %v3676_v26 = vadd.f32 %v11959_v39, %v11957_v27  ;;  %v16765_v45 = vld [vmem:[#allocation167_spill] sm:$0xff] }
 0x4f5   : > { %v3460_v11 = vmul.f32 1.442695, %v3276_v59  ;;  %v11963_v17 = vpop.eup %11962  ;;  %11982 = vpow2.f32 %v3458_v61  ;;  %v3462_v2 = vmul.f32 1.442695, %v3277_v28  ;;  %3981 = vmatmul.mubr.f32.gmra.mrb[208].mxu1 %v11957_v27  ;;  %v3210_v44 = vpop.xlane.xlu1 %3209  ;;  %v16768_v27 = vld [vmem:[#allocation146_spill] sm:$0xff] }
 0x4f6   : > { %v3117_v46 = vpop.xlane.xlu0 %3116  ;;  %v11965_v19 = vpop.eup %11964  ;;  %11984 = vpow2.f32 %v3584_v62  ;;  %4205 = vmatprep.mubr.f32.mxu0 %v11963_v17  ;;  %v3340_v1 = vsub.f32 %v16759_v3, %v3210_v44  ;;  %v3341_v42 = vsub.f32 %v16760_v18, %v3210_v44  ;;  %3674 = vadd.xlane.f32.xlu0 %v3673_v8  ;;  %v3772_v52 = vadd.f32 %v11963_v17, %v11961_v36 }
 0x4f7   : > { %v3278_v30 = vsub.f32 %v14527_v60, %v3117_v46  ;;  %v11967_v35 = vpop.eup %11966  ;;  %11986 = vpow2.f32 %v3586_v12  ;;  %v3279_v25 = vsub.f32 %v14529_v22, %v3117_v46  ;;  %4206 = vmatmul.mubr.f32.gmra.mrb[208].mxu0 %v11961_v36  ;;  %v16761_v22 = vld [vmem:[#allocation165_spill] sm:$0xff] }
 0x4f8   : > { %v11969_v51 = vpop.eup %11968  ;;  %11988 = vpow2.f32 %v3460_v11  ;;  %v3588_v29 = vmul.f32 1.442695, %v3340_v1  ;;  %v3590_v58 = vmul.f32 1.442695, %v3341_v42  ;;  %3985 = vmatprep.mubr.f32.mxu1 %v11967_v35  ;;  %3773 = vadd.xlane.f32.xlu1 %v3772_v52  ;;  %v3679_v24 = vadd.f32 %v11967_v35, %v11965_v19  ;;  %v16769_v11 = vld [vmem:[#allocation169_spill] sm:$0xff] }
 0x4f9   : > { %v3464_v37 = vmul.f32 1.442695, %v3278_v30  ;;  %v11971_v41 = vpop.eup %11970  ;;  %11990 = vpow2.f32 %v3462_v2  ;;  %v3466_v7 = vmul.f32 1.442695, %v3279_v25  ;;  %3986 = vmatmul.mubr.f32.gmra.mrb[210].mxu1 %v11965_v19  ;;  %v3213_v43 = vpop.xlane.xlu1 %3212  ;;  %v16770_v2 = vld [vmem:[#allocation170_spill] sm:$0xff] }
 0x4fa   : > { %v3120_v60 = vpop.xlane.xlu0 %3119  ;;  %v11973_v20 = vpop.eup %11972  ;;  %11992 = vpow2.f32 %v3588_v29  ;;  %4210 = vmatprep.mubr.f32.mxu0 %v11971_v41  ;;  %v3342_v47 = vsub.f32 %v16761_v22, %v3213_v43  ;;  %v3343_v5 = vsub.f32 %v16762_v63, %v3213_v43  ;;  %3677 = vadd.xlane.f32.xlu0 %v3676_v26  ;;  %v3775_v34 = vadd.f32 %v11971_v41, %v11969_v51 }
 0x4fb   : > { %v3280_v13 = vsub.f32 %v16763_v33, %v3120_v60  ;;  %v11975_v6 = vpop.eup %11974  ;;  %11994 = vpow2.f32 %v3590_v58  ;;  %v3281_v54 = vsub.f32 %v16764_v32, %v3120_v60  ;;  %4211 = vmatmul.mubr.f32.gmra.mrb[210].mxu0 %v11969_v51 }
 0x4fc   : > { %v11977_v9 = vpop.eup %11976  ;;  %11996 = vpow2.f32 %v3464_v37  ;;  %v3592_v16 = vmul.f32 1.442695, %v3342_v47  ;;  %v3594_v10 = vmul.f32 1.442695, %v3343_v5  ;;  %3990 = vmatprep.mubr.f32.mxu1 %v11975_v6  ;;  %3776 = vadd.xlane.f32.xlu1 %v3775_v34  ;;  %v3682_v38 = vadd.f32 %v11975_v6, %v11973_v20 }
 0x4fd   : > { %v3468_v55 = vmul.f32 1.442695, %v3280_v13  ;;  %v11979_v53 = vpop.eup %11978  ;;  %11998 = vpow2.f32 %v3466_v7  ;;  %v3470_v57 = vmul.f32 1.442695, %v3281_v54  ;;  %3991 = vmatmul.mubr.f32.gmra.mrb[212].mxu1 %v11973_v20  ;;  %v3216_v23 = vpop.xlane.xlu1 %3215 }
 0x4fe   : > { %v3123_v0 = vpop.xlane.xlu0 %3122  ;;  %v11981_v21 = vpop.eup %11980  ;;  %12000 = vpow2.f32 %v3592_v16  ;;  %4215 = vmatprep.mubr.f32.mxu0 %v11979_v53  ;;  %v3344_v48 = vsub.f32 %v16765_v45, %v3216_v23  ;;  %v3345_v61 = vsub.f32 %v16766_v56, %v3216_v23  ;;  %3680 = vadd.xlane.f32.xlu0 %v3679_v24  ;;  %v3778_v49 = vadd.f32 %v11979_v53, %v11977_v9  ;;  %v16771_v23 = vld [vmem:[#allocation32_spill] sm:$0xff] }
 0x4ff   : > { %v3282_v31 = vsub.f32 %v16767_v15, %v3123_v0  ;;  %v11983_v8 = vpop.eup %11982  ;;  %12002 = vpow2.f32 %v3594_v10  ;;  %v3283_v50 = vsub.f32 %v16768_v27, %v3123_v0  ;;  %4216 = vmatmul.mubr.f32.gmra.mrb[212].mxu0 %v11977_v9 }
 0x500   : > { %v11985_v40 = vpop.eup %11984  ;;  %12004 = vpow2.f32 %v3468_v55  ;;  %v3596_v14 = vmul.f32 1.442695, %v3344_v48  ;;  %v3598_v59 = vmul.f32 1.442695, %v3345_v61  ;;  %3995 = vmatprep.mubr.f32.mxu1 %v11983_v8  ;;  %3779 = vadd.xlane.f32.xlu1 %v3778_v49  ;;  %v3685_v62 = vadd.f32 %v11983_v8, %v11981_v21  ;;  %v16772_v48 = vld [vmem:[#allocation33_spill] sm:$0xff] }
 0x501   : > { %v3472_v39 = vmul.f32 1.442695, %v3282_v31  ;;  %v11987_v28 = vpop.eup %11986  ;;  %12006 = vpow2.f32 %v3470_v57  ;;  %v3474_v4 = vmul.f32 1.442695, %v3283_v50  ;;  %3996 = vmatmul.mubr.f32.gmra.mrb[214].mxu1 %v11981_v21  ;;  %v3219_v36 = vpop.xlane.xlu1 %3218 }
 0x502   : > { %v11989_v12 = vpop.eup %11988  ;;  %12008 = vpow2.f32 %v3596_v14  ;;  %4220 = vmatprep.mubr.f32.mxu0 %v11987_v28  ;;  %v3346_v17 = vsub.f32 %v16769_v11, %v3219_v36  ;;  %v3347_v44 = vsub.f32 %v16770_v2, %v3219_v36  ;;  %v3781_v46 = vadd.f32 %v11987_v28, %v11985_v40  ;;  %3683 = vadd.xlane.f32.xlu0 %v3682_v38  ;;  %v3606_v13 = vpop.xlane.xlu0 %3605 }
 0x503   : > { %v11991_v26 = vpop.eup %11990  ;;  %12010 = vpow2.f32 %v3598_v59  ;;  %4221 = vmatmul.mubr.f32.gmra.mrb[214].mxu0 %v11985_v40 }
 0x504   : > { %v11993_v19 = vpop.eup %11992  ;;  %12012 = vpow2.f32 %v3472_v39  ;;  %v3600_v3 = vmul.f32 1.442695, %v3346_v17  ;;  %v3602_v1 = vmul.f32 1.442695, %v3347_v44  ;;  %4000 = vmatprep.mubr.f32.mxu1 %v11991_v26  ;;  %v3688_v18 = vadd.f32 %v11991_v26, %v11989_v12  ;;  %3782 = vadd.xlane.f32.xlu1 %v3781_v46 }
 0x505   : > { %v11995_v42 = vpop.eup %11994  ;;  %12014 = vpow2.f32 %v3474_v4  ;;  %4001 = vmatmul.mubr.f32.gmra.mrb[216].mxu1 %v11989_v12  ;;  %v3609_v6 = vpop.xlane.xlu1 %3608 }
 0x506   : > { %v11997_v30 = vpop.eup %11996  ;;  %12016 = vpow2.f32 %v3600_v3  ;;  %4225 = vmatprep.mubr.f32.mxu0 %v11995_v42  ;;  %v3784_v35 = vadd.f32 %v11995_v42, %v11993_v19  ;;  %3686 = vadd.xlane.f32.xlu0 %v3685_v62 }
 0x507   : > { %v11999_v25 = vpop.eup %11998  ;;  %12018 = vpow2.f32 %v3602_v1  ;;  %4226 = vmatmul.mubr.f32.gmra.mrb[216].mxu0 %v11993_v19 }
 0x508   : > { %v12001_v52 = vpop.eup %12000  ;;  %4005 = vmatprep.mubr.f32.mxu1 %v11999_v25  ;;  %v3691_v51 = vadd.f32 %v11999_v25, %v11997_v30  ;;  %3785 = vadd.xlane.f32.xlu1 %v3784_v35  ;;  %12020 = vrcp.f32 %v3606_v13  ;;  %v16775_v13 = vld [vmem:[#allocation34_spill] sm:$0xff] }
 0x509   : > { %v12003_v29 = vpop.eup %12002  ;;  %4006 = vmatmul.mubr.f32.gmra.mrb[218].mxu1 %v11997_v30  ;;  %12022 = vrcp.f32 %v3609_v6 }
 0x50a   : > { %v12005_v58 = vpop.eup %12004  ;;  %4230 = vmatprep.mubr.f32.mxu0 %v12003_v29  ;;  %v3787_v37 = vadd.f32 %v12003_v29, %v12001_v52  ;;  %3689 = vadd.xlane.f32.xlu0 %v3688_v18 }
 0x50b   : > { %v12007_v41 = vpop.eup %12006  ;;  %4231 = vmatmul.mubr.f32.gmra.mrb[218].mxu0 %v12001_v52 }
 0x50c   : > { %v12009_v7 = vpop.eup %12008  ;;  %4010 = vmatprep.mubr.f32.mxu1 %v12007_v41  ;;  %v3694_v43 = vadd.f32 %v12007_v41, %v12005_v58  ;;  %3788 = vadd.xlane.f32.xlu1 %v3787_v37 }
 0x50d   : > { %v12011_v60 = vpop.eup %12010  ;;  %4011 = vmatmul.mubr.f32.gmra.mrb[220].mxu1 %v12005_v58 }
 0x50e   : > { %v12013_v24 = vpop.eup %12012  ;;  %4235 = vmatprep.mubr.f32.mxu0 %v12011_v60  ;;  %v3790_v20 = vadd.f32 %v12011_v60, %v12009_v7  ;;  %3692 = vadd.xlane.f32.xlu0 %v3691_v51  ;;  %v16773_v60 = vld [vmem:[#allocation47_spill] sm:$0xff] }
 0x50f   : > { %v12015_v22 = vpop.eup %12014  ;;  %4236 = vmatmul.mubr.f32.gmra.mrb[220].mxu0 %v12009_v7 }
 0x510   : > { %v12017_v47 = vpop.eup %12016  ;;  %4015 = vmatprep.mubr.f32.mxu1 %v12015_v22  ;;  %v3697_v63 = vadd.f32 %v12015_v22, %v12013_v24  ;;  %3791 = vadd.xlane.f32.xlu1 %v3790_v20 }
 0x511   : > { %v12019_v5 = vpop.eup %12018  ;;  %4016 = vmatmul.mubr.f32.gmra.mrb[222].mxu1 %v12013_v24 }
 0x512   : > { %4240 = vmatprep.mubr.f32.mxu0 %v12019_v5  ;;  %v3793_v33 = vadd.f32 %v12019_v5, %v12017_v47  ;;  %3695 = vadd.xlane.f32.xlu0 %v3694_v43  ;;  %v12021_v32 = vpop.eup %12020 }
 0x513   : > { %4241 = vmatmul.mubr.f32.gmra.mrb[222].mxu0 %v12017_v47  ;;  %v12023_v55 = vpop.eup %12022  ;;  %v16774_v47 = vld [vmem:[#allocation49_spill] sm:$0xff] }
 0x514   : > { %3794 = vadd.xlane.f32.xlu1 %v3793_v33 }
 0x516   : > { %3698 = vadd.xlane.f32.xlu0 %v3697_v63 }
 0x529   : > { %v3705_v54 = vpop.xlane.xlu1 %3704  ;;  %v3862_v34 = vpop.f32.mrb[160].mxu1 }
 0x52a   : > { %v4310_v9 = vmul.f32 %v12021_v32, %v3862_v34  ;;  %v3864_v16 = vpop.f32.mrb[161].mxu1  ;;  %12024 = vrcp.f32 %v3705_v54 }
 0x52b   : > { %v3612_v10 = vpop.xlane.xlu0 %3611 }
 0x52c   : > { %v4374_v0 = vadd.f32 %v4310_v9, %v16771_v23 }
 0x52d   : > { %v3708_v53 = vpop.xlane.xlu1 %3707  ;;  %v3867_v57 = vpop.f32.mrb[162].mxu1 }
 0x52e   : > { %v4311_v38 = vmul.f32 %v12023_v55, %v3867_v57  ;;  %v3869_v21 = vpop.f32.mrb[163].mxu1  ;;  %v4438_v15 = vsel %vm1355_vm4, %v4374_v0, 0.0 }
 0x52f   : > { %v3615_v45 = vpop.xlane.xlu0 %3614  ;;  %v16776_v21 = vld [vmem:[#allocation59_spill] sm:$0xff] }
 0x530   : > { %v4375_v56 = vadd.f32 %v4311_v38, %v16772_v48 }
 0x531   : > { %v3711_v61 = vpop.xlane.xlu1 %3710 }
 0x532   : > { %v4439_v31 = vsel %vm1355_vm4, %v4375_v56, 0.0  ;;  %v16777_v56 = vld [vmem:[#allocation35_spill] sm:$0xff] }
 0x533   : > { %v14846_v8 = vadd.f32 %v4439_v31, %v4438_v15  ;;  %v3618_v27 = vpop.xlane.xlu0 %3617 }
 0x534   : > { %v12025_v25 = vpop.eup %12024 }
 0x535   : > { %v3714_v50 = vpop.xlane.xlu1 %3713 }
 0x537   : > { %v3621_v49 = vpop.xlane.xlu0 %3620 }
 0x539   : > { %v3717_v14 = vpop.xlane.xlu1 %3716 }
 0x53b   : > { %v3624_v40 = vpop.xlane.xlu0 %3623 }
 0x53d   : > { %v14850_v39 = vpop.xlane.xlu1 %3719 }
 0x53f   : > { %v14848_v59 = vpop.xlane.xlu0 %3626 }
 0x541   : > { %v14856_v36 = vpop.xlane.xlu1 %3722 }
 0x543   : > { %v14852_v28 = vpop.xlane.xlu0 %3629 }
 0x545   : > { %v14860_v12 = vpop.xlane.xlu1 %3725 }
 0x547   : > { %v14854_v4 = vpop.xlane.xlu0 %3632 }
 0x549   : > { %v14866_v2 = vpop.xlane.xlu1 %3728 }
 0x54b   : > { %v14858_v62 = vpop.xlane.xlu0 %3635 }
 0x54d   : > { %v14870_v46 = vpop.xlane.xlu1 %3731 }
 0x54f   : > { %v14862_v11 = vpop.xlane.xlu0 %3638 }
 0x551   : > { %v14876_v3 = vpop.xlane.xlu1 %3734 }
 0x553   : > { %v14864_v17 = vpop.xlane.xlu0 %3641 }
 0x555   : > { %v14878_v18 = vpop.xlane.xlu1 %3737 }
 0x557   : > { %v14868_v44 = vpop.xlane.xlu0 %3644 }
 0x559   : > { %v14880_v35 = vpop.xlane.xlu1 %3740 }
 0x55b   : > { %v14872_v26 = vpop.xlane.xlu0 %3647 }
 0x55d   : > { %v14884_v33 = vpop.xlane.xlu1 %3743 }
 0x55f   : > { %v14874_v19 = vpop.xlane.xlu0 %3650 }
 0x563   : > { %v3702_v1 = vpop.xlane.xlu0 %3701 }
 0x564   : > { %12026 = vrcp.f32 %v3702_v1 }
 0x565   : > { %12028 = vrcp.f32 %v3612_v10 }
 0x566   : > { %12030 = vrcp.f32 %v3708_v53 }
 0x567   : > { %12032 = vrcp.f32 %v3615_v45 }
 0x568   : > { %12034 = vrcp.f32 %v3711_v61 }
 0x569   : > { %12036 = vrcp.f32 %v3618_v27 }
 0x56a   : > { %v4087_v42 = vpop.f32.mrb[160].mxu0  ;;  %12038 = vrcp.f32 %v3714_v50 }
 0x56b   : > { %v4089_v30 = vpop.f32.mrb[161].mxu0  ;;  %12040 = vrcp.f32 %v3621_v49 }
 0x56c   : > { %12042 = vrcp.f32 %v3717_v14  ;;  %v14895_v14 = vpop.xlane.xlu1 %3746 }
 0x56d   : > { %12044 = vrcp.f32 %v3624_v40 }
 0x56e   : > { %v4092_v52 = vpop.f32.mrb[162].mxu0  ;;  %v12027_v51 = vpop.eup %12026  ;;  %12046 = vrcp.f32 %v14850_v39 }
 0x56f   : > { %v4343_v29 = vmul.f32 %v12025_v25, %v4092_v52  ;;  %v4094_v58 = vpop.f32.mrb[163].mxu0  ;;  %v12029_v37 = vpop.eup %12028  ;;  %v4342_v41 = vmul.f32 %v12027_v51, %v4087_v42  ;;  %12048 = vrcp.f32 %v14848_v59  ;;  %v16778_v52 = vld [vmem:[#allocation57_spill] sm:$0xff] }
 0x570   : > { %v3872_v7 = vpop.f32.mrb[164].mxu1  ;;  %v12031_v22 = vpop.eup %12030  ;;  %v16779_v58 = vld [vmem:[#allocation36_spill] sm:$0xff]  ;;  %12050 = vrcp.f32 %v14856_v36  ;;  %v16781_v36 = vld [vmem:[#allocation37_spill] sm:$0xff] }
 0x571   : > { %v4312_v43 = vmul.f32 %v12029_v37, %v3872_v7  ;;  %v4407_v24 = vadd.f32 %v4343_v29, %v16773_v60  ;;  %v3874_v20 = vpop.f32.mrb[165].mxu1  ;;  %v4406_v63 = vadd.f32 %v4342_v41, %v16774_v47  ;;  %v12033_v9 = vpop.eup %12032  ;;  %12052 = vrcp.f32 %v14852_v28 }
 0x572   : > { %v4097_v5 = vpop.f32.mrb[164].mxu0  ;;  %v12035_v0 = vpop.eup %12034  ;;  %12054 = vrcp.f32 %v14860_v12 }
 0x573   : > { %v4376_v6 = vadd.f32 %v4312_v43, %v16775_v13  ;;  %v4508_v32 = vsel %vm1355_vm4, %v4407_v24, 0.0  ;;  %v4344_v54 = vmul.f32 %v12031_v22, %v4097_v5  ;;  %v4099_v34 = vpop.f32.mrb[165].mxu0  ;;  %v4507_v16 = vsel %vm1355_vm4, %v4406_v63, 0.0  ;;  %v12037_v27 = vpop.eup %12036  ;;  %v16780_v13 = vld [vmem:[#allocation67_spill] sm:$0xff] }
 0x574   : > { %v3877_v10 = vpop.f32.mrb[166].mxu1  ;;  %v4509_v53 = vadd.f32 %v4508_v32, %v4507_v16  ;;  %v12039_v30 = vpop.eup %12038  ;;  %12056 = vrcp.f32 %v14854_v4 }
 0x575   : > { %v4441_v55 = vsel %vm1355_vm4, %v4376_v6, 0.0  ;;  %v4313_v57 = vmul.f32 %v12033_v9, %v3877_v10  ;;  %v3879_v23 = vpop.f32.mrb[167].mxu1  ;;  %v4408_v45 = vadd.f32 %v4344_v54, %v16776_v21  ;;  %v12041_v7 = vpop.eup %12040  ;;  %v12642_v10 = vmov 0.0  }
 0x576   : > { %v4442_v38 = vadd.f32 %v4441_v55, %v14846_v8  ;;  %v4102_v48 = vpop.f32.mrb[166].mxu0  ;;  %v14903_v24 = vpop.xlane.xlu0 %3653  ;;  %4586 = vst [vmem:[#allocation3] sm:$0xff] %v12642_v10  ;;  %4587 = vst [vmem:[#allocation3 + $0x8] sm:$0xff] %v12642_v10  ;;  %12058 = vrcp.f32 %v14866_v2 }
 0x577   : > { %v4377_v61 = vadd.f32 %v4313_v57, %v16777_v56  ;;  %v4345_v15 = vmul.f32 %v12035_v0, %v4102_v48  ;;  %v4104_v31 = vpop.f32.mrb[167].mxu0  ;;  %v4510_v50 = vsel %vm1355_vm4, %v4408_v45, 0.0  ;;  %v12043_v63 = vpop.eup %12042  ;;  %4588 = vst [vmem:[#allocation3 + $0x10] sm:$0xff] %v12642_v10  ;;  %4589 = vst [vmem:[#allocation3 + $0x18] sm:$0xff] %v12642_v10  ;;  %v16782_v48 = vld [vmem:[#allocation66_spill] sm:$0xff]  ;;  %12060 = vrcp.f32 %v14858_v62 }
 0x578   : > { %v3882_v49 = vpop.f32.mrb[168].mxu1  ;;  %v4511_v40 = vadd.f32 %v4510_v50, %v4509_v53  ;;  %v14908_v54 = vpop.xlane.xlu1 %3749  ;;  %v16783_v31 = vld [vmem:[#allocation38_spill] sm:$0xff]  ;;  %12062 = vrcp.f32 %v14870_v46  ;;  %v16787_v46 = vld [vmem:[#allocation40_spill] sm:$0xff] }
 0x579   : > { %v4443_v1 = vsel %vm1355_vm4, %v4377_v61, 0.0  ;;  %v4314_v42 = vmul.f32 %v12037_v27, %v3882_v49  ;;  %v3884_v8 = vpop.f32.mrb[169].mxu1  ;;  %v4409_v51 = vadd.f32 %v4345_v15, %v16778_v52  ;;  %v12045_v55 = vpop.eup %12044  ;;  %12064 = vrcp.f32 %v14862_v11 }
 0x57a   : > { %v4444_v25 = vadd.f32 %v4443_v1, %v4442_v38  ;;  %v4107_v29 = vpop.f32.mrb[168].mxu0  ;;  %v12047_v21 = vpop.eup %12046  ;;  %12066 = vrcp.f32 %v14876_v3 }
 0x57b   : > { %v4378_v37 = vadd.f32 %v4314_v42, %v16779_v58  ;;  %v4346_v39 = vmul.f32 %v12039_v30, %v4107_v29  ;;  %v4109_v41 = vpop.f32.mrb[169].mxu0  ;;  %v4512_v43 = vsel %vm1355_vm4, %v4409_v51, 0.0  ;;  %v14916_v15 = vpop.xlane.xlu0 %3656  ;;  %v16784_v29 = vld [vmem:[#allocation75_spill] sm:$0xff]  ;;  %12068 = vrcp.f32 %v14864_v17 }
 0x57c   : > { %v3887_v60 = vpop.f32.mrb[170].mxu1  ;;  %v4513_v22 = vadd.f32 %v4512_v43, %v4511_v40  ;;  %v12049_v49 = vpop.eup %12048  ;;  %12070 = vrcp.f32 %v14878_v18 }
 0x57d   : > { %v4445_v20 = vsel %vm1355_vm4, %v4378_v37, 0.0  ;;  %v4315_v59 = vmul.f32 %v12041_v7, %v3887_v60  ;;  %v3889_v47 = vpop.f32.mrb[171].mxu1  ;;  %v4410_v6 = vadd.f32 %v4346_v39, %v16780_v13  ;;  %v14921_v42 = vpop.xlane.xlu1 %3752  ;;  %v16785_v39 = vld [vmem:[#allocation39_spill] sm:$0xff]  ;;  %12072 = vrcp.f32 %v14868_v44 }
 0x57e   : > { %v4446_v5 = vadd.f32 %v4445_v20, %v4444_v25  ;;  %v4112_v32 = vpop.f32.mrb[170].mxu0  ;;  %v12051_v52 = vpop.eup %12050  ;;  %12074 = vrcp.f32 %v14880_v35  ;;  %v16793_v35 = vld [vmem:[#allocation43_spill] sm:$0xff] }
 0x57f   : > { %v4379_v34 = vadd.f32 %v4315_v59, %v16781_v36  ;;  %v4347_v9 = vmul.f32 %v12043_v63, %v4112_v32  ;;  %v4114_v16 = vpop.f32.mrb[171].mxu0  ;;  %v4514_v28 = vsel %vm1355_vm4, %v4410_v6, 0.0  ;;  %v12053_v43 = vpop.eup %12052  ;;  %v16786_v6 = vld [vmem:[#allocation72_spill] sm:$0xff]  ;;  %12076 = vrcp.f32 %v14872_v26 }
 0x580   : > { %v3892_v53 = vpop.f32.mrb[172].mxu1  ;;  %v4515_v23 = vadd.f32 %v4514_v28, %v4513_v22  ;;  %v14929_v22 = vpop.xlane.xlu0 %3659  ;;  %12078 = vrcp.f32 %v14884_v33 }
 0x581   : > { %v4447_v57 = vsel %vm1355_vm4, %v4379_v34, 0.0  ;;  %v4316_v0 = vmul.f32 %v12045_v55, %v3892_v53  ;;  %v3894_v38 = vpop.f32.mrb[173].mxu1  ;;  %v4411_v56 = vadd.f32 %v4347_v9, %v16782_v48  ;;  %v14934_v34 = vpop.xlane.xlu1 %3755  ;;  %12080 = vrcp.f32 %v14874_v19 }
 0x582   : > { %v4448_v45 = vadd.f32 %v4447_v57, %v4446_v5  ;;  %v4117_v61 = vpop.f32.mrb[172].mxu0  ;;  %v12055_v5 = vpop.eup %12054  ;;  %12082 = vrcp.f32 %v14895_v14 }
 0x583   : > { %v4380_v27 = vadd.f32 %v4316_v0, %v16783_v31  ;;  %v4348_v12 = vmul.f32 %v12047_v21, %v4117_v61  ;;  %v4119_v50 = vpop.f32.mrb[173].mxu0  ;;  %v4516_v1 = vsel %vm1355_vm4, %v4411_v56, 0.0  ;;  %v12057_v55 = vpop.eup %12056  ;;  %v16789_v31 = vld [vmem:[#allocation41_spill] sm:$0xff]  ;;  %12084 = vrcp.f32 %v14903_v24 }
 0x584   : > { %v3897_v40 = vpop.f32.mrb[174].mxu1  ;;  %v4517_v8 = vadd.f32 %v4516_v1, %v4515_v23  ;;  %v12059_v38 = vpop.eup %12058  ;;  %12086 = vrcp.f32 %v14908_v54  ;;  %v16799_v54 = vld [vmem:[#allocation46_spill] sm:$0xff] }
 0x585   : > { %v4449_v4 = vsel %vm1355_vm4, %v4380_v27, 0.0  ;;  %v4317_v30 = vmul.f32 %v12049_v49, %v3897_v40  ;;  %v3899_v25 = vpop.f32.mrb[175].mxu1  ;;  %v4412_v58 = vadd.f32 %v4348_v12, %v16784_v29  ;;  %v14942_v61 = vpop.xlane.xlu0 %3662  ;;  %12088 = vrcp.f32 %v14916_v15 }
 0x586   : > { %v4450_v51 = vadd.f32 %v4449_v4, %v4448_v45  ;;  %v4122_v37 = vpop.f32.mrb[174].mxu0  ;;  %v16788_v45 = vld [vmem:[#allocation85_spill] sm:$0xff]  ;;  %v12061_v50 = vpop.eup %12060  ;;  %12090 = vrcp.f32 %v14921_v42 }
 0x587   : > { %v4381_v41 = vadd.f32 %v4317_v30, %v16785_v39  ;;  %v4349_v2 = vmul.f32 %v12051_v52, %v4122_v37  ;;  %v4124_v7 = vpop.f32.mrb[175].mxu0  ;;  %v4518_v60 = vsel %vm1355_vm4, %v4412_v58, 0.0  ;;  %v14947_v40 = vpop.xlane.xlu1 %3758  ;;  %v16791_v37 = vld [vmem:[#allocation42_spill] sm:$0xff]  ;;  %12092 = vrcp.f32 %v14929_v22 }
 0x588   : > { %v3902_v20 = vpop.f32.mrb[176].mxu1  ;;  %v4519_v47 = vadd.f32 %v4518_v60, %v4517_v8  ;;  %v12063_v25 = vpop.eup %12062  ;;  %12094 = vrcp.f32 %v14934_v34 }
 0x589   : > { %v4451_v59 = vsel %vm1355_vm4, %v4381_v41, 0.0  ;;  %v4318_v62 = vmul.f32 %v12053_v43, %v3902_v20  ;;  %v3904_v63 = vpop.f32.mrb[177].mxu1  ;;  %v4413_v32 = vadd.f32 %v4349_v2, %v16786_v6  ;;  %v12065_v2 = vpop.eup %12064  ;;  %12096 = vrcp.f32 %v14942_v61 }
 0x58a   : > { %v4452_v13 = vadd.f32 %v4451_v59, %v4450_v51  ;;  %v4127_v36 = vpop.f32.mrb[176].mxu0  ;;  %v16790_v51 = vld [vmem:[#allocation82_spill] sm:$0xff]  ;;  %v14955_v60 = vpop.xlane.xlu0 %3665 }
 0x58b   : > { %v4382_v9 = vadd.f32 %v4318_v62, %v16787_v46  ;;  %v4350_v16 = vmul.f32 %v12055_v5, %v4127_v36  ;;  %v4129_v10 = vpop.f32.mrb[177].mxu0  ;;  %v4520_v28 = vsel %vm1355_vm4, %v4413_v32, 0.0  ;;  %v12067_v62 = vpop.eup %12066  ;;  %v16792_v5 = vld [vmem:[#allocation89_spill] sm:$0xff]  ;;  %12098 = vrcp.f32 %v14947_v40 }
 0x58c   : > { %v3907_v53 = vpop.f32.mrb[178].mxu1  ;;  %v4521_v23 = vadd.f32 %v4520_v28, %v4519_v47  ;;  %v14960_v32 = vpop.xlane.xlu1 %3761 }
 0x58d   : > { %v4453_v57 = vsel %vm1355_vm4, %v4382_v9, 0.0  ;;  %v4319_v11 = vmul.f32 %v12057_v55, %v3907_v53  ;;  %v3909_v0 = vpop.f32.mrb[179].mxu1  ;;  %v4414_v48 = vadd.f32 %v4350_v16, %v16788_v45  ;;  %v12069_v16 = vpop.eup %12068  ;;  %12100 = vrcp.f32 %v14955_v60 }
 0x58e   : > { %v4454_v21 = vadd.f32 %v4453_v57, %v4452_v13  ;;  %v4132_v56 = vpop.f32.mrb[178].mxu0  ;;  %v16794_v0 = vld [vmem:[#allocation86_spill] sm:$0xff]  ;;  %v14968_v45 = vpop.xlane.xlu0 %3668 }
 0x58f   : > { %v4383_v27 = vadd.f32 %v4319_v11, %v16789_v31  ;;  %v4351_v3 = vmul.f32 %v12059_v38, %v4132_v56  ;;  %v4134_v12 = vpop.f32.mrb[179].mxu0  ;;  %v4522_v49 = vsel %vm1355_vm4, %v4414_v48, 0.0  ;;  %v16795_v48 = vld [vmem:[#allocation44_spill] sm:$0xff] }
 0x590   : > { %v3912_v1 = vpop.f32.mrb[180].mxu1  ;;  %v4523_v4 = vadd.f32 %v4522_v49, %v4521_v23  ;;  %v12071_v23 = vpop.eup %12070  ;;  %12102 = vrcp.f32 %v14960_v32 }
 0x591   : > { %v4455_v17 = vsel %vm1355_vm4, %v4383_v27, 0.0  ;;  %v4320_v8 = vmul.f32 %v12061_v50, %v3912_v1  ;;  %v3914_v30 = vpop.f32.mrb[181].mxu1  ;;  %v4415_v29 = vadd.f32 %v4351_v3, %v16790_v51  ;;  %v12073_v27 = vpop.eup %12072  ;;  %v16797_v51 = vld [vmem:[#allocation45_spill] sm:$0xff]  ;;  %12104 = vrcp.f32 %v14968_v45 }
 0x592   : > { %v4456_v52 = vadd.f32 %v4455_v17, %v4454_v21  ;;  %v4137_v58 = vpop.f32.mrb[180].mxu0  ;;  %v14973_v50 = vpop.xlane.xlu1 %3764  ;;  %v16796_v30 = vld [vmem:[#allocation93_spill] sm:$0xff] }
 0x593   : > { %v4384_v39 = vadd.f32 %v4320_v8, %v16791_v37  ;;  %v4352_v18 = vmul.f32 %v12063_v25, %v4137_v58  ;;  %v4139_v41 = vpop.f32.mrb[181].mxu0  ;;  %v4524_v7 = vsel %vm1355_vm4, %v4415_v29, 0.0 }
 0x594   : > { %v3917_v43 = vpop.f32.mrb[182].mxu1  ;;  %v4525_v59 = vadd.f32 %v4524_v7, %v4523_v4  ;;  %v12075_v4 = vpop.eup %12074  ;;  %12106 = vrcp.f32 %v14973_v50 }
 0x595   : > { %v4457_v20 = vsel %vm1355_vm4, %v4384_v39, 0.0  ;;  %v4321_v44 = vmul.f32 %v12065_v2, %v3917_v43  ;;  %v3919_v47 = vpop.f32.mrb[183].mxu1  ;;  %v4416_v13 = vadd.f32 %v4352_v18, %v16792_v5  ;;  %v12077_v37 = vpop.eup %12076 }
 0x596   : > { %v4458_v63 = vadd.f32 %v4457_v20, %v4456_v52  ;;  %v4142_v6 = vpop.f32.mrb[182].mxu0  ;;  %v14981_v41 = vpop.xlane.xlu0 %3671 }
 0x597   : > { %v4385_v36 = vadd.f32 %v4321_v44, %v16793_v35  ;;  %v4353_v46 = vmul.f32 %v12067_v62, %v4142_v6  ;;  %v4144_v9 = vpop.f32.mrb[183].mxu0  ;;  %v4526_v10 = vsel %vm1355_vm4, %v4416_v13, 0.0  ;;  %v12079_v20 = vpop.eup %12078  ;;  %v16798_v44 = vld [vmem:[#allocation90_spill] sm:$0xff]  ;;  %12108 = vrcp.f32 %v14981_v41 }
 0x598   : > { %v3922_v55 = vpop.f32.mrb[184].mxu1  ;;  %v4527_v53 = vadd.f32 %v4526_v10, %v4525_v59  ;;  %v12081_v35 = vpop.eup %12080 }
 0x599   : > { %v4459_v28 = vsel %vm1355_vm4, %v4385_v36, 0.0  ;;  %v4322_v26 = vmul.f32 %v12069_v16, %v3922_v55  ;;  %v3924_v57 = vpop.f32.mrb[185].mxu1  ;;  %v4417_v38 = vadd.f32 %v4353_v46, %v16794_v0  ;;  %v12083_v55 = vpop.eup %12082 }
 0x59a   : > { %v4460_v11 = vadd.f32 %v4459_v28, %v4458_v63  ;;  %v4147_v21 = vpop.f32.mrb[184].mxu0  ;;  %v14986_v63 = vpop.xlane.xlu1 %3767 }
 0x59b   : > { %v4386_v56 = vadd.f32 %v4322_v26, %v16795_v48  ;;  %v4354_v33 = vmul.f32 %v12071_v23, %v4147_v21  ;;  %v4149_v31 = vpop.f32.mrb[185].mxu0  ;;  %v4528_v3 = vsel %vm1355_vm4, %v4417_v38, 0.0  ;;  %v14994_v23 = vpop.xlane.xlu0 %3674  ;;  %12110 = vrcp.f32 %v14986_v63 }
 0x59c   : > { %v3927_v12 = vpop.f32.mrb[186].mxu1  ;;  %v4529_v49 = vadd.f32 %v4528_v3, %v4527_v53  ;;  %v16800_v53 = vld [vmem:[#allocation95_spill] sm:$0xff]  ;;  %v12085_v21 = vpop.eup %12084  ;;  %v16802_v3 = vld [vmem:[#allocation94_spill] sm:$0xff]  ;;  %12112 = vrcp.f32 %v14994_v23 }
 0x59d   : > { %v4461_v19 = vsel %vm1355_vm4, %v4386_v56, 0.0  ;;  %v4323_v1 = vmul.f32 %v12073_v27, %v3927_v12  ;;  %v3929_v17 = vpop.f32.mrb[187].mxu1  ;;  %v4418_v25 = vadd.f32 %v4354_v33, %v16796_v30 }
 0x59e   : > { %v4462_v8 = vadd.f32 %v4461_v19, %v4460_v11  ;;  %v4152_v52 = vpop.f32.mrb[186].mxu0  ;;  %v16801_v11 = vld [vmem:[#allocation48_spill] sm:$0xff]  ;;  %v14999_v33 = vpop.xlane.xlu1 %3770 }
 0x59f   : > { %v4387_v29 = vadd.f32 %v4323_v1, %v16797_v51  ;;  %v4355_v14 = vmul.f32 %v12075_v4, %v4152_v52  ;;  %v4154_v58 = vpop.f32.mrb[187].mxu0  ;;  %v4530_v39 = vsel %vm1355_vm4, %v4418_v25, 0.0  ;;  %v16803_v4 = vld [vmem:[#allocation52_spill] sm:$0xff]  ;;  %12114 = vrcp.f32 %v14999_v33 }
 0x5a0   : > { %v3932_v18 = vpop.f32.mrb[188].mxu1  ;;  %v4531_v7 = vadd.f32 %v4530_v39, %v4529_v49  ;;  %v12087_v49 = vpop.eup %12086  ;;  %v16804_v39 = vld [vmem:[#allocation53_spill] sm:$0xff] }
 0x5a1   : > { %v4463_v2 = vsel %vm1355_vm4, %v4387_v29, 0.0  ;;  %v4324_v24 = vmul.f32 %v12077_v37, %v3932_v18  ;;  %v3934_v43 = vpop.f32.mrb[189].mxu1  ;;  %v4419_v47 = vadd.f32 %v4355_v14, %v16798_v44  ;;  %v12089_v52 = vpop.eup %12088 }
 0x5a2   : > { %v4464_v59 = vadd.f32 %v4463_v2, %v4462_v8  ;;  %v4157_v62 = vpop.f32.mrb[188].mxu0  ;;  %v15007_v14 = vpop.xlane.xlu0 %3677 }
 0x5a3   : > { %v4388_v5 = vadd.f32 %v4324_v24, %v16799_v54  ;;  %v4356_v13 = vmul.f32 %v12079_v20, %v4157_v62  ;;  %v4159_v6 = vpop.f32.mrb[189].mxu0  ;;  %v4532_v36 = vsel %vm1355_vm4, %v4419_v47, 0.0  ;;  %v12091_v2 = vpop.eup %12090  ;;  %v16805_v20 = vld [vmem:[#allocation50_spill] sm:$0xff]  ;;  %12116 = vrcp.f32 %v15007_v14 }
 0x5a4   : > { %v3937_v46 = vpop.f32.mrb[190].mxu1  ;;  %v4533_v16 = vadd.f32 %v4532_v36, %v4531_v7  ;;  %v15012_v43 = vpop.xlane.xlu1 %3773 }
 0x5a5   : > { %v4465_v9 = vsel %vm1355_vm4, %v4388_v5, 0.0  ;;  %v4325_v15 = vmul.f32 %v12081_v35, %v3937_v46  ;;  %v3939_v10 = vpop.f32.mrb[191].mxu1  ;;  %v4420_v26 = vadd.f32 %v4356_v13, %v16800_v53  ;;  %v12093_v62 = vpop.eup %12092  ;;  %v16806_v35 = vld [vmem:[#allocation51_spill] sm:$0xff]  ;;  %12118 = vrcp.f32 %v15012_v43 }
 0x5a6   : > { %v4466_v28 = vadd.f32 %v4465_v9, %v4464_v59  ;;  %v4162_v57 = vpop.f32.mrb[190].mxu0  ;;  %v12095_v46 = vpop.eup %12094  ;;  %v16807_v10 = vld [vmem:[#allocation56_spill] sm:$0xff] }
 0x5a7   : > { %v4389_v0 = vadd.f32 %v4325_v15, %v16801_v11  ;;  %v4357_v42 = vmul.f32 %v12083_v55, %v4162_v57  ;;  %v4164_v38 = vpop.f32.mrb[191].mxu0  ;;  %v4534_v48 = vsel %vm1355_vm4, %v4420_v26, 0.0  ;;  %v15020_v15 = vpop.xlane.xlu0 %3680 }
 0x5a8   : > { %v3942_v56 = vpop.f32.mrb[192].mxu1  ;;  %v4535_v31 = vadd.f32 %v4534_v48, %v4533_v16  ;;  %v12097_v26 = vpop.eup %12096  ;;  %v16808_v38 = vld [vmem:[#allocation58_spill] sm:$0xff]  ;;  %12120 = vrcp.f32 %v15020_v15 }
 0x5a9   : > { %v4467_v22 = vsel %vm1355_vm4, %v4389_v0, 0.0  ;;  %v4326_v27 = vmul.f32 %v12085_v21, %v3942_v56  ;;  %v4421_v12 = vadd.f32 %v4357_v42, %v16802_v3  ;;  %v3944_v19 = vpop.f32.mrb[193].mxu1  ;;  %v15025_v0 = vpop.xlane.xlu1 %3776 }
 0x5aa   : > { %v4468_v1 = vadd.f32 %v4467_v22, %v4466_v28  ;;  %v4167_v17 = vpop.f32.mrb[192].mxu0  ;;  %v12099_v56 = vpop.eup %12098  ;;  %12122 = vrcp.f32 %v15025_v0 }
 0x5ab   : > { %v4390_v8 = vadd.f32 %v4326_v27, %v16803_v4  ;;  %v4536_v34 = vsel %vm1355_vm4, %v4421_v12, 0.0  ;;  %v4358_v30 = vmul.f32 %v12087_v49, %v4167_v17  ;;  %v4169_v25 = vpop.f32.mrb[193].mxu0  ;;  %v16809_v27 = vld [vmem:[#allocation54_spill] sm:$0xff]  ;;  %v12101_v49 = vpop.eup %12100 }
 0x5ac   : > { %v4537_v51 = vadd.f32 %v4536_v34, %v4535_v31  ;;  %v3947_v29 = vpop.f32.mrb[194].mxu1  ;;  %v3684_v4 = vpop.xlane.xlu0 %3683 }
 0x5ad   : > { %v4469_v58 = vsel %vm1355_vm4, %v4390_v8, 0.0  ;;  %v4327_v37 = vmul.f32 %v12089_v52, %v3947_v29  ;;  %v4422_v61 = vadd.f32 %v4358_v30, %v16804_v39  ;;  %v3949_v18 = vpop.f32.mrb[195].mxu1  ;;  %v16810_v30 = vld [vmem:[#allocation55_spill] sm:$0xff]  ;;  %v12103_v52 = vpop.eup %12102  ;;  %12124 = vrcp.f32 %v3684_v4 }
 0x5ae   : > { %v4470_v7 = vadd.f32 %v4469_v58, %v4468_v1  ;;  %v4172_v24 = vpop.f32.mrb[194].mxu0  ;;  %v3780_v58 = vpop.xlane.xlu1 %3779 }
 0x5af   : > { %v4391_v59 = vadd.f32 %v4327_v37, %v16805_v20  ;;  %v4538_v40 = vsel %vm1355_vm4, %v4422_v61, 0.0  ;;  %v4359_v44 = vmul.f32 %v12091_v2, %v4172_v24  ;;  %v4174_v47 = vpop.f32.mrb[195].mxu0  ;;  %v16811_v37 = vld [vmem:[#allocation60_spill] sm:$0xff]  ;;  %v12105_v2 = vpop.eup %12104  ;;  %12126 = vrcp.f32 %v3780_v58 }
 0x5b0   : > { %v4539_v54 = vadd.f32 %v4538_v40, %v4537_v51  ;;  %v3952_v5 = vpop.f32.mrb[196].mxu1  ;;  %v16812_v40 = vld [vmem:[#allocation62_spill] sm:$0xff]  ;;  %v12107_v47 = vpop.eup %12106 }
 0x5b1   : > { %v4471_v13 = vsel %vm1355_vm4, %v4391_v59, 0.0  ;;  %v4328_v6 = vmul.f32 %v12093_v62, %v3952_v5  ;;  %v4423_v60 = vadd.f32 %v4359_v44, %v16806_v35  ;;  %v3954_v36 = vpop.f32.mrb[197].mxu1  ;;  %v3687_v5 = vpop.xlane.xlu0 %3686 }
 0x5b2   : > { %v4472_v9 = vadd.f32 %v4471_v13, %v4470_v7  ;;  %v4177_v16 = vpop.f32.mrb[196].mxu0  ;;  %v16813_v13 = vld [vmem:[#allocation63_spill] sm:$0xff]  ;;  %v12109_v36 = vpop.eup %12108  ;;  %12128 = vrcp.f32 %v3687_v5 }
 0x5b3   : > { %v4392_v55 = vadd.f32 %v4328_v6, %v16807_v10  ;;  %v4540_v28 = vsel %vm1355_vm4, %v4423_v60, 0.0  ;;  %v4360_v32 = vmul.f32 %v12095_v46, %v4177_v16  ;;  %v4179_v53 = vpop.f32.mrb[197].mxu0  ;;  %v3783_v16 = vpop.xlane.xlu1 %3782 }
 0x5b4   : > { %v4541_v57 = vadd.f32 %v4540_v28, %v4539_v54  ;;  %v3957_v11 = vpop.f32.mrb[198].mxu1  ;;  %v16814_v28 = vld [vmem:[#allocation61_spill] sm:$0xff]  ;;  %v12111_v53 = vpop.eup %12110  ;;  %12130 = vrcp.f32 %v3783_v16 }
 0x5b5   : > { %v4473_v42 = vsel %vm1355_vm4, %v4392_v55, 0.0  ;;  %v4329_v45 = vmul.f32 %v12097_v26, %v3957_v11  ;;  %v4424_v21 = vadd.f32 %v4360_v32, %v16808_v38  ;;  %v3959_v48 = vpop.f32.mrb[199].mxu1  ;;  %v16815_v11 = vld [vmem:[#allocation64_spill] sm:$0xff] }
 0x5b6   : > { %v4474_v22 = vadd.f32 %v4473_v42, %v4472_v9  ;;  %v4182_v31 = vpop.f32.mrb[198].mxu0 }
 0x5b7   : > { %v4393_v3 = vadd.f32 %v4329_v45, %v16809_v27  ;;  %v4542_v12 = vsel %vm1355_vm4, %v4424_v21, 0.0  ;;  %v4361_v50 = vmul.f32 %v12099_v56, %v4182_v31  ;;  %v4184_v19 = vpop.f32.mrb[199].mxu0  ;;  %v12113_v21 = vpop.eup %12112 }
 0x5b8   : > { %v4543_v1 = vadd.f32 %v4542_v12, %v4541_v57  ;;  %v3962_v17 = vpop.f32.mrb[200].mxu1 }
 0x5b9   : > { %v4475_v8 = vsel %vm1355_vm4, %v4393_v3, 0.0  ;;  %v4330_v34 = vmul.f32 %v12101_v49, %v3962_v17  ;;  %v4425_v25 = vadd.f32 %v4361_v50, %v16810_v30  ;;  %v3964_v41 = vpop.f32.mrb[201].mxu1  ;;  %v16816_v3 = vld [vmem:[#allocation70_spill] sm:$0xff]  ;;  %v12115_v50 = vpop.eup %12114  ;;  %v16817_v17 = vld [vmem:[#allocation65_spill] sm:$0xff] }
 0x5ba   : > { %v4476_v51 = vadd.f32 %v4475_v8, %v4474_v22  ;;  %v4187_v29 = vpop.f32.mrb[200].mxu0  ;;  %v3690_v22 = vpop.xlane.xlu0 %3689 }
 0x5bb   : > { %v4394_v39 = vadd.f32 %v4330_v34, %v16811_v37  ;;  %v4544_v61 = vsel %vm1355_vm4, %v4425_v25, 0.0  ;;  %v4362_v63 = vmul.f32 %v12103_v52, %v4187_v29  ;;  %v4189_v18 = vpop.f32.mrb[201].mxu0  ;;  %v12117_v25 = vpop.eup %12116  ;;  %v16818_v37 = vld [vmem:[#allocation69_spill] sm:$0xff]  ;;  %12132 = vrcp.f32 %v3690_v22 }
 0x5bc   : > { %v4545_v7 = vadd.f32 %v4544_v61, %v4543_v1  ;;  %v3967_v24 = vpop.f32.mrb[202].mxu1  ;;  %v3786_v1 = vpop.xlane.xlu1 %3785 }
 0x5bd   : > { %v4477_v20 = vsel %vm1355_vm4, %v4394_v39, 0.0  ;;  %v4331_v59 = vmul.f32 %v12105_v2, %v3967_v24  ;;  %v4426_v44 = vadd.f32 %v4362_v63, %v16812_v40  ;;  %v3969_v23 = vpop.f32.mrb[203].mxu1  ;;  %v12119_v4 = vpop.eup %12118  ;;  %12134 = vrcp.f32 %v3786_v1 }
 0x5be   : > { %v4478_v62 = vadd.f32 %v4477_v20, %v4476_v51  ;;  %v4192_v54 = vpop.f32.mrb[202].mxu0  ;;  %v3693_v2 = vpop.xlane.xlu0 %3692 }
 0x5bf   : > { %v4395_v6 = vadd.f32 %v4331_v59, %v16813_v13  ;;  %v4546_v35 = vsel %vm1355_vm4, %v4426_v44, 0.0  ;;  %v4363_v60 = vmul.f32 %v12107_v47, %v4192_v54  ;;  %v4194_v33 = vpop.f32.mrb[203].mxu0  ;;  %v12121_v58 = vpop.eup %12120  ;;  %v16820_v13 = vld [vmem:[#allocation79_spill] sm:$0xff]  ;;  %12136 = vrcp.f32 %v3693_v2 }
 0x5c0   : > { %v4547_v46 = vadd.f32 %v4546_v35, %v4545_v7  ;;  %v3972_v9 = vpop.f32.mrb[204].mxu1  ;;  %v16819_v7 = vld [vmem:[#allocation68_spill] sm:$0xff]  ;;  %v3789_v47 = vpop.xlane.xlu1 %3788  ;;  %v16826_v2 = vld [vmem:[#allocation83_spill] sm:$0xff] }
 0x5c1   : > { %v4479_v10 = vsel %vm1355_vm4, %v4395_v6, 0.0  ;;  %v4332_v55 = vmul.f32 %v12109_v36, %v3972_v9  ;;  %v4427_v14 = vadd.f32 %v4363_v60, %v16814_v28  ;;  %v3974_v32 = vpop.f32.mrb[205].mxu1  ;;  %v12123_v35 = vpop.eup %12122  ;;  %v16821_v36 = vld [vmem:[#allocation71_spill] sm:$0xff]  ;;  %12138 = vrcp.f32 %v3789_v47 }
 0x5c2   : > { %v4480_v26 = vadd.f32 %v4479_v10, %v4478_v62  ;;  %v4197_v57 = vpop.f32.mrb[204].mxu0  ;;  %v12125_v16 = vpop.eup %12124 }
 0x5c3   : > { %v4396_v42 = vadd.f32 %v4332_v55, %v16815_v11  ;;  %v4548_v45 = vsel %vm1355_vm4, %v4427_v14, 0.0  ;;  %v4364_v38 = vmul.f32 %v12111_v53, %v4197_v57  ;;  %v4199_v43 = vpop.f32.mrb[205].mxu0  ;;  %v3696_v32 = vpop.xlane.xlu0 %3695  ;;  %v16822_v57 = vld [vmem:[#allocation77_spill] sm:$0xff] }
 0x5c4   : > { %v4549_v48 = vadd.f32 %v4548_v45, %v4547_v46  ;;  %v3977_v56 = vpop.f32.mrb[206].mxu1  ;;  %v12127_v45 = vpop.eup %12126  ;;  %12140 = vrcp.f32 %v3696_v32 }
 0x5c5   : > { %v4481_v31 = vsel %vm1355_vm4, %v4396_v42, 0.0  ;;  %v4333_v27 = vmul.f32 %v12113_v21, %v3977_v56  ;;  %v4428_v12 = vadd.f32 %v4364_v38, %v16816_v3  ;;  %v3979_v15 = vpop.f32.mrb[207].mxu1  ;;  %v3792_v21 = vpop.xlane.xlu1 %3791 }
 0x5c6   : > { %v4482_v19 = vadd.f32 %v4481_v31, %v4480_v26  ;;  %v4202_v49 = vpop.f32.mrb[206].mxu0  ;;  %v12129_v3 = vpop.eup %12128  ;;  %12142 = vrcp.f32 %v3792_v21 }
 0x5c7   : > { %v4397_v8 = vadd.f32 %v4333_v27, %v16817_v17  ;;  %v4550_v34 = vsel %vm1355_vm4, %v4428_v12, 0.0  ;;  %v4365_v30 = vmul.f32 %v12115_v50, %v4202_v49  ;;  %v4204_v0 = vpop.f32.mrb[207].mxu0  ;;  %v16824_v49 = vld [vmem:[#allocation84_spill] sm:$0xff] }
 0x5c8   : > { %v4551_v41 = vadd.f32 %v4550_v34, %v4549_v48  ;;  %v3982_v52 = vpop.f32.mrb[208].mxu1  ;;  %v16823_v48 = vld [vmem:[#allocation73_spill] sm:$0xff]  ;;  %v3699_v0 = vpop.xlane.xlu0 %3698 }
 0x5c9   : > { %v4483_v51 = vsel %vm1355_vm4, %v4397_v8, 0.0  ;;  %v4334_v29 = vmul.f32 %v12117_v25, %v3982_v52  ;;  %v4429_v39 = vadd.f32 %v4365_v30, %v16818_v37  ;;  %v3984_v61 = vpop.f32.mrb[209].mxu1  ;;  %v12131_v8 = vpop.eup %12130  ;;  %v16825_v25 = vld [vmem:[#allocation74_spill] sm:$0xff]  ;;  %12144 = vrcp.f32 %v3699_v0 }
 0x5ca   : > { %v4484_v63 = vadd.f32 %v4483_v51, %v4482_v19  ;;  %v4207_v18 = vpop.f32.mrb[208].mxu0  ;;  %v12133_v37 = vpop.eup %12132 }
 0x5cb   : > { %v4398_v24 = vadd.f32 %v4334_v29, %v16819_v7  ;;  %v4552_v20 = vsel %vm1355_vm4, %v4429_v39, 0.0  ;;  %v4366_v59 = vmul.f32 %v12119_v4, %v4207_v18  ;;  %v4209_v40 = vpop.f32.mrb[209].mxu0  ;;  %v3795_v4 = vpop.xlane.xlu1 %3794 }
 0x5cc   : > { %v4553_v44 = vadd.f32 %v4552_v20, %v4551_v41  ;;  %v3987_v23 = vpop.f32.mrb[210].mxu1  ;;  %v12135_v20 = vpop.eup %12134  ;;  %12146 = vrcp.f32 %v3795_v4  ;;  %v16834_v4 = vld [vmem:[#allocation91_spill] sm:$0xff] }
 0x5cd   : > { %v4485_v62 = vsel %vm1355_vm4, %v4398_v24, 0.0  ;;  %v4335_v54 = vmul.f32 %v12121_v58, %v3987_v23  ;;  %v4430_v6 = vadd.f32 %v4366_v59, %v16820_v13  ;;  %v3989_v5 = vpop.f32.mrb[211].mxu1  ;;  %v16827_v58 = vld [vmem:[#allocation76_spill] sm:$0xff] }
 0x5ce   : > { %v4486_v60 = vadd.f32 %v4485_v62, %v4484_v63  ;;  %v4212_v33 = vpop.f32.mrb[210].mxu0 }
 0x5cf   : > { %v4399_v46 = vadd.f32 %v4335_v54, %v16821_v36  ;;  %v4554_v9 = vsel %vm1355_vm4, %v4430_v6, 0.0  ;;  %v4367_v10 = vmul.f32 %v12123_v35, %v4212_v33  ;;  %v4214_v55 = vpop.f32.mrb[211].mxu0  ;;  %v12137_v54 = vpop.eup %12136 }
 0x5d0   : > { %v4555_v28 = vadd.f32 %v4554_v9, %v4553_v44  ;;  %v3992_v14 = vpop.f32.mrb[212].mxu1  ;;  %v16829_v55 = vld [vmem:[#allocation78_spill] sm:$0xff] }
 0x5d1   : > { %v4487_v53 = vsel %vm1355_vm4, %v4399_v46, 0.0  ;;  %v4336_v26 = vmul.f32 %v12125_v16, %v3992_v14  ;;  %v4431_v11 = vadd.f32 %v4367_v10, %v16822_v57  ;;  %v3994_v42 = vpop.f32.mrb[213].mxu1  ;;  %v12139_v46 = vpop.eup %12138 }
 0x5d2   : > { %v4488_v38 = vadd.f32 %v4487_v53, %v4486_v60  ;;  %v4217_v43 = vpop.f32.mrb[212].mxu0  ;;  %v16828_v60 = vld [vmem:[#allocation88_spill] sm:$0xff]  ;;  %v12141_v53 = vpop.eup %12140 }
 0x5d3   : > { %v4400_v56 = vadd.f32 %v4336_v26, %v16823_v48  ;;  %v4556_v22 = vsel %vm1355_vm4, %v4431_v11, 0.0  ;;  %v4368_v31 = vmul.f32 %v12127_v45, %v4217_v43  ;;  %v4219_v27 = vpop.f32.mrb[213].mxu0  ;;  %v16830_v45 = vld [vmem:[#allocation87_spill] sm:$0xff]  ;;  %v12143_v21 = vpop.eup %12142 }
 0x5d4   : > { %v4557_v12 = vadd.f32 %v4556_v22, %v4555_v28  ;;  %v3997_v15 = vpop.f32.mrb[214].mxu1  ;;  %v16831_v22 = vld [vmem:[#allocation80_spill] sm:$0xff] }
 0x5d5   : > { %v4489_v50 = vsel %vm1355_vm4, %v4400_v56, 0.0  ;;  %v4337_v19 = vmul.f32 %v12129_v3, %v3997_v15  ;;  %v4432_v1 = vadd.f32 %v4368_v31, %v16824_v49  ;;  %v3999_v17 = vpop.f32.mrb[215].mxu1  ;;  %v12145_v15 = vpop.eup %12144 }
 0x5d6   : > { %v4490_v34 = vadd.f32 %v4489_v50, %v4488_v38  ;;  %v4222_v30 = vpop.f32.mrb[214].mxu0  ;;  %v16832_v17 = vld [vmem:[#allocation92_spill] sm:$0xff] }
 0x5d7   : > { %v4401_v41 = vadd.f32 %v4337_v19, %v16825_v25  ;;  %v4558_v52 = vsel %vm1355_vm4, %v4432_v1, 0.0  ;;  %v4369_v51 = vmul.f32 %v12131_v8, %v4222_v30  ;;  %v4224_v29 = vpop.f32.mrb[215].mxu0  ;;  %v12147_v30 = vpop.eup %12146 }
 0x5d8   : > { %v4559_v39 = vadd.f32 %v4558_v52, %v4557_v12  ;;  %v4002_v61 = vpop.f32.mrb[216].mxu1 }
 0x5d9   : > { %v4491_v63 = vsel %vm1355_vm4, %v4401_v41, 0.0  ;;  %v4338_v18 = vmul.f32 %v12133_v37, %v4002_v61  ;;  %v4433_v7 = vadd.f32 %v4369_v51, %v16826_v2  ;;  %v4004_v24 = vpop.f32.mrb[217].mxu1  ;;  %v16833_v41 = vld [vmem:[#allocation81_spill] sm:$0xff] }
 0x5da   : > { %v4492_v59 = vadd.f32 %v4491_v63, %v4490_v34  ;;  %v4227_v40 = vpop.f32.mrb[216].mxu0 }
 0x5db   : > { %v4402_v44 = vadd.f32 %v4338_v18, %v16827_v58  ;;  %v4560_v23 = vsel %vm1355_vm4, %v4433_v7, 0.0  ;;  %v4370_v47 = vmul.f32 %v12135_v20, %v4227_v40  ;;  %v4229_v62 = vpop.f32.mrb[217].mxu0 }
 0x5dc   : > { %v4561_v13 = vadd.f32 %v4560_v23, %v4559_v39  ;;  %v4007_v6 = vpop.f32.mrb[218].mxu1 }
 0x5dd   : > { %v4493_v5 = vsel %vm1355_vm4, %v4402_v44, 0.0  ;;  %v4339_v35 = vmul.f32 %v12137_v54, %v4007_v6  ;;  %v4434_v33 = vadd.f32 %v4370_v47, %v16828_v60  ;;  %v4009_v36 = vpop.f32.mrb[219].mxu1 }
 0x5de   : > { %v4494_v9 = vadd.f32 %v4493_v5, %v4492_v59  ;;  %v4232_v10 = vpop.f32.mrb[218].mxu0 }
 0x5df   : > { %v4403_v16 = vadd.f32 %v4339_v35, %v16829_v55  ;;  %v4562_v28 = vsel %vm1355_vm4, %v4434_v33, 0.0  ;;  %v4371_v14 = vmul.f32 %v12139_v46, %v4232_v10  ;;  %v4234_v32 = vpop.f32.mrb[219].mxu0 }
 0x5e0   : > { %v4563_v26 = vadd.f32 %v4562_v28, %v4561_v13  ;;  %v4012_v57 = vpop.f32.mrb[220].mxu1 }
 0x5e1   : > { %v4495_v11 = vsel %vm1355_vm4, %v4403_v16, 0.0  ;;  %v4340_v42 = vmul.f32 %v12141_v53, %v4012_v57  ;;  %v4435_v38 = vadd.f32 %v4371_v14, %v16830_v45  ;;  %v4014_v43 = vpop.f32.mrb[221].mxu1 }
 0x5e2   : > { %v4496_v48 = vadd.f32 %v4495_v11, %v4494_v9  ;;  %v4237_v56 = vpop.f32.mrb[220].mxu0 }
 0x5e3   : > { %v4404_v31 = vadd.f32 %v4340_v42, %v16831_v22  ;;  %v4564_v27 = vsel %vm1355_vm4, %v4435_v38, 0.0  ;;  %v4372_v3 = vmul.f32 %v12143_v21, %v4237_v56  ;;  %v4239_v12 = vpop.f32.mrb[221].mxu0 }
 0x5e4   : > { %v4565_v50 = vadd.f32 %v4564_v27, %v4563_v26  ;;  %v4017_v19 = vpop.f32.mrb[222].mxu1 }
 0x5e5   : > { %v4497_v49 = vsel %vm1355_vm4, %v4404_v31, 0.0  ;;  %v4341_v1 = vmul.f32 %v12145_v15, %v4017_v19  ;;  %v4436_v8 = vadd.f32 %v4372_v3, %v16832_v17  ;;  %v4019_v34 = vpop.f32.mrb[223].mxu1 }
 0x5e6   : > { %v4498_v0 = vadd.f32 %v4497_v49, %v4496_v48  ;;  %v4242_v25 = vpop.f32.mrb[222].mxu0 }
 0x5e7   : > { %v4405_v52 = vadd.f32 %v4341_v1, %v16833_v41  ;;  %v4566_v51 = vsel %vm1355_vm4, %v4436_v8, 0.0  ;;  %v4373_v29 = vmul.f32 %v12147_v30, %v4242_v25  ;;  %v4244_v37 = vpop.f32.mrb[223].mxu0 }
 0x5e8   : > { %v4567_v39 = vadd.f32 %v4566_v51, %v4565_v50 }
 0x5e9   : > { %v4499_v61 = vsel %vm1355_vm4, %v4405_v52, 0.0  ;;  %v4437_v63 = vadd.f32 %v4373_v29, %v16834_v4 }
 0x5ea   : > { %v4500_v18 = vadd.f32 %v4499_v61, %v4498_v0 }
 0x5eb   : > { %v4568_v2 = vsel %vm1355_vm4, %v4437_v63, 0.0 }
 0x5ec   : > { %v4501_v7 = vrot.slane %v4500_v18, 4  ;;  %v4569_v24 = vadd.f32 %v4568_v2, %v4567_v39 }
 0x5ee   : > { %v4502_v20 = vadd.f32 %v4501_v7, %v4500_v18  ;;  %v4570_v59 = vrot.slane %v4569_v24, 4 }
 0x5f0   : > { %v4503_v40 = vrot.slane %v4502_v20, 2  ;;  %v4571_v58 = vadd.f32 %v4570_v59, %v4569_v24 }
 0x5f2   : > { %v4504_v44 = vadd.f32 %v4503_v40, %v4502_v20  ;;  %v4572_v23 = vrot.slane %v4571_v58, 2 }
 0x5f4   : > { %v4505_v47 = vrot.slane %v4504_v44, 1  ;;  %v4573_v62 = vadd.f32 %v4572_v23, %v4571_v58 }
 0x5f6   : > { %v4506_v54 = vadd.f32 %v4505_v47, %v4504_v44  ;;  %v4574_v13 = vrot.slane %v4573_v62, 1 }
 0x5f8   : > { %v4575_v6 = vadd.f32 %v4574_v13, %v4573_v62  ;;  %v4577_v5 = vmul.f32 0.00390625, %v4506_v54 }
 0x5fa   : > { %v4578_v35 = vmul.f32 0.00390625, %v4575_v6 }
 0x5fc   : > { %v4582_v60 = vsel %vm4581_vm6, %v4578_v35, %v4577_v5 }
 0x5fd   : > { %4585 = vst.msk [vmem:[#allocation2] sm:$0x3] %vm4584_vm7, %v4582_v60 }
 0x5fe PF: > { %v4592_v33 = vld [vmem:[%s13016_s18] sm:$0xff]  ;;  %v12643_v16 = vmov 0   ;;  %v4593_v28 = vld [vmem:[%s13016_s18 + $0x8] sm:$0xff]  ;;  %v4594_v45 = vld [vmem:[%s13016_s18 + $0x10] sm:$0xff]  ;;  %vm4730_vm8 = vcmask 261120  }
 0x5ff   : > { %v4596_v36 = vld [vmem:[%s13016_s18 + $0x20] sm:$0xff]  ;;  %4766 = vmatprep.mubr.bf16.mxu0 %v12643_v16  ;;  %4807 = vmatprep.mubr.bf16.mxu1 %v12643_v16  ;;  %v4597_v32 = vld [vmem:[%s13016_s18 + $0x28] sm:$0xff]  ;;  %v4598_v38 = vld [vmem:[%s13016_s18 + $0x30] sm:$0xff] }
 0x600   : > { %v4600_v46 = vld [vmem:[%s13016_s18 + $0x40] sm:$0xff]  ;;  %v10237_v9 = vcombine.high %v4592_v33, %v4596_v36  ;;  %v10236_v10 = vcombine.low %v4592_v33, %v4596_v36  ;;  %v4601_v53 = vld [vmem:[%s13016_s18 + $0x48] sm:$0xff]  ;;  %v10239_v57 = vcombine.high %v4593_v28, %v4597_v32  ;;  %v10238_v11 = vcombine.low %v4593_v28, %v4597_v32  ;;  %v4595_v48 = vld [vmem:[%s13016_s18 + $0x18] sm:$0xff] }
 0x601   : > { %v4604_v55 = vld [vmem:[%s13016_s18 + $0x60] sm:$0xff]  ;;  %v4605_v26 = vld [vmem:[%s13016_s18 + $0x68] sm:$0xff]  ;;  %v4599_v56 = vld [vmem:[%s13016_s18 + $0x38] sm:$0xff]  ;;  %v10241_v22 = vcombine.high %v4594_v45, %v4598_v38  ;;  %v10240_v50 = vcombine.low %v4594_v45, %v4598_v38 }
 0x602   : > { %v10245_v14 = vcombine.high %v4600_v46, %v4604_v55  ;;  %4734 = vmatprep.subr.bf16.mxu0 %v10237_v9  ;;  %v10247_v42 = vcombine.high %v4601_v53, %v4605_v26  ;;  %v10244_v43 = vcombine.low %v4600_v46, %v4604_v55  ;;  %4775 = vmatprep.subr.bf16.mxu1 %v10239_v57  ;;  %v4602_v27 = vld [vmem:[%s13016_s18 + $0x50] sm:$0xff]  ;;  %v4603_v19 = vld [vmem:[%s13016_s18 + $0x58] sm:$0xff]  ;;  %v4921_v0 = vld [vmem:[%s13024_s22 + $0x18] sm:$0xff] }
 0x603   : > { %4735 = vmatpush1.bf16.msra.mxu0 %v10236_v10  ;;  %4776 = vmatpush1.bf16.msra.mxu1 %v10238_v11  ;;  %v10246_v31 = vcombine.low %v4601_v53, %v4605_v26  ;;  %v4606_v3 = vld [vmem:[%s13016_s18 + $0x70] sm:$0xff]  ;;  %v10243_v15 = vcombine.high %v4595_v48, %v4599_v56  ;;  %v4607_v49 = vld [vmem:[%s13016_s18 + $0x78] sm:$0xff]  ;;  %v10242_v17 = vcombine.low %v4595_v48, %v4599_v56  ;;  %v5433_v51 = vunpack.c.l.s8.bf16 %v4921_v0  ;;  %v4920_v29 = vld [vmem:[%s13024_s22 + $0x10] sm:$0xff]  ;;  %s16835_s18 = sld [smem:[#allocation28_spill]] }
 0x604   : > { %v4590_v21 = vld [vmem:[#allocation2] sm:$0x3]  ;;  %4736 = vmatprep.subr.bf16.mxu0 %v10245_v14  ;;  %4777 = vmatprep.subr.bf16.mxu1 %v10247_v42  ;;  %v10249_v1 = vcombine.high %v4602_v27, %v4606_v3  ;;  %v10251_v34 = vcombine.high %v4603_v19, %v4607_v49  ;;  %v10248_v30 = vcombine.low %v4602_v27, %v4606_v3  ;;  %v4918_v41 = vld [vmem:[%s13024_s22] sm:$0xff]  ;;  %v5432_v61 = vunpack.c.l.s8.bf16 %v4920_v29  ;;  %v4937_v2 = vld [vmem:[%s13024_s22 + $0x98] sm:$0xff] }
 0x605   : > { %v4591_v12 = vpack.c.bf16 %v4590_v21, %v4590_v21  ;;  %v4919_v8 = vld [vmem:[%s13024_s22 + $0x8] sm:$0xff]  ;;  %v10250_v52 = vcombine.low %v4603_v19, %v4607_v49  ;;  %v5430_v37 = vunpack.c.l.s8.bf16 %v4918_v41  ;;  %v5449_v63 = vunpack.c.h.s8.bf16 %v4921_v0  ;;  %v4934_v24 = vld [vmem:[%s13024_s22 + $0x80] sm:$0xff]  ;;  %v4936_v40 = vld [vmem:[%s13024_s22 + $0x90] sm:$0xff] }
 0x606   : > { %v5431_v25 = vunpack.c.l.s8.bf16 %v4919_v8  ;;  %v5447_v39 = vunpack.c.h.s8.bf16 %v4919_v8  ;;  %v4935_v4 = vld [vmem:[%s13024_s22 + $0x88] sm:$0xff]  ;;  %v5446_v18 = vunpack.c.h.s8.bf16 %v4918_v41  ;;  %v5448_v20 = vunpack.c.h.s8.bf16 %v4920_v29  ;;  %v4953_v13 = vld [vmem:[%s13024_s22 + $0x118] sm:$0xff]  ;;  %v4950_v5 = vld [vmem:[%s13024_s22 + $0x100] sm:$0xff] }
 0x607   : > { %4737 = vmatpush1.bf16.msra.mxu0 %v10244_v43  ;;  %4778 = vmatpush1.bf16.msra.mxu1 %v10246_v31  ;;  %v5463_v7 = vunpack.c.l.s8.bf16 %v4935_v4  ;;  %v5465_v59 = vunpack.c.l.s8.bf16 %v4937_v2  ;;  %v5462_v58 = vunpack.c.l.s8.bf16 %v4934_v24  ;;  %v5479_v44 = vunpack.c.h.s8.bf16 %v4935_v4  ;;  %v4951_v47 = vld [vmem:[%s13024_s22 + $0x108] sm:$0xff]  ;;  %v4952_v33 = vld [vmem:[%s13024_s22 + $0x110] sm:$0xff]  ;;  %v4969_v28 = vld [vmem:[%s13024_s22 + $0x198] sm:$0xff] }
 0x608   : > { %4816 = vmatprep.subr.bf16.mxu0 %v10241_v22  ;;  %4857 = vmatprep.subr.bf16.mxu1 %v10243_v15  ;;  %v5464_v23 = vunpack.c.l.s8.bf16 %v4936_v40  ;;  %v5481_v62 = vunpack.c.h.s8.bf16 %v4937_v2  ;;  %v5478_v54 = vunpack.c.h.s8.bf16 %v4934_v24  ;;  %v5495_v6 = vunpack.c.l.s8.bf16 %v4951_v47  ;;  %v4967_v10 = vld [vmem:[%s13024_s22 + $0x188] sm:$0xff]  ;;  %v4966_v32 = vld [vmem:[%s13024_s22 + $0x180] sm:$0xff]  ;;  %v4968_v57 = vld [vmem:[%s13024_s22 + $0x190] sm:$0xff] }
 0x609   : > { %v5480_v35 = vunpack.c.h.s8.bf16 %v4936_v40  ;;  %v5497_v60 = vunpack.c.l.s8.bf16 %v4953_v13  ;;  %v5494_v36 = vunpack.c.l.s8.bf16 %v4950_v5  ;;  %v5511_v46 = vunpack.c.h.s8.bf16 %v4951_v47  ;;  %v4983_v38 = vld [vmem:[%s13024_s22 + $0x208] sm:$0xff]  ;;  %v4985_v48 = vld [vmem:[%s13024_s22 + $0x218] sm:$0xff]  ;;  %v4982_v22 = vld [vmem:[%s13024_s22 + $0x200] sm:$0xff]  ;;  %p10256_p10 = scmp.ne.s32.totalorder %s16835_s18, 1 }
 0x60a   : > { %10252 = vmatmul.mubr.msk.bf16.vlgmr.msra.gmra.mrb[0].mxu0 %vm4730_vm8, %v4591_v12  ;;  %10253 = vmatmul.mubr.msk.bf16.vlgmr.msra.gmra.mrb[0].mxu1 %vm4730_vm8, %v4591_v12  ;;  %v5496_v9 = vunpack.c.l.s8.bf16 %v4952_v33  ;;  %v5513_v55 = vunpack.c.h.s8.bf16 %v4953_v13  ;;  %v5527_v14 = vunpack.c.l.s8.bf16 %v4967_v10  ;;  %v5512_v53 = vunpack.c.h.s8.bf16 %v4952_v33  ;;  %v4984_v3 = vld [vmem:[%s13024_s22 + $0x210] sm:$0xff]  ;;  %v4999_v19 = vld [vmem:[%s13024_s22 + $0x288] sm:$0xff]  ;;  %v5033_v47 = vld [vmem:[%s13024_s22 + $0x398] sm:$0xff]  ;;  %s16836_s20 = sld [smem:[#allocation176_spill]] (!%p10256_p10)  ;;  %s16837_s27 = sld [smem:[#allocation177_spill]] (!%p10256_p10) }
 0x60b   : > { %4817 = vmatpush1.bf16.msra.mxu0 %v10240_v50  ;;  %4848 = vmatprep.mubr.bf16.mxu0 %v12643_v16  ;;  %v5529_v26 = vunpack.c.l.s8.bf16 %v4969_v28  ;;  %v5526_v11 = vunpack.c.l.s8.bf16 %v4966_v32  ;;  %v5543_v42 = vunpack.c.h.s8.bf16 %v4967_v10  ;;  %v5528_v45 = vunpack.c.l.s8.bf16 %v4968_v57  ;;  %v5015_v29 = vld [vmem:[%s13024_s22 + $0x308] sm:$0xff]  ;;  %v5030_v13 = vld [vmem:[%s13024_s22 + $0x380] sm:$0xff]  ;;  %v5049_v10 = vld [vmem:[%s13024_s22 + $0x418] sm:$0xff] }
 0x60c   : > { %4818 = vmatprep.subr.bf16.mxu0 %v10249_v1  ;;  %4858 = vmatpush1.bf16.msra.mxu1 %v10242_v17  ;;  %v5545_v43 = vunpack.c.h.s8.bf16 %v4969_v28  ;;  %v5542_v21 = vunpack.c.h.s8.bf16 %v4966_v32  ;;  %v5559_v56 = vunpack.c.l.s8.bf16 %v4983_v38  ;;  %v5544_v31 = vunpack.c.h.s8.bf16 %v4968_v57  ;;  %v5001_v17 = vld [vmem:[%s13024_s22 + $0x298] sm:$0xff] }
 0x60d   : > { %4889 = vmatprep.mubr.bf16.mxu1 %v12643_v16  ;;  %4859 = vmatprep.subr.bf16.mxu1 %v10251_v34  ;;  %v5510_v16 = vunpack.c.h.s8.bf16 %v4950_v5  ;;  %v5561_v27 = vunpack.c.l.s8.bf16 %v4985_v48  ;;  %v5575_v15 = vunpack.c.h.s8.bf16 %v4983_v38  ;;  %v5560_v50 = vunpack.c.l.s8.bf16 %v4984_v3  ;;  %v4998_v34 = vld [vmem:[%s13024_s22 + $0x280] sm:$0xff] }
 0x60e   : > { %v5577_v49 = vunpack.c.h.s8.bf16 %v4985_v48  ;;  %v5574_v1 = vunpack.c.h.s8.bf16 %v4982_v22  ;;  %v5591_v8 = vunpack.c.l.s8.bf16 %v4999_v19  ;;  %v5593_v0 = vunpack.c.l.s8.bf16 %v5001_v17 }
 0x60f   : > { %4819 = vmatpush1.bf16.msra.mxu0 %v10248_v30  ;;  %v5576_v30 = vunpack.c.h.s8.bf16 %v4984_v3  ;;  %v5590_v41 = vunpack.c.l.s8.bf16 %v4998_v34  ;;  %v5623_v4 = vunpack.c.l.s8.bf16 %v5015_v29  ;;  %v5654_v5 = vunpack.c.l.s8.bf16 %v5030_v13  ;;  %v5046_v3 = vld [vmem:[%s13024_s22 + $0x400] sm:$0xff] }
 0x610   : > { %6454 = vmatprep.subr.bf16.mxu0 %v5431_v25  ;;  %4860 = vmatpush1.bf16.msra.mxu1 %v10250_v52  ;;  %v5000_v25 = vld [vmem:[%s13024_s22 + $0x290] sm:$0xff]  ;;  %v5607_v52 = vunpack.c.h.s8.bf16 %v4999_v19  ;;  %v5673_v33 = vunpack.c.h.s8.bf16 %v5033_v47  ;;  %v4610_v28 = vlaneseq  ;;  %vm9636_vm9 = vcmask (!%p10256_p10), 1041408  }
 0x611   : > { %6618 = vmatprep.subr.bf16.mxu1 %v5433_v51  ;;  %v5592_v51 = vunpack.c.l.s8.bf16 %v5000_v25  ;;  %vm12647_vm10 = vmmov (!%p10256_p10), 0   ;;  %vm9632_vm11 = vcmask (!%p10256_p10), 408576   ;;  %vm9728_vm13 = vcmask (!%p10256_p10), 50176  }
 0x612   : > { %10254 = vmatmul.mubr.msk.bf16.vlgmr.msra.gmra.mrb[4].mxu0 %vm4730_vm8, %v4591_v12 }
 0x613   : > { %6455 = vmatpush1.bf16.msra.mxu0 %v5430_v37  ;;  %10255 = vmatmul.mubr.msk.bf16.vlgmr.msra.gmra.mrb[4].mxu1 %vm4730_vm8, %v4591_v12  ;;  %v5558_v12 = vunpack.c.l.s8.bf16 %v4982_v22  ;;  %v5609_v37 = vunpack.c.h.s8.bf16 %v5001_v17 }
 0x614   : > { %6456 = vmatprep.subr.bf16.mxu0 %v5447_v39  ;;  %6619 = vmatpush1.bf16.msra.mxu1 %v5432_v61  ;;  %v5606_v39 = vunpack.c.h.s8.bf16 %v4998_v34  ;;  %v5017_v61 = vld [vmem:[%s13024_s22 + $0x318] sm:$0xff] }
 0x615   : > { %6620 = vmatprep.subr.bf16.mxu1 %v5449_v63  ;;  %v5014_v63 = vld [vmem:[%s13024_s22 + $0x300] sm:$0xff]  ;;  %v5625_v2 = vunpack.c.l.s8.bf16 %v5017_v61  ;;  %v5641_v40 = vunpack.c.h.s8.bf16 %v5017_v61  ;;  %v5702_v61 = vunpack.c.h.s8.bf16 %v5046_v3 }
 0x616   : > { %v5622_v24 = vunpack.c.l.s8.bf16 %v5014_v63 }
 0x617   : > { %6457 = vmatpush1.bf16.msra.mxu0 %v5446_v18  ;;  %v5608_v18 = vunpack.c.h.s8.bf16 %v5000_v25 }
 0x618   : > { %6458 = vmatprep.subr.bf16.mxu0 %v5463_v7  ;;  %6621 = vmatpush1.bf16.msra.mxu1 %v5448_v20  ;;  %v5016_v7 = vld [vmem:[%s13024_s22 + $0x310] sm:$0xff]  ;;  %v5639_v20 = vunpack.c.h.s8.bf16 %v5015_v29 }
 0x619   : > { %6622 = vmatprep.subr.bf16.mxu1 %v5465_v59  ;;  %v5624_v59 = vunpack.c.l.s8.bf16 %v5016_v7 }
 0x61b   : > { %6459 = vmatpush1.bf16.msra.mxu0 %v5462_v58  ;;  %v5638_v58 = vunpack.c.h.s8.bf16 %v5014_v63 }
 0x61c   : > { %6460 = vmatprep.subr.bf16.mxu0 %v5479_v44  ;;  %6623 = vmatpush1.bf16.msra.mxu1 %v5464_v23  ;;  %v5640_v44 = vunpack.c.h.s8.bf16 %v5016_v7  ;;  %v5031_v23 = vld [vmem:[%s13024_s22 + $0x388] sm:$0xff]  ;;  %v5062_v7 = vld [vmem:[%s13024_s22 + $0x480] sm:$0xff] }
 0x61d   : > { %6624 = vmatprep.subr.bf16.mxu1 %v5481_v62  ;;  %v5655_v62 = vunpack.c.l.s8.bf16 %v5031_v23 }
 0x61f   : > { %6461 = vmatpush1.bf16.msra.mxu0 %v5478_v54  ;;  %v5657_v54 = vunpack.c.l.s8.bf16 %v5033_v47  ;;  %v5081_v47 = vld [vmem:[%s13024_s22 + $0x518] sm:$0xff] }
 0x620   : > { %6462 = vmatprep.subr.bf16.mxu0 %v5495_v6  ;;  %6625 = vmatpush1.bf16.msra.mxu1 %v5480_v35  ;;  %v5032_v6 = vld [vmem:[%s13024_s22 + $0x390] sm:$0xff] }
 0x621   : > { %6626 = vmatprep.subr.bf16.mxu1 %v5497_v60  ;;  %v5656_v35 = vunpack.c.l.s8.bf16 %v5032_v6  ;;  %v5671_v60 = vunpack.c.h.s8.bf16 %v5031_v23  ;;  %v5079_v23 = vld [vmem:[%s13024_s22 + $0x508] sm:$0xff] }
 0x623   : > { %6463 = vmatpush1.bf16.msra.mxu0 %v5494_v36  ;;  %v5670_v36 = vunpack.c.h.s8.bf16 %v5030_v13  ;;  %v5751_v13 = vunpack.c.l.s8.bf16 %v5079_v23 }
 0x624   : > { %6464 = vmatprep.subr.bf16.mxu0 %v5511_v46  ;;  %6627 = vmatpush1.bf16.msra.mxu1 %v5496_v9  ;;  %v5672_v46 = vunpack.c.h.s8.bf16 %v5032_v6  ;;  %v5047_v9 = vld [vmem:[%s13024_s22 + $0x408] sm:$0xff]  ;;  %v5753_v6 = vunpack.c.l.s8.bf16 %v5081_v47 }
 0x625   : > { %6628 = vmatprep.subr.bf16.mxu1 %v5513_v55  ;;  %v5687_v55 = vunpack.c.l.s8.bf16 %v5047_v9  ;;  %v5703_v25 = vunpack.c.h.s8.bf16 %v5047_v9 }
 0x627   : > { %6465 = vmatpush1.bf16.msra.mxu0 %v5510_v16  ;;  %v5689_v16 = vunpack.c.l.s8.bf16 %v5049_v10 }
 0x628   : > { %6466 = vmatprep.subr.bf16.mxu0 %v5527_v14  ;;  %6629 = vmatpush1.bf16.msra.mxu1 %v5512_v53  ;;  %v15144_v14 = vshrl.u32 %v4610_v28, 7  ;;  %v15150_v53 = vld [vmem:[%s13022_s30] sm:$0xff] }
 0x629   : > { %6630 = vmatprep.subr.bf16.mxu1 %v5529_v26 }
 0x62a   : > { %v15147_v32 = vsub.s32 0, %v15144_v14  ;;  %v15153_v26 = vsub.s32 1, %v15144_v14  ;;  %v15156_v57 = vsub.s32 3, %v15144_v14 }
 0x62b   : > { %6467 = vmatpush1.bf16.msra.mxu0 %v5526_v11 }
 0x62c   : > { %6468 = vmatprep.subr.bf16.mxu0 %v5543_v42  ;;  %6631 = vmatpush1.bf16.msra.mxu1 %v5528_v45  ;;  %v4613_v11 = vrot.slane %v15150_v53, %v15147_v32  ;;  %v4617_v42 = vrot.slane %v15150_v53, %v15153_v26  ;;  %v4625_v38 = vrot.slane %v15150_v53, %v15156_v57 }
 0x62d   : > { %6632 = vmatprep.subr.bf16.mxu1 %v5545_v43 }
 0x62f   : > { %6469 = vmatpush1.bf16.msra.mxu0 %v5542_v21 }
 0x630   : > { %6470 = vmatprep.subr.bf16.mxu0 %v5559_v56  ;;  %6633 = vmatpush1.bf16.msra.mxu1 %v5544_v31 }
 0x631   : > { %6634 = vmatprep.subr.bf16.mxu1 %v5561_v27 }
 0x633   : > { %6471 = vmatpush1.bf16.msra.mxu0 %v5558_v12  ;;  %v5048_v12 = vld [vmem:[%s13024_s22 + $0x410] sm:$0xff] }
 0x634   : > { %6472 = vmatprep.subr.bf16.mxu0 %v5575_v15  ;;  %6635 = vmatpush1.bf16.msra.mxu1 %v5560_v50  ;;  %v5688_v34 = vunpack.c.l.s8.bf16 %v5048_v12 }
 0x635   : > { %6636 = vmatprep.subr.bf16.mxu1 %v5577_v49 }
 0x637   : > { %6473 = vmatpush1.bf16.msra.mxu0 %v5574_v1 }
 0x638   : > { %6474 = vmatprep.subr.bf16.mxu0 %v5591_v8  ;;  %6637 = vmatpush1.bf16.msra.mxu1 %v5576_v30  ;;  %v5686_v8 = vunpack.c.l.s8.bf16 %v5046_v3 }
 0x639   : > { %6638 = vmatprep.subr.bf16.mxu1 %v5593_v0 }
 0x63b   : > { %6475 = vmatpush1.bf16.msra.mxu0 %v5590_v41  ;;  %v5705_v41 = vunpack.c.h.s8.bf16 %v5049_v10  ;;  %v5095_v10 = vld [vmem:[%s13024_s22 + $0x588] sm:$0xff] }
 0x63c   : > { %6476 = vmatprep.subr.bf16.mxu0 %v5607_v52  ;;  %6639 = vmatpush1.bf16.msra.mxu1 %v5592_v51  ;;  %v5063_v52 = vld [vmem:[%s13024_s22 + $0x488] sm:$0xff]  ;;  %v5065_v51 = vld [vmem:[%s13024_s22 + $0x498] sm:$0xff] }
 0x63d   : > { %6640 = vmatprep.subr.bf16.mxu1 %v5609_v37 }
 0x63f   : > { %6477 = vmatpush1.bf16.msra.mxu0 %v5606_v39 }
 0x640   : > { %6478 = vmatprep.subr.bf16.mxu0 %v5623_v4  ;;  %6641 = vmatpush1.bf16.msra.mxu1 %v5608_v18  ;;  %v5704_v4 = vunpack.c.h.s8.bf16 %v5048_v12  ;;  %v5719_v18 = vunpack.c.l.s8.bf16 %v5063_v52  ;;  %v5111_v12 = vld [vmem:[%s13024_s22 + $0x608] sm:$0xff] }
 0x641   : > { %6642 = vmatprep.subr.bf16.mxu1 %v5625_v2  ;;  %v5721_v2 = vunpack.c.l.s8.bf16 %v5065_v51 }
 0x643   : > { %6479 = vmatpush1.bf16.msra.mxu0 %v5622_v24  ;;  %v5064_v24 = vld [vmem:[%s13024_s22 + $0x490] sm:$0xff] }
 0x644   : > { %6480 = vmatprep.subr.bf16.mxu0 %v5639_v20  ;;  %6643 = vmatpush1.bf16.msra.mxu1 %v5624_v59  ;;  %v5718_v59 = vunpack.c.l.s8.bf16 %v5062_v7 }
 0x645   : > { %6644 = vmatprep.subr.bf16.mxu1 %v5641_v40  ;;  %v5720_v40 = vunpack.c.l.s8.bf16 %v5064_v24 }
 0x647   : > { %6481 = vmatpush1.bf16.msra.mxu0 %v5638_v58  ;;  %v5735_v58 = vunpack.c.h.s8.bf16 %v5063_v52 }
 0x648   : > { %6645 = vmatpush1.bf16.msra.mxu1 %v5640_v44  ;;  %6482 = vmatprep.subr.bf16.mxu0 %v5655_v62  ;;  %v5737_v44 = vunpack.c.h.s8.bf16 %v5065_v51  ;;  %v5734_v62 = vunpack.c.h.s8.bf16 %v5062_v7  ;;  %v5127_v51 = vld [vmem:[%s13024_s22 + $0x688] sm:$0xff]  ;;  %v5126_v7 = vld [vmem:[%s13024_s22 + $0x680] sm:$0xff] }
 0x649   : > { %6646 = vmatprep.subr.bf16.mxu1 %v5657_v54  ;;  %v5736_v54 = vunpack.c.h.s8.bf16 %v5064_v24  ;;  %v5128_v24 = vld [vmem:[%s13024_s22 + $0x690] sm:$0xff] }
 0x64b   : > { %6483 = vmatpush1.bf16.msra.mxu0 %v5654_v5  ;;  %v5078_v5 = vld [vmem:[%s13024_s22 + $0x500] sm:$0xff] }
 0x64c   : > { %6647 = vmatpush1.bf16.msra.mxu1 %v5656_v35  ;;  %6484 = vmatprep.subr.bf16.mxu0 %v5671_v60  ;;  %v5080_v35 = vld [vmem:[%s13024_s22 + $0x510] sm:$0xff]  ;;  %v5750_v60 = vunpack.c.l.s8.bf16 %v5078_v5 }
 0x64d   : > { %6648 = vmatprep.subr.bf16.mxu1 %v5673_v33  ;;  %v5752_v33 = vunpack.c.l.s8.bf16 %v5080_v35  ;;  %v5768_v28 = vunpack.c.h.s8.bf16 %v5080_v35  ;;  %v15213_v35 = vsub.s32 2, %v15144_v14 }
 0x64f   : > { %6485 = vmatpush1.bf16.msra.mxu0 %v5670_v36  ;;  %v5767_v36 = vunpack.c.h.s8.bf16 %v5079_v23  ;;  %v5145_v23 = vld [vmem:[%s13024_s22 + $0x718] sm:$0xff] }
 0x650   : > { %6649 = vmatpush1.bf16.msra.mxu1 %v5672_v46  ;;  %6495 = vmatprep.subr.bf16.mxu0 %v5687_v55  ;;  %v5769_v46 = vunpack.c.h.s8.bf16 %v5081_v47  ;;  %v5097_v55 = vld [vmem:[%s13024_s22 + $0x598] sm:$0xff]  ;;  %v5862_v47 = vunpack.c.h.s8.bf16 %v5126_v7 }
 0x651   : > { %6659 = vmatprep.subr.bf16.mxu1 %v5689_v16  ;;  %v5766_v16 = vunpack.c.h.s8.bf16 %v5078_v5  ;;  %v5801_v3 = vunpack.c.h.s8.bf16 %v5097_v55  ;;  %v5144_v5 = vld [vmem:[%s13024_s22 + $0x710] sm:$0xff] }
 0x6dd   : > { %v4768_v45 = vpop.f32.mrb[0].mxu0  ;;  %v15164_v22 = vpop.f32.mrb[0].mxu1 }
 0x6de   : > { %v4769_v43 = vadd.f32 %v4768_v45, %v4613_v11  ;;  %v4770_v21 = vpop.f32.mrb[1].mxu0  ;;  %v4811_v15 = vpop.f32.mrb[1].mxu1  ;;  %v5785_v45 = vunpack.c.l.s8.bf16 %v5097_v55  ;;  %v5161_v55 = vld [vmem:[%s13024_s22 + $0x798] sm:$0xff] }
 0x6df   : > { %v4771_v48 = vadd.f32 %v4770_v21, %v4617_v42  ;;  %v4772_v56 = vpop.f32.mrb[2].mxu0  ;;  %v4812_v19 = vadd.f32 %v4811_v15, %v4625_v38  ;;  %v4813_v49 = vpop.f32.mrb[2].mxu1  ;;  %v5783_v42 = vunpack.c.l.s8.bf16 %v5095_v10  ;;  %v5094_v38 = vld [vmem:[%s13024_s22 + $0x580] sm:$0xff]  ;;  %v5113_v15 = vld [vmem:[%s13024_s22 + $0x618] sm:$0xff] }
 0x6e0   : > { %v4898_v31 = vmax.f32 %v4769_v43, 0.0  ;;  %v4773_v27 = vpop.f32.mrb[3].mxu0  ;;  %v4814_v1 = vpop.f32.mrb[3].mxu1  ;;  %v5096_v43 = vld [vmem:[%s13024_s22 + $0x590] sm:$0xff]  ;;  %v5782_v56 = vunpack.c.l.s8.bf16 %v5094_v38  ;;  %v5815_v49 = vunpack.c.l.s8.bf16 %v5111_v12  ;;  %v5833_v52 = vunpack.c.h.s8.bf16 %v5113_v15 }
 0x6e1   : > { %v4899_v50 = vmax.f32 %v4771_v48, 0.0  ;;  %v4901_v30 = vmax.f32 %v4812_v19, 0.0  ;;  %v5799_v27 = vunpack.c.h.s8.bf16 %v5095_v10  ;;  %v5800_v19 = vunpack.c.h.s8.bf16 %v5096_v43  ;;  %v5159_v10 = vld [vmem:[%s13024_s22 + $0x788] sm:$0xff] }
 0x6e2   : > { %v15170_v0 = vpack.c.bf16 %v4898_v31, %v4898_v31  ;;  %v5784_v31 = vunpack.c.l.s8.bf16 %v5096_v43  ;;  %v5817_v1 = vunpack.c.l.s8.bf16 %v5113_v15  ;;  %v5913_v43 = vunpack.c.l.s8.bf16 %v5161_v55 }
 0x6e3   : > { %v15168_v17 = vpack.c.bf16 %v4899_v50, %v4899_v50  ;;  %v15176_v29 = vpack.c.bf16 %v4901_v30, %v4901_v30  ;;  %v5798_v50 = vunpack.c.h.s8.bf16 %v5094_v38  ;;  %v5911_v38 = vunpack.c.l.s8.bf16 %v5159_v10 }
 0x6e4   : > { %v5929_v15 = vunpack.c.h.s8.bf16 %v5161_v55 }
 0x6e5   : > { %6486 = vmatprep.mubr.bf16.mxu0 %v15168_v17  ;;  %6650 = vmatprep.mubr.bf16.mxu1 %v15168_v17  ;;  %v15178_v37 = vpop.f32.mrb[4].mxu0 }
 0x6e6   : > { %6487 = vmatmul.mubr.bf16.vlgmr.msra.gmra.mrb[8].mxu0 %v15170_v0  ;;  %6651 = vmatmul.mubr.bf16.vlgmr.msra.gmra.mrb[8].mxu1 %v15170_v0  ;;  %v15182_v39 = vpop.f32.mrb[5].mxu0  ;;  %v15192_v9 = vpop.f32.mrb[4].mxu1 }
 0x6e7   : > { %6496 = vmatpush1.bf16.msra.mxu0 %v5686_v8  ;;  %6660 = vmatpush1.bf16.msra.mxu1 %v5688_v34  ;;  %v4854_v63 = vpop.f32.mrb[6].mxu0  ;;  %v15196_v11 = vpop.f32.mrb[5].mxu1  ;;  %v5110_v8 = vld [vmem:[%s13024_s22 + $0x600] sm:$0xff]  ;;  %v5112_v34 = vld [vmem:[%s13024_s22 + $0x610] sm:$0xff] }
 0x6e8   : > { %6497 = vmatprep.subr.bf16.mxu0 %v5703_v25  ;;  %6661 = vmatprep.subr.bf16.mxu1 %v5705_v41  ;;  %v4855_v20 = vpop.f32.mrb[7].mxu0  ;;  %v4895_v21 = vpop.f32.mrb[6].mxu1  ;;  %v5814_v30 = vunpack.c.l.s8.bf16 %v5110_v8  ;;  %v5816_v25 = vunpack.c.l.s8.bf16 %v5112_v34  ;;  %v5831_v41 = vunpack.c.h.s8.bf16 %v5111_v12  ;;  %v5832_v63 = vunpack.c.h.s8.bf16 %v5112_v34 }
 0x6e9   : > { %6527 = vmatprep.mubr.bf16.mxu0 %v15176_v29  ;;  %6691 = vmatprep.mubr.bf16.mxu1 %v15176_v29  ;;  %v4896_v48 = vpop.f32.mrb[7].mxu1  ;;  %v5846_v20 = vunpack.c.l.s8.bf16 %v5126_v7  ;;  %v5158_v21 = vld [vmem:[%s13024_s22 + $0x780] sm:$0xff]  ;;  %v5927_v12 = vunpack.c.h.s8.bf16 %v5159_v10  ;;  %v5208_v10 = vld [vmem:[%s13024_s22 + $0x910] sm:$0xff] }
 0x6ea   : > { %v5160_v48 = vld [vmem:[%s13024_s22 + $0x790] sm:$0xff] }
 0x6eb   : > { %6498 = vmatpush1.bf16.msra.mxu0 %v5702_v61  ;;  %6662 = vmatpush1.bf16.msra.mxu1 %v5704_v4  ;;  %v5129_v61 = vld [vmem:[%s13024_s22 + $0x698] sm:$0xff]  ;;  %v5830_v4 = vunpack.c.h.s8.bf16 %v5110_v8  ;;  %v5926_v8 = vunpack.c.h.s8.bf16 %v5158_v21  ;;  %v5928_v34 = vunpack.c.h.s8.bf16 %v5160_v48 }
 0x6ec   : > { %6499 = vmatprep.subr.bf16.mxu0 %v5719_v18  ;;  %6663 = vmatprep.subr.bf16.mxu1 %v5721_v2  ;;  %v5847_v18 = vunpack.c.l.s8.bf16 %v5127_v51  ;;  %v5849_v2 = vunpack.c.l.s8.bf16 %v5129_v61 }
 0x6ef   : > { %6500 = vmatpush1.bf16.msra.mxu0 %v5718_v59  ;;  %6664 = vmatpush1.bf16.msra.mxu1 %v5720_v40  ;;  %v5848_v59 = vunpack.c.l.s8.bf16 %v5128_v24  ;;  %v5863_v40 = vunpack.c.h.s8.bf16 %v5127_v51 }
 0x6f0   : > { %6501 = vmatprep.subr.bf16.mxu0 %v5735_v58  ;;  %6665 = vmatprep.subr.bf16.mxu1 %v5737_v44  ;;  %v5865_v58 = vunpack.c.h.s8.bf16 %v5129_v61  ;;  %v5143_v44 = vld [vmem:[%s13024_s22 + $0x708] sm:$0xff] }
 0x6f3   : > { %6502 = vmatpush1.bf16.msra.mxu0 %v5734_v62  ;;  %6666 = vmatpush1.bf16.msra.mxu1 %v5736_v54  ;;  %v5864_v62 = vunpack.c.h.s8.bf16 %v5128_v24  ;;  %v5879_v54 = vunpack.c.l.s8.bf16 %v5143_v44 }
 0x6f4   : > { %6503 = vmatprep.subr.bf16.mxu0 %v5751_v13  ;;  %6667 = vmatprep.subr.bf16.mxu1 %v5753_v6  ;;  %v5881_v13 = vunpack.c.l.s8.bf16 %v5145_v23  ;;  %v5142_v6 = vld [vmem:[%s13024_s22 + $0x700] sm:$0xff] }
 0x6f7   : > { %6504 = vmatpush1.bf16.msra.mxu0 %v5750_v60  ;;  %6668 = vmatpush1.bf16.msra.mxu1 %v5752_v33  ;;  %v5878_v60 = vunpack.c.l.s8.bf16 %v5142_v6  ;;  %v5880_v33 = vunpack.c.l.s8.bf16 %v5144_v5 }
 0x6f8   : > { %6505 = vmatprep.subr.bf16.mxu0 %v5767_v36  ;;  %6669 = vmatprep.subr.bf16.mxu1 %v5769_v46  ;;  %v5895_v36 = vunpack.c.h.s8.bf16 %v5143_v44  ;;  %v5897_v46 = vunpack.c.h.s8.bf16 %v5145_v23  ;;  %v5192_v44 = vld [vmem:[%s13024_s22 + $0x890] sm:$0xff] }
 0x6fb   : > { %6506 = vmatpush1.bf16.msra.mxu0 %v5766_v16  ;;  %6670 = vmatpush1.bf16.msra.mxu1 %v5768_v28  ;;  %v15218_v16 = vsub.s32 5, %v15144_v14  ;;  %v4621_v28 = vrot.slane %v15150_v53, %v15213_v35 }
 0x6fc   : > { %6507 = vmatprep.subr.bf16.mxu0 %v5783_v42  ;;  %6671 = vmatprep.subr.bf16.mxu1 %v5785_v45  ;;  %v5894_v42 = vunpack.c.h.s8.bf16 %v5142_v6  ;;  %v5896_v45 = vunpack.c.h.s8.bf16 %v5144_v5  ;;  %v5209_v6 = vld [vmem:[%s13024_s22 + $0x918] sm:$0xff] }
 0x6ff   : > { %6508 = vmatpush1.bf16.msra.mxu0 %v5782_v56  ;;  %6672 = vmatpush1.bf16.msra.mxu1 %v5784_v31  ;;  %v4633_v56 = vrot.slane %v15150_v53, %v15218_v16  ;;  %v4810_v31 = vadd.f32 %v15164_v22, %v4621_v28  ;;  %v6008_v28 = vunpack.c.l.s8.bf16 %v5208_v10 }
 0x700   : > { %6509 = vmatprep.subr.bf16.mxu0 %v5799_v27  ;;  %6673 = vmatprep.subr.bf16.mxu1 %v5801_v3  ;;  %v5910_v27 = vunpack.c.l.s8.bf16 %v5158_v21  ;;  %v5912_v3 = vunpack.c.l.s8.bf16 %v5160_v48  ;;  %v6024_v48 = vunpack.c.h.s8.bf16 %v5208_v10  ;;  %v15265_v10 = vsub.s32 4, %v15144_v14 }
 0x703   : > { %6510 = vmatpush1.bf16.msra.mxu0 %v5798_v50  ;;  %6674 = vmatpush1.bf16.msra.mxu1 %v5800_v19  ;;  %v5175_v50 = vld [vmem:[%s13024_s22 + $0x808] sm:$0xff]  ;;  %v5177_v19 = vld [vmem:[%s13024_s22 + $0x818] sm:$0xff] }
 0x704   : > { %6511 = vmatprep.subr.bf16.mxu0 %v5815_v49  ;;  %6675 = vmatprep.subr.bf16.mxu1 %v5817_v1  ;;  %v4853_v49 = vadd.f32 %v15182_v39, %v4633_v56  ;;  %v4900_v1 = vmax.f32 %v4810_v31, 0.0  ;;  %v5943_v22 = vunpack.c.l.s8.bf16 %v5175_v50 }
 0x706   : > { %v15232_v51 = vpack.c.bf16 %v4900_v1, %v4900_v1  ;;  %v5241_v1 = vld [vmem:[%s13024_s22 + $0xa18] sm:$0xff] }
 0x707   : > { %6512 = vmatpush1.bf16.msra.mxu0 %v5814_v30  ;;  %6676 = vmatpush1.bf16.msra.mxu1 %v5816_v25  ;;  %v5945_v30 = vunpack.c.l.s8.bf16 %v5177_v19  ;;  %v5174_v25 = vld [vmem:[%s13024_s22 + $0x800] sm:$0xff] }
 0x708   : > { %6513 = vmatprep.subr.bf16.mxu0 %v5831_v41  ;;  %6677 = vmatprep.subr.bf16.mxu1 %v5833_v52  ;;  %v5176_v41 = vld [vmem:[%s13024_s22 + $0x810] sm:$0xff]  ;;  %v4903_v52 = vmax.f32 %v4853_v49, 0.0  ;;  %v5942_v61 = vunpack.c.l.s8.bf16 %v5174_v25  ;;  %v5958_v24 = vunpack.c.h.s8.bf16 %v5174_v25  ;;  %v5239_v49 = vld [vmem:[%s13024_s22 + $0xa08] sm:$0xff]  ;;  %v5238_v25 = vld [vmem:[%s13024_s22 + $0xa00] sm:$0xff] }
 0x709   : > { %v5944_v39 = vunpack.c.l.s8.bf16 %v5176_v41 }
 0x70a   : > { %v15236_v7 = vpack.c.bf16 %v4903_v52, %v4903_v52  ;;  %v6070_v52 = vunpack.c.l.s8.bf16 %v5238_v25 }
 0x70b   : > { %6514 = vmatpush1.bf16.msra.mxu0 %v5830_v4  ;;  %6678 = vmatpush1.bf16.msra.mxu1 %v5832_v63  ;;  %v5959_v4 = vunpack.c.h.s8.bf16 %v5175_v50  ;;  %v5961_v63 = vunpack.c.h.s8.bf16 %v5177_v19 }
 0x70c   : > { %6515 = vmatprep.subr.bf16.mxu0 %v5847_v18  ;;  %6679 = vmatprep.subr.bf16.mxu1 %v5849_v2  ;;  %v5191_v18 = vld [vmem:[%s13024_s22 + $0x888] sm:$0xff]  ;;  %v5193_v2 = vld [vmem:[%s13024_s22 + $0x898] sm:$0xff] }
 0x70f   : > { %6516 = vmatpush1.bf16.msra.mxu0 %v5846_v20  ;;  %6680 = vmatpush1.bf16.msra.mxu1 %v5848_v59  ;;  %v5960_v20 = vunpack.c.h.s8.bf16 %v5176_v41  ;;  %v5975_v59 = vunpack.c.l.s8.bf16 %v5191_v18  ;;  %v5240_v41 = vld [vmem:[%s13024_s22 + $0xa10] sm:$0xff] }
 0x710   : > { %6517 = vmatprep.subr.bf16.mxu0 %v5863_v40  ;;  %6681 = vmatprep.subr.bf16.mxu1 %v5865_v58  ;;  %v5977_v40 = vunpack.c.l.s8.bf16 %v5193_v2  ;;  %v5190_v58 = vld [vmem:[%s13024_s22 + $0x880] sm:$0xff] }
 0x711   : > { %v5974_v23 = vunpack.c.l.s8.bf16 %v5190_v58  ;;  %v5990_v5 = vunpack.c.h.s8.bf16 %v5190_v58  ;;  %v5256_v58 = vld [vmem:[%s13024_s22 + $0xa90] sm:$0xff] }
 0x713   : > { %6518 = vmatpush1.bf16.msra.mxu0 %v5862_v47  ;;  %6682 = vmatpush1.bf16.msra.mxu1 %v5864_v62  ;;  %v5976_v47 = vunpack.c.l.s8.bf16 %v5192_v44  ;;  %v5991_v62 = vunpack.c.h.s8.bf16 %v5191_v18  ;;  %v5257_v18 = vld [vmem:[%s13024_s22 + $0xa98] sm:$0xff] }
 0x714   : > { %6519 = vmatprep.subr.bf16.mxu0 %v5879_v54  ;;  %6683 = vmatprep.subr.bf16.mxu1 %v5881_v13  ;;  %v5993_v54 = vunpack.c.h.s8.bf16 %v5193_v2  ;;  %v5207_v13 = vld [vmem:[%s13024_s22 + $0x908] sm:$0xff]  ;;  %v6086_v2 = vunpack.c.h.s8.bf16 %v5238_v25 }
 0x717   : > { %6520 = vmatpush1.bf16.msra.mxu0 %v5878_v60  ;;  %6684 = vmatpush1.bf16.msra.mxu1 %v5880_v33  ;;  %v5992_v60 = vunpack.c.h.s8.bf16 %v5192_v44  ;;  %v6007_v33 = vunpack.c.l.s8.bf16 %v5207_v13 }
 0x718   : > { %6521 = vmatprep.subr.bf16.mxu0 %v5895_v36  ;;  %6685 = vmatprep.subr.bf16.mxu1 %v5897_v46  ;;  %v6009_v36 = vunpack.c.l.s8.bf16 %v5209_v6  ;;  %v5206_v46 = vld [vmem:[%s13024_s22 + $0x900] sm:$0xff] }
 0x719   : > { %v6006_v55 = vunpack.c.l.s8.bf16 %v5206_v46  ;;  %v6022_v21 = vunpack.c.h.s8.bf16 %v5206_v46  ;;  %v5272_v46 = vld [vmem:[%s13024_s22 + $0xb10] sm:$0xff] }
 0x71b   : > { %6522 = vmatpush1.bf16.msra.mxu0 %v5894_v42  ;;  %6686 = vmatpush1.bf16.msra.mxu1 %v5896_v45  ;;  %v6023_v42 = vunpack.c.h.s8.bf16 %v5207_v13  ;;  %v6025_v45 = vunpack.c.h.s8.bf16 %v5209_v6  ;;  %v5273_v13 = vld [vmem:[%s13024_s22 + $0xb18] sm:$0xff] }
 0x71c   : > { %6523 = vmatprep.subr.bf16.mxu0 %v5911_v38  ;;  %6687 = vmatprep.subr.bf16.mxu1 %v5913_v43  ;;  %v5223_v38 = vld [vmem:[%s13024_s22 + $0x988] sm:$0xff]  ;;  %v5225_v43 = vld [vmem:[%s13024_s22 + $0x998] sm:$0xff] }
 0x71d   : > { %v6039_v56 = vunpack.c.l.s8.bf16 %v5223_v38  ;;  %v6041_v31 = vunpack.c.l.s8.bf16 %v5225_v43  ;;  %v6055_v50 = vunpack.c.h.s8.bf16 %v5223_v38  ;;  %v6057_v19 = vunpack.c.h.s8.bf16 %v5225_v43  ;;  %v5287_v38 = vld [vmem:[%s13024_s22 + $0xb88] sm:$0xff]  ;;  %v5289_v43 = vld [vmem:[%s13024_s22 + $0xb98] sm:$0xff] }
 0x71f   : > { %6524 = vmatpush1.bf16.msra.mxu0 %v5910_v27  ;;  %6688 = vmatpush1.bf16.msra.mxu1 %v5912_v3  ;;  %v5222_v27 = vld [vmem:[%s13024_s22 + $0x980] sm:$0xff]  ;;  %v5224_v3 = vld [vmem:[%s13024_s22 + $0x990] sm:$0xff] }
 0x720   : > { %6525 = vmatprep.subr.bf16.mxu0 %v5927_v12  ;;  %6689 = vmatprep.subr.bf16.mxu1 %v5929_v15  ;;  %v6038_v12 = vunpack.c.l.s8.bf16 %v5222_v27  ;;  %v6040_v15 = vunpack.c.l.s8.bf16 %v5224_v3 }
 0x723   : > { %6526 = vmatpush1.bf16.msra.mxu0 %v5926_v8  ;;  %6690 = vmatpush1.bf16.msra.mxu1 %v5928_v34  ;;  %v6054_v8 = vunpack.c.h.s8.bf16 %v5222_v27  ;;  %v6056_v34 = vunpack.c.h.s8.bf16 %v5224_v3  ;;  %v6167_v27 = vunpack.c.l.s8.bf16 %v5287_v38  ;;  %v6169_v3 = vunpack.c.l.s8.bf16 %v5289_v43 }
 0x724   : > { %6536 = vmatprep.subr.bf16.mxu0 %v5943_v22  ;;  %6700 = vmatprep.subr.bf16.mxu1 %v5945_v30  ;;  %v6071_v22 = vunpack.c.l.s8.bf16 %v5239_v49  ;;  %v6073_v30 = vunpack.c.l.s8.bf16 %v5241_v1 }
 0x726   : > { %6528 = vmatmul.mubr.bf16.vlgmr.msra.gmra.mrb[8].mxu0 %v15232_v51  ;;  %6692 = vmatmul.mubr.bf16.vlgmr.msra.gmra.mrb[8].mxu1 %v15232_v51 }
 0x727   : > { %6537 = vmatpush1.bf16.msra.mxu0 %v5942_v61  ;;  %6701 = vmatpush1.bf16.msra.mxu1 %v5944_v39  ;;  %v6072_v61 = vunpack.c.l.s8.bf16 %v5240_v41  ;;  %v6087_v39 = vunpack.c.h.s8.bf16 %v5239_v49 }
 0x728   : > { %6538 = vmatprep.subr.bf16.mxu0 %v5959_v4  ;;  %6702 = vmatprep.subr.bf16.mxu1 %v5961_v63  ;;  %v6089_v4 = vunpack.c.h.s8.bf16 %v5241_v1  ;;  %v5255_v63 = vld [vmem:[%s13024_s22 + $0xa88] sm:$0xff] }
 0x729   : > { %6568 = vmatprep.mubr.bf16.mxu0 %v15236_v7  ;;  %6732 = vmatprep.mubr.bf16.mxu1 %v15236_v7 }
 0x72b   : > { %6539 = vmatpush1.bf16.msra.mxu0 %v5958_v24  ;;  %6703 = vmatpush1.bf16.msra.mxu1 %v5960_v20  ;;  %v6088_v24 = vunpack.c.h.s8.bf16 %v5240_v41  ;;  %v6103_v20 = vunpack.c.l.s8.bf16 %v5255_v63 }
 0x72c   : > { %6540 = vmatprep.subr.bf16.mxu0 %v5975_v59  ;;  %6704 = vmatprep.subr.bf16.mxu1 %v5977_v40  ;;  %v6105_v59 = vunpack.c.l.s8.bf16 %v5257_v18  ;;  %v5254_v40 = vld [vmem:[%s13024_s22 + $0xa80] sm:$0xff] }
 0x72d   : > { %v6102_v44 = vunpack.c.l.s8.bf16 %v5254_v40  ;;  %v6118_v6 = vunpack.c.h.s8.bf16 %v5254_v40  ;;  %v5321_v40 = vld [vmem:[%s13024_s22 + $0xc98] sm:$0xff] }
 0x72f   : > { %6541 = vmatpush1.bf16.msra.mxu0 %v5974_v23  ;;  %6705 = vmatpush1.bf16.msra.mxu1 %v5976_v47  ;;  %v6104_v23 = vunpack.c.l.s8.bf16 %v5256_v58  ;;  %v6119_v47 = vunpack.c.h.s8.bf16 %v5255_v63 }
 0x730   : > { %6542 = vmatprep.subr.bf16.mxu0 %v5991_v62  ;;  %6706 = vmatprep.subr.bf16.mxu1 %v5993_v54  ;;  %v6121_v62 = vunpack.c.h.s8.bf16 %v5257_v18  ;;  %v5271_v54 = vld [vmem:[%s13024_s22 + $0xb08] sm:$0xff] }
 0x733   : > { %6543 = vmatpush1.bf16.msra.mxu0 %v5990_v5  ;;  %6707 = vmatpush1.bf16.msra.mxu1 %v5992_v60  ;;  %v6120_v5 = vunpack.c.h.s8.bf16 %v5256_v58  ;;  %v6135_v60 = vunpack.c.l.s8.bf16 %v5271_v54 }
 0x734   : > { %6544 = vmatprep.subr.bf16.mxu0 %v6007_v33  ;;  %6708 = vmatprep.subr.bf16.mxu1 %v6009_v36  ;;  %v6137_v33 = vunpack.c.l.s8.bf16 %v5273_v13  ;;  %v5270_v36 = vld [vmem:[%s13024_s22 + $0xb00] sm:$0xff] }
 0x737   : > { %6545 = vmatpush1.bf16.msra.mxu0 %v6006_v55  ;;  %6709 = vmatpush1.bf16.msra.mxu1 %v6008_v28  ;;  %v6134_v55 = vunpack.c.l.s8.bf16 %v5270_v36  ;;  %v6136_v28 = vunpack.c.l.s8.bf16 %v5272_v46 }
 0x738   : > { %6546 = vmatprep.subr.bf16.mxu0 %v6023_v42  ;;  %6710 = vmatprep.subr.bf16.mxu1 %v6025_v45  ;;  %v6151_v42 = vunpack.c.h.s8.bf16 %v5271_v54  ;;  %v6153_v45 = vunpack.c.h.s8.bf16 %v5273_v13  ;;  %v5318_v54 = vld [vmem:[%s13024_s22 + $0xc80] sm:$0xff]  ;;  %v5320_v13 = vld [vmem:[%s13024_s22 + $0xc90] sm:$0xff] }
 0x73b   : > { %6547 = vmatpush1.bf16.msra.mxu0 %v6022_v21  ;;  %6711 = vmatpush1.bf16.msra.mxu1 %v6024_v48  ;;  %v15270_v21 = vsub.s32 7, %v15144_v14  ;;  %v4629_v48 = vrot.slane %v15150_v53, %v15265_v10 }
 0x73c   : > { %6548 = vmatprep.subr.bf16.mxu0 %v6039_v56  ;;  %6712 = vmatprep.subr.bf16.mxu1 %v6041_v31  ;;  %v6150_v56 = vunpack.c.h.s8.bf16 %v5270_v36  ;;  %v6152_v31 = vunpack.c.h.s8.bf16 %v5272_v46  ;;  %v5335_v36 = vld [vmem:[%s13024_s22 + $0xd08] sm:$0xff]  ;;  %v5337_v46 = vld [vmem:[%s13024_s22 + $0xd18] sm:$0xff] }
 0x73f   : > { %6549 = vmatpush1.bf16.msra.mxu0 %v6038_v12  ;;  %6713 = vmatpush1.bf16.msra.mxu1 %v6040_v15  ;;  %v5286_v12 = vld [vmem:[%s13024_s22 + $0xb80] sm:$0xff]  ;;  %v5288_v15 = vld [vmem:[%s13024_s22 + $0xb90] sm:$0xff] }
 0x740   : > { %6550 = vmatprep.subr.bf16.mxu0 %v6055_v50  ;;  %6714 = vmatprep.subr.bf16.mxu1 %v6057_v19  ;;  %v4641_v50 = vrot.slane %v15150_v53, %v15270_v21  ;;  %v4851_v19 = vadd.f32 %v15178_v37, %v4629_v48  ;;  %v6166_v49 = vunpack.c.l.s8.bf16 %v5286_v12  ;;  %v6168_v1 = vunpack.c.l.s8.bf16 %v5288_v15 }
 0x741   : > { %v6182_v53 = vunpack.c.h.s8.bf16 %v5286_v12  ;;  %v5353_v12 = vld [vmem:[%s13024_s22 + $0xd98] sm:$0xff] }
 0x742   : > { %v4894_v25 = vadd.f32 %v15196_v11, %v4641_v50  ;;  %v4902_v41 = vmax.f32 %v4851_v19, 0.0 }
 0x743   : > { %6551 = vmatpush1.bf16.msra.mxu0 %v6054_v8  ;;  %6715 = vmatpush1.bf16.msra.mxu1 %v6056_v34  ;;  %v6183_v8 = vunpack.c.h.s8.bf16 %v5287_v38  ;;  %v6185_v34 = vunpack.c.h.s8.bf16 %v5289_v43  ;;  %v5334_v38 = vld [vmem:[%s13024_s22 + $0xd00] sm:$0xff]  ;;  %v5336_v43 = vld [vmem:[%s13024_s22 + $0xd10] sm:$0xff] }
 0x744   : > { %6552 = vmatprep.subr.bf16.mxu0 %v6071_v22  ;;  %6716 = vmatprep.subr.bf16.mxu1 %v6073_v30  ;;  %v5303_v22 = vld [vmem:[%s13024_s22 + $0xc08] sm:$0xff]  ;;  %v5305_v30 = vld [vmem:[%s13024_s22 + $0xc18] sm:$0xff]  ;;  %v4905_v63 = vmax.f32 %v4894_v25, 0.0  ;;  %v15284_v18 = vpack.c.bf16 %v4902_v41, %v4902_v41  ;;  %v6262_v48 = vunpack.c.l.s8.bf16 %v5334_v38  ;;  %v6280_v50 = vunpack.c.h.s8.bf16 %v5336_v43 }
 0x745   : > { %v6199_v37 = vunpack.c.l.s8.bf16 %v5303_v22  ;;  %v6313_v25 = vunpack.c.h.s8.bf16 %v5353_v12  ;;  %v5367_v41 = vld [vmem:[%s13024_s22 + $0xe08] sm:$0xff] }
 0x746   : > { %v15288_v58 = vpack.c.bf16 %v4905_v63, %v4905_v63  ;;  %v5368_v63 = vld [vmem:[%s13024_s22 + $0xe10] sm:$0xff] }
 0x747   : > { %6553 = vmatpush1.bf16.msra.mxu0 %v6070_v52  ;;  %6717 = vmatpush1.bf16.msra.mxu1 %v6072_v61  ;;  %v6184_v52 = vunpack.c.h.s8.bf16 %v5288_v15  ;;  %v6201_v61 = vunpack.c.l.s8.bf16 %v5305_v30  ;;  %v6278_v15 = vunpack.c.h.s8.bf16 %v5334_v38  ;;  %v5398_v38 = vld [vmem:[%s13024_s22 + $0xf00] sm:$0xff] }
 0x748   : > { %6554 = vmatprep.subr.bf16.mxu0 %v6087_v39  ;;  %6718 = vmatprep.subr.bf16.mxu1 %v6089_v4  ;;  %v5302_v39 = vld [vmem:[%s13024_s22 + $0xc00] sm:$0xff]  ;;  %v5304_v4 = vld [vmem:[%s13024_s22 + $0xc10] sm:$0xff] }
 0x749   : > { %v6200_v11 = vunpack.c.l.s8.bf16 %v5304_v4 }
 0x74b   : > { %6555 = vmatpush1.bf16.msra.mxu0 %v6086_v2  ;;  %6719 = vmatpush1.bf16.msra.mxu1 %v6088_v24  ;;  %v6198_v2 = vunpack.c.l.s8.bf16 %v5302_v39  ;;  %v6215_v24 = vunpack.c.h.s8.bf16 %v5303_v22 }
 0x74c   : > { %6556 = vmatprep.subr.bf16.mxu0 %v6103_v20  ;;  %6720 = vmatprep.subr.bf16.mxu1 %v6105_v59  ;;  %v6217_v20 = vunpack.c.h.s8.bf16 %v5305_v30  ;;  %v5319_v59 = vld [vmem:[%s13024_s22 + $0xc88] sm:$0xff] }
 0x74f   : > { %6557 = vmatpush1.bf16.msra.mxu0 %v6102_v44  ;;  %6721 = vmatpush1.bf16.msra.mxu1 %v6104_v23  ;;  %v6214_v44 = vunpack.c.h.s8.bf16 %v5302_v39  ;;  %v6216_v23 = vunpack.c.h.s8.bf16 %v5304_v4  ;;  %v5366_v4 = vld [vmem:[%s13024_s22 + $0xe00] sm:$0xff] }
 0x750   : > { %6558 = vmatprep.subr.bf16.mxu0 %v6119_v47  ;;  %6722 = vmatprep.subr.bf16.mxu1 %v6121_v62  ;;  %v6231_v47 = vunpack.c.l.s8.bf16 %v5319_v59  ;;  %v6233_v62 = vunpack.c.l.s8.bf16 %v5321_v40 }
 0x753   : > { %6559 = vmatpush1.bf16.msra.mxu0 %v6118_v6  ;;  %6723 = vmatpush1.bf16.msra.mxu1 %v6120_v5  ;;  %v6230_v6 = vunpack.c.l.s8.bf16 %v5318_v54  ;;  %v6232_v5 = vunpack.c.l.s8.bf16 %v5320_v13 }
 0x754   : > { %6560 = vmatprep.subr.bf16.mxu0 %v6135_v60  ;;  %6724 = vmatprep.subr.bf16.mxu1 %v6137_v33  ;;  %v6247_v60 = vunpack.c.h.s8.bf16 %v5319_v59  ;;  %v6249_v33 = vunpack.c.h.s8.bf16 %v5321_v40  ;;  %v5383_v59 = vld [vmem:[%s13024_s22 + $0xe88] sm:$0xff]  ;;  %v5385_v40 = vld [vmem:[%s13024_s22 + $0xe98] sm:$0xff] }
 0x757   : > { %6561 = vmatpush1.bf16.msra.mxu0 %v6134_v55  ;;  %6725 = vmatpush1.bf16.msra.mxu1 %v6136_v28  ;;  %v6246_v55 = vunpack.c.h.s8.bf16 %v5318_v54  ;;  %v6248_v28 = vunpack.c.h.s8.bf16 %v5320_v13  ;;  %v5382_v54 = vld [vmem:[%s13024_s22 + $0xe80] sm:$0xff]  ;;  %v5384_v13 = vld [vmem:[%s13024_s22 + $0xe90] sm:$0xff] }
 0x758   : > { %6562 = vmatprep.subr.bf16.mxu0 %v6151_v42  ;;  %6726 = vmatprep.subr.bf16.mxu1 %v6153_v45  ;;  %v6263_v42 = vunpack.c.l.s8.bf16 %v5335_v36  ;;  %v6265_v45 = vunpack.c.l.s8.bf16 %v5337_v46 }
 0x75b   : > { %6563 = vmatpush1.bf16.msra.mxu0 %v6150_v56  ;;  %6727 = vmatpush1.bf16.msra.mxu1 %v6152_v31  ;;  %v6264_v56 = vunpack.c.l.s8.bf16 %v5336_v43  ;;  %v6279_v31 = vunpack.c.h.s8.bf16 %v5335_v36  ;;  %v5399_v36 = vld [vmem:[%s13024_s22 + $0xf08] sm:$0xff]  ;;  %v5400_v43 = vld [vmem:[%s13024_s22 + $0xf10] sm:$0xff] }
 0x75c   : > { %6564 = vmatprep.subr.bf16.mxu0 %v6167_v27  ;;  %6728 = vmatprep.subr.bf16.mxu1 %v6169_v3  ;;  %v6281_v27 = vunpack.c.h.s8.bf16 %v5337_v46  ;;  %v5351_v3 = vld [vmem:[%s13024_s22 + $0xd88] sm:$0xff]  ;;  %v5401_v46 = vld [vmem:[%s13024_s22 + $0xf18] sm:$0xff] }
 0x75d   : > { %v6295_v19 = vunpack.c.l.s8.bf16 %v5351_v3  ;;  %v6311_v30 = vunpack.c.h.s8.bf16 %v5351_v3  ;;  %v6409_v3 = vunpack.c.h.s8.bf16 %v5401_v46 }
 0x75f   : > { %6565 = vmatpush1.bf16.msra.mxu0 %v6166_v49  ;;  %6729 = vmatpush1.bf16.msra.mxu1 %v6168_v1  ;;  %v6297_v49 = vunpack.c.l.s8.bf16 %v5353_v12  ;;  %v5350_v1 = vld [vmem:[%s13024_s22 + $0xd80] sm:$0xff]  ;;  %v5415_v12 = vld [vmem:[%s13024_s22 + $0xf88] sm:$0xff] }
 0x760   : > { %6566 = vmatprep.subr.bf16.mxu0 %v6183_v8  ;;  %6730 = vmatprep.subr.bf16.mxu1 %v6185_v34  ;;  %v5352_v8 = vld [vmem:[%s13024_s22 + $0xd90] sm:$0xff]  ;;  %v6294_v34 = vunpack.c.l.s8.bf16 %v5350_v1 }
 0x761   : > { %v6296_v22 = vunpack.c.l.s8.bf16 %v5352_v8 }
 0x763   : > { %6567 = vmatpush1.bf16.msra.mxu0 %v6182_v53  ;;  %6731 = vmatpush1.bf16.msra.mxu1 %v6184_v52  ;;  %v5369_v53 = vld [vmem:[%s13024_s22 + $0xe18] sm:$0xff]  ;;  %v6310_v52 = vunpack.c.h.s8.bf16 %v5350_v1 }
 0x764   : > { %6577 = vmatprep.subr.bf16.mxu0 %v6199_v37  ;;  %6741 = vmatprep.subr.bf16.mxu1 %v6201_v61  ;;  %v6312_v37 = vunpack.c.h.s8.bf16 %v5352_v8  ;;  %v6327_v61 = vunpack.c.l.s8.bf16 %v5367_v41  ;;  %v6329_v39 = vunpack.c.l.s8.bf16 %v5369_v53  ;;  %v6423_v8 = vunpack.c.l.s8.bf16 %v5415_v12 }
 0x766   : > { %6569 = vmatmul.mubr.bf16.vlgmr.msra.gmra.mrb[8].mxu0 %v15284_v18  ;;  %6733 = vmatmul.mubr.bf16.vlgmr.msra.gmra.mrb[8].mxu1 %v15284_v18 }
 0x767   : > { %6578 = vmatpush1.bf16.msra.mxu0 %v6198_v2  ;;  %6742 = vmatpush1.bf16.msra.mxu1 %v6200_v11  ;;  %v6326_v2 = vunpack.c.l.s8.bf16 %v5366_v4  ;;  %v6328_v11 = vunpack.c.l.s8.bf16 %v5368_v63 }
 0x768   : > { %6579 = vmatprep.subr.bf16.mxu0 %v6215_v24  ;;  %6743 = vmatprep.subr.bf16.mxu1 %v6217_v20  ;;  %v6343_v24 = vunpack.c.h.s8.bf16 %v5367_v41  ;;  %v6345_v20 = vunpack.c.h.s8.bf16 %v5369_v53 }
 0x769   : > { %6609 = vmatprep.mubr.bf16.mxu0 %v15288_v58  ;;  %6773 = vmatprep.mubr.bf16.mxu1 %v15288_v58 }
 0x76b   : > { %6580 = vmatpush1.bf16.msra.mxu0 %v6214_v44  ;;  %6744 = vmatpush1.bf16.msra.mxu1 %v6216_v23  ;;  %v6342_v44 = vunpack.c.h.s8.bf16 %v5366_v4  ;;  %v6344_v23 = vunpack.c.h.s8.bf16 %v5368_v63 }
 0x76c   : > { %6581 = vmatprep.subr.bf16.mxu0 %v6231_v47  ;;  %6745 = vmatprep.subr.bf16.mxu1 %v6233_v62  ;;  %v6359_v47 = vunpack.c.l.s8.bf16 %v5383_v59  ;;  %v6361_v62 = vunpack.c.l.s8.bf16 %v5385_v40 }
 0x76f   : > { %6582 = vmatpush1.bf16.msra.mxu0 %v6230_v6  ;;  %6746 = vmatpush1.bf16.msra.mxu1 %v6232_v5  ;;  %v6358_v6 = vunpack.c.l.s8.bf16 %v5382_v54  ;;  %v6360_v5 = vunpack.c.l.s8.bf16 %v5384_v13 }
 0x770   : > { %6583 = vmatprep.subr.bf16.mxu0 %v6247_v60  ;;  %6747 = vmatprep.subr.bf16.mxu1 %v6249_v33  ;;  %v6375_v60 = vunpack.c.h.s8.bf16 %v5383_v59  ;;  %v6377_v33 = vunpack.c.h.s8.bf16 %v5385_v40 }
 0x773   : > { %6584 = vmatpush1.bf16.msra.mxu0 %v6246_v55  ;;  %6748 = vmatpush1.bf16.msra.mxu1 %v6248_v28  ;;  %v6374_v55 = vunpack.c.h.s8.bf16 %v5382_v54  ;;  %v6376_v28 = vunpack.c.h.s8.bf16 %v5384_v13  ;;  %v4941_v54 = vld [vmem:[%s13024_s22 + $0xb8] sm:$0xff] }
 0x774   : > { %6585 = vmatprep.subr.bf16.mxu0 %v6263_v42  ;;  %6749 = vmatprep.subr.bf16.mxu1 %v6265_v45  ;;  %v6391_v42 = vunpack.c.l.s8.bf16 %v5399_v36  ;;  %v6393_v45 = vunpack.c.l.s8.bf16 %v5401_v46 }
 0x777   : > { %6586 = vmatpush1.bf16.msra.mxu0 %v6262_v48  ;;  %6750 = vmatpush1.bf16.msra.mxu1 %v6264_v56  ;;  %v6390_v48 = vunpack.c.l.s8.bf16 %v5398_v38  ;;  %v6392_v56 = vunpack.c.l.s8.bf16 %v5400_v43 }
 0x778   : > { %6587 = vmatprep.subr.bf16.mxu0 %v6279_v31  ;;  %6751 = vmatprep.subr.bf16.mxu1 %v6281_v27  ;;  %v15317_v31 = vsub.s32 6, %v15144_v14  ;;  %v6407_v27 = vunpack.c.h.s8.bf16 %v5399_v36  ;;  %v4940_v36 = vld [vmem:[%s13024_s22 + $0xb0] sm:$0xff] }
 0x77b   : > { %6588 = vmatpush1.bf16.msra.mxu0 %v6278_v15  ;;  %6752 = vmatpush1.bf16.msra.mxu1 %v6280_v50  ;;  %v5417_v15 = vld [vmem:[%s13024_s22 + $0xf98] sm:$0xff]  ;;  %v6406_v50 = vunpack.c.h.s8.bf16 %v5398_v38 }
 0x77c   : > { %6589 = vmatprep.subr.bf16.mxu0 %v6295_v19  ;;  %6753 = vmatprep.subr.bf16.mxu1 %v6297_v49  ;;  %v6408_v19 = vunpack.c.h.s8.bf16 %v5400_v43  ;;  %v12148_v49 = vld [vmem:[%s13022_s30] sm:$0xff] }
 0x77d   : > { %v4637_v1 = vrot.slane %v12148_v49, %v15317_v31  ;;  %v4957_v38 = vld [vmem:[%s13024_s22 + $0x138] sm:$0xff] }
 0x77e   : > { %v5517_v49 = vunpack.c.h.s8.bf16 %v4957_v38 }
 0x77f   : > { %6590 = vmatpush1.bf16.msra.mxu0 %v6294_v34  ;;  %6754 = vmatpush1.bf16.msra.mxu1 %v6296_v22  ;;  %v6425_v34 = vunpack.c.l.s8.bf16 %v5417_v15  ;;  %v5414_v22 = vld [vmem:[%s13024_s22 + $0xf80] sm:$0xff]  ;;  %v4892_v53 = vadd.f32 %v15192_v9, %v4637_v1  ;;  %v4971_v1 = vld [vmem:[%s13024_s22 + $0x1a8] sm:$0xff] }
 0x780   : > { %6591 = vmatprep.subr.bf16.mxu0 %v6311_v30  ;;  %6755 = vmatprep.subr.bf16.mxu1 %v6313_v25  ;;  %v5416_v30 = vld [vmem:[%s13024_s22 + $0xf90] sm:$0xff]  ;;  %v6422_v25 = vunpack.c.l.s8.bf16 %v5414_v22  ;;  %v6438_v4 = vunpack.c.h.s8.bf16 %v5414_v22  ;;  %v4922_v9 = vld [vmem:[%s13024_s22 + $0x20] sm:$0xff] }
 0x781   : > { %v6424_v41 = vunpack.c.l.s8.bf16 %v5416_v30  ;;  %v6440_v63 = vunpack.c.h.s8.bf16 %v5416_v30  ;;  %v5434_v59 = vunpack.c.l.s8.bf16 %v4922_v9  ;;  %v5450_v13 = vunpack.c.h.s8.bf16 %v4922_v9  ;;  %v4986_v9 = vld [vmem:[%s13024_s22 + $0x220] sm:$0xff] }
 0x782   : > { %v5531_v30 = vunpack.c.l.s8.bf16 %v4971_v1 }
 0x783   : > { %6592 = vmatpush1.bf16.msra.mxu0 %v6310_v52  ;;  %6756 = vmatpush1.bf16.msra.mxu1 %v6312_v37  ;;  %v6439_v52 = vunpack.c.h.s8.bf16 %v5415_v12  ;;  %v6441_v37 = vunpack.c.h.s8.bf16 %v5417_v15  ;;  %v4956_v12 = vld [vmem:[%s13024_s22 + $0x130] sm:$0xff] }
 0x784   : > { %6593 = vmatprep.subr.bf16.mxu0 %v6327_v61  ;;  %6757 = vmatprep.subr.bf16.mxu1 %v6329_v39  ;;  %v4923_v61 = vld [vmem:[%s13024_s22 + $0x28] sm:$0xff]  ;;  %v4925_v39 = vld [vmem:[%s13024_s22 + $0x38] sm:$0xff]  ;;  %v5516_v22 = vunpack.c.h.s8.bf16 %v4956_v12 }
 0x787   : > { %6594 = vmatpush1.bf16.msra.mxu0 %v6326_v2  ;;  %6758 = vmatpush1.bf16.msra.mxu1 %v6328_v11  ;;  %v4904_v2 = vmax.f32 %v4892_v53, 0.0  ;;  %v5435_v11 = vunpack.c.l.s8.bf16 %v4923_v61  ;;  %v4972_v53 = vld [vmem:[%s13024_s22 + $0x1b0] sm:$0xff] }
 0x788   : > { %6595 = vmatprep.subr.bf16.mxu0 %v6343_v24  ;;  %6759 = vmatprep.subr.bf16.mxu1 %v6345_v20  ;;  %v5437_v24 = vunpack.c.l.s8.bf16 %v4925_v39  ;;  %v4924_v20 = vld [vmem:[%s13024_s22 + $0x30] sm:$0xff] }
 0x789   : > { %v15330_v40 = vpack.c.bf16 %v4904_v2, %v4904_v2 }
 0x78b   : > { %6596 = vmatpush1.bf16.msra.mxu0 %v6342_v44  ;;  %6760 = vmatpush1.bf16.msra.mxu1 %v6344_v23  ;;  %v5436_v44 = vunpack.c.l.s8.bf16 %v4924_v20  ;;  %v5451_v23 = vunpack.c.h.s8.bf16 %v4923_v61  ;;  %v5547_v61 = vunpack.c.h.s8.bf16 %v4971_v1 }
 0x78c   : > { %6597 = vmatprep.subr.bf16.mxu0 %v6359_v47  ;;  %6761 = vmatprep.subr.bf16.mxu1 %v6361_v62  ;;  %v5453_v47 = vunpack.c.h.s8.bf16 %v4925_v39  ;;  %v4939_v62 = vld [vmem:[%s13024_s22 + $0xa8] sm:$0xff] }
 0x78f   : > { %6598 = vmatpush1.bf16.msra.mxu0 %v6358_v6  ;;  %6762 = vmatpush1.bf16.msra.mxu1 %v6360_v5  ;;  %v5452_v6 = vunpack.c.h.s8.bf16 %v4924_v20  ;;  %v5467_v5 = vunpack.c.l.s8.bf16 %v4939_v62 }
 0x790   : > { %6599 = vmatprep.subr.bf16.mxu0 %v6375_v60  ;;  %6763 = vmatprep.subr.bf16.mxu1 %v6377_v33  ;;  %v4938_v60 = vld [vmem:[%s13024_s22 + $0xa0] sm:$0xff]  ;;  %v5469_v33 = vunpack.c.l.s8.bf16 %v4941_v54 }
 0x791   : > { %v5466_v46 = vunpack.c.l.s8.bf16 %v4938_v60  ;;  %v5482_v43 = vunpack.c.h.s8.bf16 %v4938_v60 }
 0x793   : > { %6600 = vmatpush1.bf16.msra.mxu0 %v6374_v55  ;;  %6764 = vmatpush1.bf16.msra.mxu1 %v6376_v28  ;;  %v5468_v55 = vunpack.c.l.s8.bf16 %v4940_v36  ;;  %v5483_v28 = vunpack.c.h.s8.bf16 %v4939_v62 }
 0x794   : > { %6601 = vmatprep.subr.bf16.mxu0 %v6391_v42  ;;  %6765 = vmatprep.subr.bf16.mxu1 %v6393_v45  ;;  %v5485_v42 = vunpack.c.h.s8.bf16 %v4941_v54  ;;  %v4955_v45 = vld [vmem:[%s13024_s22 + $0x128] sm:$0xff] }
 0x795   : > { %v5003_v54 = vld [vmem:[%s13024_s22 + $0x2a8] sm:$0xff] }
 0x796   : > { %v5595_v60 = vunpack.c.l.s8.bf16 %v5003_v54 }
 0x797   : > { %6602 = vmatpush1.bf16.msra.mxu0 %v6390_v48  ;;  %6766 = vmatpush1.bf16.msra.mxu1 %v6392_v56  ;;  %v5484_v48 = vunpack.c.h.s8.bf16 %v4940_v36  ;;  %v5499_v56 = vunpack.c.l.s8.bf16 %v4955_v45 }
 0x798   : > { %6603 = vmatprep.subr.bf16.mxu0 %v6407_v27  ;;  %6767 = vmatprep.subr.bf16.mxu1 %v6409_v3  ;;  %v4954_v27 = vld [vmem:[%s13024_s22 + $0x120] sm:$0xff]  ;;  %v5501_v3 = vunpack.c.l.s8.bf16 %v4957_v38  ;;  %v5019_v38 = vld [vmem:[%s13024_s22 + $0x328] sm:$0xff] }
 0x799   : > { %v5498_v15 = vunpack.c.l.s8.bf16 %v4954_v27 }
 0x79b   : > { %6604 = vmatpush1.bf16.msra.mxu0 %v6406_v50  ;;  %6768 = vmatpush1.bf16.msra.mxu1 %v6408_v19  ;;  %v5500_v50 = vunpack.c.l.s8.bf16 %v4956_v12  ;;  %v5515_v19 = vunpack.c.h.s8.bf16 %v4955_v45 }
 0x79c   : > { %6605 = vmatprep.subr.bf16.mxu0 %v6423_v8  ;;  %6769 = vmatprep.subr.bf16.mxu1 %v6425_v34  ;;  %v4973_v8 = vld [vmem:[%s13024_s22 + $0x1b8] sm:$0xff]  ;;  %v5514_v34 = vunpack.c.h.s8.bf16 %v4954_v27  ;;  %v5627_v27 = vunpack.c.l.s8.bf16 %v5019_v38 }
 0x79d   : > { %v5549_v39 = vunpack.c.h.s8.bf16 %v4973_v8 }
 0x79f   : > { %6606 = vmatpush1.bf16.msra.mxu0 %v6422_v25  ;;  %6770 = vmatpush1.bf16.msra.mxu1 %v6424_v41  ;;  %v4970_v25 = vld [vmem:[%s13024_s22 + $0x1a0] sm:$0xff]  ;;  %v5533_v41 = vunpack.c.l.s8.bf16 %v4973_v8  ;;  %v5035_v8 = vld [vmem:[%s13024_s22 + $0x3a8] sm:$0xff] }
 0x7a0   : > { %6607 = vmatprep.subr.bf16.mxu0 %v6439_v52  ;;  %6771 = vmatprep.subr.bf16.mxu1 %v6441_v37  ;;  %v5530_v52 = vunpack.c.l.s8.bf16 %v4970_v25  ;;  %v5532_v37 = vunpack.c.l.s8.bf16 %v4972_v53  ;;  %v5546_v2 = vunpack.c.h.s8.bf16 %v4970_v25  ;;  %v5659_v25 = vunpack.c.l.s8.bf16 %v5035_v8 }
 0x7a3   : > { %6608 = vmatpush1.bf16.msra.mxu0 %v6438_v4  ;;  %6772 = vmatpush1.bf16.msra.mxu1 %v6440_v63  ;;  %v4987_v4 = vld [vmem:[%s13024_s22 + $0x228] sm:$0xff]  ;;  %v4989_v63 = vld [vmem:[%s13024_s22 + $0x238] sm:$0xff] }
 0x7a4   : > { %6782 = vmatprep.subr.bf16.mxu0 %v5435_v11  ;;  %6946 = vmatprep.subr.bf16.mxu1 %v5437_v24  ;;  %v5548_v11 = vunpack.c.h.s8.bf16 %v4972_v53  ;;  %v5563_v24 = vunpack.c.l.s8.bf16 %v4987_v4  ;;  %v5565_v20 = vunpack.c.l.s8.bf16 %v4989_v63  ;;  %v5581_v62 = vunpack.c.h.s8.bf16 %v4989_v63  ;;  %v5051_v63 = vld [vmem:[%s13024_s22 + $0x428] sm:$0xff] }
 0x7a6   : > { %6610 = vmatmul.mubr.bf16.vlgmr.msra.gmra.mrb[8].mxu0 %v15330_v40  ;;  %6774 = vmatmul.mubr.bf16.vlgmr.msra.gmra.mrb[8].mxu1 %v15330_v40 }
 0x7a7   : > { %6783 = vmatpush1.bf16.msra.mxu0 %v5434_v59  ;;  %6814 = vmatprep.mubr.bf16.mxu0 %v15168_v17  ;;  %v4988_v59 = vld [vmem:[%s13024_s22 + $0x230] sm:$0xff] }
 0x7a8   : > { %6947 = vmatpush1.bf16.msra.mxu1 %v5436_v44  ;;  %6978 = vmatprep.mubr.bf16.mxu1 %v15168_v17  ;;  %v5562_v44 = vunpack.c.l.s8.bf16 %v4986_v9 }
 0x7a9   : > { %6784 = vmatprep.subr.bf16.mxu0 %v5451_v23  ;;  %6948 = vmatprep.subr.bf16.mxu1 %v5453_v47  ;;  %v5564_v23 = vunpack.c.l.s8.bf16 %v4988_v59  ;;  %v5579_v47 = vunpack.c.h.s8.bf16 %v4987_v4 }
 0x7ab   : > { %6785 = vmatpush1.bf16.msra.mxu0 %v5450_v13  ;;  %v5005_v13 = vld [vmem:[%s13024_s22 + $0x2b8] sm:$0xff] }
 0x7ac   : > { %6949 = vmatpush1.bf16.msra.mxu1 %v5452_v6  ;;  %6786 = vmatprep.subr.bf16.mxu0 %v5467_v5  ;;  %v5578_v6 = vunpack.c.h.s8.bf16 %v4986_v9  ;;  %v5580_v5 = vunpack.c.h.s8.bf16 %v4988_v59  ;;  %v5597_v36 = vunpack.c.l.s8.bf16 %v5005_v13  ;;  %v5613_v45 = vunpack.c.h.s8.bf16 %v5005_v13 }
 0x7ad   : > { %6950 = vmatprep.subr.bf16.mxu1 %v5469_v33  ;;  %v5002_v33 = vld [vmem:[%s13024_s22 + $0x2a0] sm:$0xff]  ;;  %v5691_v9 = vunpack.c.l.s8.bf16 %v5051_v63 }
 0x7af   : > { %6787 = vmatpush1.bf16.msra.mxu0 %v5466_v46  ;;  %v5004_v46 = vld [vmem:[%s13024_s22 + $0x2b0] sm:$0xff] }
 0x7b0   : > { %6951 = vmatpush1.bf16.msra.mxu1 %v5468_v55  ;;  %6788 = vmatprep.subr.bf16.mxu0 %v5483_v28  ;;  %v5594_v55 = vunpack.c.l.s8.bf16 %v5002_v33  ;;  %v5596_v28 = vunpack.c.l.s8.bf16 %v5004_v46 }
 0x7b1   : > { %6952 = vmatprep.subr.bf16.mxu1 %v5485_v42  ;;  %v5611_v42 = vunpack.c.h.s8.bf16 %v5003_v54  ;;  %v5067_v54 = vld [vmem:[%s13024_s22 + $0x4a8] sm:$0xff] }
 0x7b3   : > { %6789 = vmatpush1.bf16.msra.mxu0 %v5482_v43  ;;  %v5021_v43 = vld [vmem:[%s13024_s22 + $0x338] sm:$0xff] }
 0x7b4   : > { %6953 = vmatpush1.bf16.msra.mxu1 %v5484_v48  ;;  %6790 = vmatprep.subr.bf16.mxu0 %v5499_v56  ;;  %v5610_v48 = vunpack.c.h.s8.bf16 %v5002_v33  ;;  %v5612_v56 = vunpack.c.h.s8.bf16 %v5004_v46  ;;  %v5629_v12 = vunpack.c.l.s8.bf16 %v5021_v43  ;;  %v5645_v1 = vunpack.c.h.s8.bf16 %v5021_v43  ;;  %v5083_v43 = vld [vmem:[%s13024_s22 + $0x528] sm:$0xff] }
 0x7b5   : > { %6954 = vmatprep.subr.bf16.mxu1 %v5501_v3  ;;  %v5018_v3 = vld [vmem:[%s13024_s22 + $0x320] sm:$0xff]  ;;  %v5723_v33 = vunpack.c.l.s8.bf16 %v5067_v54 }
 0x7b7   : > { %6791 = vmatpush1.bf16.msra.mxu0 %v5498_v15  ;;  %v5020_v15 = vld [vmem:[%s13024_s22 + $0x330] sm:$0xff] }
 0x7b8   : > { %6955 = vmatpush1.bf16.msra.mxu1 %v5500_v50  ;;  %6792 = vmatprep.subr.bf16.mxu0 %v5515_v19  ;;  %v5626_v50 = vunpack.c.l.s8.bf16 %v5018_v3  ;;  %v5628_v19 = vunpack.c.l.s8.bf16 %v5020_v15 }
 0x7b9   : > { %6956 = vmatprep.subr.bf16.mxu1 %v5517_v49  ;;  %v5643_v49 = vunpack.c.h.s8.bf16 %v5019_v38 }
 0x7bb   : > { %6793 = vmatpush1.bf16.msra.mxu0 %v5514_v34  ;;  %v5037_v34 = vld [vmem:[%s13024_s22 + $0x3b8] sm:$0xff] }
 0x7bc   : > { %6957 = vmatpush1.bf16.msra.mxu1 %v5516_v22  ;;  %6794 = vmatprep.subr.bf16.mxu0 %v5531_v30  ;;  %v5642_v22 = vunpack.c.h.s8.bf16 %v5018_v3  ;;  %v5644_v30 = vunpack.c.h.s8.bf16 %v5020_v15  ;;  %v5661_v53 = vunpack.c.l.s8.bf16 %v5037_v34  ;;  %v5677_v4 = vunpack.c.h.s8.bf16 %v5037_v34  ;;  %v5099_v34 = vld [vmem:[%s13024_s22 + $0x5a8] sm:$0xff] }
 0x7bd   : > { %6958 = vmatprep.subr.bf16.mxu1 %v5533_v41  ;;  %v5034_v41 = vld [vmem:[%s13024_s22 + $0x3a0] sm:$0xff]  ;;  %v5755_v3 = vunpack.c.l.s8.bf16 %v5083_v43 }
 0x7bf   : > { %6795 = vmatpush1.bf16.msra.mxu0 %v5530_v52  ;;  %v5036_v52 = vld [vmem:[%s13024_s22 + $0x3b0] sm:$0xff] }
 0x7c0   : > { %6959 = vmatpush1.bf16.msra.mxu1 %v5532_v37  ;;  %6796 = vmatprep.subr.bf16.mxu0 %v5547_v61  ;;  %v5658_v37 = vunpack.c.l.s8.bf16 %v5034_v41  ;;  %v5660_v61 = vunpack.c.l.s8.bf16 %v5036_v52 }
 0x7c1   : > { %6960 = vmatprep.subr.bf16.mxu1 %v5549_v39  ;;  %v5675_v39 = vunpack.c.h.s8.bf16 %v5035_v8 }
 0x7c3   : > { %6797 = vmatpush1.bf16.msra.mxu0 %v5546_v2  ;;  %v5053_v2 = vld [vmem:[%s13024_s22 + $0x438] sm:$0xff] }
 0x7c4   : > { %6961 = vmatpush1.bf16.msra.mxu1 %v5548_v11  ;;  %6798 = vmatprep.subr.bf16.mxu0 %v5563_v24  ;;  %v5674_v11 = vunpack.c.h.s8.bf16 %v5034_v41  ;;  %v5676_v24 = vunpack.c.h.s8.bf16 %v5036_v52  ;;  %v5693_v59 = vunpack.c.l.s8.bf16 %v5053_v2  ;;  %v5709_v13 = vunpack.c.h.s8.bf16 %v5053_v2  ;;  %v5115_v2 = vld [vmem:[%s13024_s22 + $0x628] sm:$0xff] }
 0x7c5   : > { %6962 = vmatprep.subr.bf16.mxu1 %v5565_v20  ;;  %v5050_v20 = vld [vmem:[%s13024_s22 + $0x420] sm:$0xff]  ;;  %v5787_v41 = vunpack.c.l.s8.bf16 %v5099_v34 }
 0x7c7   : > { %6799 = vmatpush1.bf16.msra.mxu0 %v5562_v44  ;;  %v5052_v44 = vld [vmem:[%s13024_s22 + $0x430] sm:$0xff] }
 0x7c8   : > { %6963 = vmatpush1.bf16.msra.mxu1 %v5564_v23  ;;  %6800 = vmatprep.subr.bf16.mxu0 %v5579_v47  ;;  %v5690_v23 = vunpack.c.l.s8.bf16 %v5050_v20  ;;  %v5692_v47 = vunpack.c.l.s8.bf16 %v5052_v44 }
 0x7c9   : > { %6964 = vmatprep.subr.bf16.mxu1 %v5581_v62  ;;  %v5707_v62 = vunpack.c.h.s8.bf16 %v5051_v63 }
 0x7cb   : > { %6801 = vmatpush1.bf16.msra.mxu0 %v5578_v6  ;;  %v5069_v6 = vld [vmem:[%s13024_s22 + $0x4b8] sm:$0xff] }
 0x7cc   : > { %6965 = vmatpush1.bf16.msra.mxu1 %v5580_v5  ;;  %6802 = vmatprep.subr.bf16.mxu0 %v5595_v60  ;;  %v5706_v5 = vunpack.c.h.s8.bf16 %v5050_v20  ;;  %v5708_v60 = vunpack.c.h.s8.bf16 %v5052_v44  ;;  %v5725_v46 = vunpack.c.l.s8.bf16 %v5069_v6  ;;  %v5741_v38 = vunpack.c.h.s8.bf16 %v5069_v6  ;;  %v5131_v6 = vld [vmem:[%s13024_s22 + $0x6a8] sm:$0xff] }
 0x7cd   : > { %6966 = vmatprep.subr.bf16.mxu1 %v5597_v36  ;;  %v5066_v36 = vld [vmem:[%s13024_s22 + $0x4a0] sm:$0xff]  ;;  %v5819_v20 = vunpack.c.l.s8.bf16 %v5115_v2 }
 0x7cf   : > { %6803 = vmatpush1.bf16.msra.mxu0 %v5594_v55  ;;  %v5068_v55 = vld [vmem:[%s13024_s22 + $0x4b0] sm:$0xff] }
 0x7d0   : > { %6967 = vmatpush1.bf16.msra.mxu1 %v5596_v28  ;;  %6804 = vmatprep.subr.bf16.mxu0 %v5611_v42  ;;  %v5722_v28 = vunpack.c.l.s8.bf16 %v5066_v36  ;;  %v5724_v42 = vunpack.c.l.s8.bf16 %v5068_v55 }
 0x7d1   : > { %6968 = vmatprep.subr.bf16.mxu1 %v5613_v45  ;;  %v5739_v45 = vunpack.c.h.s8.bf16 %v5067_v54  ;;  %v5835_v54 = vunpack.c.h.s8.bf16 %v5115_v2 }
 0x7d3   : > { %6805 = vmatpush1.bf16.msra.mxu0 %v5610_v48  ;;  %v5085_v48 = vld [vmem:[%s13024_s22 + $0x538] sm:$0xff] }
 0x7d4   : > { %6969 = vmatpush1.bf16.msra.mxu1 %v5612_v56  ;;  %6806 = vmatprep.subr.bf16.mxu0 %v5627_v27  ;;  %v5738_v56 = vunpack.c.h.s8.bf16 %v5066_v36  ;;  %v5740_v27 = vunpack.c.h.s8.bf16 %v5068_v55  ;;  %v5757_v15 = vunpack.c.l.s8.bf16 %v5085_v48  ;;  %v5773_v8 = vunpack.c.h.s8.bf16 %v5085_v48  ;;  %v5147_v48 = vld [vmem:[%s13024_s22 + $0x728] sm:$0xff] }
 0x7d5   : > { %6970 = vmatprep.subr.bf16.mxu1 %v5629_v12  ;;  %v5082_v12 = vld [vmem:[%s13024_s22 + $0x520] sm:$0xff]  ;;  %v5851_v36 = vunpack.c.l.s8.bf16 %v5131_v6 }
 0x7d7   : > { %6807 = vmatpush1.bf16.msra.mxu0 %v5626_v50  ;;  %v5084_v50 = vld [vmem:[%s13024_s22 + $0x530] sm:$0xff] }
 0x7d8   : > { %6971 = vmatpush1.bf16.msra.mxu1 %v5628_v19  ;;  %6808 = vmatprep.subr.bf16.mxu0 %v5643_v49  ;;  %v5754_v19 = vunpack.c.l.s8.bf16 %v5082_v12  ;;  %v5756_v49 = vunpack.c.l.s8.bf16 %v5084_v50 }
 0x7d9   : > { %6972 = vmatprep.subr.bf16.mxu1 %v5645_v1  ;;  %v5771_v1 = vunpack.c.h.s8.bf16 %v5083_v43 }
 0x7db   : > { %6809 = vmatpush1.bf16.msra.mxu0 %v5642_v22  ;;  %v5101_v22 = vld [vmem:[%s13024_s22 + $0x5b8] sm:$0xff] }
 0x7dc   : > { %6973 = vmatpush1.bf16.msra.mxu1 %v5644_v30  ;;  %6810 = vmatprep.subr.bf16.mxu0 %v5659_v25  ;;  %v5770_v30 = vunpack.c.h.s8.bf16 %v5082_v12  ;;  %v5772_v25 = vunpack.c.h.s8.bf16 %v5084_v50  ;;  %v5789_v52 = vunpack.c.l.s8.bf16 %v5101_v22  ;;  %v5805_v63 = vunpack.c.h.s8.bf16 %v5101_v22  ;;  %v5163_v22 = vld [vmem:[%s13024_s22 + $0x7a8] sm:$0xff] }
 0x7dd   : > { %6974 = vmatprep.subr.bf16.mxu1 %v5661_v53  ;;  %v5098_v53 = vld [vmem:[%s13024_s22 + $0x5a0] sm:$0xff]  ;;  %v5883_v12 = vunpack.c.l.s8.bf16 %v5147_v48 }
 0x7df   : > { %6811 = vmatpush1.bf16.msra.mxu0 %v5658_v37  ;;  %v5100_v37 = vld [vmem:[%s13024_s22 + $0x5b0] sm:$0xff] }
 0x7e0   : > { %6975 = vmatpush1.bf16.msra.mxu1 %v5660_v61  ;;  %6812 = vmatprep.subr.bf16.mxu0 %v5675_v39  ;;  %v5786_v61 = vunpack.c.l.s8.bf16 %v5098_v53  ;;  %v5788_v39 = vunpack.c.l.s8.bf16 %v5100_v37 }
 0x7e1   : > { %6976 = vmatprep.subr.bf16.mxu1 %v5677_v4  ;;  %v5803_v4 = vunpack.c.h.s8.bf16 %v5099_v34 }
 0x7e3   : > { %6813 = vmatpush1.bf16.msra.mxu0 %v5674_v11  ;;  %v5117_v11 = vld [vmem:[%s13024_s22 + $0x638] sm:$0xff] }
 0x7e4   : > { %6977 = vmatpush1.bf16.msra.mxu1 %v5676_v24  ;;  %6823 = vmatprep.subr.bf16.mxu0 %v5691_v9  ;;  %v5802_v24 = vunpack.c.h.s8.bf16 %v5098_v53  ;;  %v5804_v9 = vunpack.c.h.s8.bf16 %v5100_v37  ;;  %v5821_v44 = vunpack.c.l.s8.bf16 %v5117_v11  ;;  %v5915_v53 = vunpack.c.l.s8.bf16 %v5163_v22 }
 0x7e5   : > { %6987 = vmatprep.subr.bf16.mxu1 %v5693_v59  ;;  %v5114_v59 = vld [vmem:[%s13024_s22 + $0x620] sm:$0xff] }
 0x7e6   : > { %6815 = vmatmul.mubr.bf16.vlgmr.msra.gmra.mrb[12].mxu0 %v15170_v0 }
 0x7e7   : > { %6979 = vmatmul.mubr.bf16.vlgmr.msra.gmra.mrb[12].mxu1 %v15170_v0  ;;  %6824 = vmatpush1.bf16.msra.mxu0 %v5690_v23  ;;  %v5116_v23 = vld [vmem:[%s13024_s22 + $0x630] sm:$0xff] }
 0x7e8   : > { %6855 = vmatprep.mubr.bf16.mxu0 %v15176_v29  ;;  %6988 = vmatpush1.bf16.msra.mxu1 %v5692_v47  ;;  %v5818_v47 = vunpack.c.l.s8.bf16 %v5114_v59 }
 0x7e9   : > { %7019 = vmatprep.mubr.bf16.mxu1 %v15176_v29  ;;  %6825 = vmatprep.subr.bf16.mxu0 %v5707_v62  ;;  %v5820_v62 = vunpack.c.l.s8.bf16 %v5116_v23 }
 0x7ea   : > { %6989 = vmatprep.subr.bf16.mxu1 %v5709_v13  ;;  %v5837_v13 = vunpack.c.h.s8.bf16 %v5117_v11  ;;  %v5179_v11 = vld [vmem:[%s13024_s22 + $0x828] sm:$0xff] }
 0x7eb   : > { %6826 = vmatpush1.bf16.msra.mxu0 %v5706_v5  ;;  %v5133_v5 = vld [vmem:[%s13024_s22 + $0x6b8] sm:$0xff] }
 0x7ec   : > { %6990 = vmatpush1.bf16.msra.mxu1 %v5708_v60  ;;  %6827 = vmatprep.subr.bf16.mxu0 %v5723_v33  ;;  %v5834_v60 = vunpack.c.h.s8.bf16 %v5114_v59  ;;  %v5836_v33 = vunpack.c.h.s8.bf16 %v5116_v23  ;;  %v5853_v55 = vunpack.c.l.s8.bf16 %v5133_v5  ;;  %v5869_v43 = vunpack.c.h.s8.bf16 %v5133_v5 }
 0x7ed   : > { %6991 = vmatprep.subr.bf16.mxu1 %v5725_v46  ;;  %v5130_v46 = vld [vmem:[%s13024_s22 + $0x6a0] sm:$0xff]  ;;  %v5947_v59 = vunpack.c.l.s8.bf16 %v5179_v11 }
 0x7ef   : > { %6828 = vmatpush1.bf16.msra.mxu0 %v5722_v28  ;;  %v5132_v28 = vld [vmem:[%s13024_s22 + $0x6b0] sm:$0xff] }
 0x7f0   : > { %6992 = vmatpush1.bf16.msra.mxu1 %v5724_v42  ;;  %6829 = vmatprep.subr.bf16.mxu0 %v5739_v45  ;;  %v5850_v42 = vunpack.c.l.s8.bf16 %v5130_v46  ;;  %v5852_v45 = vunpack.c.l.s8.bf16 %v5132_v28 }
 0x7f1   : > { %6993 = vmatprep.subr.bf16.mxu1 %v5741_v38  ;;  %v5867_v38 = vunpack.c.h.s8.bf16 %v5131_v6  ;;  %v5195_v6 = vld [vmem:[%s13024_s22 + $0x8a8] sm:$0xff] }
 0x7f3   : > { %6830 = vmatpush1.bf16.msra.mxu0 %v5738_v56  ;;  %v5149_v56 = vld [vmem:[%s13024_s22 + $0x738] sm:$0xff] }
 0x7f4   : > { %6994 = vmatpush1.bf16.msra.mxu1 %v5740_v27  ;;  %6831 = vmatprep.subr.bf16.mxu0 %v5755_v3  ;;  %v5866_v27 = vunpack.c.h.s8.bf16 %v5130_v46  ;;  %v5868_v3 = vunpack.c.h.s8.bf16 %v5132_v28  ;;  %v5885_v50 = vunpack.c.l.s8.bf16 %v5149_v56  ;;  %v5901_v34 = vunpack.c.h.s8.bf16 %v5149_v56  ;;  %v5211_v56 = vld [vmem:[%s13024_s22 + $0x928] sm:$0xff] }
 0x7f5   : > { %6995 = vmatprep.subr.bf16.mxu1 %v5757_v15  ;;  %v5146_v15 = vld [vmem:[%s13024_s22 + $0x720] sm:$0xff]  ;;  %v5979_v46 = vunpack.c.l.s8.bf16 %v5195_v6 }
 0x7f7   : > { %6832 = vmatpush1.bf16.msra.mxu0 %v5754_v19  ;;  %v5148_v19 = vld [vmem:[%s13024_s22 + $0x730] sm:$0xff] }
 0x7f8   : > { %6996 = vmatpush1.bf16.msra.mxu1 %v5756_v49  ;;  %6833 = vmatprep.subr.bf16.mxu0 %v5771_v1  ;;  %v5882_v49 = vunpack.c.l.s8.bf16 %v5146_v15  ;;  %v5884_v1 = vunpack.c.l.s8.bf16 %v5148_v19 }
 0x7f9   : > { %6997 = vmatprep.subr.bf16.mxu1 %v5773_v8  ;;  %v5899_v8 = vunpack.c.h.s8.bf16 %v5147_v48 }
 0x7fb   : > { %6834 = vmatpush1.bf16.msra.mxu0 %v5770_v30  ;;  %v5165_v30 = vld [vmem:[%s13024_s22 + $0x7b8] sm:$0xff] }
 0x7fc   : > { %6998 = vmatpush1.bf16.msra.mxu1 %v5772_v25  ;;  %6835 = vmatprep.subr.bf16.mxu0 %v5787_v41  ;;  %v5898_v25 = vunpack.c.h.s8.bf16 %v5146_v15  ;;  %v5900_v41 = vunpack.c.h.s8.bf16 %v5148_v19  ;;  %v5917_v37 = vunpack.c.l.s8.bf16 %v5165_v30  ;;  %v5933_v2 = vunpack.c.h.s8.bf16 %v5165_v30  ;;  %v5227_v30 = vld [vmem:[%s13024_s22 + $0x9a8] sm:$0xff] }
 0x7fd   : > { %6999 = vmatprep.subr.bf16.mxu1 %v5789_v52  ;;  %v5162_v52 = vld [vmem:[%s13024_s22 + $0x7a0] sm:$0xff]  ;;  %v6011_v15 = vunpack.c.l.s8.bf16 %v5211_v56 }
 0x7ff   : > { %6836 = vmatpush1.bf16.msra.mxu0 %v5786_v61  ;;  %v5164_v61 = vld [vmem:[%s13024_s22 + $0x7b0] sm:$0xff] }
 0x800   : > { %7000 = vmatpush1.bf16.msra.mxu1 %v5788_v39  ;;  %6837 = vmatprep.subr.bf16.mxu0 %v5803_v4  ;;  %v5914_v39 = vunpack.c.l.s8.bf16 %v5162_v52  ;;  %v5916_v4 = vunpack.c.l.s8.bf16 %v5164_v61 }
 0x801   : > { %7001 = vmatprep.subr.bf16.mxu1 %v5805_v63  ;;  %v5931_v63 = vunpack.c.h.s8.bf16 %v5163_v22 }
 0x803   : > { %6838 = vmatpush1.bf16.msra.mxu0 %v5802_v24  ;;  %v5181_v24 = vld [vmem:[%s13024_s22 + $0x838] sm:$0xff] }
 0x804   : > { %7002 = vmatpush1.bf16.msra.mxu1 %v5804_v9  ;;  %6839 = vmatprep.subr.bf16.mxu0 %v5819_v20  ;;  %v5930_v9 = vunpack.c.h.s8.bf16 %v5162_v52  ;;  %v5932_v20 = vunpack.c.h.s8.bf16 %v5164_v61  ;;  %v5949_v23 = vunpack.c.l.s8.bf16 %v5181_v24  ;;  %v5965_v5 = vunpack.c.h.s8.bf16 %v5181_v24  ;;  %v5243_v24 = vld [vmem:[%s13024_s22 + $0xa28] sm:$0xff] }
 0x805   : > { %7003 = vmatprep.subr.bf16.mxu1 %v5821_v44  ;;  %v5178_v44 = vld [vmem:[%s13024_s22 + $0x820] sm:$0xff]  ;;  %v6043_v52 = vunpack.c.l.s8.bf16 %v5227_v30 }
 0x807   : > { %6840 = vmatpush1.bf16.msra.mxu0 %v5818_v47  ;;  %v5180_v47 = vld [vmem:[%s13024_s22 + $0x830] sm:$0xff] }
 0x808   : > { %7004 = vmatpush1.bf16.msra.mxu1 %v5820_v62  ;;  %6841 = vmatprep.subr.bf16.mxu0 %v5835_v54  ;;  %v5946_v62 = vunpack.c.l.s8.bf16 %v5178_v44  ;;  %v5948_v54 = vunpack.c.l.s8.bf16 %v5180_v47 }
 0x809   : > { %7005 = vmatprep.subr.bf16.mxu1 %v5837_v13  ;;  %v5963_v13 = vunpack.c.h.s8.bf16 %v5179_v11 }
 0x80b   : > { %6842 = vmatpush1.bf16.msra.mxu0 %v5834_v60  ;;  %v5197_v60 = vld [vmem:[%s13024_s22 + $0x8b8] sm:$0xff] }
 0x80c   : > { %7006 = vmatpush1.bf16.msra.mxu1 %v5836_v33  ;;  %6843 = vmatprep.subr.bf16.mxu0 %v5851_v36  ;;  %v5962_v33 = vunpack.c.h.s8.bf16 %v5178_v44  ;;  %v5964_v36 = vunpack.c.h.s8.bf16 %v5180_v47  ;;  %v5981_v28 = vunpack.c.l.s8.bf16 %v5197_v60  ;;  %v5997_v48 = vunpack.c.h.s8.bf16 %v5197_v60  ;;  %v5259_v60 = vld [vmem:[%s13024_s22 + $0xaa8] sm:$0xff] }
 0x80d   : > { %7007 = vmatprep.subr.bf16.mxu1 %v5853_v55  ;;  %v5194_v55 = vld [vmem:[%s13024_s22 + $0x8a0] sm:$0xff]  ;;  %v6075_v44 = vunpack.c.l.s8.bf16 %v5243_v24 }
 0x80f   : > { %6844 = vmatpush1.bf16.msra.mxu0 %v5850_v42  ;;  %v5196_v42 = vld [vmem:[%s13024_s22 + $0x8b0] sm:$0xff] }
 0x810   : > { %7008 = vmatpush1.bf16.msra.mxu1 %v5852_v45  ;;  %6845 = vmatprep.subr.bf16.mxu0 %v5867_v38  ;;  %v5978_v45 = vunpack.c.l.s8.bf16 %v5194_v55  ;;  %v5980_v38 = vunpack.c.l.s8.bf16 %v5196_v42 }
 0x811   : > { %7009 = vmatprep.subr.bf16.mxu1 %v5869_v43  ;;  %v5995_v43 = vunpack.c.h.s8.bf16 %v5195_v6  ;;  %v6091_v6 = vunpack.c.h.s8.bf16 %v5243_v24 }
 0x813   : > { %6846 = vmatpush1.bf16.msra.mxu0 %v5866_v27  ;;  %v5213_v27 = vld [vmem:[%s13024_s22 + $0x938] sm:$0xff] }
 0x814   : > { %7010 = vmatpush1.bf16.msra.mxu1 %v5868_v3  ;;  %6847 = vmatprep.subr.bf16.mxu0 %v5883_v12  ;;  %v5994_v3 = vunpack.c.h.s8.bf16 %v5194_v55  ;;  %v5996_v12 = vunpack.c.h.s8.bf16 %v5196_v42  ;;  %v6013_v19 = vunpack.c.l.s8.bf16 %v5213_v27  ;;  %v6029_v22 = vunpack.c.h.s8.bf16 %v5213_v27  ;;  %v5275_v27 = vld [vmem:[%s13024_s22 + $0xb28] sm:$0xff] }
 0x815   : > { %7011 = vmatprep.subr.bf16.mxu1 %v5885_v50  ;;  %v5210_v50 = vld [vmem:[%s13024_s22 + $0x920] sm:$0xff]  ;;  %v6107_v55 = vunpack.c.l.s8.bf16 %v5259_v60 }
 0x817   : > { %6848 = vmatpush1.bf16.msra.mxu0 %v5882_v49  ;;  %v5212_v49 = vld [vmem:[%s13024_s22 + $0x930] sm:$0xff] }
 0x818   : > { %7012 = vmatpush1.bf16.msra.mxu1 %v5884_v1  ;;  %6849 = vmatprep.subr.bf16.mxu0 %v5899_v8  ;;  %v6010_v1 = vunpack.c.l.s8.bf16 %v5210_v50  ;;  %v6012_v8 = vunpack.c.l.s8.bf16 %v5212_v49 }
 0x819   : > { %7013 = vmatprep.subr.bf16.mxu1 %v5901_v34  ;;  %v6027_v34 = vunpack.c.h.s8.bf16 %v5211_v56 }
 0x81b   : > { %6850 = vmatpush1.bf16.msra.mxu0 %v5898_v25  ;;  %v5229_v25 = vld [vmem:[%s13024_s22 + $0x9b8] sm:$0xff] }
 0x81c   : > { %7014 = vmatpush1.bf16.msra.mxu1 %v5900_v41  ;;  %6851 = vmatprep.subr.bf16.mxu0 %v5915_v53  ;;  %v6026_v41 = vunpack.c.h.s8.bf16 %v5210_v50  ;;  %v6028_v53 = vunpack.c.h.s8.bf16 %v5212_v49  ;;  %v6045_v61 = vunpack.c.l.s8.bf16 %v5229_v25  ;;  %v6061_v11 = vunpack.c.h.s8.bf16 %v5229_v25  ;;  %v5291_v25 = vld [vmem:[%s13024_s22 + $0xba8] sm:$0xff] }
 0x81d   : > { %7015 = vmatprep.subr.bf16.mxu1 %v5917_v37  ;;  %v5226_v37 = vld [vmem:[%s13024_s22 + $0x9a0] sm:$0xff]  ;;  %v6139_v50 = vunpack.c.l.s8.bf16 %v5275_v27 }
 0x81f   : > { %6852 = vmatpush1.bf16.msra.mxu0 %v5914_v39  ;;  %v5228_v39 = vld [vmem:[%s13024_s22 + $0x9b0] sm:$0xff] }
 0x820   : > { %7016 = vmatpush1.bf16.msra.mxu1 %v5916_v4  ;;  %6853 = vmatprep.subr.bf16.mxu0 %v5931_v63  ;;  %v6042_v4 = vunpack.c.l.s8.bf16 %v5226_v37  ;;  %v6044_v63 = vunpack.c.l.s8.bf16 %v5228_v39 }
 0x821   : > { %7017 = vmatprep.subr.bf16.mxu1 %v5933_v2  ;;  %v6059_v2 = vunpack.c.h.s8.bf16 %v5227_v30 }
 0x823   : > { %6854 = vmatpush1.bf16.msra.mxu0 %v5930_v9  ;;  %v5245_v9 = vld [vmem:[%s13024_s22 + $0xa38] sm:$0xff] }
 0x824   : > { %7018 = vmatpush1.bf16.msra.mxu1 %v5932_v20  ;;  %6864 = vmatprep.subr.bf16.mxu0 %v5947_v59  ;;  %v6058_v20 = vunpack.c.h.s8.bf16 %v5226_v37  ;;  %v6060_v59 = vunpack.c.h.s8.bf16 %v5228_v39  ;;  %v6077_v47 = vunpack.c.l.s8.bf16 %v5245_v9  ;;  %v6171_v37 = vunpack.c.l.s8.bf16 %v5291_v25 }
 0x825   : > { %7028 = vmatprep.subr.bf16.mxu1 %v5949_v23  ;;  %v5242_v23 = vld [vmem:[%s13024_s22 + $0xa20] sm:$0xff] }
 0x826   : > { %6856 = vmatmul.mubr.bf16.vlgmr.msra.gmra.mrb[12].mxu0 %v15232_v51 }
 0x827   : > { %7020 = vmatmul.mubr.bf16.vlgmr.msra.gmra.mrb[12].mxu1 %v15232_v51  ;;  %6865 = vmatpush1.bf16.msra.mxu0 %v5946_v62  ;;  %v5244_v62 = vld [vmem:[%s13024_s22 + $0xa30] sm:$0xff] }
 0x828   : > { %6896 = vmatprep.mubr.bf16.mxu0 %v15236_v7  ;;  %7029 = vmatpush1.bf16.msra.mxu1 %v5948_v54  ;;  %v6074_v54 = vunpack.c.l.s8.bf16 %v5242_v23 }
 0x829   : > { %7060 = vmatprep.mubr.bf16.mxu1 %v15236_v7  ;;  %6866 = vmatprep.subr.bf16.mxu0 %v5963_v13  ;;  %v6076_v13 = vunpack.c.l.s8.bf16 %v5244_v62 }
 0x82a   : > { %7030 = vmatprep.subr.bf16.mxu1 %v5965_v5  ;;  %v6093_v5 = vunpack.c.h.s8.bf16 %v5245_v9  ;;  %v5307_v9 = vld [vmem:[%s13024_s22 + $0xc28] sm:$0xff] }
 0x82b   : > { %6867 = vmatpush1.bf16.msra.mxu0 %v5962_v33  ;;  %v5261_v33 = vld [vmem:[%s13024_s22 + $0xab8] sm:$0xff] }
 0x82c   : > { %7031 = vmatpush1.bf16.msra.mxu1 %v5964_v36  ;;  %6868 = vmatprep.subr.bf16.mxu0 %v5979_v46  ;;  %v6090_v36 = vunpack.c.h.s8.bf16 %v5242_v23  ;;  %v6092_v46 = vunpack.c.h.s8.bf16 %v5244_v62  ;;  %v6109_v42 = vunpack.c.l.s8.bf16 %v5261_v33  ;;  %v6125_v56 = vunpack.c.h.s8.bf16 %v5261_v33 }
 0x82d   : > { %7032 = vmatprep.subr.bf16.mxu1 %v5981_v28  ;;  %v5258_v28 = vld [vmem:[%s13024_s22 + $0xaa0] sm:$0xff]  ;;  %v6203_v23 = vunpack.c.l.s8.bf16 %v5307_v9 }
 0x82f   : > { %6869 = vmatpush1.bf16.msra.mxu0 %v5978_v45  ;;  %v5260_v45 = vld [vmem:[%s13024_s22 + $0xab0] sm:$0xff] }
 0x830   : > { %7033 = vmatpush1.bf16.msra.mxu1 %v5980_v38  ;;  %6870 = vmatprep.subr.bf16.mxu0 %v5995_v43  ;;  %v6106_v38 = vunpack.c.l.s8.bf16 %v5258_v28  ;;  %v6108_v43 = vunpack.c.l.s8.bf16 %v5260_v45 }
 0x831   : > { %7034 = vmatprep.subr.bf16.mxu1 %v5997_v48  ;;  %v6123_v48 = vunpack.c.h.s8.bf16 %v5259_v60  ;;  %v5323_v60 = vld [vmem:[%s13024_s22 + $0xca8] sm:$0xff] }
 0x833   : > { %6871 = vmatpush1.bf16.msra.mxu0 %v5994_v3  ;;  %v5277_v3 = vld [vmem:[%s13024_s22 + $0xb38] sm:$0xff] }
 0x834   : > { %7035 = vmatpush1.bf16.msra.mxu1 %v5996_v12  ;;  %6872 = vmatprep.subr.bf16.mxu0 %v6011_v15  ;;  %v6122_v12 = vunpack.c.h.s8.bf16 %v5258_v28  ;;  %v6124_v15 = vunpack.c.h.s8.bf16 %v5260_v45  ;;  %v6141_v49 = vunpack.c.l.s8.bf16 %v5277_v3  ;;  %v6157_v30 = vunpack.c.h.s8.bf16 %v5277_v3  ;;  %v5339_v3 = vld [vmem:[%s13024_s22 + $0xd28] sm:$0xff] }
 0x835   : > { %7036 = vmatprep.subr.bf16.mxu1 %v6013_v19  ;;  %v5274_v19 = vld [vmem:[%s13024_s22 + $0xb20] sm:$0xff]  ;;  %v6235_v28 = vunpack.c.l.s8.bf16 %v5323_v60 }
 0x837   : > { %6873 = vmatpush1.bf16.msra.mxu0 %v6010_v1  ;;  %v5276_v1 = vld [vmem:[%s13024_s22 + $0xb30] sm:$0xff] }
 0x838   : > { %7037 = vmatpush1.bf16.msra.mxu1 %v6012_v8  ;;  %6874 = vmatprep.subr.bf16.mxu0 %v6027_v34  ;;  %v6138_v8 = vunpack.c.l.s8.bf16 %v5274_v19  ;;  %v6140_v34 = vunpack.c.l.s8.bf16 %v5276_v1 }
 0x839   : > { %7038 = vmatprep.subr.bf16.mxu1 %v6029_v22  ;;  %v6155_v22 = vunpack.c.h.s8.bf16 %v5275_v27 }
 0x83b   : > { %6875 = vmatpush1.bf16.msra.mxu0 %v6026_v41  ;;  %v5293_v41 = vld [vmem:[%s13024_s22 + $0xbb8] sm:$0xff] }
 0x83c   : > { %7039 = vmatpush1.bf16.msra.mxu1 %v6028_v53  ;;  %6876 = vmatprep.subr.bf16.mxu0 %v6043_v52  ;;  %v6154_v53 = vunpack.c.h.s8.bf16 %v5274_v19  ;;  %v6156_v52 = vunpack.c.h.s8.bf16 %v5276_v1  ;;  %v6173_v39 = vunpack.c.l.s8.bf16 %v5293_v41  ;;  %v6189_v24 = vunpack.c.h.s8.bf16 %v5293_v41 }
 0x83d   : > { %7040 = vmatprep.subr.bf16.mxu1 %v6045_v61  ;;  %v5290_v61 = vld [vmem:[%s13024_s22 + $0xba0] sm:$0xff]  ;;  %v6267_v19 = vunpack.c.l.s8.bf16 %v5339_v3  ;;  %v6283_v41 = vunpack.c.h.s8.bf16 %v5339_v3 }
 0x83f   : > { %6877 = vmatpush1.bf16.msra.mxu0 %v6042_v4  ;;  %v5292_v4 = vld [vmem:[%s13024_s22 + $0xbb0] sm:$0xff] }
 0x840   : > { %7041 = vmatpush1.bf16.msra.mxu1 %v6044_v63  ;;  %6878 = vmatprep.subr.bf16.mxu0 %v6059_v2  ;;  %v6170_v63 = vunpack.c.l.s8.bf16 %v5290_v61  ;;  %v6172_v2 = vunpack.c.l.s8.bf16 %v5292_v4 }
 0x841   : > { %7042 = vmatprep.subr.bf16.mxu1 %v6061_v11  ;;  %v6187_v11 = vunpack.c.h.s8.bf16 %v5291_v25 }
 0x843   : > { %6879 = vmatpush1.bf16.msra.mxu0 %v6058_v20  ;;  %v5309_v20 = vld [vmem:[%s13024_s22 + $0xc38] sm:$0xff] }
 0x844   : > { %7043 = vmatpush1.bf16.msra.mxu1 %v6060_v59  ;;  %6880 = vmatprep.subr.bf16.mxu0 %v6075_v44  ;;  %v6186_v59 = vunpack.c.h.s8.bf16 %v5290_v61  ;;  %v6188_v44 = vunpack.c.h.s8.bf16 %v5292_v4  ;;  %v6205_v62 = vunpack.c.l.s8.bf16 %v5309_v20  ;;  %v6221_v33 = vunpack.c.h.s8.bf16 %v5309_v20  ;;  %v5357_v61 = vld [vmem:[%s13024_s22 + $0xdb8] sm:$0xff] }
 0x845   : > { %7044 = vmatprep.subr.bf16.mxu1 %v6077_v47  ;;  %v5306_v47 = vld [vmem:[%s13024_s22 + $0xc20] sm:$0xff]  ;;  %v6301_v20 = vunpack.c.l.s8.bf16 %v5357_v61 }
 0x847   : > { %6881 = vmatpush1.bf16.msra.mxu0 %v6074_v54  ;;  %v5308_v54 = vld [vmem:[%s13024_s22 + $0xc30] sm:$0xff] }
 0x848   : > { %7045 = vmatpush1.bf16.msra.mxu1 %v6076_v13  ;;  %6882 = vmatprep.subr.bf16.mxu0 %v6091_v6  ;;  %v6202_v13 = vunpack.c.l.s8.bf16 %v5306_v47  ;;  %v6204_v6 = vunpack.c.l.s8.bf16 %v5308_v54 }
 0x849   : > { %7046 = vmatprep.subr.bf16.mxu1 %v6093_v5  ;;  %v6219_v5 = vunpack.c.h.s8.bf16 %v5307_v9 }
 0x84b   : > { %6883 = vmatpush1.bf16.msra.mxu0 %v6090_v36  ;;  %v5325_v36 = vld [vmem:[%s13024_s22 + $0xcb8] sm:$0xff] }
 0x84c   : > { %7047 = vmatpush1.bf16.msra.mxu1 %v6092_v46  ;;  %6884 = vmatprep.subr.bf16.mxu0 %v6107_v55  ;;  %v6218_v46 = vunpack.c.h.s8.bf16 %v5306_v47  ;;  %v6220_v55 = vunpack.c.h.s8.bf16 %v5308_v54  ;;  %v6237_v45 = vunpack.c.l.s8.bf16 %v5325_v36  ;;  %v6253_v27 = vunpack.c.h.s8.bf16 %v5325_v36 }
 0x84d   : > { %7048 = vmatprep.subr.bf16.mxu1 %v6109_v42  ;;  %v5322_v42 = vld [vmem:[%s13024_s22 + $0xca0] sm:$0xff] }
 0x84f   : > { %6885 = vmatpush1.bf16.msra.mxu0 %v6106_v38  ;;  %v5324_v38 = vld [vmem:[%s13024_s22 + $0xcb0] sm:$0xff] }
 0x850   : > { %7049 = vmatpush1.bf16.msra.mxu1 %v6108_v43  ;;  %6886 = vmatprep.subr.bf16.mxu0 %v6123_v48  ;;  %v6234_v43 = vunpack.c.l.s8.bf16 %v5322_v42  ;;  %v6236_v48 = vunpack.c.l.s8.bf16 %v5324_v38 }
 0x851   : > { %7050 = vmatprep.subr.bf16.mxu1 %v6125_v56  ;;  %v6251_v56 = vunpack.c.h.s8.bf16 %v5323_v60 }
 0x853   : > { %6887 = vmatpush1.bf16.msra.mxu0 %v6122_v12  ;;  %v5341_v12 = vld [vmem:[%s13024_s22 + $0xd38] sm:$0xff] }
 0x854   : > { %7051 = vmatpush1.bf16.msra.mxu1 %v6124_v15  ;;  %6888 = vmatprep.subr.bf16.mxu0 %v6139_v50  ;;  %v6250_v15 = vunpack.c.h.s8.bf16 %v5322_v42  ;;  %v6252_v50 = vunpack.c.h.s8.bf16 %v5324_v38  ;;  %v6269_v1 = vunpack.c.l.s8.bf16 %v5341_v12  ;;  %v4906_v42 = vld [vmem:[#allocation3] sm:$0xff] }
 0x855   : > { %7052 = vmatprep.subr.bf16.mxu1 %v6141_v49  ;;  %v5338_v49 = vld [vmem:[%s13024_s22 + $0xd20] sm:$0xff] }
 0x857   : > { %6889 = vmatpush1.bf16.msra.mxu0 %v6138_v8  ;;  %v5340_v8 = vld [vmem:[%s13024_s22 + $0xd30] sm:$0xff] }
 0x858   : > { %7053 = vmatpush1.bf16.msra.mxu1 %v6140_v34  ;;  %6890 = vmatprep.subr.bf16.mxu0 %v6155_v22  ;;  %v12644_v34 = vmov 1983009808   ;;  %v6268_v25 = vunpack.c.l.s8.bf16 %v5340_v8  ;;  %v6284_v4 = vunpack.c.h.s8.bf16 %v5340_v8  ;;  %v5387_v8 = vld [vmem:[%s13024_s22 + $0xea8] sm:$0xff] }
 0x859   : > { %7054 = vmatprep.subr.bf16.mxu1 %v6157_v30  ;;  %v7785_v22 = vunpack.c.l.s4 %v12644_v34  ;;  %v6266_v30 = vunpack.c.l.s8.bf16 %v5338_v49  ;;  %v5389_v34 = vld [vmem:[%s13024_s22 + $0xeb8] sm:$0xff] }
 0x85b   : > { %6891 = vmatpush1.bf16.msra.mxu0 %v6154_v53  ;;  %v7786_v53 = vunpack.c.0.s8 %v7785_v22 }
 0x85c   : > { %7055 = vmatpush1.bf16.msra.mxu1 %v6156_v52  ;;  %6892 = vmatprep.subr.bf16.mxu0 %v6171_v37  ;;  %v6285_v52 = vunpack.c.h.s8.bf16 %v5341_v12  ;;  %v5355_v37 = vld [vmem:[%s13024_s22 + $0xda8] sm:$0xff] }
 0x85d   : > { %7056 = vmatprep.subr.bf16.mxu1 %v6173_v39  ;;  %v6282_v39 = vunpack.c.h.s8.bf16 %v5338_v49  ;;  %v15456_v9 = vsub.s32 %v7786_v53, %v15144_v14  ;;  %v6315_v14 = vunpack.c.h.s8.bf16 %v5355_v37  ;;  %v6365_v53 = vunpack.c.l.s8.bf16 %v5389_v34 }
 0x85f   : > { %6893 = vmatpush1.bf16.msra.mxu0 %v6170_v63  ;;  %v6299_v63 = vunpack.c.l.s8.bf16 %v5355_v37 }
 0x860   : > { %7057 = vmatpush1.bf16.msra.mxu1 %v6172_v2  ;;  %6894 = vmatprep.subr.bf16.mxu0 %v6187_v11  ;;  %v5354_v2 = vld [vmem:[%s13024_s22 + $0xda0] sm:$0xff] }
 0x861   : > { %7058 = vmatprep.subr.bf16.mxu1 %v6189_v24 }
 0x863   : > { %6895 = vmatpush1.bf16.msra.mxu0 %v6186_v59  ;;  %v5356_v59 = vld [vmem:[%s13024_s22 + $0xdb0] sm:$0xff] }
 0x864   : > { %7059 = vmatpush1.bf16.msra.mxu1 %v6188_v44  ;;  %6905 = vmatprep.subr.bf16.mxu0 %v6203_v23 }
 0x865   : > { %7069 = vmatprep.subr.bf16.mxu1 %v6205_v62 }
 0x866   : > { %6897 = vmatmul.mubr.bf16.vlgmr.msra.gmra.mrb[12].mxu0 %v15284_v18 }
 0x867   : > { %7061 = vmatmul.mubr.bf16.vlgmr.msra.gmra.mrb[12].mxu1 %v15284_v18  ;;  %6906 = vmatpush1.bf16.msra.mxu0 %v6202_v13 }
 0x868   : > { %6937 = vmatprep.mubr.bf16.mxu0 %v15288_v58  ;;  %7070 = vmatpush1.bf16.msra.mxu1 %v6204_v6  ;;  %v6298_v6 = vunpack.c.l.s8.bf16 %v5354_v2 }
 0x869   : > { %7101 = vmatprep.mubr.bf16.mxu1 %v15288_v58  ;;  %6907 = vmatprep.subr.bf16.mxu0 %v6219_v5 }
 0x86a   : > { %7071 = vmatprep.subr.bf16.mxu1 %v6221_v33  ;;  %v6300_v33 = vunpack.c.l.s8.bf16 %v5356_v59 }
 0x86b   : > { %6908 = vmatpush1.bf16.msra.mxu0 %v6218_v46 }
 0x86c   : > { %7072 = vmatpush1.bf16.msra.mxu1 %v6220_v55  ;;  %6909 = vmatprep.subr.bf16.mxu0 %v6235_v28  ;;  %v6317_v55 = vunpack.c.h.s8.bf16 %v5357_v61  ;;  %v5371_v28 = vld [vmem:[%s13024_s22 + $0xe28] sm:$0xff] }
 0x86d   : > { %7073 = vmatprep.subr.bf16.mxu1 %v6237_v45  ;;  %v5373_v45 = vld [vmem:[%s13024_s22 + $0xe38] sm:$0xff]  ;;  %v6347_v49 = vunpack.c.h.s8.bf16 %v5371_v28 }
 0x86e   : > { %v6333_v12 = vunpack.c.l.s8.bf16 %v5373_v45 }
 0x86f   : > { %6910 = vmatpush1.bf16.msra.mxu0 %v6234_v43  ;;  %v6314_v43 = vunpack.c.h.s8.bf16 %v5354_v2  ;;  %v5405_v2 = vld [vmem:[%s13024_s22 + $0xf38] sm:$0xff] }
 0x870   : > { %7074 = vmatpush1.bf16.msra.mxu1 %v6236_v48  ;;  %6911 = vmatprep.subr.bf16.mxu0 %v6251_v56  ;;  %v6316_v48 = vunpack.c.h.s8.bf16 %v5356_v59  ;;  %v6331_v56 = vunpack.c.l.s8.bf16 %v5371_v28  ;;  %v5402_v59 = vld [vmem:[%s13024_s22 + $0xf20] sm:$0xff] }
 0x871   : > { %7075 = vmatprep.subr.bf16.mxu1 %v6253_v27  ;;  %v5370_v27 = vld [vmem:[%s13024_s22 + $0xe20] sm:$0xff] }
 0x872   : > { %v6346_v22 = vunpack.c.h.s8.bf16 %v5370_v27 }
 0x873   : > { %6912 = vmatpush1.bf16.msra.mxu0 %v6250_v15  ;;  %v5372_v15 = vld [vmem:[%s13024_s22 + $0xe30] sm:$0xff] }
 0x874   : > { %7076 = vmatpush1.bf16.msra.mxu1 %v6252_v50  ;;  %6913 = vmatprep.subr.bf16.mxu0 %v6267_v19  ;;  %v6330_v50 = vunpack.c.l.s8.bf16 %v5370_v27  ;;  %v6332_v19 = vunpack.c.l.s8.bf16 %v5372_v15 }
 0x875   : > { %7077 = vmatprep.subr.bf16.mxu1 %v6269_v1  ;;  %v6349_v1 = vunpack.c.h.s8.bf16 %v5373_v45 }
 0x877   : > { %6914 = vmatpush1.bf16.msra.mxu0 %v6266_v30  ;;  %v6348_v30 = vunpack.c.h.s8.bf16 %v5372_v15 }
 0x878   : > { %7078 = vmatpush1.bf16.msra.mxu1 %v6268_v25  ;;  %6915 = vmatprep.subr.bf16.mxu0 %v6283_v41  ;;  %v6363_v25 = vunpack.c.l.s8.bf16 %v5387_v8  ;;  %v5386_v41 = vld [vmem:[%s13024_s22 + $0xea0] sm:$0xff] }
 0x879   : > { %v6611_v11 = vpop.f32.mrb[8].mxu0  ;;  %v6775_v24 = vpop.f32.mrb[8].mxu1  ;;  %7079 = vmatprep.subr.bf16.mxu1 %v6285_v52  ;;  %v5388_v52 = vld [vmem:[%s13024_s22 + $0xeb0] sm:$0xff]  ;;  %v6362_v37 = vunpack.c.l.s8.bf16 %v5386_v41 }
 0x87a   : > { %v6613_v44 = vpop.f32.mrb[9].mxu0  ;;  %v6777_v23 = vpop.f32.mrb[9].mxu1  ;;  %v6364_v61 = vunpack.c.l.s8.bf16 %v5388_v52 }
 0x87b   : > { %v7782_v47 = vcombine.low %v6611_v11, %v6613_v44  ;;  %v7783_v62 = vcombine.low %v6775_v24, %v6777_v23  ;;  %v6615_v54 = vpop.f32.mrb[10].mxu0  ;;  %v6779_v13 = vpop.f32.mrb[10].mxu1  ;;  %6916 = vmatpush1.bf16.msra.mxu0 %v6282_v39  ;;  %v6379_v39 = vunpack.c.h.s8.bf16 %v5387_v8  ;;  %v6378_v11 = vunpack.c.h.s8.bf16 %v5386_v41  ;;  %v5404_v23 = vld [vmem:[%s13024_s22 + $0xf30] sm:$0xff]  ;;  %v4943_v8 = vld [vmem:[%s13024_s22 + $0xc8] sm:$0xff] }
 0x87c   : > { %7080 = vmatpush1.bf16.msra.mxu1 %v6284_v4  ;;  %v6616_v5 = vpop.f32.mrb[11].mxu0  ;;  %v6780_v60 = vpop.f32.mrb[11].mxu1  ;;  %6917 = vmatprep.subr.bf16.mxu0 %v6299_v63  ;;  %v6381_v4 = vunpack.c.h.s8.bf16 %v5389_v34  ;;  %v5403_v63 = vld [vmem:[%s13024_s22 + $0xf28] sm:$0xff]  ;;  %v6380_v24 = vunpack.c.h.s8.bf16 %v5388_v52  ;;  %v6397_v44 = vunpack.c.l.s8.bf16 %v5405_v2  ;;  %v6413_v13 = vunpack.c.h.s8.bf16 %v5405_v2 }
 0x87d   : > { %v7790_v36 = vrot.slane %v7782_v47, %v15456_v9  ;;  %v7797_v46 = vrot.slane %v7783_v62, %v15456_v9  ;;  %7081 = vmatprep.subr.bf16.mxu1 %v6301_v20  ;;  %v6395_v20 = vunpack.c.l.s8.bf16 %v5403_v63  ;;  %v6394_v47 = vunpack.c.l.s8.bf16 %v5402_v59  ;;  %v5421_v5 = vld [vmem:[%s13024_s22 + $0xfb8] sm:$0xff]  ;;  %v4959_v2 = vld [vmem:[%s13024_s22 + $0x148] sm:$0xff] }
 0x87e   : > { %v6396_v62 = vunpack.c.l.s8.bf16 %v5404_v23  ;;  %v6411_v54 = vunpack.c.h.s8.bf16 %v5403_v63  ;;  %v6410_v60 = vunpack.c.h.s8.bf16 %v5402_v59  ;;  %v5471_v41 = vunpack.c.l.s8.bf16 %v4943_v8 }
 0x87f   : > { %v7798_v38 = vcombine.low %v7790_v36, %v7797_v46  ;;  %6918 = vmatpush1.bf16.msra.mxu0 %v6298_v6  ;;  %v5419_v6 = vld [vmem:[%s13024_s22 + $0xfa8] sm:$0xff]  ;;  %v5418_v36 = vld [vmem:[%s13024_s22 + $0xfa0] sm:$0xff]  ;;  %v6429_v46 = vunpack.c.l.s8.bf16 %v5421_v5  ;;  %v5503_v59 = vunpack.c.l.s8.bf16 %v4959_v2 }
 0x880   : > { %7082 = vmatpush1.bf16.msra.mxu1 %v6300_v33  ;;  %6919 = vmatprep.subr.bf16.mxu0 %v6315_v14  ;;  %v6412_v33 = vunpack.c.h.s8.bf16 %v5404_v23  ;;  %v6427_v14 = vunpack.c.l.s8.bf16 %v5419_v6  ;;  %v6426_v28 = vunpack.c.l.s8.bf16 %v5418_v36  ;;  %v6443_v45 = vunpack.c.h.s8.bf16 %v5419_v6 }
 0x881   : > { %v7854_v3 = vadd.f32 %v7798_v38, %v4906_v42  ;;  %7083 = vmatprep.subr.bf16.mxu1 %v6317_v55  ;;  %v5420_v55 = vld [vmem:[%s13024_s22 + $0xfb0] sm:$0xff]  ;;  %v6445_v38 = vunpack.c.h.s8.bf16 %v5421_v5  ;;  %v4975_v5 = vld [vmem:[%s13024_s22 + $0x1c8] sm:$0xff] }
 0x882   : > { %v6428_v42 = vunpack.c.l.s8.bf16 %v5420_v55  ;;  %v6444_v27 = vunpack.c.h.s8.bf16 %v5420_v55 }
 0x883   : > { %7858 = vst [vmem:[#allocation3] sm:$0xff] %v7854_v3  ;;  %6920 = vmatpush1.bf16.msra.mxu0 %v6314_v43  ;;  %v4927_v43 = vld [vmem:[%s13024_s22 + $0x48] sm:$0xff] }
 0x884   : > { %7084 = vmatpush1.bf16.msra.mxu1 %v6316_v48  ;;  %6921 = vmatprep.subr.bf16.mxu0 %v6331_v56  ;;  %v4929_v48 = vld [vmem:[%s13024_s22 + $0x58] sm:$0xff]  ;;  %v6442_v56 = vunpack.c.h.s8.bf16 %v5418_v36  ;;  %v5439_v3 = vunpack.c.l.s8.bf16 %v4927_v43  ;;  %v5535_v36 = vunpack.c.l.s8.bf16 %v4975_v5 }
 0x885   : > { %7085 = vmatprep.subr.bf16.mxu1 %v6333_v12  ;;  %v4926_v12 = vld [vmem:[%s13024_s22 + $0x40] sm:$0xff]  ;;  %v5441_v15 = vunpack.c.l.s8.bf16 %v4929_v48  ;;  %v5457_v34 = vunpack.c.h.s8.bf16 %v4929_v48  ;;  %v4991_v48 = vld [vmem:[%s13024_s22 + $0x248] sm:$0xff] }
 0x887   : > { %6922 = vmatpush1.bf16.msra.mxu0 %v6330_v50  ;;  %v4928_v50 = vld [vmem:[%s13024_s22 + $0x50] sm:$0xff] }
 0x888   : > { %7086 = vmatpush1.bf16.msra.mxu1 %v6332_v19  ;;  %6923 = vmatprep.subr.bf16.mxu0 %v6347_v49  ;;  %v5438_v19 = vunpack.c.l.s8.bf16 %v4926_v12  ;;  %v5440_v49 = vunpack.c.l.s8.bf16 %v4928_v50 }
 0x889   : > { %7087 = vmatprep.subr.bf16.mxu1 %v6349_v1  ;;  %v5455_v1 = vunpack.c.h.s8.bf16 %v4927_v43 }
 0x88b   : > { %6924 = vmatpush1.bf16.msra.mxu0 %v6346_v22  ;;  %v4945_v22 = vld [vmem:[%s13024_s22 + $0xd8] sm:$0xff] }
 0x88c   : > { %7088 = vmatpush1.bf16.msra.mxu1 %v6348_v30  ;;  %6925 = vmatprep.subr.bf16.mxu0 %v6363_v25  ;;  %v5454_v30 = vunpack.c.h.s8.bf16 %v4926_v12  ;;  %v5456_v25 = vunpack.c.h.s8.bf16 %v4928_v50  ;;  %v5473_v52 = vunpack.c.l.s8.bf16 %v4945_v22  ;;  %v5489_v63 = vunpack.c.h.s8.bf16 %v4945_v22  ;;  %v5007_v22 = vld [vmem:[%s13024_s22 + $0x2c8] sm:$0xff] }
 0x88d   : > { %7089 = vmatprep.subr.bf16.mxu1 %v6365_v53  ;;  %v4942_v53 = vld [vmem:[%s13024_s22 + $0xc0] sm:$0xff]  ;;  %v5567_v12 = vunpack.c.l.s8.bf16 %v4991_v48 }
 0x88f   : > { %6926 = vmatpush1.bf16.msra.mxu0 %v6362_v37  ;;  %v4944_v37 = vld [vmem:[%s13024_s22 + $0xd0] sm:$0xff] }
 0x890   : > { %7090 = vmatpush1.bf16.msra.mxu1 %v6364_v61  ;;  %6927 = vmatprep.subr.bf16.mxu0 %v6379_v39  ;;  %v5470_v61 = vunpack.c.l.s8.bf16 %v4942_v53  ;;  %v5472_v39 = vunpack.c.l.s8.bf16 %v4944_v37 }
 0x891   : > { %7091 = vmatprep.subr.bf16.mxu1 %v6381_v4  ;;  %v5487_v4 = vunpack.c.h.s8.bf16 %v4943_v8  ;;  %v5583_v8 = vunpack.c.h.s8.bf16 %v4991_v48 }
 0x893   : > { %6928 = vmatpush1.bf16.msra.mxu0 %v6378_v11  ;;  %v4961_v11 = vld [vmem:[%s13024_s22 + $0x158] sm:$0xff] }
 0x894   : > { %7092 = vmatpush1.bf16.msra.mxu1 %v6380_v24  ;;  %6929 = vmatprep.subr.bf16.mxu0 %v6395_v20  ;;  %v5486_v24 = vunpack.c.h.s8.bf16 %v4942_v53  ;;  %v5488_v20 = vunpack.c.h.s8.bf16 %v4944_v37  ;;  %v5505_v23 = vunpack.c.l.s8.bf16 %v4961_v11  ;;  %v5521_v6 = vunpack.c.h.s8.bf16 %v4961_v11  ;;  %v5023_v11 = vld [vmem:[%s13024_s22 + $0x348] sm:$0xff] }
 0x895   : > { %7093 = vmatprep.subr.bf16.mxu1 %v6397_v44  ;;  %v4958_v44 = vld [vmem:[%s13024_s22 + $0x140] sm:$0xff]  ;;  %v5599_v53 = vunpack.c.l.s8.bf16 %v5007_v22 }
 0x897   : > { %6930 = vmatpush1.bf16.msra.mxu0 %v6394_v47  ;;  %v4960_v47 = vld [vmem:[%s13024_s22 + $0x150] sm:$0xff] }
 0x898   : > { %7094 = vmatpush1.bf16.msra.mxu1 %v6396_v62  ;;  %6931 = vmatprep.subr.bf16.mxu0 %v6411_v54  ;;  %v5502_v62 = vunpack.c.l.s8.bf16 %v4958_v44  ;;  %v5504_v54 = vunpack.c.l.s8.bf16 %v4960_v47 }
 0x899   : > { %7095 = vmatprep.subr.bf16.mxu1 %v6413_v13  ;;  %v5519_v13 = vunpack.c.h.s8.bf16 %v4959_v2 }
 0x89b   : > { %6932 = vmatpush1.bf16.msra.mxu0 %v6410_v60  ;;  %v4977_v60 = vld [vmem:[%s13024_s22 + $0x1d8] sm:$0xff] }
 0x89c   : > { %7096 = vmatpush1.bf16.msra.mxu1 %v6412_v33  ;;  %6933 = vmatprep.subr.bf16.mxu0 %v6427_v14  ;;  %v5518_v33 = vunpack.c.h.s8.bf16 %v4958_v44  ;;  %v5520_v14 = vunpack.c.h.s8.bf16 %v4960_v47  ;;  %v5537_v55 = vunpack.c.l.s8.bf16 %v4977_v60  ;;  %v5553_v43 = vunpack.c.h.s8.bf16 %v4977_v60  ;;  %v5039_v60 = vld [vmem:[%s13024_s22 + $0x3c8] sm:$0xff] }
 0x89d   : > { %7097 = vmatprep.subr.bf16.mxu1 %v6429_v46  ;;  %v4974_v46 = vld [vmem:[%s13024_s22 + $0x1c0] sm:$0xff]  ;;  %v5631_v44 = vunpack.c.l.s8.bf16 %v5023_v11 }
 0x89f   : > { %6934 = vmatpush1.bf16.msra.mxu0 %v6426_v28  ;;  %v4976_v28 = vld [vmem:[%s13024_s22 + $0x1d0] sm:$0xff] }
 0x8a0   : > { %7098 = vmatpush1.bf16.msra.mxu1 %v6428_v42  ;;  %6935 = vmatprep.subr.bf16.mxu0 %v6443_v45  ;;  %v5534_v42 = vunpack.c.l.s8.bf16 %v4974_v46  ;;  %v5536_v45 = vunpack.c.l.s8.bf16 %v4976_v28 }
 0x8a1   : > { %7099 = vmatprep.subr.bf16.mxu1 %v6445_v38  ;;  %v5551_v38 = vunpack.c.h.s8.bf16 %v4975_v5 }
 0x8a3   : > { %6936 = vmatpush1.bf16.msra.mxu0 %v6442_v56  ;;  %v4993_v56 = vld [vmem:[%s13024_s22 + $0x258] sm:$0xff] }
 0x8a4   : > { %7100 = vmatpush1.bf16.msra.mxu1 %v6444_v27  ;;  %7110 = vmatprep.subr.bf16.mxu0 %v5439_v3  ;;  %v5550_v27 = vunpack.c.h.s8.bf16 %v4974_v46  ;;  %v5552_v3 = vunpack.c.h.s8.bf16 %v4976_v28  ;;  %v5569_v50 = vunpack.c.l.s8.bf16 %v4993_v56  ;;  %v5663_v46 = vunpack.c.l.s8.bf16 %v5039_v60 }
 0x8a5   : > { %7274 = vmatprep.subr.bf16.mxu1 %v5441_v15  ;;  %v4990_v15 = vld [vmem:[%s13024_s22 + $0x240] sm:$0xff] }
 0x8a6   : > { %6938 = vmatmul.mubr.bf16.vlgmr.msra.gmra.mrb[12].mxu0 %v15330_v40 }
 0x8a7   : > { %7102 = vmatmul.mubr.bf16.vlgmr.msra.gmra.mrb[12].mxu1 %v15330_v40  ;;  %7111 = vmatpush1.bf16.msra.mxu0 %v5438_v19  ;;  %v4992_v19 = vld [vmem:[%s13024_s22 + $0x250] sm:$0xff] }
 0x8a8   : > { %7142 = vmatprep.mubr.bf16.mxu0 %v15168_v17  ;;  %7275 = vmatpush1.bf16.msra.mxu1 %v5440_v49  ;;  %v5566_v49 = vunpack.c.l.s8.bf16 %v4990_v15 }
 0x8a9   : > { %7306 = vmatprep.mubr.bf16.mxu1 %v15168_v17  ;;  %7112 = vmatprep.subr.bf16.mxu0 %v5455_v1  ;;  %v5568_v1 = vunpack.c.l.s8.bf16 %v4992_v19 }
 0x8aa   : > { %7276 = vmatprep.subr.bf16.mxu1 %v5457_v34  ;;  %v5585_v34 = vunpack.c.h.s8.bf16 %v4993_v56  ;;  %v5055_v56 = vld [vmem:[%s13024_s22 + $0x448] sm:$0xff] }
 0x8ab   : > { %7113 = vmatpush1.bf16.msra.mxu0 %v5454_v30  ;;  %v5009_v30 = vld [vmem:[%s13024_s22 + $0x2d8] sm:$0xff] }
 0x8ac   : > { %7277 = vmatpush1.bf16.msra.mxu1 %v5456_v25  ;;  %7114 = vmatprep.subr.bf16.mxu0 %v5471_v41  ;;  %v5582_v25 = vunpack.c.h.s8.bf16 %v4990_v15  ;;  %v5584_v41 = vunpack.c.h.s8.bf16 %v4992_v19  ;;  %v5601_v37 = vunpack.c.l.s8.bf16 %v5009_v30  ;;  %v5617_v2 = vunpack.c.h.s8.bf16 %v5009_v30 }
 0x8ad   : > { %7278 = vmatprep.subr.bf16.mxu1 %v5473_v52  ;;  %v5006_v52 = vld [vmem:[%s13024_s22 + $0x2c0] sm:$0xff]  ;;  %v5695_v15 = vunpack.c.l.s8.bf16 %v5055_v56 }
 0x8af   : > { %7115 = vmatpush1.bf16.msra.mxu0 %v5470_v61  ;;  %v5008_v61 = vld [vmem:[%s13024_s22 + $0x2d0] sm:$0xff] }
 0x8b0   : > { %7279 = vmatpush1.bf16.msra.mxu1 %v5472_v39  ;;  %7116 = vmatprep.subr.bf16.mxu0 %v5487_v4  ;;  %v5598_v39 = vunpack.c.l.s8.bf16 %v5006_v52  ;;  %v5600_v4 = vunpack.c.l.s8.bf16 %v5008_v61 }
 0x8b1   : > { %7280 = vmatprep.subr.bf16.mxu1 %v5489_v63  ;;  %v5615_v63 = vunpack.c.h.s8.bf16 %v5007_v22  ;;  %v5071_v22 = vld [vmem:[%s13024_s22 + $0x4c8] sm:$0xff] }
 0x8b3   : > { %7117 = vmatpush1.bf16.msra.mxu0 %v5486_v24  ;;  %v5025_v24 = vld [vmem:[%s13024_s22 + $0x358] sm:$0xff] }
 0x8b4   : > { %7281 = vmatpush1.bf16.msra.mxu1 %v5488_v20  ;;  %7118 = vmatprep.subr.bf16.mxu0 %v5503_v59  ;;  %v5614_v20 = vunpack.c.h.s8.bf16 %v5006_v52  ;;  %v5616_v59 = vunpack.c.h.s8.bf16 %v5008_v61  ;;  %v5633_v47 = vunpack.c.l.s8.bf16 %v5025_v24  ;;  %v5649_v5 = vunpack.c.h.s8.bf16 %v5025_v24  ;;  %v5087_v24 = vld [vmem:[%s13024_s22 + $0x548] sm:$0xff] }
 0x8b5   : > { %7282 = vmatprep.subr.bf16.mxu1 %v5505_v23  ;;  %v5022_v23 = vld [vmem:[%s13024_s22 + $0x340] sm:$0xff]  ;;  %v5727_v52 = vunpack.c.l.s8.bf16 %v5071_v22 }
 0x8b7   : > { %7119 = vmatpush1.bf16.msra.mxu0 %v5502_v62  ;;  %v5024_v62 = vld [vmem:[%s13024_s22 + $0x350] sm:$0xff] }
 0x8b8   : > { %7283 = vmatpush1.bf16.msra.mxu1 %v5504_v54  ;;  %7120 = vmatprep.subr.bf16.mxu0 %v5519_v13  ;;  %v5630_v54 = vunpack.c.l.s8.bf16 %v5022_v23  ;;  %v5632_v13 = vunpack.c.l.s8.bf16 %v5024_v62 }
 0x8b9   : > { %7284 = vmatprep.subr.bf16.mxu1 %v5521_v6  ;;  %v5647_v6 = vunpack.c.h.s8.bf16 %v5023_v11 }
 0x8bb   : > { %7121 = vmatpush1.bf16.msra.mxu0 %v5518_v33  ;;  %v5041_v33 = vld [vmem:[%s13024_s22 + $0x3d8] sm:$0xff] }
 0x8bc   : > { %7285 = vmatpush1.bf16.msra.mxu1 %v5520_v14  ;;  %7122 = vmatprep.subr.bf16.mxu0 %v5535_v36  ;;  %v5646_v14 = vunpack.c.h.s8.bf16 %v5022_v23  ;;  %v5648_v36 = vunpack.c.h.s8.bf16 %v5024_v62  ;;  %v5665_v28 = vunpack.c.l.s8.bf16 %v5041_v33  ;;  %v5681_v48 = vunpack.c.h.s8.bf16 %v5041_v33  ;;  %v5103_v33 = vld [vmem:[%s13024_s22 + $0x5c8] sm:$0xff] }
 0x8bd   : > { %7286 = vmatprep.subr.bf16.mxu1 %v5537_v55  ;;  %v5038_v55 = vld [vmem:[%s13024_s22 + $0x3c0] sm:$0xff]  ;;  %v5759_v23 = vunpack.c.l.s8.bf16 %v5087_v24 }
 0x8bf   : > { %7123 = vmatpush1.bf16.msra.mxu0 %v5534_v42  ;;  %v5040_v42 = vld [vmem:[%s13024_s22 + $0x3d0] sm:$0xff] }
 0x8c0   : > { %7287 = vmatpush1.bf16.msra.mxu1 %v5536_v45  ;;  %7124 = vmatprep.subr.bf16.mxu0 %v5551_v38  ;;  %v5662_v45 = vunpack.c.l.s8.bf16 %v5038_v55  ;;  %v5664_v38 = vunpack.c.l.s8.bf16 %v5040_v42 }
 0x8c1   : > { %7288 = vmatprep.subr.bf16.mxu1 %v5553_v43  ;;  %v5679_v43 = vunpack.c.h.s8.bf16 %v5039_v60 }
 0x8c3   : > { %7125 = vmatpush1.bf16.msra.mxu0 %v5550_v27  ;;  %v5057_v27 = vld [vmem:[%s13024_s22 + $0x458] sm:$0xff] }
 0x8c4   : > { %7289 = vmatpush1.bf16.msra.mxu1 %v5552_v3  ;;  %7126 = vmatprep.subr.bf16.mxu0 %v5567_v12  ;;  %v5678_v3 = vunpack.c.h.s8.bf16 %v5038_v55  ;;  %v5680_v12 = vunpack.c.h.s8.bf16 %v5040_v42  ;;  %v5697_v19 = vunpack.c.l.s8.bf16 %v5057_v27  ;;  %v5713_v30 = vunpack.c.h.s8.bf16 %v5057_v27  ;;  %v5119_v27 = vld [vmem:[%s13024_s22 + $0x648] sm:$0xff] }
 0x8c5   : > { %7290 = vmatprep.subr.bf16.mxu1 %v5569_v50  ;;  %v5054_v50 = vld [vmem:[%s13024_s22 + $0x440] sm:$0xff]  ;;  %v5791_v55 = vunpack.c.l.s8.bf16 %v5103_v33 }
 0x8c7   : > { %7127 = vmatpush1.bf16.msra.mxu0 %v5566_v49  ;;  %v5056_v49 = vld [vmem:[%s13024_s22 + $0x450] sm:$0xff] }
 0x8c8   : > { %7291 = vmatpush1.bf16.msra.mxu1 %v5568_v1  ;;  %7128 = vmatprep.subr.bf16.mxu0 %v5583_v8  ;;  %v5694_v1 = vunpack.c.l.s8.bf16 %v5054_v50  ;;  %v5696_v8 = vunpack.c.l.s8.bf16 %v5056_v49 }
 0x8c9   : > { %7292 = vmatprep.subr.bf16.mxu1 %v5585_v34  ;;  %v5711_v34 = vunpack.c.h.s8.bf16 %v5055_v56 }
 0x8cb   : > { %7129 = vmatpush1.bf16.msra.mxu0 %v5582_v25  ;;  %v5073_v25 = vld [vmem:[%s13024_s22 + $0x4d8] sm:$0xff] }
 0x8cc   : > { %7293 = vmatpush1.bf16.msra.mxu1 %v5584_v41  ;;  %7130 = vmatprep.subr.bf16.mxu0 %v5599_v53  ;;  %v5710_v41 = vunpack.c.h.s8.bf16 %v5054_v50  ;;  %v5712_v53 = vunpack.c.h.s8.bf16 %v5056_v49  ;;  %v5729_v61 = vunpack.c.l.s8.bf16 %v5073_v25  ;;  %v5745_v11 = vunpack.c.h.s8.bf16 %v5073_v25  ;;  %v5135_v25 = vld [vmem:[%s13024_s22 + $0x6c8] sm:$0xff] }
 0x8cd   : > { %7294 = vmatprep.subr.bf16.mxu1 %v5601_v37  ;;  %v5070_v37 = vld [vmem:[%s13024_s22 + $0x4c0] sm:$0xff]  ;;  %v5823_v50 = vunpack.c.l.s8.bf16 %v5119_v27 }
 0x8cf   : > { %7131 = vmatpush1.bf16.msra.mxu0 %v5598_v39  ;;  %v5072_v39 = vld [vmem:[%s13024_s22 + $0x4d0] sm:$0xff] }
 0x8d0   : > { %7295 = vmatpush1.bf16.msra.mxu1 %v5600_v4  ;;  %7132 = vmatprep.subr.bf16.mxu0 %v5615_v63  ;;  %v5726_v4 = vunpack.c.l.s8.bf16 %v5070_v37  ;;  %v5728_v63 = vunpack.c.l.s8.bf16 %v5072_v39 }
 0x8d1   : > { %7296 = vmatprep.subr.bf16.mxu1 %v5617_v2  ;;  %v5743_v2 = vunpack.c.h.s8.bf16 %v5071_v22  ;;  %v5839_v22 = vunpack.c.h.s8.bf16 %v5119_v27 }
 0x8d3   : > { %7133 = vmatpush1.bf16.msra.mxu0 %v5614_v20  ;;  %v5089_v20 = vld [vmem:[%s13024_s22 + $0x558] sm:$0xff] }
 0x8d4   : > { %7297 = vmatpush1.bf16.msra.mxu1 %v5616_v59  ;;  %7134 = vmatprep.subr.bf16.mxu0 %v5631_v44  ;;  %v5742_v59 = vunpack.c.h.s8.bf16 %v5070_v37  ;;  %v5744_v44 = vunpack.c.h.s8.bf16 %v5072_v39  ;;  %v5761_v62 = vunpack.c.l.s8.bf16 %v5089_v20  ;;  %v5777_v60 = vunpack.c.h.s8.bf16 %v5089_v20  ;;  %v5151_v20 = vld [vmem:[%s13024_s22 + $0x748] sm:$0xff] }
 0x8d5   : > { %7298 = vmatprep.subr.bf16.mxu1 %v5633_v47  ;;  %v5086_v47 = vld [vmem:[%s13024_s22 + $0x540] sm:$0xff]  ;;  %v5855_v37 = vunpack.c.l.s8.bf16 %v5135_v25 }
 0x8d7   : > { %7135 = vmatpush1.bf16.msra.mxu0 %v5630_v54  ;;  %v5088_v54 = vld [vmem:[%s13024_s22 + $0x550] sm:$0xff] }
 0x8d8   : > { %7299 = vmatpush1.bf16.msra.mxu1 %v5632_v13  ;;  %7136 = vmatprep.subr.bf16.mxu0 %v5647_v6  ;;  %v5758_v13 = vunpack.c.l.s8.bf16 %v5086_v47  ;;  %v5760_v6 = vunpack.c.l.s8.bf16 %v5088_v54 }
 0x8d9   : > { %7300 = vmatprep.subr.bf16.mxu1 %v5649_v5  ;;  %v5775_v5 = vunpack.c.h.s8.bf16 %v5087_v24 }
 0x8db   : > { %7137 = vmatpush1.bf16.msra.mxu0 %v5646_v14  ;;  %v5105_v14 = vld [vmem:[%s13024_s22 + $0x5d8] sm:$0xff] }
 0x8dc   : > { %7301 = vmatpush1.bf16.msra.mxu1 %v5648_v36  ;;  %7138 = vmatprep.subr.bf16.mxu0 %v5663_v46  ;;  %v5774_v36 = vunpack.c.h.s8.bf16 %v5086_v47  ;;  %v5776_v46 = vunpack.c.h.s8.bf16 %v5088_v54  ;;  %v5793_v42 = vunpack.c.l.s8.bf16 %v5105_v14  ;;  %v5809_v56 = vunpack.c.h.s8.bf16 %v5105_v14  ;;  %v5167_v14 = vld [vmem:[%s13024_s22 + $0x7c8] sm:$0xff] }
 0x8dd   : > { %7302 = vmatprep.subr.bf16.mxu1 %v5665_v28  ;;  %v5102_v28 = vld [vmem:[%s13024_s22 + $0x5c0] sm:$0xff]  ;;  %v5887_v47 = vunpack.c.l.s8.bf16 %v5151_v20 }
 0x8df   : > { %7139 = vmatpush1.bf16.msra.mxu0 %v5662_v45  ;;  %v5104_v45 = vld [vmem:[%s13024_s22 + $0x5d0] sm:$0xff] }
 0x8e0   : > { %7303 = vmatpush1.bf16.msra.mxu1 %v5664_v38  ;;  %7140 = vmatprep.subr.bf16.mxu0 %v5679_v43  ;;  %v5790_v38 = vunpack.c.l.s8.bf16 %v5102_v28  ;;  %v5792_v43 = vunpack.c.l.s8.bf16 %v5104_v45 }
 0x8e1   : > { %7304 = vmatprep.subr.bf16.mxu1 %v5681_v48  ;;  %v5807_v48 = vunpack.c.h.s8.bf16 %v5103_v33 }
 0x8e3   : > { %7141 = vmatpush1.bf16.msra.mxu0 %v5678_v3  ;;  %v5121_v3 = vld [vmem:[%s13024_s22 + $0x658] sm:$0xff] }
 0x8e4   : > { %7305 = vmatpush1.bf16.msra.mxu1 %v5680_v12  ;;  %7151 = vmatprep.subr.bf16.mxu0 %v5695_v15  ;;  %v5806_v12 = vunpack.c.h.s8.bf16 %v5102_v28  ;;  %v5808_v15 = vunpack.c.h.s8.bf16 %v5104_v45  ;;  %v5825_v49 = vunpack.c.l.s8.bf16 %v5121_v3  ;;  %v5919_v28 = vunpack.c.l.s8.bf16 %v5167_v14 }
 0x8e5   : > { %7315 = vmatprep.subr.bf16.mxu1 %v5697_v19  ;;  %v5118_v19 = vld [vmem:[%s13024_s22 + $0x640] sm:$0xff] }
 0x8e6   : > { %7143 = vmatmul.mubr.bf16.vlgmr.msra.gmra.mrb[16].mxu0 %v15170_v0 }
 0x8e7   : > { %7307 = vmatmul.mubr.bf16.vlgmr.msra.gmra.mrb[16].mxu1 %v15170_v0  ;;  %7152 = vmatpush1.bf16.msra.mxu0 %v5694_v1  ;;  %v5120_v1 = vld [vmem:[%s13024_s22 + $0x650] sm:$0xff] }
 0x8e8   : > { %7183 = vmatprep.mubr.bf16.mxu0 %v15176_v29  ;;  %7316 = vmatpush1.bf16.msra.mxu1 %v5696_v8  ;;  %v5822_v8 = vunpack.c.l.s8.bf16 %v5118_v19 }
 0x8e9   : > { %7347 = vmatprep.mubr.bf16.mxu1 %v15176_v29  ;;  %7153 = vmatprep.subr.bf16.mxu0 %v5711_v34  ;;  %v5824_v34 = vunpack.c.l.s8.bf16 %v5120_v1 }
 0x8ea   : > { %7317 = vmatprep.subr.bf16.mxu1 %v5713_v30  ;;  %v5841_v30 = vunpack.c.h.s8.bf16 %v5121_v3  ;;  %v5183_v3 = vld [vmem:[%s13024_s22 + $0x848] sm:$0xff] }
 0x8eb   : > { %7154 = vmatpush1.bf16.msra.mxu0 %v5710_v41  ;;  %v5137_v41 = vld [vmem:[%s13024_s22 + $0x6d8] sm:$0xff] }
 0x8ec   : > { %7318 = vmatpush1.bf16.msra.mxu1 %v5712_v53  ;;  %7155 = vmatprep.subr.bf16.mxu0 %v5727_v52  ;;  %v5838_v53 = vunpack.c.h.s8.bf16 %v5118_v19  ;;  %v5840_v52 = vunpack.c.h.s8.bf16 %v5120_v1  ;;  %v5857_v39 = vunpack.c.l.s8.bf16 %v5137_v41  ;;  %v5873_v24 = vunpack.c.h.s8.bf16 %v5137_v41 }
 0x8ed   : > { %7319 = vmatprep.subr.bf16.mxu1 %v5729_v61  ;;  %v5134_v61 = vld [vmem:[%s13024_s22 + $0x6c0] sm:$0xff]  ;;  %v5951_v19 = vunpack.c.l.s8.bf16 %v5183_v3 }
 0x8ef   : > { %7156 = vmatpush1.bf16.msra.mxu0 %v5726_v4  ;;  %v5136_v4 = vld [vmem:[%s13024_s22 + $0x6d0] sm:$0xff] }
 0x8f0   : > { %7320 = vmatpush1.bf16.msra.mxu1 %v5728_v63  ;;  %7157 = vmatprep.subr.bf16.mxu0 %v5743_v2  ;;  %v5854_v63 = vunpack.c.l.s8.bf16 %v5134_v61  ;;  %v5856_v2 = vunpack.c.l.s8.bf16 %v5136_v4 }
 0x8f1   : > { %7321 = vmatprep.subr.bf16.mxu1 %v5745_v11  ;;  %v5871_v11 = vunpack.c.h.s8.bf16 %v5135_v25  ;;  %v5199_v25 = vld [vmem:[%s13024_s22 + $0x8c8] sm:$0xff] }
 0x8f3   : > { %7158 = vmatpush1.bf16.msra.mxu0 %v5742_v59  ;;  %v5153_v59 = vld [vmem:[%s13024_s22 + $0x758] sm:$0xff] }
 0x8f4   : > { %7322 = vmatpush1.bf16.msra.mxu1 %v5744_v44  ;;  %7159 = vmatprep.subr.bf16.mxu0 %v5759_v23  ;;  %v5870_v44 = vunpack.c.h.s8.bf16 %v5134_v61  ;;  %v5872_v23 = vunpack.c.h.s8.bf16 %v5136_v4  ;;  %v5889_v54 = vunpack.c.l.s8.bf16 %v5153_v59  ;;  %v5905_v33 = vunpack.c.h.s8.bf16 %v5153_v59  ;;  %v5215_v59 = vld [vmem:[%s13024_s22 + $0x948] sm:$0xff] }
 0x8f5   : > { %7323 = vmatprep.subr.bf16.mxu1 %v5761_v62  ;;  %v5150_v62 = vld [vmem:[%s13024_s22 + $0x740] sm:$0xff]  ;;  %v5983_v61 = vunpack.c.l.s8.bf16 %v5199_v25 }
 0x8f7   : > { %7160 = vmatpush1.bf16.msra.mxu0 %v5758_v13  ;;  %v5152_v13 = vld [vmem:[%s13024_s22 + $0x750] sm:$0xff] }
 0x8f8   : > { %7324 = vmatpush1.bf16.msra.mxu1 %v5760_v6  ;;  %7161 = vmatprep.subr.bf16.mxu0 %v5775_v5  ;;  %v5886_v6 = vunpack.c.l.s8.bf16 %v5150_v62  ;;  %v5888_v5 = vunpack.c.l.s8.bf16 %v5152_v13 }
 0x8f9   : > { %7325 = vmatprep.subr.bf16.mxu1 %v5777_v60  ;;  %v5903_v60 = vunpack.c.h.s8.bf16 %v5151_v20 }
 0x8fb   : > { %7162 = vmatpush1.bf16.msra.mxu0 %v5774_v36  ;;  %v5169_v36 = vld [vmem:[%s13024_s22 + $0x7d8] sm:$0xff] }
 0x8fc   : > { %7326 = vmatpush1.bf16.msra.mxu1 %v5776_v46  ;;  %7163 = vmatprep.subr.bf16.mxu0 %v5791_v55  ;;  %v5902_v46 = vunpack.c.h.s8.bf16 %v5150_v62  ;;  %v5904_v55 = vunpack.c.h.s8.bf16 %v5152_v13  ;;  %v5921_v45 = vunpack.c.l.s8.bf16 %v5169_v36  ;;  %v5937_v27 = vunpack.c.h.s8.bf16 %v5169_v36  ;;  %v5231_v36 = vld [vmem:[%s13024_s22 + $0x9c8] sm:$0xff] }
 0x8fd   : > { %7327 = vmatprep.subr.bf16.mxu1 %v5793_v42  ;;  %v5166_v42 = vld [vmem:[%s13024_s22 + $0x7c0] sm:$0xff]  ;;  %v6015_v62 = vunpack.c.l.s8.bf16 %v5215_v59 }
 0x8ff   : > { %7164 = vmatpush1.bf16.msra.mxu0 %v5790_v38  ;;  %v5168_v38 = vld [vmem:[%s13024_s22 + $0x7d0] sm:$0xff] }
 0x900   : > { %7328 = vmatpush1.bf16.msra.mxu1 %v5792_v43  ;;  %7165 = vmatprep.subr.bf16.mxu0 %v5807_v48  ;;  %v5918_v43 = vunpack.c.l.s8.bf16 %v5166_v42  ;;  %v5920_v48 = vunpack.c.l.s8.bf16 %v5168_v38 }
 0x901   : > { %7329 = vmatprep.subr.bf16.mxu1 %v5809_v56  ;;  %v5935_v56 = vunpack.c.h.s8.bf16 %v5167_v14 }
 0x903   : > { %7166 = vmatpush1.bf16.msra.mxu0 %v5806_v12  ;;  %v5185_v12 = vld [vmem:[%s13024_s22 + $0x858] sm:$0xff] }
 0x904   : > { %7330 = vmatpush1.bf16.msra.mxu1 %v5808_v15  ;;  %7167 = vmatprep.subr.bf16.mxu0 %v5823_v50  ;;  %v5934_v15 = vunpack.c.h.s8.bf16 %v5166_v42  ;;  %v5936_v50 = vunpack.c.h.s8.bf16 %v5168_v38  ;;  %v5953_v1 = vunpack.c.l.s8.bf16 %v5185_v12  ;;  %v5969_v41 = vunpack.c.h.s8.bf16 %v5185_v12  ;;  %v5247_v12 = vld [vmem:[%s13024_s22 + $0xa48] sm:$0xff] }
 0x905   : > { %7331 = vmatprep.subr.bf16.mxu1 %v5825_v49  ;;  %v5182_v49 = vld [vmem:[%s13024_s22 + $0x840] sm:$0xff]  ;;  %v6047_v42 = vunpack.c.l.s8.bf16 %v5231_v36 }
 0x907   : > { %7168 = vmatpush1.bf16.msra.mxu0 %v5822_v8  ;;  %v5184_v8 = vld [vmem:[%s13024_s22 + $0x850] sm:$0xff] }
 0x908   : > { %7332 = vmatpush1.bf16.msra.mxu1 %v5824_v34  ;;  %7169 = vmatprep.subr.bf16.mxu0 %v5839_v22  ;;  %v5950_v34 = vunpack.c.l.s8.bf16 %v5182_v49  ;;  %v5952_v22 = vunpack.c.l.s8.bf16 %v5184_v8 }
 0x909   : > { %7333 = vmatprep.subr.bf16.mxu1 %v5841_v30  ;;  %v5967_v30 = vunpack.c.h.s8.bf16 %v5183_v3 }
 0x90b   : > { %7170 = vmatpush1.bf16.msra.mxu0 %v5838_v53  ;;  %v5201_v53 = vld [vmem:[%s13024_s22 + $0x8d8] sm:$0xff] }
 0x90c   : > { %7334 = vmatpush1.bf16.msra.mxu1 %v5840_v52  ;;  %7171 = vmatprep.subr.bf16.mxu0 %v5855_v37  ;;  %v5966_v52 = vunpack.c.h.s8.bf16 %v5182_v49  ;;  %v5968_v37 = vunpack.c.h.s8.bf16 %v5184_v8  ;;  %v5985_v4 = vunpack.c.l.s8.bf16 %v5201_v53  ;;  %v6001_v20 = vunpack.c.h.s8.bf16 %v5201_v53  ;;  %v5263_v53 = vld [vmem:[%s13024_s22 + $0xac8] sm:$0xff] }
 0x90d   : > { %7335 = vmatprep.subr.bf16.mxu1 %v5857_v39  ;;  %v5198_v39 = vld [vmem:[%s13024_s22 + $0x8c0] sm:$0xff]  ;;  %v6079_v49 = vunpack.c.l.s8.bf16 %v5247_v12 }
 0x90f   : > { %7172 = vmatpush1.bf16.msra.mxu0 %v5854_v63  ;;  %v5200_v63 = vld [vmem:[%s13024_s22 + $0x8d0] sm:$0xff] }
 0x910   : > { %7336 = vmatpush1.bf16.msra.mxu1 %v5856_v2  ;;  %7173 = vmatprep.subr.bf16.mxu0 %v5871_v11  ;;  %v5982_v2 = vunpack.c.l.s8.bf16 %v5198_v39  ;;  %v5984_v11 = vunpack.c.l.s8.bf16 %v5200_v63 }
 0x911   : > { %7337 = vmatprep.subr.bf16.mxu1 %v5873_v24  ;;  %v5999_v24 = vunpack.c.h.s8.bf16 %v5199_v25  ;;  %v6095_v25 = vunpack.c.h.s8.bf16 %v5247_v12 }
 0x913   : > { %7174 = vmatpush1.bf16.msra.mxu0 %v5870_v44  ;;  %v5217_v44 = vld [vmem:[%s13024_s22 + $0x958] sm:$0xff] }
 0x914   : > { %7338 = vmatpush1.bf16.msra.mxu1 %v5872_v23  ;;  %7175 = vmatprep.subr.bf16.mxu0 %v5887_v47  ;;  %v5998_v23 = vunpack.c.h.s8.bf16 %v5198_v39  ;;  %v6000_v47 = vunpack.c.h.s8.bf16 %v5200_v63  ;;  %v6017_v13 = vunpack.c.l.s8.bf16 %v5217_v44  ;;  %v6033_v14 = vunpack.c.h.s8.bf16 %v5217_v44  ;;  %v5279_v44 = vld [vmem:[%s13024_s22 + $0xb48] sm:$0xff] }
 0x915   : > { %7339 = vmatprep.subr.bf16.mxu1 %v5889_v54  ;;  %v5214_v54 = vld [vmem:[%s13024_s22 + $0x940] sm:$0xff]  ;;  %v6111_v39 = vunpack.c.l.s8.bf16 %v5263_v53 }
 0x917   : > { %7176 = vmatpush1.bf16.msra.mxu0 %v5886_v6  ;;  %v5216_v6 = vld [vmem:[%s13024_s22 + $0x950] sm:$0xff] }
 0x918   : > { %7340 = vmatpush1.bf16.msra.mxu1 %v5888_v5  ;;  %7177 = vmatprep.subr.bf16.mxu0 %v5903_v60  ;;  %v6014_v5 = vunpack.c.l.s8.bf16 %v5214_v54  ;;  %v6016_v60 = vunpack.c.l.s8.bf16 %v5216_v6 }
 0x919   : > { %7341 = vmatprep.subr.bf16.mxu1 %v5905_v33  ;;  %v6031_v33 = vunpack.c.h.s8.bf16 %v5215_v59 }
 0x91b   : > { %7178 = vmatpush1.bf16.msra.mxu0 %v5902_v46  ;;  %v5233_v46 = vld [vmem:[%s13024_s22 + $0x9d8] sm:$0xff] }
 0x91c   : > { %7342 = vmatpush1.bf16.msra.mxu1 %v5904_v55  ;;  %7179 = vmatprep.subr.bf16.mxu0 %v5919_v28  ;;  %v6030_v55 = vunpack.c.h.s8.bf16 %v5214_v54  ;;  %v6032_v28 = vunpack.c.h.s8.bf16 %v5216_v6  ;;  %v6049_v38 = vunpack.c.l.s8.bf16 %v5233_v46  ;;  %v6065_v3 = vunpack.c.h.s8.bf16 %v5233_v46  ;;  %v5295_v46 = vld [vmem:[%s13024_s22 + $0xbc8] sm:$0xff] }
 0x91d   : > { %7343 = vmatprep.subr.bf16.mxu1 %v5921_v45  ;;  %v5230_v45 = vld [vmem:[%s13024_s22 + $0x9c0] sm:$0xff]  ;;  %v6143_v54 = vunpack.c.l.s8.bf16 %v5279_v44 }
 0x91f   : > { %7180 = vmatpush1.bf16.msra.mxu0 %v5918_v43  ;;  %v5232_v43 = vld [vmem:[%s13024_s22 + $0x9d0] sm:$0xff] }
 0x920   : > { %7344 = vmatpush1.bf16.msra.mxu1 %v5920_v48  ;;  %7181 = vmatprep.subr.bf16.mxu0 %v5935_v56  ;;  %v6046_v48 = vunpack.c.l.s8.bf16 %v5230_v45  ;;  %v6048_v56 = vunpack.c.l.s8.bf16 %v5232_v43 }
 0x921   : > { %7345 = vmatprep.subr.bf16.mxu1 %v5937_v27  ;;  %v6063_v27 = vunpack.c.h.s8.bf16 %v5231_v36 }
 0x923   : > { %7182 = vmatpush1.bf16.msra.mxu0 %v5934_v15  ;;  %v5249_v15 = vld [vmem:[%s13024_s22 + $0xa58] sm:$0xff] }
 0x924   : > { %7346 = vmatpush1.bf16.msra.mxu1 %v5936_v50  ;;  %7192 = vmatprep.subr.bf16.mxu0 %v5951_v19  ;;  %v6062_v50 = vunpack.c.h.s8.bf16 %v5230_v45  ;;  %v6064_v19 = vunpack.c.h.s8.bf16 %v5232_v43  ;;  %v6081_v8 = vunpack.c.l.s8.bf16 %v5249_v15  ;;  %v6175_v45 = vunpack.c.l.s8.bf16 %v5295_v46 }
 0x925   : > { %7356 = vmatprep.subr.bf16.mxu1 %v5953_v1  ;;  %v5246_v1 = vld [vmem:[%s13024_s22 + $0xa40] sm:$0xff] }
 0x926   : > { %7184 = vmatmul.mubr.bf16.vlgmr.msra.gmra.mrb[16].mxu0 %v15232_v51 }
 0x927   : > { %7348 = vmatmul.mubr.bf16.vlgmr.msra.gmra.mrb[16].mxu1 %v15232_v51  ;;  %7193 = vmatpush1.bf16.msra.mxu0 %v5950_v34  ;;  %v5248_v34 = vld [vmem:[%s13024_s22 + $0xa50] sm:$0xff] }
 0x928   : > { %7224 = vmatprep.mubr.bf16.mxu0 %v15236_v7  ;;  %7357 = vmatpush1.bf16.msra.mxu1 %v5952_v22  ;;  %v6078_v22 = vunpack.c.l.s8.bf16 %v5246_v1 }
 0x929   : > { %7388 = vmatprep.mubr.bf16.mxu1 %v15236_v7  ;;  %7194 = vmatprep.subr.bf16.mxu0 %v5967_v30  ;;  %v6080_v30 = vunpack.c.l.s8.bf16 %v5248_v34 }
 0x92a   : > { %7358 = vmatprep.subr.bf16.mxu1 %v5969_v41  ;;  %v6097_v41 = vunpack.c.h.s8.bf16 %v5249_v15  ;;  %v5311_v15 = vld [vmem:[%s13024_s22 + $0xc48] sm:$0xff] }
 0x92b   : > { %7195 = vmatpush1.bf16.msra.mxu0 %v5966_v52  ;;  %v5265_v52 = vld [vmem:[%s13024_s22 + $0xad8] sm:$0xff] }
 0x92c   : > { %7359 = vmatpush1.bf16.msra.mxu1 %v5968_v37  ;;  %7196 = vmatprep.subr.bf16.mxu0 %v5983_v61  ;;  %v6094_v37 = vunpack.c.h.s8.bf16 %v5246_v1  ;;  %v6096_v61 = vunpack.c.h.s8.bf16 %v5248_v34  ;;  %v6113_v63 = vunpack.c.l.s8.bf16 %v5265_v52  ;;  %v6129_v59 = vunpack.c.h.s8.bf16 %v5265_v52 }
 0x92d   : > { %7360 = vmatprep.subr.bf16.mxu1 %v5985_v4  ;;  %v5262_v4 = vld [vmem:[%s13024_s22 + $0xac0] sm:$0xff]  ;;  %v6207_v1 = vunpack.c.l.s8.bf16 %v5311_v15 }
 0x92f   : > { %7197 = vmatpush1.bf16.msra.mxu0 %v5982_v2  ;;  %v5264_v2 = vld [vmem:[%s13024_s22 + $0xad0] sm:$0xff] }
 0x930   : > { %7361 = vmatpush1.bf16.msra.mxu1 %v5984_v11  ;;  %7198 = vmatprep.subr.bf16.mxu0 %v5999_v24  ;;  %v6110_v11 = vunpack.c.l.s8.bf16 %v5262_v4  ;;  %v6112_v24 = vunpack.c.l.s8.bf16 %v5264_v2 }
 0x931   : > { %7362 = vmatprep.subr.bf16.mxu1 %v6001_v20  ;;  %v6127_v20 = vunpack.c.h.s8.bf16 %v5263_v53  ;;  %v5327_v53 = vld [vmem:[%s13024_s22 + $0xcc8] sm:$0xff] }
 0x933   : > { %7199 = vmatpush1.bf16.msra.mxu0 %v5998_v23  ;;  %v5281_v23 = vld [vmem:[%s13024_s22 + $0xb58] sm:$0xff] }
 0x934   : > { %7363 = vmatpush1.bf16.msra.mxu1 %v6000_v47  ;;  %7200 = vmatprep.subr.bf16.mxu0 %v6015_v62  ;;  %v6126_v47 = vunpack.c.h.s8.bf16 %v5262_v4  ;;  %v6128_v62 = vunpack.c.h.s8.bf16 %v5264_v2  ;;  %v6145_v6 = vunpack.c.l.s8.bf16 %v5281_v23  ;;  %v6161_v36 = vunpack.c.h.s8.bf16 %v5281_v23  ;;  %v5343_v23 = vld [vmem:[%s13024_s22 + $0xd48] sm:$0xff] }
 0x935   : > { %7364 = vmatprep.subr.bf16.mxu1 %v6017_v13  ;;  %v5278_v13 = vld [vmem:[%s13024_s22 + $0xb40] sm:$0xff]  ;;  %v6239_v4 = vunpack.c.l.s8.bf16 %v5327_v53 }
 0x937   : > { %7201 = vmatpush1.bf16.msra.mxu0 %v6014_v5  ;;  %v5280_v5 = vld [vmem:[%s13024_s22 + $0xb50] sm:$0xff] }
 0x938   : > { %7365 = vmatpush1.bf16.msra.mxu1 %v6016_v60  ;;  %7202 = vmatprep.subr.bf16.mxu0 %v6031_v33  ;;  %v6142_v60 = vunpack.c.l.s8.bf16 %v5278_v13  ;;  %v6144_v33 = vunpack.c.l.s8.bf16 %v5280_v5 }
 0x939   : > { %7366 = vmatprep.subr.bf16.mxu1 %v6033_v14  ;;  %v6159_v14 = vunpack.c.h.s8.bf16 %v5279_v44 }
 0x93b   : > { %7203 = vmatpush1.bf16.msra.mxu0 %v6030_v55  ;;  %v5297_v55 = vld [vmem:[%s13024_s22 + $0xbd8] sm:$0xff] }
 0x93c   : > { %7367 = vmatpush1.bf16.msra.mxu1 %v6032_v28  ;;  %7204 = vmatprep.subr.bf16.mxu0 %v6047_v42  ;;  %v6158_v28 = vunpack.c.h.s8.bf16 %v5278_v13  ;;  %v6160_v42 = vunpack.c.h.s8.bf16 %v5280_v5  ;;  %v6177_v43 = vunpack.c.l.s8.bf16 %v5297_v55  ;;  %v6193_v12 = vunpack.c.h.s8.bf16 %v5297_v55  ;;  %v5359_v55 = vld [vmem:[%s13024_s22 + $0xdc8] sm:$0xff] }
 0x93d   : > { %7368 = vmatprep.subr.bf16.mxu1 %v6049_v38  ;;  %v5294_v38 = vld [vmem:[%s13024_s22 + $0xbc0] sm:$0xff]  ;;  %v6271_v13 = vunpack.c.l.s8.bf16 %v5343_v23 }
 0x93f   : > { %7205 = vmatpush1.bf16.msra.mxu0 %v6046_v48  ;;  %v5296_v48 = vld [vmem:[%s13024_s22 + $0xbd0] sm:$0xff] }
 0x940   : > { %7369 = vmatpush1.bf16.msra.mxu1 %v6048_v56  ;;  %7206 = vmatprep.subr.bf16.mxu0 %v6063_v27  ;;  %v6174_v56 = vunpack.c.l.s8.bf16 %v5294_v38  ;;  %v6176_v27 = vunpack.c.l.s8.bf16 %v5296_v48 }
 0x941   : > { %7370 = vmatprep.subr.bf16.mxu1 %v6065_v3  ;;  %v6191_v3 = vunpack.c.h.s8.bf16 %v5295_v46 }
 0x943   : > { %7207 = vmatpush1.bf16.msra.mxu0 %v6062_v50  ;;  %v5313_v50 = vld [vmem:[%s13024_s22 + $0xc58] sm:$0xff] }
 0x944   : > { %7371 = vmatpush1.bf16.msra.mxu1 %v6064_v19  ;;  %7208 = vmatprep.subr.bf16.mxu0 %v6079_v49  ;;  %v6190_v19 = vunpack.c.h.s8.bf16 %v5294_v38  ;;  %v6192_v49 = vunpack.c.h.s8.bf16 %v5296_v48  ;;  %v6209_v34 = vunpack.c.l.s8.bf16 %v5313_v50  ;;  %v6225_v52 = vunpack.c.h.s8.bf16 %v5313_v50 }
 0x945   : > { %7372 = vmatprep.subr.bf16.mxu1 %v6081_v8  ;;  %v5310_v8 = vld [vmem:[%s13024_s22 + $0xc40] sm:$0xff]  ;;  %v6303_v38 = vunpack.c.l.s8.bf16 %v5359_v55 }
 0x947   : > { %7209 = vmatpush1.bf16.msra.mxu0 %v6078_v22  ;;  %v5312_v22 = vld [vmem:[%s13024_s22 + $0xc50] sm:$0xff] }
 0x948   : > { %7373 = vmatpush1.bf16.msra.mxu1 %v6080_v30  ;;  %7210 = vmatprep.subr.bf16.mxu0 %v6095_v25  ;;  %v6206_v30 = vunpack.c.l.s8.bf16 %v5310_v8  ;;  %v6208_v25 = vunpack.c.l.s8.bf16 %v5312_v22 }
 0x949   : > { %7374 = vmatprep.subr.bf16.mxu1 %v6097_v41  ;;  %v6223_v41 = vunpack.c.h.s8.bf16 %v5311_v15 }
 0x94b   : > { %7211 = vmatpush1.bf16.msra.mxu0 %v6094_v37  ;;  %v5329_v37 = vld [vmem:[%s13024_s22 + $0xcd8] sm:$0xff] }
 0x94c   : > { %7375 = vmatpush1.bf16.msra.mxu1 %v6096_v61  ;;  %7212 = vmatprep.subr.bf16.mxu0 %v6111_v39  ;;  %v6222_v61 = vunpack.c.h.s8.bf16 %v5310_v8  ;;  %v6224_v39 = vunpack.c.h.s8.bf16 %v5312_v22  ;;  %v6241_v2 = vunpack.c.l.s8.bf16 %v5329_v37  ;;  %v6257_v44 = vunpack.c.h.s8.bf16 %v5329_v37 }
 0x94d   : > { %7376 = vmatprep.subr.bf16.mxu1 %v6113_v63  ;;  %v5326_v63 = vld [vmem:[%s13024_s22 + $0xcc0] sm:$0xff] }
 0x94f   : > { %7213 = vmatpush1.bf16.msra.mxu0 %v6110_v11  ;;  %v5328_v11 = vld [vmem:[%s13024_s22 + $0xcd0] sm:$0xff] }
 0x950   : > { %7377 = vmatpush1.bf16.msra.mxu1 %v6112_v24  ;;  %7214 = vmatprep.subr.bf16.mxu0 %v6127_v20  ;;  %v6238_v24 = vunpack.c.l.s8.bf16 %v5326_v63  ;;  %v6240_v20 = vunpack.c.l.s8.bf16 %v5328_v11 }
 0x951   : > { %7378 = vmatprep.subr.bf16.mxu1 %v6129_v59  ;;  %v6255_v59 = vunpack.c.h.s8.bf16 %v5327_v53 }
 0x953   : > { %7215 = vmatpush1.bf16.msra.mxu0 %v6126_v47  ;;  %v5345_v47 = vld [vmem:[%s13024_s22 + $0xd58] sm:$0xff] }
 0x954   : > { %7379 = vmatpush1.bf16.msra.mxu1 %v6128_v62  ;;  %7216 = vmatprep.subr.bf16.mxu0 %v6143_v54  ;;  %v6254_v62 = vunpack.c.h.s8.bf16 %v5326_v63  ;;  %v6256_v54 = vunpack.c.h.s8.bf16 %v5328_v11  ;;  %v6273_v5 = vunpack.c.l.s8.bf16 %v5345_v47  ;;  %v6289_v46 = vunpack.c.h.s8.bf16 %v5345_v47 }
 0x955   : > { %7380 = vmatprep.subr.bf16.mxu1 %v6145_v6  ;;  %v5342_v6 = vld [vmem:[%s13024_s22 + $0xd40] sm:$0xff] }
 0x957   : > { %7217 = vmatpush1.bf16.msra.mxu0 %v6142_v60  ;;  %v5344_v60 = vld [vmem:[%s13024_s22 + $0xd50] sm:$0xff] }
 0x958   : > { %7381 = vmatpush1.bf16.msra.mxu1 %v6144_v33  ;;  %7218 = vmatprep.subr.bf16.mxu0 %v6159_v14  ;;  %v6270_v33 = vunpack.c.l.s8.bf16 %v5342_v6  ;;  %v6272_v14 = vunpack.c.l.s8.bf16 %v5344_v60 }
 0x959   : > { %7382 = vmatprep.subr.bf16.mxu1 %v6161_v36  ;;  %v6287_v36 = vunpack.c.h.s8.bf16 %v5343_v23 }
 0x95b   : > { %7219 = vmatpush1.bf16.msra.mxu0 %v6158_v28  ;;  %v5361_v28 = vld [vmem:[%s13024_s22 + $0xdd8] sm:$0xff] }
 0x95c   : > { %7383 = vmatpush1.bf16.msra.mxu1 %v6160_v42  ;;  %7220 = vmatprep.subr.bf16.mxu0 %v6175_v45  ;;  %v6286_v42 = vunpack.c.h.s8.bf16 %v5342_v6  ;;  %v6288_v45 = vunpack.c.h.s8.bf16 %v5344_v60  ;;  %v6321_v53 = vunpack.c.h.s8.bf16 %v5361_v28  ;;  %v5393_v6 = vld [vmem:[%s13024_s22 + $0xed8] sm:$0xff] }
 0x95d   : > { %7384 = vmatprep.subr.bf16.mxu1 %v6177_v43  ;;  %v5358_v43 = vld [vmem:[%s13024_s22 + $0xdc0] sm:$0xff] }
 0x95f   : > { %7221 = vmatpush1.bf16.msra.mxu0 %v6174_v56  ;;  %v6305_v56 = vunpack.c.l.s8.bf16 %v5361_v28 }
 0x960   : > { %7385 = vmatpush1.bf16.msra.mxu1 %v6176_v27  ;;  %7222 = vmatprep.subr.bf16.mxu0 %v6191_v3  ;;  %v5360_v27 = vld [vmem:[%s13024_s22 + $0xdd0] sm:$0xff] }
 0x961   : > { %7386 = vmatprep.subr.bf16.mxu1 %v6193_v12  ;;  %v6304_v22 = vunpack.c.l.s8.bf16 %v5360_v27 }
 0x963   : > { %7223 = vmatpush1.bf16.msra.mxu0 %v6190_v19 }
 0x964   : > { %7387 = vmatpush1.bf16.msra.mxu1 %v6192_v49  ;;  %7233 = vmatprep.subr.bf16.mxu0 %v6207_v1  ;;  %v6302_v49 = vunpack.c.l.s8.bf16 %v5358_v43 }
 0x965   : > { %7397 = vmatprep.subr.bf16.mxu1 %v6209_v34 }
 0x966   : > { %7225 = vmatmul.mubr.bf16.vlgmr.msra.gmra.mrb[16].mxu0 %v15284_v18 }
 0x967   : > { %7389 = vmatmul.mubr.bf16.vlgmr.msra.gmra.mrb[16].mxu1 %v15284_v18  ;;  %7234 = vmatpush1.bf16.msra.mxu0 %v6206_v30  ;;  %v6319_v30 = vunpack.c.h.s8.bf16 %v5359_v55 }
 0x968   : > { %7265 = vmatprep.mubr.bf16.mxu0 %v15288_v58  ;;  %7398 = vmatpush1.bf16.msra.mxu1 %v6208_v25 }
 0x969   : > { %7429 = vmatprep.mubr.bf16.mxu1 %v15288_v58  ;;  %7235 = vmatprep.subr.bf16.mxu0 %v6223_v41 }
 0x96a   : > { %7399 = vmatprep.subr.bf16.mxu1 %v6225_v52  ;;  %v5375_v52 = vld [vmem:[%s13024_s22 + $0xe48] sm:$0xff] }
 0x96b   : > { %7236 = vmatpush1.bf16.msra.mxu0 %v6222_v61  ;;  %v5377_v61 = vld [vmem:[%s13024_s22 + $0xe58] sm:$0xff]  ;;  %v6335_v11 = vunpack.c.l.s8.bf16 %v5375_v52 }
 0x96c   : > { %7400 = vmatpush1.bf16.msra.mxu1 %v6224_v39  ;;  %7237 = vmatprep.subr.bf16.mxu0 %v6239_v4  ;;  %v4907_v39 = vld [vmem:[#allocation3 + $0x8] sm:$0xff]  ;;  %v6318_v4 = vunpack.c.h.s8.bf16 %v5358_v43 }
 0x96d   : > { %7401 = vmatprep.subr.bf16.mxu1 %v6241_v2  ;;  %v6320_v2 = vunpack.c.h.s8.bf16 %v5360_v27  ;;  %v5409_v43 = vld [vmem:[%s13024_s22 + $0xf58] sm:$0xff] }
 0x96f   : > { %7238 = vmatpush1.bf16.msra.mxu0 %v6238_v24  ;;  %v5374_v24 = vld [vmem:[%s13024_s22 + $0xe40] sm:$0xff] }
 0x970   : > { %7402 = vmatpush1.bf16.msra.mxu1 %v6240_v20  ;;  %7239 = vmatprep.subr.bf16.mxu0 %v6255_v59  ;;  %v6337_v20 = vunpack.c.l.s8.bf16 %v5377_v61  ;;  %v5376_v59 = vld [vmem:[%s13024_s22 + $0xe50] sm:$0xff]  ;;  %v6334_v23 = vunpack.c.l.s8.bf16 %v5374_v24 }
 0x971   : > { %7403 = vmatprep.subr.bf16.mxu1 %v6257_v44  ;;  %v6336_v47 = vunpack.c.l.s8.bf16 %v5376_v59  ;;  %v6352_v60 = vunpack.c.h.s8.bf16 %v5376_v59  ;;  %v4930_v59 = vld [vmem:[%s13024_s22 + $0x60] sm:$0xff] }
 0x973   : > { %7240 = vmatpush1.bf16.msra.mxu0 %v6254_v62  ;;  %v6351_v62 = vunpack.c.h.s8.bf16 %v5375_v52  ;;  %v5424_v52 = vld [vmem:[%s13024_s22 + $0xfd0] sm:$0xff] }
 0x974   : > { %7404 = vmatpush1.bf16.msra.mxu1 %v6256_v54  ;;  %7241 = vmatprep.subr.bf16.mxu0 %v6271_v13  ;;  %v6353_v54 = vunpack.c.h.s8.bf16 %v5377_v61  ;;  %v5391_v13 = vld [vmem:[%s13024_s22 + $0xec8] sm:$0xff]  ;;  %v6432_v61 = vunpack.c.l.s8.bf16 %v5424_v52 }
 0x975   : > { %7405 = vmatprep.subr.bf16.mxu1 %v6273_v5  ;;  %v6350_v5 = vunpack.c.h.s8.bf16 %v5374_v24  ;;  %v6448_v24 = vunpack.c.h.s8.bf16 %v5424_v52  ;;  %v4980_v52 = vld [vmem:[%s13024_s22 + $0x1f0] sm:$0xff] }
 0x977   : > { %7242 = vmatpush1.bf16.msra.mxu0 %v6270_v33  ;;  %v6367_v33 = vunpack.c.l.s8.bf16 %v5391_v13 }
 0x978   : > { %7406 = vmatpush1.bf16.msra.mxu1 %v6272_v14  ;;  %7243 = vmatprep.subr.bf16.mxu0 %v6287_v36  ;;  %v5390_v14 = vld [vmem:[%s13024_s22 + $0xec0] sm:$0xff]  ;;  %v6369_v36 = vunpack.c.l.s8.bf16 %v5393_v6 }
 0x979   : > { %v6939_v48 = vpop.f32.mrb[12].mxu0  ;;  %7407 = vmatprep.subr.bf16.mxu1 %v6289_v46  ;;  %v5392_v46 = vld [vmem:[%s13024_s22 + $0xed0] sm:$0xff]  ;;  %v6366_v55 = vunpack.c.l.s8.bf16 %v5390_v14 }
 0x97a   : > { %v7103_v3 = vpop.f32.mrb[12].mxu1  ;;  %v6941_v12 = vpop.f32.mrb[13].mxu0  ;;  %v6368_v28 = vunpack.c.l.s8.bf16 %v5392_v46 }
 0x97b   : > { %v7799_v15 = vcombine.low %v6939_v48, %v6941_v12  ;;  %v7105_v50 = vpop.f32.mrb[13].mxu1  ;;  %v6943_v19 = vpop.f32.mrb[14].mxu0  ;;  %7244 = vmatpush1.bf16.msra.mxu0 %v6286_v42  ;;  %v6383_v42 = vunpack.c.h.s8.bf16 %v5391_v13  ;;  %v6382_v48 = vunpack.c.h.s8.bf16 %v5390_v14  ;;  %v6401_v12 = vunpack.c.l.s8.bf16 %v5409_v43  ;;  %v4947_v13 = vld [vmem:[%s13024_s22 + $0xe8] sm:$0xff] }
 0x97c   : > { %v7800_v1 = vcombine.low %v7103_v3, %v7105_v50  ;;  %v7107_v8 = vpop.f32.mrb[14].mxu1  ;;  %7408 = vmatpush1.bf16.msra.mxu1 %v6288_v45  ;;  %v6944_v34 = vpop.f32.mrb[15].mxu0  ;;  %7245 = vmatprep.subr.bf16.mxu0 %v6303_v38  ;;  %v6385_v45 = vunpack.c.h.s8.bf16 %v5393_v6  ;;  %v5407_v38 = vld [vmem:[%s13024_s22 + $0xf48] sm:$0xff]  ;;  %v5406_v3 = vld [vmem:[%s13024_s22 + $0xf40] sm:$0xff]  ;;  %v5475_v14 = vunpack.c.l.s8.bf16 %v4947_v13 }
 0x97d   : > { %v7807_v25 = vrot.slane %v7799_v15, %v15456_v9  ;;  %v7108_v41 = vpop.f32.mrb[15].mxu1  ;;  %7409 = vmatprep.subr.bf16.mxu1 %v6305_v56  ;;  %v6384_v56 = vunpack.c.h.s8.bf16 %v5392_v46  ;;  %v6399_v27 = vunpack.c.l.s8.bf16 %v5407_v38  ;;  %v5408_v15 = vld [vmem:[%s13024_s22 + $0xf50] sm:$0xff]  ;;  %v6398_v50 = vunpack.c.l.s8.bf16 %v5406_v3  ;;  %v5423_v8 = vld [vmem:[%s13024_s22 + $0xfc8] sm:$0xff]  ;;  %v5425_v34 = vld [vmem:[%s13024_s22 + $0xfd8] sm:$0xff] }
 0x97e   : > { %v7814_v37 = vrot.slane %v7800_v1, %v15456_v9  ;;  %v6400_v19 = vunpack.c.l.s8.bf16 %v5408_v15  ;;  %v6417_v1 = vunpack.c.h.s8.bf16 %v5409_v43  ;;  %v5422_v41 = vld [vmem:[%s13024_s22 + $0xfc0] sm:$0xff]  ;;  %v4963_v43 = vld [vmem:[%s13024_s22 + $0x168] sm:$0xff] }
 0x97f   : > { %7246 = vmatpush1.bf16.msra.mxu0 %v6302_v49  ;;  %v6415_v49 = vunpack.c.h.s8.bf16 %v5407_v38 }
 0x980   : > { %v7815_v63 = vcombine.low %v7807_v25, %v7814_v37  ;;  %7410 = vmatpush1.bf16.msra.mxu1 %v6304_v22  ;;  %7247 = vmatprep.subr.bf16.mxu0 %v6319_v30  ;;  %v6414_v22 = vunpack.c.h.s8.bf16 %v5406_v3  ;;  %v6416_v30 = vunpack.c.h.s8.bf16 %v5408_v15  ;;  %v6431_v25 = vunpack.c.l.s8.bf16 %v5423_v8  ;;  %v4962_v3 = vld [vmem:[%s13024_s22 + $0x160] sm:$0xff]  ;;  %v4964_v15 = vld [vmem:[%s13024_s22 + $0x170] sm:$0xff] }
 0x981   : > { %7411 = vmatprep.subr.bf16.mxu1 %v6321_v53  ;;  %v6433_v53 = vunpack.c.l.s8.bf16 %v5425_v34  ;;  %v6430_v37 = vunpack.c.l.s8.bf16 %v5422_v41 }
 0x982   : > { %v7855_v44 = vadd.f32 %v7815_v63, %v4907_v39  ;;  %v6447_v39 = vunpack.c.h.s8.bf16 %v5423_v8  ;;  %v4931_v63 = vld [vmem:[%s13024_s22 + $0x68] sm:$0xff] }
 0x983   : > { %7248 = vmatpush1.bf16.msra.mxu0 %v6318_v4  ;;  %v6449_v4 = vunpack.c.h.s8.bf16 %v5425_v34  ;;  %v4979_v8 = vld [vmem:[%s13024_s22 + $0x1e8] sm:$0xff]  ;;  %v4981_v34 = vld [vmem:[%s13024_s22 + $0x1f8] sm:$0xff] }
 0x984   : > { %7859 = vst [vmem:[#allocation3 + $0x8] sm:$0xff] %v7855_v44  ;;  %7412 = vmatpush1.bf16.msra.mxu1 %v6320_v2  ;;  %7249 = vmatprep.subr.bf16.mxu0 %v6335_v11  ;;  %v4933_v2 = vld [vmem:[%s13024_s22 + $0x78] sm:$0xff]  ;;  %v6446_v11 = vunpack.c.h.s8.bf16 %v5422_v41  ;;  %v4978_v41 = vld [vmem:[%s13024_s22 + $0x1e0] sm:$0xff] }
 0x985   : > { %7413 = vmatprep.subr.bf16.mxu1 %v6337_v20  ;;  %v5443_v20 = vunpack.c.l.s8.bf16 %v4931_v63  ;;  %v5445_v44 = vunpack.c.l.s8.bf16 %v4933_v2  ;;  %v5461_v6 = vunpack.c.h.s8.bf16 %v4933_v2  ;;  %v4997_v2 = vld [vmem:[%s13024_s22 + $0x278] sm:$0xff] }
 0x987   : > { %7250 = vmatpush1.bf16.msra.mxu0 %v6334_v23  ;;  %v4932_v23 = vld [vmem:[%s13024_s22 + $0x70] sm:$0xff] }
 0x988   : > { %7414 = vmatpush1.bf16.msra.mxu1 %v6336_v47  ;;  %7251 = vmatprep.subr.bf16.mxu0 %v6351_v62  ;;  %v5442_v47 = vunpack.c.l.s8.bf16 %v4930_v59  ;;  %v5444_v62 = vunpack.c.l.s8.bf16 %v4932_v23 }
 0x989   : > { %7415 = vmatprep.subr.bf16.mxu1 %v6353_v54  ;;  %v5459_v54 = vunpack.c.h.s8.bf16 %v4931_v63  ;;  %v4995_v63 = vld [vmem:[%s13024_s22 + $0x268] sm:$0xff] }
 0x98b   : > { %7252 = vmatpush1.bf16.msra.mxu0 %v6350_v5  ;;  %v4949_v5 = vld [vmem:[%s13024_s22 + $0xf8] sm:$0xff] }
 0x98c   : > { %7416 = vmatpush1.bf16.msra.mxu1 %v6352_v60  ;;  %7253 = vmatprep.subr.bf16.mxu0 %v6367_v33  ;;  %v5458_v60 = vunpack.c.h.s8.bf16 %v4930_v59  ;;  %v5460_v33 = vunpack.c.h.s8.bf16 %v4932_v23  ;;  %v5477_v46 = vunpack.c.l.s8.bf16 %v4949_v5  ;;  %v5493_v38 = vunpack.c.h.s8.bf16 %v4949_v5  ;;  %v4994_v59 = vld [vmem:[%s13024_s22 + $0x260] sm:$0xff]  ;;  %v4996_v23 = vld [vmem:[%s13024_s22 + $0x270] sm:$0xff]  ;;  %v5013_v5 = vld [vmem:[%s13024_s22 + $0x2f8] sm:$0xff] }
 0x98d   : > { %7417 = vmatprep.subr.bf16.mxu1 %v6369_v36  ;;  %v4946_v36 = vld [vmem:[%s13024_s22 + $0xe0] sm:$0xff] }
 0x98f   : > { %7254 = vmatpush1.bf16.msra.mxu0 %v6366_v55  ;;  %v4948_v55 = vld [vmem:[%s13024_s22 + $0xf0] sm:$0xff] }
 0x990   : > { %7418 = vmatpush1.bf16.msra.mxu1 %v6368_v28  ;;  %7255 = vmatprep.subr.bf16.mxu0 %v6383_v42  ;;  %v5474_v28 = vunpack.c.l.s8.bf16 %v4946_v36  ;;  %v5476_v42 = vunpack.c.l.s8.bf16 %v4948_v55 }
 0x991   : > { %7419 = vmatprep.subr.bf16.mxu1 %v6385_v45  ;;  %v5491_v45 = vunpack.c.h.s8.bf16 %v4947_v13  ;;  %v5589_v13 = vunpack.c.h.s8.bf16 %v4997_v2 }
 0x993   : > { %7256 = vmatpush1.bf16.msra.mxu0 %v6382_v48  ;;  %v4965_v48 = vld [vmem:[%s13024_s22 + $0x178] sm:$0xff] }
 0x994   : > { %7420 = vmatpush1.bf16.msra.mxu1 %v6384_v56  ;;  %7257 = vmatprep.subr.bf16.mxu0 %v6399_v27  ;;  %v5490_v56 = vunpack.c.h.s8.bf16 %v4946_v36  ;;  %v5507_v27 = vunpack.c.l.s8.bf16 %v4963_v43  ;;  %v5010_v36 = vld [vmem:[%s13024_s22 + $0x2e0] sm:$0xff] }
 0x995   : > { %7421 = vmatprep.subr.bf16.mxu1 %v6401_v12  ;;  %v5509_v12 = vunpack.c.l.s8.bf16 %v4965_v48 }
 0x997   : > { %7258 = vmatpush1.bf16.msra.mxu0 %v6398_v50  ;;  %v5506_v50 = vunpack.c.l.s8.bf16 %v4962_v3 }
 0x998   : > { %7422 = vmatpush1.bf16.msra.mxu1 %v6400_v19  ;;  %7259 = vmatprep.subr.bf16.mxu0 %v6415_v49  ;;  %v5508_v19 = vunpack.c.l.s8.bf16 %v4964_v15  ;;  %v5523_v49 = vunpack.c.h.s8.bf16 %v4963_v43  ;;  %v5027_v43 = vld [vmem:[%s13024_s22 + $0x368] sm:$0xff] }
 0x999   : > { %7423 = vmatprep.subr.bf16.mxu1 %v6417_v1  ;;  %v5525_v1 = vunpack.c.h.s8.bf16 %v4965_v48  ;;  %v5029_v48 = vld [vmem:[%s13024_s22 + $0x378] sm:$0xff] }
 0x99b   : > { %7260 = vmatpush1.bf16.msra.mxu0 %v6414_v22  ;;  %v5522_v22 = vunpack.c.h.s8.bf16 %v4962_v3  ;;  %v5026_v3 = vld [vmem:[%s13024_s22 + $0x360] sm:$0xff] }
 0x99c   : > { %7424 = vmatpush1.bf16.msra.mxu1 %v6416_v30  ;;  %7261 = vmatprep.subr.bf16.mxu0 %v6431_v25  ;;  %v5524_v30 = vunpack.c.h.s8.bf16 %v4964_v15  ;;  %v5539_v25 = vunpack.c.l.s8.bf16 %v4979_v8  ;;  %v5028_v15 = vld [vmem:[%s13024_s22 + $0x370] sm:$0xff] }
 0x99d   : > { %7425 = vmatprep.subr.bf16.mxu1 %v6433_v53  ;;  %v5541_v53 = vunpack.c.l.s8.bf16 %v4981_v34 }
 0x99f   : > { %7262 = vmatpush1.bf16.msra.mxu0 %v6430_v37  ;;  %v5538_v37 = vunpack.c.l.s8.bf16 %v4978_v41 }
 0x9a0   : > { %7426 = vmatpush1.bf16.msra.mxu1 %v6432_v61  ;;  %7263 = vmatprep.subr.bf16.mxu0 %v6447_v39  ;;  %v5540_v61 = vunpack.c.l.s8.bf16 %v4980_v52  ;;  %v5555_v39 = vunpack.c.h.s8.bf16 %v4979_v8  ;;  %v5043_v8 = vld [vmem:[%s13024_s22 + $0x3e8] sm:$0xff] }
 0x9a1   : > { %7427 = vmatprep.subr.bf16.mxu1 %v6449_v4  ;;  %v5557_v4 = vunpack.c.h.s8.bf16 %v4981_v34  ;;  %v5045_v34 = vld [vmem:[%s13024_s22 + $0x3f8] sm:$0xff] }
 0x9a3   : > { %7264 = vmatpush1.bf16.msra.mxu0 %v6446_v11  ;;  %v5554_v11 = vunpack.c.h.s8.bf16 %v4978_v41  ;;  %v5042_v41 = vld [vmem:[%s13024_s22 + $0x3e0] sm:$0xff] }
 0x9a4   : > { %7428 = vmatpush1.bf16.msra.mxu1 %v6448_v24  ;;  %7438 = vmatprep.subr.bf16.mxu0 %v5443_v20  ;;  %v5556_v24 = vunpack.c.h.s8.bf16 %v4980_v52  ;;  %v5571_v20 = vunpack.c.l.s8.bf16 %v4995_v63  ;;  %v5044_v52 = vld [vmem:[%s13024_s22 + $0x3f0] sm:$0xff] }
 0x9a5   : > { %7602 = vmatprep.subr.bf16.mxu1 %v5445_v44  ;;  %v5573_v44 = vunpack.c.l.s8.bf16 %v4997_v2  ;;  %v5061_v2 = vld [vmem:[%s13024_s22 + $0x478] sm:$0xff] }
 0x9a6   : > { %7266 = vmatmul.mubr.bf16.vlgmr.msra.gmra.mrb[16].mxu0 %v15330_v40 }
 0x9a7   : > { %7430 = vmatmul.mubr.bf16.vlgmr.msra.gmra.mrb[16].mxu1 %v15330_v40  ;;  %7439 = vmatpush1.bf16.msra.mxu0 %v5442_v47  ;;  %v5570_v47 = vunpack.c.l.s8.bf16 %v4994_v59 }
 0x9a8   : > { %7470 = vmatprep.mubr.bf16.mxu0 %v15168_v17  ;;  %7603 = vmatpush1.bf16.msra.mxu1 %v5444_v62  ;;  %v5572_v62 = vunpack.c.l.s8.bf16 %v4996_v23 }
 0x9a9   : > { %7634 = vmatprep.mubr.bf16.mxu1 %v15168_v17  ;;  %7440 = vmatprep.subr.bf16.mxu0 %v5459_v54  ;;  %v5492_v17 = vunpack.c.h.s8.bf16 %v4948_v55  ;;  %v5587_v54 = vunpack.c.h.s8.bf16 %v4995_v63  ;;  %v5012_v55 = vld [vmem:[%s13024_s22 + $0x2f0] sm:$0xff]  ;;  %v5059_v63 = vld [vmem:[%s13024_s22 + $0x468] sm:$0xff] }
 0x9aa   : > { %7604 = vmatprep.subr.bf16.mxu1 %v5461_v6  ;;  %v5011_v6 = vld [vmem:[%s13024_s22 + $0x2e8] sm:$0xff] }
 0x9ab   : > { %7441 = vmatpush1.bf16.msra.mxu0 %v5458_v60  ;;  %v5586_v60 = vunpack.c.h.s8.bf16 %v4994_v59  ;;  %v5058_v59 = vld [vmem:[%s13024_s22 + $0x460] sm:$0xff] }
 0x9ac   : > { %7605 = vmatpush1.bf16.msra.mxu1 %v5460_v33  ;;  %7442 = vmatprep.subr.bf16.mxu0 %v5475_v14  ;;  %v5588_v33 = vunpack.c.h.s8.bf16 %v4996_v23  ;;  %v5603_v14 = vunpack.c.l.s8.bf16 %v5011_v6  ;;  %v5060_v23 = vld [vmem:[%s13024_s22 + $0x470] sm:$0xff] }
 0x9ad   : > { %7606 = vmatprep.subr.bf16.mxu1 %v5477_v46  ;;  %v5605_v46 = vunpack.c.l.s8.bf16 %v5013_v5 }
 0x9af   : > { %7443 = vmatpush1.bf16.msra.mxu0 %v5474_v28  ;;  %v5602_v28 = vunpack.c.l.s8.bf16 %v5010_v36 }
 0x9b0   : > { %7607 = vmatpush1.bf16.msra.mxu1 %v5476_v42  ;;  %7444 = vmatprep.subr.bf16.mxu0 %v5491_v45  ;;  %v5604_v42 = vunpack.c.l.s8.bf16 %v5012_v55  ;;  %v5619_v45 = vunpack.c.h.s8.bf16 %v5011_v6  ;;  %v5717_v6 = vunpack.c.h.s8.bf16 %v5061_v2 }
 0x9b1   : > { %7608 = vmatprep.subr.bf16.mxu1 %v5493_v38  ;;  %v5621_v38 = vunpack.c.h.s8.bf16 %v5013_v5  ;;  %v5077_v5 = vld [vmem:[%s13024_s22 + $0x4f8] sm:$0xff] }
 0x9b3   : > { %7445 = vmatpush1.bf16.msra.mxu0 %v5490_v56  ;;  %v5618_v56 = vunpack.c.h.s8.bf16 %v5010_v36  ;;  %v5074_v36 = vld [vmem:[%s13024_s22 + $0x4e0] sm:$0xff] }
 0x9b4   : > { %7609 = vmatpush1.bf16.msra.mxu1 %v5492_v17  ;;  %7446 = vmatprep.subr.bf16.mxu0 %v5507_v27  ;;  %v5620_v17 = vunpack.c.h.s8.bf16 %v5012_v55  ;;  %v5635_v27 = vunpack.c.l.s8.bf16 %v5027_v43  ;;  %v5076_v55 = vld [vmem:[%s13024_s22 + $0x4f0] sm:$0xff] }
 0x9b5   : > { %7610 = vmatprep.subr.bf16.mxu1 %v5509_v12  ;;  %v5637_v12 = vunpack.c.l.s8.bf16 %v5029_v48 }
 0x9b7   : > { %7447 = vmatpush1.bf16.msra.mxu0 %v5506_v50  ;;  %v5634_v50 = vunpack.c.l.s8.bf16 %v5026_v3 }
 0x9b8   : > { %7611 = vmatpush1.bf16.msra.mxu1 %v5508_v19  ;;  %7448 = vmatprep.subr.bf16.mxu0 %v5523_v49  ;;  %v5636_v19 = vunpack.c.l.s8.bf16 %v5028_v15  ;;  %v5651_v49 = vunpack.c.h.s8.bf16 %v5027_v43  ;;  %v5093_v43 = vld [vmem:[%s13024_s22 + $0x578] sm:$0xff] }
 0x9b9   : > { %7612 = vmatprep.subr.bf16.mxu1 %v5525_v1  ;;  %v5653_v1 = vunpack.c.h.s8.bf16 %v5029_v48  ;;  %v5746_v48 = vunpack.c.h.s8.bf16 %v5074_v36 }
 0x9bb   : > { %7449 = vmatpush1.bf16.msra.mxu0 %v5522_v22  ;;  %v5650_v22 = vunpack.c.h.s8.bf16 %v5026_v3  ;;  %v5092_v3 = vld [vmem:[%s13024_s22 + $0x570] sm:$0xff] }
 0x9bc   : > { %7613 = vmatpush1.bf16.msra.mxu1 %v5524_v30  ;;  %7450 = vmatprep.subr.bf16.mxu0 %v5539_v25  ;;  %v5652_v30 = vunpack.c.h.s8.bf16 %v5028_v15  ;;  %v5667_v25 = vunpack.c.l.s8.bf16 %v5043_v8  ;;  %v5764_v15 = vunpack.c.l.s8.bf16 %v5092_v3 }
 0x9bd   : > { %7614 = vmatprep.subr.bf16.mxu1 %v5541_v53  ;;  %v5669_v53 = vunpack.c.l.s8.bf16 %v5045_v34 }
 0x9bf   : > { %7451 = vmatpush1.bf16.msra.mxu0 %v5538_v37  ;;  %v5666_v37 = vunpack.c.l.s8.bf16 %v5042_v41 }
 0x9c0   : > { %7615 = vmatpush1.bf16.msra.mxu1 %v5540_v61  ;;  %7452 = vmatprep.subr.bf16.mxu0 %v5555_v39  ;;  %v5668_v61 = vunpack.c.l.s8.bf16 %v5044_v52  ;;  %v5683_v39 = vunpack.c.h.s8.bf16 %v5043_v8 }
 0x9c1   : > { %7616 = vmatprep.subr.bf16.mxu1 %v5557_v4  ;;  %v5685_v4 = vunpack.c.h.s8.bf16 %v5045_v34  ;;  %v5780_v34 = vunpack.c.h.s8.bf16 %v5092_v3 }
 0x9c3   : > { %7453 = vmatpush1.bf16.msra.mxu0 %v5554_v11  ;;  %v5682_v11 = vunpack.c.h.s8.bf16 %v5042_v41  ;;  %v5108_v41 = vld [vmem:[%s13024_s22 + $0x5f0] sm:$0xff] }
 0x9c4   : > { %7617 = vmatpush1.bf16.msra.mxu1 %v5556_v24  ;;  %7454 = vmatprep.subr.bf16.mxu0 %v5571_v20  ;;  %v5684_v24 = vunpack.c.h.s8.bf16 %v5044_v52  ;;  %v5699_v20 = vunpack.c.l.s8.bf16 %v5059_v63  ;;  %v5796_v52 = vunpack.c.l.s8.bf16 %v5108_v41 }
 0x9c5   : > { %7618 = vmatprep.subr.bf16.mxu1 %v5573_v44  ;;  %v5701_v44 = vunpack.c.l.s8.bf16 %v5061_v2  ;;  %v5812_v2 = vunpack.c.h.s8.bf16 %v5108_v41 }
 0x9c7   : > { %7455 = vmatpush1.bf16.msra.mxu0 %v5570_v47  ;;  %v5698_v47 = vunpack.c.l.s8.bf16 %v5058_v59 }
 0x9c8   : > { %7619 = vmatpush1.bf16.msra.mxu1 %v5572_v62  ;;  %7456 = vmatprep.subr.bf16.mxu0 %v5587_v54  ;;  %v5700_v62 = vunpack.c.l.s8.bf16 %v5060_v23  ;;  %v5715_v54 = vunpack.c.h.s8.bf16 %v5059_v63 }
 0x9c9   : > { %7620 = vmatprep.subr.bf16.mxu1 %v5589_v13  ;;  %v5075_v13 = vld [vmem:[%s13024_s22 + $0x4e8] sm:$0xff] }
 0x9cb   : > { %7457 = vmatpush1.bf16.msra.mxu0 %v5586_v60  ;;  %v5714_v60 = vunpack.c.h.s8.bf16 %v5058_v59  ;;  %v5124_v59 = vld [vmem:[%s13024_s22 + $0x670] sm:$0xff] }
 0x9cc   : > { %7621 = vmatpush1.bf16.msra.mxu1 %v5588_v33  ;;  %7458 = vmatprep.subr.bf16.mxu0 %v5603_v14  ;;  %v5716_v33 = vunpack.c.h.s8.bf16 %v5060_v23  ;;  %v5731_v14 = vunpack.c.l.s8.bf16 %v5075_v13  ;;  %v5828_v23 = vunpack.c.l.s8.bf16 %v5124_v59 }
 0x9cd   : > { %7622 = vmatprep.subr.bf16.mxu1 %v5605_v46  ;;  %v5733_v46 = vunpack.c.l.s8.bf16 %v5077_v5 }
 0x9cf   : > { %7459 = vmatpush1.bf16.msra.mxu0 %v5602_v28  ;;  %v5730_v28 = vunpack.c.l.s8.bf16 %v5074_v36  ;;  %v5140_v36 = vld [vmem:[%s13024_s22 + $0x6f0] sm:$0xff] }
 0x9d0   : > { %7623 = vmatpush1.bf16.msra.mxu1 %v5604_v42  ;;  %7460 = vmatprep.subr.bf16.mxu0 %v5619_v45  ;;  %v5747_v42 = vunpack.c.h.s8.bf16 %v5075_v13  ;;  %v5749_v45 = vunpack.c.h.s8.bf16 %v5077_v5  ;;  %v5141_v13 = vld [vmem:[%s13024_s22 + $0x6f8] sm:$0xff]  ;;  %v5844_v5 = vunpack.c.h.s8.bf16 %v5124_v59 }
 0x9d1   : > { %7624 = vmatprep.subr.bf16.mxu1 %v5621_v38  ;;  %v5091_v38 = vld [vmem:[%s13024_s22 + $0x568] sm:$0xff] }
 0x9d3   : > { %7461 = vmatpush1.bf16.msra.mxu0 %v5618_v56  ;;  %v5763_v56 = vunpack.c.l.s8.bf16 %v5091_v38 }
 0x9d4   : > { %7625 = vmatpush1.bf16.msra.mxu1 %v5620_v17  ;;  %7462 = vmatprep.subr.bf16.mxu0 %v5635_v27  ;;  %v5090_v17 = vld [vmem:[%s13024_s22 + $0x560] sm:$0xff]  ;;  %v5765_v27 = vunpack.c.l.s8.bf16 %v5093_v43 }
 0x9d5   : > { %7626 = vmatprep.subr.bf16.mxu1 %v5637_v12  ;;  %v5762_v12 = vunpack.c.l.s8.bf16 %v5090_v17  ;;  %v5778_v8 = vunpack.c.h.s8.bf16 %v5090_v17  ;;  %v5156_v17 = vld [vmem:[%s13024_s22 + $0x770] sm:$0xff] }
 0x9d6   : > { %v5892_v3 = vunpack.c.l.s8.bf16 %v5156_v17 }
 0x9d7   : > { %7463 = vmatpush1.bf16.msra.mxu0 %v5634_v50  ;;  %v5779_v50 = vunpack.c.h.s8.bf16 %v5091_v38 }
 0x9d8   : > { %7627 = vmatpush1.bf16.msra.mxu1 %v5636_v19  ;;  %7464 = vmatprep.subr.bf16.mxu0 %v5651_v49  ;;  %v5781_v19 = vunpack.c.h.s8.bf16 %v5093_v43  ;;  %v5107_v49 = vld [vmem:[%s13024_s22 + $0x5e8] sm:$0xff]  ;;  %v5876_v43 = vunpack.c.h.s8.bf16 %v5140_v36 }
 0x9d9   : > { %7628 = vmatprep.subr.bf16.mxu1 %v5653_v1  ;;  %v5109_v1 = vld [vmem:[%s13024_s22 + $0x5f8] sm:$0xff] }
 0x9db   : > { %7465 = vmatpush1.bf16.msra.mxu0 %v5650_v22  ;;  %v5795_v22 = vunpack.c.l.s8.bf16 %v5107_v49 }
 0x9dc   : > { %7629 = vmatpush1.bf16.msra.mxu1 %v5652_v30  ;;  %7466 = vmatprep.subr.bf16.mxu0 %v5667_v25  ;;  %v5106_v30 = vld [vmem:[%s13024_s22 + $0x5e0] sm:$0xff]  ;;  %v5797_v25 = vunpack.c.l.s8.bf16 %v5109_v1 }
 0x9dd   : > { %7630 = vmatprep.subr.bf16.mxu1 %v5669_v53  ;;  %v5794_v53 = vunpack.c.l.s8.bf16 %v5106_v30  ;;  %v5810_v63 = vunpack.c.h.s8.bf16 %v5106_v30  ;;  %v5172_v30 = vld [vmem:[%s13024_s22 + $0x7f0] sm:$0xff] }
 0x9de   : > { %v5924_v41 = vunpack.c.l.s8.bf16 %v5172_v30 }
 0x9df   : > { %7467 = vmatpush1.bf16.msra.mxu0 %v5666_v37  ;;  %v5811_v37 = vunpack.c.h.s8.bf16 %v5107_v49 }
 0x9e0   : > { %7631 = vmatpush1.bf16.msra.mxu1 %v5668_v61  ;;  %7468 = vmatprep.subr.bf16.mxu0 %v5683_v39  ;;  %v5813_v61 = vunpack.c.h.s8.bf16 %v5109_v1  ;;  %v5123_v39 = vld [vmem:[%s13024_s22 + $0x668] sm:$0xff]  ;;  %v5908_v1 = vunpack.c.h.s8.bf16 %v5156_v17 }
 0x9e1   : > { %7632 = vmatprep.subr.bf16.mxu1 %v5685_v4  ;;  %v5125_v4 = vld [vmem:[%s13024_s22 + $0x678] sm:$0xff] }
 0x9e3   : > { %7469 = vmatpush1.bf16.msra.mxu0 %v5682_v11  ;;  %v5827_v11 = vunpack.c.l.s8.bf16 %v5123_v39 }
 0x9e4   : > { %7633 = vmatpush1.bf16.msra.mxu1 %v5684_v24  ;;  %7479 = vmatprep.subr.bf16.mxu0 %v5699_v20  ;;  %v5122_v24 = vld [vmem:[%s13024_s22 + $0x660] sm:$0xff]  ;;  %v5829_v20 = vunpack.c.l.s8.bf16 %v5125_v4 }
 0x9e5   : > { %7643 = vmatprep.subr.bf16.mxu1 %v5701_v44  ;;  %v5826_v44 = vunpack.c.l.s8.bf16 %v5122_v24 }
 0x9e6   : > { %7471 = vmatmul.mubr.bf16.vlgmr.msra.gmra.mrb[20].mxu0 %v15170_v0 }
 0x9e7   : > { %7635 = vmatmul.mubr.bf16.vlgmr.msra.gmra.mrb[20].mxu1 %v15170_v0  ;;  %7480 = vmatpush1.bf16.msra.mxu0 %v5698_v47  ;;  %v5732_v0 = vunpack.c.l.s8.bf16 %v5076_v55  ;;  %v5843_v47 = vunpack.c.h.s8.bf16 %v5123_v39 }
 0x9e8   : > { %7511 = vmatprep.mubr.bf16.mxu0 %v15176_v29  ;;  %7644 = vmatpush1.bf16.msra.mxu1 %v5700_v62  ;;  %v5845_v62 = vunpack.c.h.s8.bf16 %v5125_v4  ;;  %v5940_v4 = vunpack.c.h.s8.bf16 %v5172_v30 }
 0x9e9   : > { %7675 = vmatprep.mubr.bf16.mxu1 %v15176_v29  ;;  %7481 = vmatprep.subr.bf16.mxu0 %v5715_v54  ;;  %v5748_v29 = vunpack.c.h.s8.bf16 %v5076_v55  ;;  %v5139_v54 = vld [vmem:[%s13024_s22 + $0x6e8] sm:$0xff]  ;;  %v5860_v55 = vunpack.c.l.s8.bf16 %v5140_v36 }
 0x9ea   : > { %7645 = vmatprep.subr.bf16.mxu1 %v5717_v6  ;;  %v5842_v6 = vunpack.c.h.s8.bf16 %v5122_v24  ;;  %v5188_v24 = vld [vmem:[%s13024_s22 + $0x870] sm:$0xff] }
 0x9eb   : > { %7482 = vmatpush1.bf16.msra.mxu0 %v5714_v60  ;;  %v5859_v60 = vunpack.c.l.s8.bf16 %v5139_v54  ;;  %v5956_v59 = vunpack.c.l.s8.bf16 %v5188_v24 }
 0x9ec   : > { %7646 = vmatpush1.bf16.msra.mxu1 %v5716_v33  ;;  %7483 = vmatprep.subr.bf16.mxu0 %v5731_v14  ;;  %v5138_v33 = vld [vmem:[%s13024_s22 + $0x6e0] sm:$0xff]  ;;  %v5861_v14 = vunpack.c.l.s8.bf16 %v5141_v13 }
 0x9ed   : > { %7647 = vmatprep.subr.bf16.mxu1 %v5733_v46  ;;  %v5858_v46 = vunpack.c.l.s8.bf16 %v5138_v33  ;;  %v5874_v38 = vunpack.c.h.s8.bf16 %v5138_v33  ;;  %v5204_v33 = vld [vmem:[%s13024_s22 + $0x8f0] sm:$0xff] }
 0x9ef   : > { %7484 = vmatpush1.bf16.msra.mxu0 %v5730_v28  ;;  %v5875_v28 = vunpack.c.h.s8.bf16 %v5139_v54 }
 0x9f0   : > { %7648 = vmatpush1.bf16.msra.mxu1 %v5732_v0  ;;  %7485 = vmatprep.subr.bf16.mxu0 %v5747_v42  ;;  %v5877_v0 = vunpack.c.h.s8.bf16 %v5141_v13  ;;  %v5155_v42 = vld [vmem:[%s13024_s22 + $0x768] sm:$0xff]  ;;  %v5972_v13 = vunpack.c.h.s8.bf16 %v5188_v24 }
 0x9f1   : > { %7649 = vmatprep.subr.bf16.mxu1 %v5749_v45  ;;  %v5157_v45 = vld [vmem:[%s13024_s22 + $0x778] sm:$0xff] }
 0x9f3   : > { %7486 = vmatpush1.bf16.msra.mxu0 %v5746_v48  ;;  %v5891_v48 = vunpack.c.l.s8.bf16 %v5155_v42 }
 0x9f4   : > { %7650 = vmatpush1.bf16.msra.mxu1 %v5748_v29  ;;  %7487 = vmatprep.subr.bf16.mxu0 %v5763_v56  ;;  %v5154_v29 = vld [vmem:[%s13024_s22 + $0x760] sm:$0xff]  ;;  %v5893_v56 = vunpack.c.l.s8.bf16 %v5157_v45 }
 0x9f5   : > { %7651 = vmatprep.subr.bf16.mxu1 %v5765_v27  ;;  %v5890_v27 = vunpack.c.l.s8.bf16 %v5154_v29  ;;  %v5906_v49 = vunpack.c.h.s8.bf16 %v5154_v29 }
 0x9f7   : > { %7488 = vmatpush1.bf16.msra.mxu0 %v5762_v12  ;;  %v5907_v12 = vunpack.c.h.s8.bf16 %v5155_v42 }
 0x9f8   : > { %7652 = vmatpush1.bf16.msra.mxu1 %v5764_v15  ;;  %7489 = vmatprep.subr.bf16.mxu0 %v5779_v50  ;;  %v5909_v15 = vunpack.c.h.s8.bf16 %v5157_v45  ;;  %v5171_v50 = vld [vmem:[%s13024_s22 + $0x7e8] sm:$0xff]  ;;  %v5218_v45 = vld [vmem:[%s13024_s22 + $0x960] sm:$0xff] }
 0x9f9   : > { %7653 = vmatprep.subr.bf16.mxu1 %v5781_v19  ;;  %v5173_v19 = vld [vmem:[%s13024_s22 + $0x7f8] sm:$0xff] }
 0x9fb   : > { %7490 = vmatpush1.bf16.msra.mxu0 %v5778_v8  ;;  %v5923_v8 = vunpack.c.l.s8.bf16 %v5171_v50 }
 0x9fc   : > { %7654 = vmatpush1.bf16.msra.mxu1 %v5780_v34  ;;  %7491 = vmatprep.subr.bf16.mxu0 %v5795_v22  ;;  %v5170_v34 = vld [vmem:[%s13024_s22 + $0x7e0] sm:$0xff]  ;;  %v5925_v22 = vunpack.c.l.s8.bf16 %v5173_v19 }
 0x9fd   : > { %7655 = vmatprep.subr.bf16.mxu1 %v5797_v25  ;;  %v5922_v25 = vunpack.c.l.s8.bf16 %v5170_v34  ;;  %v5938_v39 = vunpack.c.h.s8.bf16 %v5170_v34 }
 0x9ff   : > { %7492 = vmatpush1.bf16.msra.mxu0 %v5794_v53  ;;  %v5939_v53 = vunpack.c.h.s8.bf16 %v5171_v50 }
 0xa00   : > { %7656 = vmatpush1.bf16.msra.mxu1 %v5796_v52  ;;  %7493 = vmatprep.subr.bf16.mxu0 %v5811_v37  ;;  %v5941_v52 = vunpack.c.h.s8.bf16 %v5173_v19  ;;  %v5187_v37 = vld [vmem:[%s13024_s22 + $0x868] sm:$0xff]  ;;  %v5234_v19 = vld [vmem:[%s13024_s22 + $0x9e0] sm:$0xff] }
 0xa01   : > { %7657 = vmatprep.subr.bf16.mxu1 %v5813_v61  ;;  %v5189_v61 = vld [vmem:[%s13024_s22 + $0x878] sm:$0xff] }
 0xa03   : > { %7494 = vmatpush1.bf16.msra.mxu0 %v5810_v63  ;;  %v5955_v63 = vunpack.c.l.s8.bf16 %v5187_v37 }
 0xa04   : > { %7658 = vmatpush1.bf16.msra.mxu1 %v5812_v2  ;;  %7495 = vmatprep.subr.bf16.mxu0 %v5827_v11  ;;  %v5186_v2 = vld [vmem:[%s13024_s22 + $0x860] sm:$0xff]  ;;  %v5957_v11 = vunpack.c.l.s8.bf16 %v5189_v61 }
 0xa05   : > { %7659 = vmatprep.subr.bf16.mxu1 %v5829_v20  ;;  %v5954_v20 = vunpack.c.l.s8.bf16 %v5186_v2  ;;  %v5970_v54 = vunpack.c.h.s8.bf16 %v5186_v2 }
 0xa07   : > { %7496 = vmatpush1.bf16.msra.mxu0 %v5826_v44  ;;  %v5971_v44 = vunpack.c.h.s8.bf16 %v5187_v37 }
 0xa08   : > { %7660 = vmatpush1.bf16.msra.mxu1 %v5828_v23  ;;  %7497 = vmatprep.subr.bf16.mxu0 %v5843_v47  ;;  %v5203_v23 = vld [vmem:[%s13024_s22 + $0x8e8] sm:$0xff]  ;;  %v5973_v47 = vunpack.c.h.s8.bf16 %v5189_v61  ;;  %v5250_v61 = vld [vmem:[%s13024_s22 + $0xa60] sm:$0xff] }
 0xa09   : > { %7661 = vmatprep.subr.bf16.mxu1 %v5845_v62  ;;  %v5205_v62 = vld [vmem:[%s13024_s22 + $0x8f8] sm:$0xff]  ;;  %v6003_v36 = vunpack.c.h.s8.bf16 %v5203_v23 }
 0xa0b   : > { %7498 = vmatpush1.bf16.msra.mxu0 %v5842_v6  ;;  %v5987_v6 = vunpack.c.l.s8.bf16 %v5203_v23 }
 0xa0c   : > { %7662 = vmatpush1.bf16.msra.mxu1 %v5844_v5  ;;  %7499 = vmatprep.subr.bf16.mxu0 %v5859_v60  ;;  %v5202_v5 = vld [vmem:[%s13024_s22 + $0x8e0] sm:$0xff]  ;;  %v5989_v60 = vunpack.c.l.s8.bf16 %v5205_v62 }
 0xa0d   : > { %7663 = vmatprep.subr.bf16.mxu1 %v5861_v14  ;;  %v5986_v14 = vunpack.c.l.s8.bf16 %v5202_v5 }
 0xa0f   : > { %7500 = vmatpush1.bf16.msra.mxu0 %v5858_v46  ;;  %v6005_v46 = vunpack.c.h.s8.bf16 %v5205_v62  ;;  %v5266_v62 = vld [vmem:[%s13024_s22 + $0xae0] sm:$0xff] }
 0xa10   : > { %7664 = vmatpush1.bf16.msra.mxu1 %v5860_v55  ;;  %7501 = vmatprep.subr.bf16.mxu0 %v5875_v28  ;;  %v5219_v55 = vld [vmem:[%s13024_s22 + $0x968] sm:$0xff]  ;;  %v5221_v28 = vld [vmem:[%s13024_s22 + $0x978] sm:$0xff] }
 0xa11   : > { %7665 = vmatprep.subr.bf16.mxu1 %v5877_v0  ;;  %v6002_v0 = vunpack.c.h.s8.bf16 %v5202_v5  ;;  %v6019_v42 = vunpack.c.l.s8.bf16 %v5219_v55  ;;  %v6037_v17 = vunpack.c.h.s8.bf16 %v5221_v28 }
 0xa13   : > { %7502 = vmatpush1.bf16.msra.mxu0 %v5874_v38  ;;  %v6021_v38 = vunpack.c.l.s8.bf16 %v5221_v28  ;;  %v5282_v28 = vld [vmem:[%s13024_s22 + $0xb60] sm:$0xff] }
 0xa14   : > { %7666 = vmatpush1.bf16.msra.mxu1 %v5876_v43  ;;  %7503 = vmatprep.subr.bf16.mxu0 %v5891_v48  ;;  %v5220_v43 = vld [vmem:[%s13024_s22 + $0x970] sm:$0xff]  ;;  %v6018_v48 = vunpack.c.l.s8.bf16 %v5218_v45 }
 0xa15   : > { %7667 = vmatprep.subr.bf16.mxu1 %v5893_v56  ;;  %v6020_v29 = vunpack.c.l.s8.bf16 %v5220_v43  ;;  %v6035_v56 = vunpack.c.h.s8.bf16 %v5219_v55 }
 0xa17   : > { %7504 = vmatpush1.bf16.msra.mxu0 %v5890_v27  ;;  %v5235_v27 = vld [vmem:[%s13024_s22 + $0x9e8] sm:$0xff] }
 0xa18   : > { %7668 = vmatpush1.bf16.msra.mxu1 %v5892_v3  ;;  %7505 = vmatprep.subr.bf16.mxu0 %v5907_v12  ;;  %v5237_v3 = vld [vmem:[%s13024_s22 + $0x9f8] sm:$0xff]  ;;  %v6034_v12 = vunpack.c.h.s8.bf16 %v5218_v45  ;;  %v6051_v50 = vunpack.c.l.s8.bf16 %v5235_v27 }
 0xa19   : > { %7669 = vmatprep.subr.bf16.mxu1 %v5909_v15  ;;  %v6036_v15 = vunpack.c.h.s8.bf16 %v5220_v43  ;;  %v6069_v30 = vunpack.c.h.s8.bf16 %v5237_v3 }
 0xa1b   : > { %7506 = vmatpush1.bf16.msra.mxu0 %v5906_v49  ;;  %v6053_v49 = vunpack.c.l.s8.bf16 %v5237_v3  ;;  %v5298_v3 = vld [vmem:[%s13024_s22 + $0xbe0] sm:$0xff] }
 0xa1c   : > { %7670 = vmatpush1.bf16.msra.mxu1 %v5908_v1  ;;  %7507 = vmatprep.subr.bf16.mxu0 %v5923_v8  ;;  %v5236_v1 = vld [vmem:[%s13024_s22 + $0x9f0] sm:$0xff]  ;;  %v6050_v8 = vunpack.c.l.s8.bf16 %v5234_v19 }
 0xa1d   : > { %7671 = vmatprep.subr.bf16.mxu1 %v5925_v22  ;;  %v6052_v34 = vunpack.c.l.s8.bf16 %v5236_v1  ;;  %v6067_v22 = vunpack.c.h.s8.bf16 %v5235_v27 }
 0xa1f   : > { %7508 = vmatpush1.bf16.msra.mxu0 %v5922_v25  ;;  %v5251_v25 = vld [vmem:[%s13024_s22 + $0xa68] sm:$0xff] }
 0xa20   : > { %7672 = vmatpush1.bf16.msra.mxu1 %v5924_v41  ;;  %7509 = vmatprep.subr.bf16.mxu0 %v5939_v53  ;;  %v5253_v41 = vld [vmem:[%s13024_s22 + $0xa78] sm:$0xff]  ;;  %v6066_v53 = vunpack.c.h.s8.bf16 %v5234_v19  ;;  %v6083_v37 = vunpack.c.l.s8.bf16 %v5251_v25 }
 0xa21   : > { %7673 = vmatprep.subr.bf16.mxu1 %v5941_v52  ;;  %v6068_v52 = vunpack.c.h.s8.bf16 %v5236_v1  ;;  %v6101_v24 = vunpack.c.h.s8.bf16 %v5253_v41 }
 0xa23   : > { %7510 = vmatpush1.bf16.msra.mxu0 %v5938_v39  ;;  %v6085_v39 = vunpack.c.l.s8.bf16 %v5253_v41  ;;  %v5314_v41 = vld [vmem:[%s13024_s22 + $0xc60] sm:$0xff] }
 0xa24   : > { %7674 = vmatpush1.bf16.msra.mxu1 %v5940_v4  ;;  %7520 = vmatprep.subr.bf16.mxu0 %v5955_v63  ;;  %v5252_v4 = vld [vmem:[%s13024_s22 + $0xa70] sm:$0xff]  ;;  %v6082_v63 = vunpack.c.l.s8.bf16 %v5250_v61 }
 0xa25   : > { %7684 = vmatprep.subr.bf16.mxu1 %v5957_v11  ;;  %v6084_v2 = vunpack.c.l.s8.bf16 %v5252_v4  ;;  %v6099_v11 = vunpack.c.h.s8.bf16 %v5251_v25  ;;  %v6100_v23 = vunpack.c.h.s8.bf16 %v5252_v4  ;;  %v5331_v4 = vld [vmem:[%s13024_s22 + $0xce8] sm:$0xff] }
 0xa26   : > { %7512 = vmatmul.mubr.bf16.vlgmr.msra.gmra.mrb[20].mxu0 %v15232_v51 }
 0xa27   : > { %7676 = vmatmul.mubr.bf16.vlgmr.msra.gmra.mrb[20].mxu1 %v15232_v51  ;;  %7521 = vmatpush1.bf16.msra.mxu0 %v5954_v20  ;;  %v5988_v51 = vunpack.c.l.s8.bf16 %v5204_v33  ;;  %v5267_v20 = vld [vmem:[%s13024_s22 + $0xae8] sm:$0xff] }
 0xa28   : > { %7552 = vmatprep.mubr.bf16.mxu0 %v15236_v7  ;;  %7685 = vmatpush1.bf16.msra.mxu1 %v5956_v59  ;;  %v5269_v59 = vld [vmem:[%s13024_s22 + $0xaf8] sm:$0xff] }
 0xa29   : > { %7716 = vmatprep.mubr.bf16.mxu1 %v15236_v7  ;;  %7522 = vmatprep.subr.bf16.mxu0 %v5971_v44  ;;  %v6004_v7 = vunpack.c.h.s8.bf16 %v5204_v33  ;;  %v6098_v44 = vunpack.c.h.s8.bf16 %v5250_v61  ;;  %v6133_v33 = vunpack.c.h.s8.bf16 %v5269_v59 }
 0xa2a   : > { %7686 = vmatprep.subr.bf16.mxu1 %v5973_v47  ;;  %v6115_v47 = vunpack.c.l.s8.bf16 %v5267_v20 }
 0xa2b   : > { %7523 = vmatpush1.bf16.msra.mxu0 %v5970_v54  ;;  %v6117_v54 = vunpack.c.l.s8.bf16 %v5269_v59  ;;  %v5330_v59 = vld [vmem:[%s13024_s22 + $0xce0] sm:$0xff] }
 0xa2c   : > { %7687 = vmatpush1.bf16.msra.mxu1 %v5972_v13  ;;  %7524 = vmatprep.subr.bf16.mxu0 %v5987_v6  ;;  %v5268_v13 = vld [vmem:[%s13024_s22 + $0xaf0] sm:$0xff]  ;;  %v6114_v6 = vunpack.c.l.s8.bf16 %v5266_v62 }
 0xa2d   : > { %7688 = vmatprep.subr.bf16.mxu1 %v5989_v60  ;;  %v6116_v5 = vunpack.c.l.s8.bf16 %v5268_v13  ;;  %v6131_v60 = vunpack.c.h.s8.bf16 %v5267_v20  ;;  %v6243_v20 = vunpack.c.l.s8.bf16 %v5331_v4 }
 0xa2f   : > { %7525 = vmatpush1.bf16.msra.mxu0 %v5986_v14  ;;  %v5283_v14 = vld [vmem:[%s13024_s22 + $0xb68] sm:$0xff] }
 0xa30   : > { %7689 = vmatpush1.bf16.msra.mxu1 %v5988_v51  ;;  %7526 = vmatprep.subr.bf16.mxu0 %v6003_v36  ;;  %v5285_v51 = vld [vmem:[%s13024_s22 + $0xb78] sm:$0xff]  ;;  %v6130_v36 = vunpack.c.h.s8.bf16 %v5266_v62  ;;  %v6147_v55 = vunpack.c.l.s8.bf16 %v5283_v14  ;;  %v6259_v62 = vunpack.c.h.s8.bf16 %v5331_v4 }
 0xa31   : > { %7690 = vmatprep.subr.bf16.mxu1 %v6005_v46  ;;  %v6132_v46 = vunpack.c.h.s8.bf16 %v5268_v13  ;;  %v6165_v43 = vunpack.c.h.s8.bf16 %v5285_v51  ;;  %v5347_v13 = vld [vmem:[%s13024_s22 + $0xd68] sm:$0xff] }
 0xa33   : > { %7527 = vmatpush1.bf16.msra.mxu0 %v6002_v0  ;;  %v6149_v0 = vunpack.c.l.s8.bf16 %v5285_v51  ;;  %v5348_v51 = vld [vmem:[%s13024_s22 + $0xd70] sm:$0xff] }
 0xa34   : > { %7691 = vmatpush1.bf16.msra.mxu1 %v6004_v7  ;;  %7528 = vmatprep.subr.bf16.mxu0 %v6019_v42  ;;  %v5284_v7 = vld [vmem:[%s13024_s22 + $0xb70] sm:$0xff]  ;;  %v6146_v42 = vunpack.c.l.s8.bf16 %v5282_v28 }
 0xa35   : > { %7692 = vmatprep.subr.bf16.mxu1 %v6021_v38  ;;  %v6148_v45 = vunpack.c.l.s8.bf16 %v5284_v7  ;;  %v6163_v38 = vunpack.c.h.s8.bf16 %v5283_v14 }
 0xa37   : > { %7529 = vmatpush1.bf16.msra.mxu0 %v6018_v48  ;;  %v5299_v48 = vld [vmem:[%s13024_s22 + $0xbe8] sm:$0xff] }
 0xa38   : > { %7693 = vmatpush1.bf16.msra.mxu1 %v6020_v29  ;;  %7530 = vmatprep.subr.bf16.mxu0 %v6035_v56  ;;  %v5301_v29 = vld [vmem:[%s13024_s22 + $0xbf8] sm:$0xff]  ;;  %v6162_v56 = vunpack.c.h.s8.bf16 %v5282_v28  ;;  %v6179_v27 = vunpack.c.l.s8.bf16 %v5299_v48 }
 0xa39   : > { %7694 = vmatprep.subr.bf16.mxu1 %v6037_v17  ;;  %v6164_v17 = vunpack.c.h.s8.bf16 %v5284_v7  ;;  %v6197_v1 = vunpack.c.h.s8.bf16 %v5301_v29  ;;  %v5365_v7 = vld [vmem:[%s13024_s22 + $0xdf8] sm:$0xff] }
 0xa3b   : > { %7531 = vmatpush1.bf16.msra.mxu0 %v6034_v12  ;;  %v6181_v12 = vunpack.c.l.s8.bf16 %v5301_v29  ;;  %v6309_v29 = vunpack.c.l.s8.bf16 %v5365_v7 }
 0xa3c   : > { %7695 = vmatpush1.bf16.msra.mxu1 %v6036_v15  ;;  %7532 = vmatprep.subr.bf16.mxu0 %v6051_v50  ;;  %v5300_v15 = vld [vmem:[%s13024_s22 + $0xbf0] sm:$0xff]  ;;  %v6178_v50 = vunpack.c.l.s8.bf16 %v5298_v3 }
 0xa3d   : > { %7696 = vmatprep.subr.bf16.mxu1 %v6053_v49  ;;  %v6180_v19 = vunpack.c.l.s8.bf16 %v5300_v15  ;;  %v6195_v49 = vunpack.c.h.s8.bf16 %v5299_v48 }
 0xa3f   : > { %7533 = vmatpush1.bf16.msra.mxu0 %v6050_v8  ;;  %v5315_v8 = vld [vmem:[%s13024_s22 + $0xc68] sm:$0xff] }
 0xa40   : > { %7697 = vmatpush1.bf16.msra.mxu1 %v6052_v34  ;;  %7534 = vmatprep.subr.bf16.mxu0 %v6067_v22  ;;  %v5317_v34 = vld [vmem:[%s13024_s22 + $0xc78] sm:$0xff]  ;;  %v6194_v22 = vunpack.c.h.s8.bf16 %v5298_v3  ;;  %v6211_v25 = vunpack.c.l.s8.bf16 %v5315_v8 }
 0xa41   : > { %7698 = vmatprep.subr.bf16.mxu1 %v6069_v30  ;;  %v6196_v30 = vunpack.c.h.s8.bf16 %v5300_v15 }
 0xa43   : > { %7535 = vmatpush1.bf16.msra.mxu0 %v6066_v53  ;;  %v6213_v53 = vunpack.c.l.s8.bf16 %v5317_v34 }
 0xa44   : > { %7699 = vmatpush1.bf16.msra.mxu1 %v6068_v52  ;;  %7536 = vmatprep.subr.bf16.mxu0 %v6083_v37  ;;  %v5316_v52 = vld [vmem:[%s13024_s22 + $0xc70] sm:$0xff]  ;;  %v6210_v37 = vunpack.c.l.s8.bf16 %v5314_v41 }
 0xa45   : > { %7700 = vmatprep.subr.bf16.mxu1 %v6085_v39  ;;  %v6212_v61 = vunpack.c.l.s8.bf16 %v5316_v52  ;;  %v6227_v39 = vunpack.c.h.s8.bf16 %v5315_v8 }
 0xa47   : > { %7537 = vmatpush1.bf16.msra.mxu0 %v6082_v63  ;;  %v6229_v63 = vunpack.c.h.s8.bf16 %v5317_v34 }
 0xa48   : > { %7701 = vmatpush1.bf16.msra.mxu1 %v6084_v2  ;;  %7538 = vmatprep.subr.bf16.mxu0 %v6099_v11  ;;  %v5333_v2 = vld [vmem:[%s13024_s22 + $0xcf8] sm:$0xff]  ;;  %v6226_v11 = vunpack.c.h.s8.bf16 %v5314_v41  ;;  %v5379_v41 = vld [vmem:[%s13024_s22 + $0xe68] sm:$0xff] }
 0xa49   : > { %7702 = vmatprep.subr.bf16.mxu1 %v6101_v24  ;;  %v6228_v24 = vunpack.c.h.s8.bf16 %v5316_v52  ;;  %v5381_v52 = vld [vmem:[%s13024_s22 + $0xe78] sm:$0xff] }
 0xa4b   : > { %7539 = vmatpush1.bf16.msra.mxu0 %v6098_v44  ;;  %v6245_v44 = vunpack.c.l.s8.bf16 %v5333_v2 }
 0xa4c   : > { %7703 = vmatpush1.bf16.msra.mxu1 %v6100_v23  ;;  %7540 = vmatprep.subr.bf16.mxu0 %v6115_v47  ;;  %v5332_v23 = vld [vmem:[%s13024_s22 + $0xcf0] sm:$0xff]  ;;  %v6242_v47 = vunpack.c.l.s8.bf16 %v5330_v59 }
 0xa4d   : > { %7704 = vmatprep.subr.bf16.mxu1 %v6117_v54  ;;  %v6261_v54 = vunpack.c.h.s8.bf16 %v5333_v2  ;;  %v5378_v2 = vld [vmem:[%s13024_s22 + $0xe60] sm:$0xff] }
 0xa4f   : > { %7541 = vmatpush1.bf16.msra.mxu0 %v6114_v6  ;;  %v5349_v6 = vld [vmem:[%s13024_s22 + $0xd78] sm:$0xff] }
 0xa50   : > { %7705 = vmatpush1.bf16.msra.mxu1 %v6116_v5  ;;  %7542 = vmatprep.subr.bf16.mxu0 %v6131_v60  ;;  %v6258_v5 = vunpack.c.h.s8.bf16 %v5330_v59  ;;  %v6275_v60 = vunpack.c.l.s8.bf16 %v5347_v13  ;;  %v6277_v14 = vunpack.c.l.s8.bf16 %v5349_v6  ;;  %v6293_v28 = vunpack.c.h.s8.bf16 %v5349_v6 }
 0xa51   : > { %7706 = vmatprep.subr.bf16.mxu1 %v6133_v33  ;;  %v5346_v33 = vld [vmem:[%s13024_s22 + $0xd60] sm:$0xff]  ;;  %v6338_v59 = vunpack.c.l.s8.bf16 %v5378_v2 }
 0xa53   : > { %7543 = vmatpush1.bf16.msra.mxu0 %v6130_v36  ;;  %v6274_v36 = vunpack.c.l.s8.bf16 %v5346_v33 }
 0xa54   : > { %7707 = vmatpush1.bf16.msra.mxu1 %v6132_v46  ;;  %7544 = vmatprep.subr.bf16.mxu0 %v6147_v55  ;;  %v6276_v46 = vunpack.c.l.s8.bf16 %v5348_v51  ;;  %v6291_v55 = vunpack.c.h.s8.bf16 %v5347_v13 }
 0xa55   : > { %7708 = vmatprep.subr.bf16.mxu1 %v6149_v0  ;;  %v5363_v0 = vld [vmem:[%s13024_s22 + $0xde8] sm:$0xff] }
 0xa56   : > { %v6323_v34 = vunpack.c.h.s8.bf16 %v5363_v0 }
 0xa57   : > { %7545 = vmatpush1.bf16.msra.mxu0 %v6146_v42  ;;  %v6290_v42 = vunpack.c.h.s8.bf16 %v5346_v33 }
 0xa58   : > { %7709 = vmatpush1.bf16.msra.mxu1 %v6148_v45  ;;  %7546 = vmatprep.subr.bf16.mxu0 %v6163_v38  ;;  %v6292_v45 = vunpack.c.h.s8.bf16 %v5348_v51  ;;  %v6307_v38 = vunpack.c.l.s8.bf16 %v5363_v0 }
 0xa59   : > { %7710 = vmatprep.subr.bf16.mxu1 %v6165_v43  ;;  %v5362_v43 = vld [vmem:[%s13024_s22 + $0xde0] sm:$0xff] }
 0xa5b   : > { %7547 = vmatpush1.bf16.msra.mxu0 %v6162_v56  ;;  %v5364_v56 = vld [vmem:[%s13024_s22 + $0xdf0] sm:$0xff] }
 0xa5c   : > { %7711 = vmatpush1.bf16.msra.mxu1 %v6164_v17  ;;  %7548 = vmatprep.subr.bf16.mxu0 %v6179_v27  ;;  %v6308_v8 = vunpack.c.l.s8.bf16 %v5364_v56  ;;  %v6324_v4 = vunpack.c.h.s8.bf16 %v5364_v56 }
 0xa5d   : > { %7712 = vmatprep.subr.bf16.mxu1 %v6181_v12 }
 0xa5f   : > { %7549 = vmatpush1.bf16.msra.mxu0 %v6178_v50  ;;  %v6306_v50 = vunpack.c.l.s8.bf16 %v5362_v43 }
 0xa60   : > { %7713 = vmatpush1.bf16.msra.mxu1 %v6180_v19  ;;  %7550 = vmatprep.subr.bf16.mxu0 %v6195_v49 }
 0xa61   : > { %7714 = vmatprep.subr.bf16.mxu1 %v6197_v1 }
 0xa63   : > { %7551 = vmatpush1.bf16.msra.mxu0 %v6194_v22 }
 0xa64   : > { %7715 = vmatpush1.bf16.msra.mxu1 %v6196_v30  ;;  %7561 = vmatprep.subr.bf16.mxu0 %v6211_v25  ;;  %v6325_v25 = vunpack.c.h.s8.bf16 %v5365_v7 }
 0xa65   : > { %7725 = vmatprep.subr.bf16.mxu1 %v6213_v53 }
 0xa66   : > { %7553 = vmatmul.mubr.bf16.vlgmr.msra.gmra.mrb[20].mxu0 %v15284_v18 }
 0xa67   : > { %7717 = vmatmul.mubr.bf16.vlgmr.msra.gmra.mrb[20].mxu1 %v15284_v18  ;;  %7562 = vmatpush1.bf16.msra.mxu0 %v6210_v37  ;;  %v6244_v18 = vunpack.c.l.s8.bf16 %v5332_v23  ;;  %v4908_v37 = vld [vmem:[#allocation3 + $0x10] sm:$0xff] }
 0xa68   : > { %7593 = vmatprep.mubr.bf16.mxu0 %v15288_v58  ;;  %7726 = vmatpush1.bf16.msra.mxu1 %v6212_v61  ;;  %v6322_v61 = vunpack.c.h.s8.bf16 %v5362_v43 }
 0xa69   : > { %7757 = vmatprep.mubr.bf16.mxu1 %v15288_v58  ;;  %7563 = vmatprep.subr.bf16.mxu0 %v6227_v39  ;;  %v6260_v58 = vunpack.c.h.s8.bf16 %v5332_v23  ;;  %v6355_v23 = vunpack.c.h.s8.bf16 %v5379_v41 }
 0xa6a   : > { %7727 = vmatprep.subr.bf16.mxu1 %v6229_v63  ;;  %v6339_v63 = vunpack.c.l.s8.bf16 %v5379_v41 }
 0xa6b   : > { %7564 = vmatpush1.bf16.msra.mxu0 %v6226_v11  ;;  %v6341_v11 = vunpack.c.l.s8.bf16 %v5381_v52 }
 0xa6c   : > { %7728 = vmatpush1.bf16.msra.mxu1 %v6228_v24  ;;  %7565 = vmatprep.subr.bf16.mxu0 %v6243_v20  ;;  %v5380_v24 = vld [vmem:[%s13024_s22 + $0xe70] sm:$0xff] }
 0xa6d   : > { %7729 = vmatprep.subr.bf16.mxu1 %v6245_v44  ;;  %v6340_v44 = vunpack.c.l.s8.bf16 %v5380_v24  ;;  %v6356_v13 = vunpack.c.h.s8.bf16 %v5380_v24 }
 0xa6f   : > { %7566 = vmatpush1.bf16.msra.mxu0 %v6242_v47  ;;  %v6357_v47 = vunpack.c.h.s8.bf16 %v5381_v52 }
 0xa70   : > { %7730 = vmatpush1.bf16.msra.mxu1 %v6244_v18  ;;  %7567 = vmatprep.subr.bf16.mxu0 %v6259_v62  ;;  %v5395_v18 = vld [vmem:[%s13024_s22 + $0xee8] sm:$0xff]  ;;  %v5397_v62 = vld [vmem:[%s13024_s22 + $0xef8] sm:$0xff] }
 0xa71   : > { %7731 = vmatprep.subr.bf16.mxu1 %v6261_v54  ;;  %v6354_v54 = vunpack.c.h.s8.bf16 %v5378_v2  ;;  %v6371_v6 = vunpack.c.l.s8.bf16 %v5395_v18  ;;  %v6387_v51 = vunpack.c.h.s8.bf16 %v5395_v18  ;;  %v12151_v18 = vld [vmem:[%s16836_s20] sm:$0xff] (!%p10256_p10)  }
 0xa73   : > { %7568 = vmatpush1.bf16.msra.mxu0 %v6258_v5  ;;  %v5394_v5 = vld [vmem:[%s13024_s22 + $0xee0] sm:$0xff] }
 0xa74   : > { %7732 = vmatpush1.bf16.msra.mxu1 %v6260_v58  ;;  %7569 = vmatprep.subr.bf16.mxu0 %v6275_v60  ;;  %v6373_v58 = vunpack.c.l.s8.bf16 %v5397_v62  ;;  %v5396_v60 = vld [vmem:[%s13024_s22 + $0xef0] sm:$0xff]  ;;  %v6370_v33 = vunpack.c.l.s8.bf16 %v5394_v5 }
 0xa75   : > { %7733 = vmatprep.subr.bf16.mxu1 %v6277_v14  ;;  %v6372_v14 = vunpack.c.l.s8.bf16 %v5396_v60  ;;  %v6388_v0 = vunpack.c.h.s8.bf16 %v5396_v60  ;;  %v12158_v60 = vld [vmem:[%s16836_s20 + $0xd0] sm:$0xff] (!%p10256_p10)  }
 0xa77   : > { %7570 = vmatpush1.bf16.msra.mxu0 %v6274_v36  ;;  %v6389_v36 = vunpack.c.h.s8.bf16 %v5397_v62  ;;  %v12152_v62 = vld [vmem:[%s16836_s20 + $0x80] sm:$0xff] (!%p10256_p10)  }
 0xa78   : > { %7734 = vmatpush1.bf16.msra.mxu1 %v6276_v46  ;;  %7571 = vmatprep.subr.bf16.mxu0 %v6291_v55  ;;  %v5411_v46 = vld [vmem:[%s13024_s22 + $0xf68] sm:$0xff]  ;;  %v5413_v55 = vld [vmem:[%s13024_s22 + $0xf78] sm:$0xff] }
 0xa79   : > { %v7267_v48 = vpop.f32.mrb[16].mxu0  ;;  %7735 = vmatprep.subr.bf16.mxu1 %v6293_v28  ;;  %v6386_v28 = vunpack.c.h.s8.bf16 %v5394_v5  ;;  %v6403_v7 = vunpack.c.l.s8.bf16 %v5411_v46  ;;  %v6421_v56 = vunpack.c.h.s8.bf16 %v5413_v55  ;;  %v12156_v5 = vld [vmem:[%s16836_s20 + $0x88] sm:$0xff] (!%p10256_p10)  }
 0xa7a   : > { %v7431_v17 = vpop.f32.mrb[16].mxu1  ;;  %v7269_v27 = vpop.f32.mrb[17].mxu0 }
 0xa7b   : > { %v7816_v3 = vcombine.low %v7267_v48, %v7269_v27  ;;  %v7433_v12 = vpop.f32.mrb[17].mxu1  ;;  %v7271_v15 = vpop.f32.mrb[18].mxu0  ;;  %7572 = vmatpush1.bf16.msra.mxu0 %v6290_v42  ;;  %v5410_v42 = vld [vmem:[%s13024_s22 + $0xf60] sm:$0xff]  ;;  %v5429_v27 = vld [vmem:[%s13024_s22 + $0xff8] sm:$0xff] }
 0xa7c   : > { %v7817_v19 = vcombine.low %v7431_v17, %v7433_v12  ;;  %v7435_v49 = vpop.f32.mrb[18].mxu1  ;;  %7736 = vmatpush1.bf16.msra.mxu1 %v6292_v45  ;;  %v7272_v1 = vpop.f32.mrb[19].mxu0  ;;  %7573 = vmatprep.subr.bf16.mxu0 %v6307_v38  ;;  %v6405_v45 = vunpack.c.l.s8.bf16 %v5413_v55  ;;  %v5412_v38 = vld [vmem:[%s13024_s22 + $0xf70] sm:$0xff]  ;;  %v6402_v43 = vunpack.c.l.s8.bf16 %v5410_v42  ;;  %v5427_v17 = vld [vmem:[%s13024_s22 + $0xfe8] sm:$0xff] }
 0xa7d   : > { %v7824_v22 = vrot.slane %v7816_v3, %v15456_v9  ;;  %v7436_v30 = vpop.f32.mrb[19].mxu1  ;;  %7737 = vmatprep.subr.bf16.mxu1 %v6309_v29  ;;  %v6404_v48 = vunpack.c.l.s8.bf16 %v5412_v38  ;;  %v6419_v29 = vunpack.c.h.s8.bf16 %v5411_v46  ;;  %v6418_v3 = vunpack.c.h.s8.bf16 %v5410_v42  ;;  %v5428_v49 = vld [vmem:[%s13024_s22 + $0xff0] sm:$0xff]  ;;  %v12163_v46 = vld [vmem:[%s16836_s20 + $0x18] sm:$0xff] (!%p10256_p10)  }
 0xa7e   : > { %v7831_v53 = vrot.slane %v7817_v19, %v15456_v9  ;;  %v6420_v12 = vunpack.c.h.s8.bf16 %v5412_v38  ;;  %v6435_v15 = vunpack.c.l.s8.bf16 %v5427_v17  ;;  %v6437_v19 = vunpack.c.l.s8.bf16 %v5429_v27  ;;  %v12164_v55 = vld [vmem:[%s16836_s20 + $0x98] sm:$0xff] (!%p10256_p10)   ;;  %v12168_v42 = vld [vmem:[%s16836_s20 + $0xa0] sm:$0xff] (!%p10256_p10)   ;;  %v12170_v38 = vld [vmem:[%s16836_s20 + $0xe8] sm:$0xff] (!%p10256_p10)  }
 0xa7f   : > { %7574 = vmatpush1.bf16.msra.mxu0 %v6306_v50  ;;  %v5426_v50 = vld [vmem:[%s13024_s22 + $0xfe0] sm:$0xff] }
 0xa80   : > { %v7832_v39 = vcombine.low %v7824_v22, %v7831_v53  ;;  %7738 = vmatpush1.bf16.msra.mxu1 %v6308_v8  ;;  %7575 = vmatprep.subr.bf16.mxu0 %v6323_v34  ;;  %v6434_v1 = vunpack.c.l.s8.bf16 %v5426_v50  ;;  %v6436_v8 = vunpack.c.l.s8.bf16 %v5428_v49  ;;  %v6451_v34 = vunpack.c.h.s8.bf16 %v5427_v17  ;;  %v12175_v17 = vld [vmem:[%s16836_s20 + $0x30] sm:$0xff] (!%p10256_p10)  }
 0xa81   : > { %7739 = vmatprep.subr.bf16.mxu1 %v6325_v25  ;;  %v6453_v22 = vunpack.c.h.s8.bf16 %v5429_v27  ;;  %v6450_v30 = vunpack.c.h.s8.bf16 %v5426_v50  ;;  %v6452_v25 = vunpack.c.h.s8.bf16 %v5428_v49  ;;  %v12176_v27 = vld [vmem:[%s16836_s20 + $0xb0] sm:$0xff] (!%p10256_p10)   ;;  %v12180_v50 = vld [vmem:[%s16836_s20 + $0xb8] sm:$0xff] (!%p10256_p10)   ;;  %v8014_v49 = vld [vmem:[#allocation13] sm:$0xff] (!%p10256_p10) }
 0xa82   : > { %v7856_v20 = vadd.f32 %v7832_v39, %v4908_v37 }
 0xa83   : > { %7576 = vmatpush1.bf16.msra.mxu0 %v6322_v61 }
 0xa84   : > { %7860 = vst [vmem:[#allocation3 + $0x10] sm:$0xff] %v7856_v20  ;;  %7740 = vmatpush1.bf16.msra.mxu1 %v6324_v4  ;;  %7577 = vmatprep.subr.bf16.mxu0 %v6339_v63 }
 0xa85   : > { %7741 = vmatprep.subr.bf16.mxu1 %v6341_v11 }
 0xa87   : > { %7578 = vmatpush1.bf16.msra.mxu0 %v6338_v59  ;;  %v4909_v59 = vld [vmem:[#allocation3 + $0x18] sm:$0xff] }
 0xa88   : > { %7742 = vmatpush1.bf16.msra.mxu1 %v6340_v44  ;;  %7579 = vmatprep.subr.bf16.mxu0 %v6355_v23 }
 0xa89   : > { %7743 = vmatprep.subr.bf16.mxu1 %v6357_v47  ;;  %v12150_v47 = vld [vmem:[%s16836_s20 + $0xc0] sm:$0xff] (!%p10256_p10)  }
 0xa8b   : > { %7580 = vmatpush1.bf16.msra.mxu0 %v6354_v54  ;;  %v12153_v54 = vld [vmem:[%s16836_s20 + $0x48] sm:$0xff] (!%p10256_p10)  }
 0xa8c   : > { %7744 = vmatpush1.bf16.msra.mxu1 %v6356_v13  ;;  %7581 = vmatprep.subr.bf16.mxu0 %v6371_v6  ;;  %v12154_v13 = vld [vmem:[%s16836_s20 + $0xc8] sm:$0xff] (!%p10256_p10)  }
 0xa8d   : > { %7745 = vmatprep.subr.bf16.mxu1 %v6373_v58  ;;  %v12155_v6 = vld [vmem:[%s16836_s20 + $0x8] sm:$0xff] (!%p10256_p10)   ;;  %v12157_v58 = vld [vmem:[%s16836_s20 + $0x50] sm:$0xff] (!%p10256_p10)  }
 0xa8f   : > { %7582 = vmatpush1.bf16.msra.mxu0 %v6370_v33  ;;  %v12159_v33 = vld [vmem:[%s16836_s20 + $0x10] sm:$0xff] (!%p10256_p10)  }
 0xa90   : > { %7746 = vmatpush1.bf16.msra.mxu1 %v6372_v14  ;;  %7583 = vmatprep.subr.bf16.mxu0 %v6387_v51  ;;  %v12160_v14 = vld [vmem:[%s16836_s20 + $0x90] sm:$0xff] (!%p10256_p10)   ;;  %v12161_v51 = vld [vmem:[%s16836_s20 + $0x58] sm:$0xff] (!%p10256_p10)  }
 0xa91   : > { %7747 = vmatprep.subr.bf16.mxu1 %v6389_v36  ;;  %v12162_v36 = vld [vmem:[%s16836_s20 + $0xd8] sm:$0xff] (!%p10256_p10)  }
 0xa93   : > { %7584 = vmatpush1.bf16.msra.mxu0 %v6386_v28  ;;  %v12165_v28 = vld [vmem:[%s16836_s20 + $0x60] sm:$0xff] (!%p10256_p10)  }
 0xa94   : > { %7748 = vmatpush1.bf16.msra.mxu1 %v6388_v0  ;;  %7585 = vmatprep.subr.bf16.mxu0 %v6403_v7  ;;  %v12166_v0 = vld [vmem:[%s16836_s20 + $0xe0] sm:$0xff] (!%p10256_p10)  }
 0xa95   : > { %7749 = vmatprep.subr.bf16.mxu1 %v6405_v45  ;;  %v12167_v7 = vld [vmem:[%s16836_s20 + $0x20] sm:$0xff] (!%p10256_p10)   ;;  %v12169_v45 = vld [vmem:[%s16836_s20 + $0x68] sm:$0xff] (!%p10256_p10)  }
 0xa97   : > { %7586 = vmatpush1.bf16.msra.mxu0 %v6402_v43  ;;  %v12171_v43 = vld [vmem:[%s16836_s20 + $0x28] sm:$0xff] (!%p10256_p10)  }
 0xa98   : > { %7750 = vmatpush1.bf16.msra.mxu1 %v6404_v48  ;;  %7587 = vmatprep.subr.bf16.mxu0 %v6419_v29  ;;  %v12172_v48 = vld [vmem:[%s16836_s20 + $0xa8] sm:$0xff] (!%p10256_p10)   ;;  %v12173_v29 = vld [vmem:[%s16836_s20 + $0x70] sm:$0xff] (!%p10256_p10)  }
 0xa99   : > { %7751 = vmatprep.subr.bf16.mxu1 %v6421_v56  ;;  %v12174_v56 = vld [vmem:[%s16836_s20 + $0xf0] sm:$0xff] (!%p10256_p10)  }
 0xa9b   : > { %7588 = vmatpush1.bf16.msra.mxu0 %v6418_v3  ;;  %v12177_v3 = vld [vmem:[%s16836_s20 + $0x78] sm:$0xff] (!%p10256_p10)  }
 0xa9c   : > { %7752 = vmatpush1.bf16.msra.mxu1 %v6420_v12  ;;  %7589 = vmatprep.subr.bf16.mxu0 %v6435_v15  ;;  %v12178_v12 = vld [vmem:[%s16836_s20 + $0xf8] sm:$0xff] (!%p10256_p10)  }
 0xa9d   : > { %7753 = vmatprep.subr.bf16.mxu1 %v6437_v19  ;;  %v12179_v15 = vld [vmem:[%s16836_s20 + $0x38] sm:$0xff] (!%p10256_p10)  }
 0xa9e   : > { %v7870_v19 = vld [vmem:[#allocation12] sm:$0xff] (!%p10256_p10) }
 0xa9f   : > { %7590 = vmatpush1.bf16.msra.mxu0 %v6434_v1  ;;  %v7877_v1 = vrot.slane (!%p10256_p10), %v7870_v19, %v15147_v32 }
 0xaa0   : > { %7754 = vmatpush1.bf16.msra.mxu1 %v6436_v8  ;;  %7591 = vmatprep.subr.bf16.mxu0 %v6451_v34  ;;  %v7881_v8 = vrot.slane (!%p10256_p10), %v7870_v19, %v15153_v26  ;;  %v7885_v34 = vrot.slane (!%p10256_p10), %v7870_v19, %v15213_v35 }
 0xaa1   : > { %7755 = vmatprep.subr.bf16.mxu1 %v6453_v22  ;;  %v7889_v22 = vrot.slane (!%p10256_p10), %v7870_v19, %v15156_v57 }
 0xaa3   : > { %7592 = vmatpush1.bf16.msra.mxu0 %v6450_v30  ;;  %v12181_v30 = vld [vmem:[%s16836_s20 + $0x140] sm:$0xff] (!%p10256_p10)  }
 0xaa4   : > { %7756 = vmatpush1.bf16.msra.mxu1 %v6452_v25  ;;  %v8021_v25 = vrot.slane (!%p10256_p10), %v8014_v49, %v15147_v32 }
 0xaa5   : > { %10815 = vmatprep.subr.bf16.mxu1 (!%p10256_p10), %v12150_v47 }
 0xaa6   : > { %7594 = vmatmul.mubr.bf16.vlgmr.msra.gmra.mrb[20].mxu0 %v15330_v40 }
 0xaa7   : > { %7758 = vmatmul.mubr.bf16.vlgmr.msra.gmra.mrb[20].mxu1 %v15330_v40  ;;  %v12149_v40 = vld [vmem:[%s16836_s20 + $0x40] sm:$0xff] (!%p10256_p10)  }
 0xaa8   : > { %10793 = vmatprep.subr.bf16.mxu0 (!%p10256_p10), %v12149_v40  ;;  %10816 = vmatpush3.bf16.msra.mxu1 (!%p10256_p10), %v12152_v62 }
 0xaa9   : > { %10794 = vmatpush3.bf16.msra.mxu0 (!%p10256_p10), %v12151_v18  ;;  %10817 = vmatprep.subr.bf16.mxu1 (!%p10256_p10), %v12154_v13 }
 0xaaa   : > { %10795 = vmatprep.subr.bf16.mxu0 (!%p10256_p10), %v12153_v54 }
 0xaac   : > { %10818 = vmatpush3.bf16.msra.mxu1 (!%p10256_p10), %v12156_v5  ;;  %v7893_v5 = vrot.slane (!%p10256_p10), %v7870_v19, %v15265_v10 }
 0xaad   : > { %10796 = vmatpush3.bf16.msra.mxu0 (!%p10256_p10), %v12155_v6  ;;  %10819 = vmatprep.subr.bf16.mxu1 (!%p10256_p10), %v12158_v60  ;;  %v12183_v60 = vld [vmem:[%s16836_s20 + $0x100] sm:$0xff] (!%p10256_p10)  }
 0xaae   : > { %10797 = vmatprep.subr.bf16.mxu0 (!%p10256_p10), %v12157_v58 }
 0xab0   : > { %10820 = vmatpush3.bf16.msra.mxu1 (!%p10256_p10), %v12160_v14  ;;  %v7901_v14 = vrot.slane (!%p10256_p10), %v7870_v19, %v15317_v31 }
 0xab1   : > { %10798 = vmatpush3.bf16.msra.mxu0 (!%p10256_p10), %v12159_v33  ;;  %10821 = vmatprep.subr.bf16.mxu1 (!%p10256_p10), %v12162_v36  ;;  %v7897_v33 = vrot.slane (!%p10256_p10), %v7870_v19, %v15218_v16 }
 0xab2   : > { %10799 = vmatprep.subr.bf16.mxu0 (!%p10256_p10), %v12161_v51  ;;  %v7905_v51 = vrot.slane (!%p10256_p10), %v7870_v19, %v15270_v21  ;;  %v12191_v19 = vld [vmem:[%s16836_s20 + $0x110] sm:$0xff] (!%p10256_p10)  }
 0xab4   : > { %10822 = vmatpush3.bf16.msra.mxu1 (!%p10256_p10), %v12164_v55  ;;  %v12184_v55 = vld [vmem:[%s16836_s20 + $0x180] sm:$0xff] (!%p10256_p10)  }
 0xab5   : > { %10800 = vmatpush3.bf16.msra.mxu0 (!%p10256_p10), %v12163_v46  ;;  %10823 = vmatprep.subr.bf16.mxu1 (!%p10256_p10), %v12166_v0 }
 0xab6   : > { %10801 = vmatprep.subr.bf16.mxu0 (!%p10256_p10), %v12165_v28  ;;  %v8037_v28 = vrot.slane (!%p10256_p10), %v8014_v49, %v15265_v10 }
 0xab8   : > { %10824 = vmatpush3.bf16.msra.mxu1 (!%p10256_p10), %v12168_v42  ;;  %v8041_v42 = vrot.slane (!%p10256_p10), %v8014_v49, %v15218_v16 }
 0xab9   : > { %10802 = vmatpush3.bf16.msra.mxu0 (!%p10256_p10), %v12167_v7  ;;  %10825 = vmatprep.subr.bf16.mxu1 (!%p10256_p10), %v12170_v38  ;;  %v12185_v7 = vld [vmem:[%s16836_s20 + $0x148] sm:$0xff] (!%p10256_p10)   ;;  %v8049_v38 = vrot.slane (!%p10256_p10), %v8014_v49, %v15270_v21 }
 0xaba   : > { %10803 = vmatprep.subr.bf16.mxu0 (!%p10256_p10), %v12169_v45  ;;  %v8045_v45 = vrot.slane (!%p10256_p10), %v8014_v49, %v15317_v31 }
 0xabc   : > { %10826 = vmatpush3.bf16.msra.mxu1 (!%p10256_p10), %v12172_v48  ;;  %v12186_v48 = vld [vmem:[%s16836_s20 + $0x1c8] sm:$0xff] (!%p10256_p10)  }
 0xabd   : > { %10804 = vmatpush3.bf16.msra.mxu0 (!%p10256_p10), %v12171_v43  ;;  %10827 = vmatprep.subr.bf16.mxu1 (!%p10256_p10), %v12174_v56  ;;  %v7955_v56 = vcombine.low (!%p10256_p10), %v7893_v5, %v7897_v33 }
 0xabe   : > { %10805 = vmatprep.subr.bf16.mxu0 (!%p10256_p10), %v12173_v29  ;;  %v12187_v29 = vld [vmem:[%s16836_s20 + $0x108] sm:$0xff] (!%p10256_p10)  }
 0xac0   : > { %10828 = vmatpush3.bf16.msra.mxu1 (!%p10256_p10), %v12176_v27  ;;  %v12188_v27 = vld [vmem:[%s16836_s20 + $0x188] sm:$0xff] (!%p10256_p10)  }
 0xac1   : > { %10806 = vmatpush3.bf16.msra.mxu0 (!%p10256_p10), %v12175_v17  ;;  %10829 = vmatprep.subr.bf16.mxu1 (!%p10256_p10), %v12178_v12  ;;  %v7956_v17 = vcombine.low (!%p10256_p10), %v7901_v14, %v7905_v51  ;;  %v8099_v12 = vcombine.low (!%p10256_p10), %v8037_v28, %v8041_v42  ;;  %v12210_v51 = vld [vmem:[%s16836_s20 + $0x1f8] sm:$0xff] (!%p10256_p10)   ;;  %v12213_v28 = vld [vmem:[%s16836_s20 + $0x240] sm:$0xff] (!%p10256_p10)  }
 0xac2   : > { %10807 = vmatprep.subr.bf16.mxu0 (!%p10256_p10), %v12177_v3  ;;  %v12189_v3 = vld [vmem:[%s16836_s20 + $0x150] sm:$0xff] (!%p10256_p10)   ;;  %v12215_v42 = vld [vmem:[%s16836_s20 + $0x200] sm:$0xff] (!%p10256_p10)  }
 0xac4   : > { %10830 = vmatpush3.bf16.msra.mxu1 (!%p10256_p10), %v12180_v50  ;;  %v12190_v50 = vld [vmem:[%s16836_s20 + $0x1d0] sm:$0xff] (!%p10256_p10)  }
 0xac5   : > { %10808 = vmatpush3.bf16.msra.mxu0 (!%p10256_p10), %v12179_v15  ;;  %v8100_v15 = vcombine.low (!%p10256_p10), %v8045_v45, %v8049_v38  ;;  %v12216_v45 = vld [vmem:[%s16836_s20 + $0x280] sm:$0xff] (!%p10256_p10)  }
 0xac6   : > { %10837 = vmatprep.subr.bf16.mxu0 (!%p10256_p10), %v12181_v30 }
 0xac7   : > { %v8114_v30 = vrot.slane (!%p10256_p10), %v8100_v15, %v15456_v9  ;;  %v12225_v15 = vld [vmem:[%s16836_s20 + $0x258] sm:$0xff] (!%p10256_p10)  }
 0xb79   : > { %v7595_v41 = vpop.f32.mrb[20].mxu0 }
 0xb7a   : > { %v7759_v53 = vpop.f32.mrb[20].mxu1  ;;  %v7597_v52 = vpop.f32.mrb[21].mxu0 }
 0xb7b   : > { %v7833_v37 = vcombine.low %v7595_v41, %v7597_v52  ;;  %v7761_v61 = vpop.f32.mrb[21].mxu1  ;;  %v7599_v39 = vpop.f32.mrb[22].mxu0  ;;  %v8025_v41 = vrot.slane (!%p10256_p10), %v8014_v49, %v15153_v26  ;;  %v8033_v52 = vrot.slane (!%p10256_p10), %v8014_v49, %v15156_v57 }
 0xb7c   : > { %v7834_v4 = vcombine.low %v7759_v53, %v7761_v61  ;;  %v7763_v63 = vpop.f32.mrb[22].mxu1  ;;  %v7600_v2 = vpop.f32.mrb[23].mxu0  ;;  %v8029_v53 = vrot.slane (!%p10256_p10), %v8014_v49, %v15213_v35  ;;  %v7938_v61 = vcombine.low (!%p10256_p10), %v7877_v1, %v7881_v8  ;;  %v7939_v39 = vcombine.low (!%p10256_p10), %v7885_v34, %v7889_v22  ;;  %v12192_v8 = vld [vmem:[%s16836_s20 + $0x190] sm:$0xff] (!%p10256_p10)   ;;  %v12193_v34 = vld [vmem:[%s16836_s20 + $0x158] sm:$0xff] (!%p10256_p10)  }
 0xb7d   : > { %v7841_v11 = vrot.slane %v7833_v37, %v15456_v9  ;;  %v7764_v24 = vpop.f32.mrb[23].mxu1  ;;  %v12182_v37 = vld [vmem:[%s16836_s20 + $0x1c0] sm:$0xff] (!%p10256_p10)   ;;  %v7963_v49 = vrot.slane (!%p10256_p10), %v7955_v56, %v15456_v9  ;;  %v7970_v1 = vrot.slane (!%p10256_p10), %v7956_v17, %v15456_v9  ;;  %v8107_v22 = vrot.slane (!%p10256_p10), %v8099_v12, %v15456_v9  ;;  %v12220_v56 = vld [vmem:[%s16836_s20 + $0x288] sm:$0xff] (!%p10256_p10)   ;;  %v12221_v17 = vld [vmem:[%s16836_s20 + $0x250] sm:$0xff] (!%p10256_p10)  }
 0xb7e   : > { %v7848_v20 = vrot.slane %v7834_v4, %v15456_v9  ;;  %7865 = sbr.rel (%p10256_p10) target bundleno = 3529 (0xdc9), region = 120  ;;  %v8082_v4 = vcombine.low (!%p10256_p10), %v8021_v25, %v8025_v41  ;;  %v8083_v63 = vcombine.low (!%p10256_p10), %v8029_v53, %v8033_v52  ;;  %10859 = vmatprep.subr.bf16.mxu1 (!%p10256_p10), %v12182_v37  ;;  %v7946_v2 = vrot.slane (!%p10256_p10), %v7938_v61, %v15456_v9  ;;  %v7866_v24 = vld [vmem:[#allocation3] sm:$0xff] (!%p10256_p10)  ;;  %v12194_v25 = vld [vmem:[%s16836_s20 + $0x1d8] sm:$0xff] (!%p10256_p10)   ;;  %v12224_v12 = vld [vmem:[%s16836_s20 + $0x290] sm:$0xff] (!%p10256_p10)  }
 0xb7f   : > { %v12195_v41 = vld [vmem:[%s16836_s20 + $0x118] sm:$0xff] (!%p10256_p10)   ;;  %v7971_v53 = vcombine.low (!%p10256_p10), %v7963_v49, %v7970_v1  ;;  %v12197_v37 = vld [vmem:[%s16836_s20 + $0x160] sm:$0xff] (!%p10256_p10)  }
 0xb80   : > { %v7849_v44 = vcombine.low %v7841_v11, %v7848_v20  ;;  %v7953_v11 = vrot.slane (!%p10256_p10), %v7939_v39, %v15456_v9  ;;  %v8090_v20 = vrot.slane (!%p10256_p10), %v8082_v4, %v15456_v9  ;;  %v12196_v52 = vld [vmem:[%s16836_s20 + $0x198] sm:$0xff] (!%p10256_p10)   ;;  %v12198_v61 = vld [vmem:[%s16836_s20 + $0x1e0] sm:$0xff] (!%p10256_p10)   ;;  %v8115_v39 = vcombine.low (!%p10256_p10), %v8107_v22, %v8114_v30  ;;  %v7867_v4 = vld [vmem:[#allocation3 + $0x8] sm:$0xff] (!%p10256_p10) }
 0xb81   : > { %v12228_v49 = vld [vmem:[%s16836_s20 + $0x298] sm:$0xff] (!%p10256_p10)   ;;  %v12229_v1 = vld [vmem:[%s16836_s20 + $0x260] sm:$0xff] (!%p10256_p10)  }
 0xb82   : > { %v7857_v23 = vadd.f32 %v7849_v44, %v4909_v59  ;;  %v8097_v59 = vrot.slane (!%p10256_p10), %v8083_v63, %v15456_v9  ;;  %v7954_v44 = vcombine.low (!%p10256_p10), %v7946_v2, %v7953_v11  ;;  %v12199_v63 = vld [vmem:[%s16836_s20 + $0x120] sm:$0xff] (!%p10256_p10)   ;;  %v8011_v2 = vmul.f32 (!%p10256_p10), %v7971_v53, %v7867_v4 }
 0xb83   : > { %v12200_v11 = vld [vmem:[%s16836_s20 + $0x1a0] sm:$0xff] (!%p10256_p10)  }
 0xb84   : > { %7861 = vst [vmem:[#allocation3 + $0x18] sm:$0xff] %v7857_v23  ;;  %v8098_v23 = vcombine.low (!%p10256_p10), %v8090_v20, %v8097_v59  ;;  %v8010_v40 = vmul.f32 (!%p10256_p10), %v7954_v44, %v7866_v24  ;;  %v12201_v24 = vld [vmem:[%s16836_s20 + $0x168] sm:$0xff] (!%p10256_p10)   ;;  %v8155_v20 = vadd.f32 (!%p10256_p10), %v8115_v39, %v8011_v2  ;;  %v16051_v22 = vld [vmem:[#allocation12 + $0x8] sm:$0xff] (!%p10256_p10) }
 0xb85   : > { %v12202_v59 = vld [vmem:[%s16836_s20 + $0x1e8] sm:$0xff]   ;;  %v7909_v30 = vrot.slane %v16051_v22, %v15147_v32  ;;  %v7921_v53 = vrot.slane %v16051_v22, %v15156_v57 }
 0xb86   : > { %v8154_v47 = vadd.f32 %v8098_v23, %v8010_v40  ;;  %v12203_v44 = vld [vmem:[%s16836_s20 + $0x128] sm:$0xff]   ;;  %v8159_v23 = vmax.f32 %v8155_v20, 0.0 }
 0xb87   : > { %v12204_v40 = vld [vmem:[%s16836_s20 + $0x1a8] sm:$0xff]  }
 0xb88   : > { %v8158_v18 = vmax.f32 %v8154_v47, 0.0  ;;  %v12205_v47 = vld [vmem:[%s16836_s20 + $0x170] sm:$0xff]   ;;  %v12233_v2 = vld [vmem:[%s16836_s20 + $0x268] sm:$0xff]  }
 0xb8a   : > { %v8173_v62 = vrot.slane %v8158_v18, %v15456_v9  ;;  %v8166_v54 = vcombine.high %v8158_v18, %v8158_v18  ;;  %v8190_v18 = vrot.slane %v8159_v23, %v15456_v9 }
 0xb8c   : > { %v8181_v13 = vcombine.high %v8173_v62, %v8173_v62  ;;  %v8180_v6 = vrot.slane %v8166_v54, %v15456_v9  ;;  %v8250_v58 = vpack.c.bf16 %v8173_v62, %v8173_v62  ;;  %v8183_v62 = vcombine.high %v8159_v23, %v8159_v23  ;;  %v12206_v54 = vld [vmem:[%s16836_s20 + $0x1f0] sm:$0xff]  }
 0xb8e   : > { %v8251_v36 = vpack.c.bf16 %v8181_v13, %v8181_v13  ;;  %v8182_v46 = vcombine.high %v8180_v6, %v8180_v6  ;;  %v8252_v0 = vpack.c.bf16 %v8180_v6, %v8180_v6  ;;  %v12207_v13 = vld [vmem:[%s16836_s20 + $0x130] sm:$0xff]   ;;  %v8198_v6 = vcombine.high %v8190_v18, %v8190_v18 }
 0xb8f   : > { %v8197_v5 = vrot.slane %v8183_v62, %v15456_v9  ;;  %v12236_v62 = vld [vmem:[%s16836_s20 + $0x2a8] sm:$0xff]  }
 0xb90   : > { %9329 = vmatprep.mubr.bf16.mxu0 %v8251_v36  ;;  %v8253_v43 = vpack.c.bf16 %v8182_v46, %v8182_v46  ;;  %v8255_v33 = vpack.c.bf16 %v8198_v6, %v8198_v6  ;;  %v12211_v36 = vld [vmem:[%s16836_s20 + $0x138] sm:$0xff]  }
 0xb91   : > { %9330 = vmatmul.mubr.bf16.vlgmr.msra.gmra.mrb[0].mxu0 %v8250_v58  ;;  %v12208_v58 = vld [vmem:[%s16836_s20 + $0x1b0] sm:$0xff]   ;;  %v8199_v14 = vcombine.high %v8197_v5, %v8197_v5  ;;  %v8256_v38 = vpack.c.bf16 %v8197_v5, %v8197_v5 }
 0xb92   : > { %9369 = vmatprep.mubr.bf16.mxu1 %v8253_v43  ;;  %10838 = vmatpush3.bf16.msra.mxu0 %v12183_v60  ;;  %v12209_v60 = vld [vmem:[%s16836_s20 + $0x178] sm:$0xff]   ;;  %v12217_v43 = vld [vmem:[%s16836_s20 + $0x248] sm:$0xff]   ;;  %v12239_v5 = vld [vmem:[%s16836_s20 + $0x230] sm:$0xff]  }
 0xb93   : > { %9370 = vmatmul.mubr.bf16.vlgmr.msra.gmra.mrb[0].mxu1 %v8252_v0  ;;  %10839 = vmatprep.subr.bf16.mxu0 %v12185_v7  ;;  %v8257_v46 = vpack.c.bf16 %v8199_v14, %v8199_v14  ;;  %v12214_v0 = vld [vmem:[%s16836_s20 + $0x2c0] sm:$0xff]   ;;  %v8254_v7 = vpack.c.bf16 %v8190_v18, %v8190_v18  ;;  %v12242_v14 = vld [vmem:[%s16836_s20 + $0x2f8] sm:$0xff]  }
 0xb94   : > { %10860 = vmatpush3.bf16.msra.mxu1 %v12184_v55  ;;  %9409 = vmatprep.mubr.bf16.mxu0 %v8255_v33  ;;  %v12212_v55 = vld [vmem:[%s16836_s20 + $0x1b8] sm:$0xff]   ;;  %v12240_v33 = vld [vmem:[%s16836_s20 + $0x2b0] sm:$0xff]  }
 0xb95   : > { %10861 = vmatprep.subr.bf16.mxu1 %v12186_v48  ;;  %9449 = vmatprep.mubr.bf16.mxu1 %v8257_v46  ;;  %v12218_v48 = vld [vmem:[%s16836_s20 + $0x2c8] sm:$0xff]  }
 0xb96   : > { %10840 = vmatpush3.bf16.msra.mxu0 %v12187_v29  ;;  %v12219_v29 = vld [vmem:[%s16836_s20 + $0x208] sm:$0xff]  }
 0xb97   : > { %10841 = vmatprep.subr.bf16.mxu0 %v12189_v3  ;;  %v12223_v3 = vld [vmem:[%s16836_s20 + $0x210] sm:$0xff]  }
 0xb98   : > { %10862 = vmatpush3.bf16.msra.mxu1 %v12188_v27  ;;  %v12222_v27 = vld [vmem:[%s16836_s20 + $0x2d0] sm:$0xff]  }
 0xb99   : > { %10863 = vmatprep.subr.bf16.mxu1 %v12190_v50  ;;  %v12226_v50 = vld [vmem:[%s16836_s20 + $0x2d8] sm:$0xff]  }
 0xb9a   : > { %10842 = vmatpush3.bf16.msra.mxu0 %v12191_v19  ;;  %v12227_v19 = vld [vmem:[%s16836_s20 + $0x218] sm:$0xff]  }
 0xb9b   : > { %10843 = vmatprep.subr.bf16.mxu0 %v12193_v34  ;;  %v12231_v34 = vld [vmem:[%s16836_s20 + $0x220] sm:$0xff]  }
 0xb9c   : > { %10864 = vmatpush3.bf16.msra.mxu1 %v12192_v8  ;;  %v12230_v8 = vld [vmem:[%s16836_s20 + $0x2e0] sm:$0xff]  }
 0xb9d   : > { %10865 = vmatprep.subr.bf16.mxu1 %v12194_v25  ;;  %v7913_v25 = vrot.slane %v16051_v22, %v15153_v26 }
 0xb9e   : > { %10844 = vmatpush3.bf16.msra.mxu0 %v12195_v41  ;;  %v7917_v41 = vrot.slane %v16051_v22, %v15213_v35 }
 0xb9f   : > { %10845 = vmatprep.subr.bf16.mxu0 %v12197_v37  ;;  %v12232_v37 = vld [vmem:[%s16836_s20 + $0x2a0] sm:$0xff]  }
 0xba0   : > { %10866 = vmatpush3.bf16.msra.mxu1 %v12196_v52  ;;  %v16061_v52 = vld [vmem:[#allocation13 + $0x8] sm:$0xff] }
 0xba1   : > { %10867 = vmatprep.subr.bf16.mxu1 %v12198_v61  ;;  %v8053_v61 = vrot.slane %v16061_v52, %v15147_v32  ;;  %v8057_v39 = vrot.slane %v16061_v52, %v15153_v26  ;;  %v8061_v4 = vrot.slane %v16061_v52, %v15213_v35  ;;  %v12234_v32 = vld [vmem:[%s16836_s20 + $0x2e8] sm:$0xff]  }
 0xba2   : > { %10846 = vmatpush3.bf16.msra.mxu0 %v12199_v63  ;;  %v8065_v63 = vrot.slane %v16061_v52, %v15156_v57  ;;  %v12235_v35 = vld [vmem:[%s16836_s20 + $0x228] sm:$0xff]  }
 0xba3   : > { %10847 = vmatprep.subr.bf16.mxu0 %v12201_v24  ;;  %v7973_v24 = vcombine.low %v7917_v41, %v7921_v53  ;;  %v8116_v20 = vcombine.low %v8053_v61, %v8057_v39  ;;  %v12252_v41 = vld [vmem:[%s16836_s20 + $0x388] sm:$0xff]   ;;  %v12254_v53 = vld [vmem:[%s16836_s20 + $0x3d0] sm:$0xff]   ;;  %v12257_v39 = vld [vmem:[%s16836_s20 + $0x358] sm:$0xff]  }
 0xba4   : > { %10868 = vmatpush3.bf16.msra.mxu1 %v12200_v11  ;;  %v7972_v11 = vcombine.low %v7909_v30, %v7913_v25  ;;  %v8117_v26 = vcombine.low %v8061_v4, %v8065_v63  ;;  %v12255_v61 = vld [vmem:[%s16836_s20 + $0x310] sm:$0xff]  }
 0xba5   : > { %10869 = vmatprep.subr.bf16.mxu1 %v12202_v59  ;;  %v7987_v59 = vrot.slane %v7973_v24, %v15456_v9  ;;  %v8124_v23 = vrot.slane %v8116_v20, %v15456_v9  ;;  %v12261_v20 = vld [vmem:[%s16836_s20 + $0x360] sm:$0xff]  }
 0xba6   : > { %10848 = vmatpush3.bf16.msra.mxu0 %v12203_v44  ;;  %v7980_v57 = vrot.slane %v7972_v11, %v15456_v9  ;;  %v7868_v44 = vld [vmem:[#allocation3 + $0x10] sm:$0xff] }
 0xba7   : > { %10849 = vmatprep.subr.bf16.mxu0 %v12205_v47  ;;  %v12237_v47 = vld [vmem:[%s16836_s20 + $0x270] sm:$0xff]   ;;  %v12258_v11 = vld [vmem:[%s16836_s20 + $0x3d8] sm:$0xff]  }
 0xba8   : > { %10870 = vmatpush3.bf16.msra.mxu1 %v12204_v40  ;;  %v8131_v40 = vrot.slane %v8117_v26, %v15456_v9  ;;  %v7988_v18 = vcombine.low %v7980_v57, %v7987_v59  ;;  %v7869_v57 = vld [vmem:[#allocation3 + $0x18] sm:$0xff] }
 0xba9   : > { %10871 = vmatprep.subr.bf16.mxu1 %v12206_v54  ;;  %v12262_v59 = vld [vmem:[%s16836_s20 + $0x3e0] sm:$0xff]  }
 0xbaa   : > { %10850 = vmatpush3.bf16.msra.mxu0 %v12207_v13  ;;  %v8132_v54 = vcombine.low %v8124_v23, %v8131_v40  ;;  %v12238_v13 = vld [vmem:[%s16836_s20 + $0x2f0] sm:$0xff]   ;;  %v8012_v6 = vmul.f32 %v7988_v18, %v7868_v44  ;;  %v12263_v23 = vld [vmem:[%s16836_s20 + $0x320] sm:$0xff]   ;;  %v12265_v40 = vld [vmem:[%s16836_s20 + $0x368] sm:$0xff]  }
 0xbab   : > { %10851 = vmatprep.subr.bf16.mxu0 %v12209_v60  ;;  %v12264_v18 = vld [vmem:[%s16836_s20 + $0x3a0] sm:$0xff]  }
 0xbac   : > { %10872 = vmatpush3.bf16.msra.mxu1 %v12208_v58  ;;  %v12241_v58 = vld [vmem:[%s16836_s20 + $0x278] sm:$0xff]   ;;  %v8156_v60 = vadd.f32 %v8132_v54, %v8012_v6  ;;  %v12269_v6 = vld [vmem:[%s16836_s20 + $0x370] sm:$0xff]  }
 0xbad   : > { %10873 = vmatprep.subr.bf16.mxu1 %v12210_v51 }
 0xbae   : > { %10852 = vmatpush3.bf16.msra.mxu0 %v12211_v36  ;;  %v8160_v51 = vmax.f32 %v8156_v60, 0.0  ;;  %v12243_v36 = vld [vmem:[%s16836_s20 + $0x238] sm:$0xff]   ;;  %v12268_v60 = vld [vmem:[%s16836_s20 + $0x3a8] sm:$0xff]  }
 0xbaf   : > { %10881 = vmatprep.subr.bf16.mxu0 %v12213_v28  ;;  %v12245_v28 = vld [vmem:[%s16836_s20 + $0x340] sm:$0xff]  }
 0xbb0   : > { %10874 = vmatpush3.bf16.msra.mxu1 %v12212_v55  ;;  %v8207_v46 = vrot.slane %v8160_v51, %v15456_v9  ;;  %v8200_v55 = vcombine.high %v8160_v51, %v8160_v51 }
 0xbb1   : > { %9410 = vmatmul.mubr.bf16.vlgmr.msra.gmra.mrb[4].mxu0 %v8254_v7  ;;  %10903 = vmatprep.subr.bf16.mxu1 %v12214_v0  ;;  %v12244_v0 = vld [vmem:[%s16836_s20 + $0x2b8] sm:$0xff]  }
 0xbb2   : > { %10882 = vmatpush3.bf16.msra.mxu0 %v12215_v42  ;;  %v8215_v7 = vcombine.high %v8207_v46, %v8207_v46  ;;  %v8214_v42 = vrot.slane %v8200_v55, %v15456_v9 }
 0xbb3   : > { %9450 = vmatmul.mubr.bf16.vlgmr.msra.gmra.mrb[4].mxu1 %v8256_v38  ;;  %10883 = vmatprep.subr.bf16.mxu0 %v12217_v43  ;;  %v7925_v38 = vrot.slane %v16051_v22, %v15265_v10  ;;  %v8258_v43 = vpack.c.bf16 %v8207_v46, %v8207_v46  ;;  %v12273_v46 = vld [vmem:[%s16836_s20 + $0x378] sm:$0xff]  }
 0xbb4   : > { %10904 = vmatpush3.bf16.msra.mxu1 %v12216_v45  ;;  %v12246_v45 = vld [vmem:[%s16836_s20 + $0x3c0] sm:$0xff]  }
 0xbb5   : > { %10905 = vmatprep.subr.bf16.mxu1 %v12218_v48  ;;  %v7929_v48 = vrot.slane %v16051_v22, %v15218_v16 }
 0xbb6   : > { %10884 = vmatpush3.bf16.msra.mxu0 %v12219_v29  ;;  %v7933_v29 = vrot.slane %v16051_v22, %v15317_v31 }
 0xbb7   : > { %10885 = vmatprep.subr.bf16.mxu0 %v12221_v17  ;;  %v8259_v17 = vpack.c.bf16 %v8215_v7, %v8215_v7 }
 0xbb8   : > { %10906 = vmatpush3.bf16.msra.mxu1 %v12220_v56  ;;  %v7937_v56 = vrot.slane %v16051_v22, %v15270_v21  ;;  %v7989_v22 = vcombine.low %v7925_v38, %v7929_v48  ;;  %v9618_v48 = vld [vmem:[%s16837_s27] sm:$0xff] }
 0xbb9   : > { %10907 = vmatprep.subr.bf16.mxu1 %v12222_v27  ;;  %v8216_v27 = vcombine.high %v8214_v42, %v8214_v42  ;;  %9489 = vmatprep.mubr.bf16.mxu0 %v8259_v17 }
 0xbba   : > { %10886 = vmatpush3.bf16.msra.mxu0 %v12223_v3  ;;  %v12247_v3 = vld [vmem:[%s16836_s20 + $0x300] sm:$0xff]  }
 0xbbb   : > { %10887 = vmatprep.subr.bf16.mxu0 %v12225_v15  ;;  %v8260_v15 = vpack.c.bf16 %v8214_v42, %v8214_v42  ;;  %v12275_v42 = vld [vmem:[%s16836_s20 + $0x338] sm:$0xff]  }
 0xbbc   : > { %10908 = vmatpush3.bf16.msra.mxu1 %v12224_v12  ;;  %v8069_v12 = vrot.slane %v16061_v52, %v15265_v10  ;;  %v12248_v10 = vld [vmem:[%s16836_s20 + $0x380] sm:$0xff]  }
 0xbbd   : > { %10909 = vmatprep.subr.bf16.mxu1 %v12226_v50  ;;  %v12249_v50 = vld [vmem:[%s16836_s20 + $0x348] sm:$0xff]  }
 0xbbe   : > { %10888 = vmatpush3.bf16.msra.mxu0 %v12227_v19  ;;  %v8073_v19 = vrot.slane %v16061_v52, %v15218_v16  ;;  %v7990_v16 = vcombine.low %v7933_v29, %v7937_v56  ;;  %v9619_v29 = vld [vmem:[%s16837_s27 + $0x8] sm:$0xff]  ;;  %v12645_v56 = vmov 0.0|0.0  }
 0xbbf   : > { %10889 = vmatprep.subr.bf16.mxu0 %v12229_v1  ;;  %v8081_v1 = vrot.slane %v16061_v52, %v15270_v21  ;;  %v12251_v21 = vld [vmem:[%s16836_s20 + $0x308] sm:$0xff]   ;;  %v11525_v17 = vpack.c.bf16 %v9619_v29, %v9618_v48 }
 0xbc0   : > { %10910 = vmatpush3.bf16.msra.mxu1 %v12228_v49  ;;  %v8077_v49 = vrot.slane %v16061_v52, %v15317_v31  ;;  %v12253_v31 = vld [vmem:[%s16836_s20 + $0x350] sm:$0xff]   ;;  %v8133_v30 = vcombine.low %v8069_v12, %v8073_v19  ;;  %v7997_v52 = vrot.slane %v7989_v22, %v15456_v9 }
 0xbc1   : > { %10911 = vmatprep.subr.bf16.mxu1 %v12230_v8  ;;  %v8261_v8 = vpack.c.bf16 %v8216_v27, %v8216_v27  ;;  %v9620_v27 = vld [vmem:[%s16837_s27 + $0x10] sm:$0xff] }
 0xbc2   : > { %10890 = vmatpush3.bf16.msra.mxu0 %v12231_v34  ;;  %v12250_v34 = vld [vmem:[%s16836_s20 + $0x3c8] sm:$0xff]   ;;  %v8134_v25 = vcombine.low %v8077_v49, %v8081_v1  ;;  %v8141_v4 = vrot.slane %v8133_v30, %v15456_v9  ;;  %v9624_v49 = vld [vmem:[%s16837_s27 + $0x30] sm:$0x3]  ;;  %v12646_v1 = vmov 0.0  }
 0xbc3   : > { %10891 = vmatprep.subr.bf16.mxu0 %v12233_v2  ;;  %9529 = vmatprep.mubr.bf16.mxu1 %v8261_v8  ;;  %v12256_v2 = vld [vmem:[%s16836_s20 + $0x390] sm:$0xff]  }
 0xbc4   : > { %10912 = vmatpush3.bf16.msra.mxu1 %v12232_v37  ;;  %v8004_v37 = vrot.slane %v7990_v16, %v15456_v9  ;;  %v8148_v63 = vrot.slane %v8134_v25, %v15456_v9 }
 0xbc5   : > { %10913 = vmatprep.subr.bf16.mxu1 %v12234_v32  ;;  %v12259_v32 = vld [vmem:[%s16836_s20 + $0x318] sm:$0xff]  }
 0xbc6   : > { %10892 = vmatpush3.bf16.msra.mxu0 %v12235_v35  ;;  %v8005_v24 = vcombine.low %v7997_v52, %v8004_v37  ;;  %v8149_v26 = vcombine.low %v8141_v4, %v8148_v63  ;;  %v12260_v35 = vld [vmem:[%s16836_s20 + $0x398] sm:$0xff]  }
 0xbc7   : > { %10893 = vmatprep.subr.bf16.mxu0 %v12237_v47 }
 0xbc8   : > { %10914 = vmatpush3.bf16.msra.mxu1 %v12236_v62  ;;  %v8013_v44 = vmul.f32 %v8005_v24, %v7869_v57  ;;  %v12266_v62 = vld [vmem:[%s16836_s20 + $0x3e8] sm:$0xff]  }
 0xbc9   : > { %10915 = vmatprep.subr.bf16.mxu1 %v12238_v13  ;;  %v12267_v13 = vld [vmem:[%s16836_s20 + $0x328] sm:$0xff]  }
 0xbca   : > { %10894 = vmatpush3.bf16.msra.mxu0 %v12239_v5  ;;  %v8157_v47 = vadd.f32 %v8149_v26, %v8013_v44 }
 0xbcb   : > { %10895 = vmatprep.subr.bf16.mxu0 %v12241_v58 }
 0xbcc   : > { %10916 = vmatpush3.bf16.msra.mxu1 %v12240_v33  ;;  %v8161_v54 = vmax.f32 %v8157_v47, 0.0  ;;  %v12270_v33 = vld [vmem:[%s16836_s20 + $0x3f0] sm:$0xff]  }
 0xbcd   : > { %10917 = vmatprep.subr.bf16.mxu1 %v12242_v14 }
 0xbce   : > { %10896 = vmatpush3.bf16.msra.mxu0 %v12243_v36  ;;  %v8224_v5 = vrot.slane %v8161_v54, %v15456_v9  ;;  %v8217_v58 = vcombine.high %v8161_v54, %v8161_v54  ;;  %v12271_v36 = vld [vmem:[%s16836_s20 + $0x330] sm:$0xff]  }
 0xbcf   : > { %10925 = vmatprep.subr.bf16.mxu0 %v12245_v28 }
 0xbd0   : > { %10918 = vmatpush3.bf16.msra.mxu1 %v12244_v0  ;;  %v8232_v14 = vcombine.high %v8224_v5, %v8224_v5  ;;  %v8231_v51 = vrot.slane %v8217_v58, %v15456_v9  ;;  %v12272_v0 = vld [vmem:[%s16836_s20 + $0x3b0] sm:$0xff]   ;;  %v12274_v9 = vld [vmem:[%s16836_s20 + $0x3f8] sm:$0xff]   ;;  %v8262_v38 = vpack.c.bf16 %v8224_v5, %v8224_v5 }
 0xbd1   : > { %10947 = vmatprep.subr.bf16.mxu1 %v12246_v45  ;;  %9490 = vmatmul.mubr.bf16.vlgmr.msra.gmra.mrb[8].mxu0 %v8258_v43  ;;  %v12276_v45 = vld [vmem:[%s16836_s20 + $0x3b8] sm:$0xff]  }
 0xbd2   : > { %10926 = vmatpush3.bf16.msra.mxu0 %v12247_v3  ;;  %v8263_v55 = vpack.c.bf16 %v8232_v14, %v8232_v14  ;;  %v8233_v28 = vcombine.high %v8231_v51, %v8231_v51  ;;  %v8264_v43 = vpack.c.bf16 %v8231_v51, %v8231_v51  ;;  %v9621_v3 = vld [vmem:[%s16837_s27 + $0x18] sm:$0xff] }
 0xbd3   : > { %9530 = vmatmul.mubr.bf16.vlgmr.msra.gmra.mrb[8].mxu1 %v8260_v15  ;;  %10927 = vmatprep.subr.bf16.mxu0 %v12249_v50  ;;  %v11528_v12 = vpack.c.bf16 %v9621_v3, %v9620_v27  ;;  %v9622_v15 = vld [vmem:[%s16837_s27 + $0x20] sm:$0xff]  ;;  %v9623_v50 = vld [vmem:[%s16837_s27 + $0x28] sm:$0xff] }
 0xbd4   : > { %10948 = vmatpush3.bf16.msra.mxu1 %v12248_v10  ;;  %9569 = vmatprep.mubr.bf16.mxu0 %v8263_v55  ;;  %v8265_v7 = vpack.c.bf16 %v8233_v28, %v8233_v28  ;;  %v11531_v19 = vpack.c.bf16 %v9623_v50, %v9622_v15  ;;  %v10257_v10 = vld [vmem:[#allocation15] ss:$0 sm:$0xff] }
 0xbd5   : > { %10949 = vmatprep.subr.bf16.mxu1 %v12250_v34 }
 0xbd6   : > { %10928 = vmatpush3.bf16.msra.mxu0 %v12251_v21  ;;  %9609 = vmatprep.mubr.bf16.mxu1 %v8265_v7 }
 0xbd7   : > { %10929 = vmatprep.subr.bf16.mxu0 %v12253_v31 }
 0xbd8   : > { %10950 = vmatpush3.bf16.msra.mxu1 %v12252_v41 }
 0xbd9   : > { %10951 = vmatprep.subr.bf16.mxu1 %v12254_v53 }
 0xbda   : > { %10930 = vmatpush3.bf16.msra.mxu0 %v12255_v61 }
 0xbdb   : > { %10931 = vmatprep.subr.bf16.mxu0 %v12257_v39 }
 0xbdc   : > { %10952 = vmatpush3.bf16.msra.mxu1 %v12256_v2 }
 0xbdd   : > { %10953 = vmatprep.subr.bf16.mxu1 %v12258_v11 }
 0xbde   : > { %10932 = vmatpush3.bf16.msra.mxu0 %v12259_v32 }
 0xbdf   : > { %10933 = vmatprep.subr.bf16.mxu0 %v12261_v20 }
 0xbe0   : > { %10954 = vmatpush3.bf16.msra.mxu1 %v12260_v35 }
 0xbe1   : > { %10955 = vmatprep.subr.bf16.mxu1 %v12262_v59 }
 0xbe2   : > { %10934 = vmatpush3.bf16.msra.mxu0 %v12263_v23 }
 0xbe3   : > { %10935 = vmatprep.subr.bf16.mxu0 %v12265_v40 }
 0xbe4   : > { %10956 = vmatpush3.bf16.msra.mxu1 %v12264_v18 }
 0xbe5   : > { %10957 = vmatprep.subr.bf16.mxu1 %v12266_v62 }
 0xbe6   : > { %10936 = vmatpush3.bf16.msra.mxu0 %v12267_v13 }
 0xbe7   : > { %10937 = vmatprep.subr.bf16.mxu0 %v12269_v6 }
 0xbe8   : > { %10958 = vmatpush3.bf16.msra.mxu1 %v12268_v60 }
 0xbe9   : > { %10959 = vmatprep.subr.bf16.mxu1 %v12270_v33 }
 0xbea   : > { %10938 = vmatpush3.bf16.msra.mxu0 %v12271_v36 }
 0xbeb   : > { %10939 = vmatprep.subr.bf16.mxu0 %v12273_v46 }
 0xbec   : > { %10960 = vmatpush3.bf16.msra.mxu1 %v12272_v0 }
 0xbed   : > { %10961 = vmatprep.subr.bf16.mxu1 %v12274_v9 }
 0xbee   : > { %10940 = vmatpush3.bf16.msra.mxu0 %v12275_v42 }
 0xbef   : > { %11524 = vmatprep.subr.bf16.mxu0 %v12645_v56 }
 0xbf0   : > { %10962 = vmatpush3.bf16.msra.mxu1 %v12276_v45 }
 0xbf1   : > { %9570 = vmatmul.mubr.bf16.vlgmr.msra.gmra.mrb[12].mxu0 %v8262_v38  ;;  %v10386_v38 = vld [vmem:[#allocation16] ss:$0 sm:$0xff] }
 0xbf2   : > { %11526 = vmatpush3.bf16.msra.mxu0 %v11525_v17  ;;  %11303 = vmatprep.mubr.msk.f32.mxu0 %vm12647_vm10, %v12646_v1 }
 0xbf3   : > { %9610 = vmatmul.mubr.bf16.vlgmr.msra.gmra.mrb[12].mxu1 %v8264_v43  ;;  %11527 = vmatprep.subr.bf16.mxu0 %v12645_v56 }
 0xbf6   : > { %11529 = vmatpush3.bf16.msra.mxu0 %v11528_v12 }
 0xbf7   : > { %11530 = vmatprep.subr.bf16.mxu0 %v12645_v56 }
 0xbfa   : > { %11532 = vmatpush3.bf16.msra.mxu0 %v11531_v19 }
 0xbfb   : > { %11301 = vmatprep.subr.mxu0 %v12646_v1 }
 0xbfe   : > { %11302 = vmatpush3.msk.msra.mxu0 %vm9636_vm9, %v9624_v49 }
 0xc64   : > { %v10809_v8 = vpop.f32.mrb[0].mxu0 }
 0xc65   : > { %v10810_v34 = vpop.f32.mrb[1].mxu0 }
 0xc66   : > { %v10831_v22 = vpop.f32.mrb[0].mxu1  ;;  %v10811_v16 = vadd.f32 %v10810_v34, %v10809_v8  ;;  %v10812_v21 = vpop.f32.mrb[2].mxu0 }
 0xc67   : > { %v10832_v31 = vpop.f32.mrb[1].mxu1  ;;  %v10813_v30 = vpop.f32.mrb[3].mxu0 }
 0xc68   : > { %v9332_v25 = vadd.f32 %v10811_v16, %v10257_v10  ;;  %v10833_v41 = vadd.f32 %v10832_v31, %v10831_v22  ;;  %v10834_v53 = vpop.f32.mrb[2].mxu1 }
 0xc69   : > { %v10835_v52 = vpop.f32.mrb[3].mxu1 }
 0xc6a   : > { %v9372_v37 = vadd.f32 %v10833_v41, %v9332_v25 }
 0xc84   : > { %v10853_v61 = vpop.f32.mrb[4].mxu0 }
 0xc85   : > { %v10854_v39 = vpop.f32.mrb[5].mxu0 }
 0xc86   : > { %v10875_v4 = vpop.f32.mrb[4].mxu1  ;;  %v10855_v63 = vadd.f32 %v10854_v39, %v10853_v61  ;;  %v10856_v2 = vpop.f32.mrb[6].mxu0 }
 0xc87   : > { %v10876_v11 = vpop.f32.mrb[5].mxu1  ;;  %v10857_v24 = vpop.f32.mrb[7].mxu0 }
 0xc88   : > { %v9412_v32 = vadd.f32 %v10855_v63, %v9372_v37  ;;  %v10877_v20 = vadd.f32 %v10876_v11, %v10875_v4  ;;  %v10878_v26 = vpop.f32.mrb[6].mxu1 }
 0xc89   : > { %v10879_v35 = vpop.f32.mrb[7].mxu1 }
 0xc8a   : > { %v9452_v57 = vadd.f32 %v10877_v20, %v9412_v32 }
 0xca4   : > { %v10897_v59 = vpop.f32.mrb[8].mxu0 }
 0xca5   : > { %v10898_v44 = vpop.f32.mrb[9].mxu0 }
 0xca6   : > { %v10919_v23 = vpop.f32.mrb[8].mxu1  ;;  %v10899_v40 = vadd.f32 %v10898_v44, %v10897_v59  ;;  %v10900_v47 = vpop.f32.mrb[10].mxu0 }
 0xca7   : > { %v10920_v18 = vpop.f32.mrb[9].mxu1  ;;  %v10901_v62 = vpop.f32.mrb[11].mxu0 }
 0xca8   : > { %v9492_v54 = vadd.f32 %v10899_v40, %v9452_v57  ;;  %v10921_v13 = vadd.f32 %v10920_v18, %v10919_v23  ;;  %v10922_v6 = vpop.f32.mrb[10].mxu1 }
 0xca9   : > { %v10923_v5 = vpop.f32.mrb[11].mxu1 }
 0xcaa   : > { %v9532_v58 = vadd.f32 %v10921_v13, %v9492_v54 }
 0xcc4   : > { %v10941_v60 = vpop.f32.mrb[12].mxu0 }
 0xcc5   : > { %v10942_v33 = vpop.f32.mrb[13].mxu0 }
 0xcc6   : > { %v10963_v14 = vpop.f32.mrb[12].mxu1  ;;  %v10943_v51 = vadd.f32 %v10942_v33, %v10941_v60  ;;  %v10944_v36 = vpop.f32.mrb[14].mxu0 }
 0xcc7   : > { %v10964_v46 = vpop.f32.mrb[13].mxu1  ;;  %v10945_v55 = vpop.f32.mrb[15].mxu0 }
 0xcc8   : > { %v9572_v28 = vadd.f32 %v10943_v51, %v9532_v58  ;;  %v10965_v0 = vadd.f32 %v10964_v46, %v10963_v14  ;;  %v10966_v9 = vpop.f32.mrb[14].mxu1 }
 0xcc9   : > { %v10967_v7 = vpop.f32.mrb[15].mxu1 }
 0xcca   : > { %v9612_v42 = vadd.f32 %v10965_v0, %v9572_v28 }
 0xccc   : > { %v9617_v45 = vmax.f32 %v9612_v42, 0.0 }
 0xcce   : > { %11304 = vmatmul.mubr.msk.f32.vlgmr.msra.gmra.mrb[16].mxu0 %vm9632_vm11, %v9617_v45 }
 0xda1   : > { %v9706_v43 = vpop.f32.mrb[16].mxu0 }
 0xda2   : > { %v9707_v48 = vadd.f32 %v10386_v38, %v9706_v43  ;;  %v11305_v29 = vpop.f32.mrb[17].mxu0 }
 0xda4   : > { %v9713_v56 = vand.u32 2147483647, %v9707_v48  ;;  %v9710_v10 = vmax.f32 %v9707_v48, 0.0  ;;  %vm9711_vm14 = vcmp.ne.f32.partialorder %v9707_v48, %v9707_v48 }
 0xda6   : > { %v9714_v17 = vsub.f32 0.0, %v9713_v56 }
 0xda8   : > { %v9715_v27 = vmul.f32 1.442695, %v9714_v17 }
 0xdaa   : > { %12277 = vpow2.f32 %v9715_v27 }
 0xdb4   : > { %v12278_v3 = vpop.eup %12277 }
 0xdb5   : > { %v9717_v12 = vadd.f32 1.0, %v12278_v3  ;;  %v9720_v15 = vmul.f32 -0.5, %v12278_v3  ;;  %v9723_v19 = vand.u32 2147483647, %v12278_v3 }
 0xdb7   : > { %12279 = vlog2.f32 %v9717_v12  ;;  %v9721_v50 = vadd.f32 1.0, %v9720_v15  ;;  %vm9724_vm12 = vcmp.lt.f32.partialorder %v9723_v19, 0.0004427343 }
 0xdb9   : > { %v9722_v8 = vmul.f32 %v12278_v3, %v9721_v50 }
 0xdc1   : > { %v12280_v49 = vpop.eup %12279 }
 0xdc2   : > { %v9719_v1 = vmul.f32 0.6931472, %v12280_v49 }
 0xdc4   : > { %v9725_v34 = vsel %vm9724_vm12, %v9722_v8, %v9719_v1 }
 0xdc5   : > { %v9726_v22 = vadd.f32 %v9725_v34, %v9710_v10 }
 0xdc7   : > { %v9727_v16 = vsel %vm9711_vm14, %v9707_v48, %v9726_v22 }
 0xdc8   : > { %9729 = vst.msk [vmem:[#allocation18] sm:$0x3] %vm9728_vm13, %v9727_v16 }
 0xdc9 PF: > { %s16838_s26 = sld [smem:[#allocation28_spill]]  ;;  %s12648_s19 = smov [#allocation18]  }
 0xdca   : > { %s9737_s4 = sshll.u32 %s12648_s19, 4  ;;  %s9738_s4 = int_to_ptr.vmem [resolvable:$true] %s9737_s4 }
 0xdcb   : > { %s12539_s14 = scalar_lea.vmem %s9738_s4, 32  ;;  %p12546_p5 = scmp.lt.s32.totalorder %s9738_s4, %s9738_s4 }
 0xdcc   : > { %p12540_p12 = scmp.ne.s32.totalorder %s9738_s4, %s12539_s14  ;;  %p12547_p3 = scmp.lt.s32.totalorder %s12539_s14, %s12539_s14 }
 0xdce   : > { %p12548_p4 = por %p12547_p3, %p12546_p5 }
 0xdcf   : > { %p11709_p11 = scmp.eq.s32.totalorder %s16838_s26, 1 }
 0xdd1   : > { %p12541_p9 = pnand %p12540_p12, %p11709_p11 }
 0xdd3   : > { %p12542_p0 = pneg %p12541_p9 }
 0xdd5   : > { %p12549_p2 = pnand %p12548_p4, %p12542_p0 }
 0xdd7   : > { %12552 = shalt.err (!%p12549_p2)
}
 0xdd8   : > { %s16839_s1 = sld [smem:[#allocation178_spill]] }
 0xdde   : > { %s12553_s18 = scalar_lea.hbm %s16839_s1, 32 }
 0xddf   : > { %p12554_p13 = scmp.ne.s32.totalorder %s16839_s1, %s12553_s18  ;;  %p12559_p1 = scmp.lt.u32.totalorder %s12553_s18, %s16839_s1 }
 0xde1   : > { %p12555_p7 = pnand %p12554_p13, %p11709_p11 }
 0xde3   : > { %p12556_p6 = pneg %p12555_p7 }
 0xde5   : > { %p12561_p8 = pnand %p12559_p1, %p12556_p6 }
 0xde7   : > { %12564 = shalt.err (!%p12561_p8)
}
 0xde8   : > { %11664 = dma.vmem_to_hbm [thread:$0]  (%p11709_p11), %s9738_s4, 32, %s16839_s1, [#allocation6]  }
 0xde9   : > { %12606 = dma.done.wait (%p11709_p11), [#allocation6], 32  }
 0xdea   : > { %12608 = vsyncadd (%p11709_p11), [#allocation6], 4294967264 }
 0xdeb PF: > { %s16840_s16 = sld [smem:[#allocation29_spill]]  ;;  %s16841_s29 = sld [smem:[#allocation26_spill]] }
 0xdec   : > { %s16842_s30 = sld [smem:[#allocation27_spill]]  ;;  %s16843_s15 = sld [smem:[#allocation30_spill]] }
 0xdf1   : > { %p26_p10 = scmp.ge.s32.totalorder %s16840_s16, 4  }
 0xdf3   :  { %28 = sbr.rel (!%p26_p10) target bundleno = 15 (0xf), region = 166 }
 0xdfa   :  { %9750 = vsyncpa [#allocation5], 1 }
 0xdfb   :  { %9752 = vsyncpa [#allocation5 + $0x1], 1 }
 0xdfc   :  { %9753 = vsyncpa [#allocation8], 1 }
 0xdfd   :  { %9754 = vsyncpa [#allocation14], 1 }
 0xdfe   :  { %9755 = vsyncpa [#allocation17], 1 }
 0xdff   :  { %9756 = vsyncpa [#allocation6], 1 }
 0xe00   :  { %9758 = vsyncpa [#allocation6 + $0x1], 1 }

</bundles_post_ra>
